<compile_context>
chip_gen: v6e
topology: v6e:2x2x1
jax: 0.10.0
libtpu: 0.0.40
codegen_flags: <defaults>
</compile_context>

<pallas_src>
import math

import jax
import jax.numpy as jnp
from jax import lax
from jax.experimental import pallas as pl
from jax.experimental.pallas import tpu as pltpu


_VMEM = pl.BlockSpec(memory_space=pltpu.MemorySpace.VMEM)
_SMEM = pl.BlockSpec(memory_space=pltpu.MemorySpace.SMEM)


# ============================================================================
# Fused kernel: encoder cell call + full decoder rollout + prediction linear
# ============================================================================
def _rollout_kernel(i_ref, x_ref, st_ref, dtw_ref, td_ref,
                    base_nm_ref, base_m_ref,
                    wx1_ref, wh1_ref, b1_ref,
                    wx2_ref, wh2_ref, b2_ref,
                    selr_ref, selu_ref, cl_ref, ch_ref, even_ref,
                    lw_ref, lb_ref,
                    h_enc_ref, h_dec_ref, pred_ref,
                    x_scr, st_scr):
    """One DSTN outer iteration i:
         encoder DGCN_cell(times=i+1)  ->  h_enc
         decoder rollout j=0..T-i-2    ->  h_dec, final prediction
    Layouts (batch stacked along lanes; no in-kernel reshape/transpose):
      x_scr  : (T+1, N, B)    x_scr[t, n, b]      = input of node n, batch b
      st_scr : (T+1, N, B*H)  st_scr[t, n, b*H+h] = hidden state h of node n
      h_enc  : (N, B*H)       encoder h_new (next iteration's states[i+1])
      h_dec  : (B*N, H)       last decoder h_new, node-major per batch
      pred   : (N, B)         final prediction (wrapper transposes to (B, N))
    """
    f32 = jnp.float32
    T1, N, B = x_scr.shape
    BH = st_scr.shape[2]
    H = BH // B
    T = T1 - 1

    i = i_ref[0]
    times_enc = i + 1
    n_dec = T - 1 - i

    # Hoist every (tiny) constant into vregs once.
    dtw = dtw_ref[...]
    nz = dtw != 0.0
    td = td_ref[...]
    base_nm = base_nm_ref[...]
    base_m = base_m_ref[...]
    wx1 = wx1_ref[...]
    wh1 = wh1_ref[...]
    b1 = b1_ref[...]
    wx2 = wx2_ref[...]
    wh2 = wh2_ref[...]
    b2 = b2_ref[...]
    selr = selr_ref[...]
    selu = selu_ref[...]
    cl = cl_ref[...]
    ch = ch_ref[...]
    even = even_ref[...]
    odd = 1.0 - even
    lw = lw_ref[...]
    lb = lb_ref[...]

    # Whole working set (a few KB) copied into VMEM scratch once; every
    # per-step state update during the rollout stays in VMEM.
    x_scr[...] = x_ref[...]
    st_scr[...] = st_ref[...]

    def gate_from(sel, conc):
        # torch.chunk over the flattened (N*2H) vector, per batch block:
        # out[n, b*H+h] = conc[rowsel(n), b*2H + (n%2)*H + h]
        dup = jnp.dot(sel, conc, preferred_element_type=f32)
        return (jnp.dot(dup, cl, preferred_element_type=f32) * even
                + jnp.dot(dup, ch, preferred_element_type=f32) * odd)

    def run_cell(times):
        """One DGCN_cell.forward over the first `times` slots (both batches)."""
        g1 = jnp.zeros((N, 2 * BH), f32)
        g2 = jnp.zeros((N, BH), f32)
        # Fixed trip count T, fully unrolled; steps t >= times contribute
        # exactly zero (adj and bias masked), so results match the reference
        # dynamic-length loop bit-for-bit.
        for t in range(T):
            validf = (t < times).astype(f32)
            lastf = (t == times - 1).astype(f32)             # "multi" step
            coef = (0.5 + lastf * (1.0 / 3.0 - 0.5)) * validf
            base = (base_nm + lastf * (base_m - base_nm)) * validf
            # dtwt = where((dtw != 0) & (t+1 > times - td), dtw, 0)
            mask = nz & ((t + 1) > (times - td))
            adj = jnp.where(mask, dtw, 0.0) * coef + base

            x_t = x_scr[t]                                   # (N, B)
            h_t = st_scr[t]                                  # (N, B*H)

            # (adj @ [x|h]) @ W + bias  ==  adj @ (x*Wx + h @ Wh) + bias,
            # both batches in one matmul via block-diagonal weights.
            c1 = (jnp.dot(x_t, wx1, preferred_element_type=f32)
                  + jnp.dot(h_t, wh1, preferred_element_type=f32))
            g1 = g1 + jnp.dot(adj, c1, preferred_element_type=f32) + b1 * validf

            r = gate_from(selr, jax.nn.sigmoid(g1))          # (N, B*H)

            c2 = (jnp.dot(x_t, wx2, preferred_element_type=f32)
                  + jnp.dot(r * h_t, wh2, preferred_element_type=f32))
            g2 = g2 + jnp.dot(adj, c2, preferred_element_type=f32) + b2 * validf

        # h_new only matters after the last timestep (it never feeds back
        # inside the cell), so compute it once from the final accumulators.
        h_last = st_scr[times - 1]                           # (N, B*H)
        u = gate_from(selu, jax.nn.sigmoid(g1))
        c = jnp.tanh(g2)
        h_new = u * h_last + (1.0 - u) * c                   # (N, B*H)
        pred = jnp.dot(h_new, lw, preferred_element_type=f32) + lb   # (N, B)
        return h_new, pred

    # ---- encoder call (observed=True) --------------------------------------
    h_enc, _ = run_cell(times_enc)
    h_enc_ref[...] = h_enc
    # decoder_states = encoder_states + [encoder_state]
    st_scr[times_enc] = h_enc
    # decoder_inputs = cat(encoder_inputs, inputs[:, i, :])
    x_scr[times_enc] = x_scr[times_enc - 1]

    # ---- full decoder rollout (observed=False, dtw cached), all in VMEM ----
    def dec_body(j, h_carry):
        del h_carry
        t_dec = i + 2 + j
        h_new, pred = run_cell(t_dec)
        x_scr[t_dec] = pred          # decoder_inputs.append(prediction)
        st_scr[t_dec] = h_new        # decoder_states.append(decoder_state)
        return h_new

    h_dec = lax.fori_loop(0, n_dec, dec_body, h_enc)

    # Last decoder state in node-major (B*N, H) layout for the controller,
    # final prediction from it.
    for b in range(B):
        h_dec_ref[b * N:(b + 1) * N, :] = h_dec[:, b * H:(b + 1) * H]
    pred_ref[...] = jnp.dot(h_dec, lw, preferred_element_type=f32) + lb


def rollout_call(kp, x_buf, st_buf, dtw, i):
    """One outer DSTN iteration as a single pallas dispatch."""
    T1, N, B = x_buf.shape
    BH = st_buf.shape[2]
    H = BH // B
    i_arr = jnp.reshape(i, (1,)).astype(jnp.int32)
    return pl.pallas_call(
        _rollout_kernel,
        out_shape=(jax.ShapeDtypeStruct((N, BH), jnp.float32),      # h_enc
                   jax.ShapeDtypeStruct((B * N, H), jnp.float32),   # h_dec
                   jax.ShapeDtypeStruct((N, B), jnp.float32)),      # prediction
        in_specs=[_SMEM] + [_VMEM] * 19,
        out_specs=(_VMEM, _VMEM, _VMEM),
        scratch_shapes=[pltpu.VMEM((T1, N, B), jnp.float32),
                        pltpu.VMEM((T1, N, BH), jnp.float32)],
    )(i_arr, x_buf, st_buf, dtw,
      kp["td"], kp["base_nm"], kp["base_m"],
      kp["wx1"], kp["wh1"], kp["b1"],
      kp["wx2"], kp["wh2"], kp["b2"],
      kp["selR"], kp["selU"], kp["csel_lo"], kp["csel_hi"], kp["even"],
      kp["lw_bd"], kp["lb"])


# ============================================================================
# Graph helpers (plain JAX glue)
# ============================================================================
def calculate_normalized_laplacian(a):
    # TODO(synk): exact convention of the original repo unavailable; using the
    # standard symmetric normalized Laplacian L = I - D^-1/2 A D^-1/2.
    a = jnp.asarray(a, jnp.float32)
    d = jnp.sum(a, axis=1)
    d_inv_sqrt = jnp.where(d > 0, 1.0 / jnp.sqrt(jnp.where(d > 0, d, 1.0)), 0.0)
    dm = jnp.diag(d_inv_sqrt)
    return jnp.eye(a.shape[0], dtype=jnp.float32) - dm @ a @ dm


def dtw_proxy(x_buf, times, k=0.01):
    # TODO(synk): the true DTW routine (calculate_dtw_matrix) and
    # scaler.inverse_transform are not part of the module; deterministic,
    # shape-stable proxy: exp(-k * masked mean squared distance of node series).
    T1, N, B = x_buf.shape
    s = jnp.mean(x_buf, axis=2)                                   # (T1, N)
    w = (jnp.arange(T1) < times).astype(jnp.float32)
    tf = jnp.maximum(times.astype(jnp.float32), 1.0)
    diff = s[:, :, None] - s[:, None, :]
    d = jnp.sum(w[:, None, None] * diff * diff, axis=0) / tf
    return jnp.exp(-k * d)


# ============================================================================
# One outer DSTN iteration: ONE pallas dispatch + a handful of tiny XLA ops.
# ============================================================================
@jax.jit
def outer_step(kp, x_buf, st_buf, enc_state, halt_points, predictions,
               i, key, epsilon):
    T1, N, B = x_buf.shape
    BH = st_buf.shape[2]
    H = BH // B

    # encoder_states.append(encoder_state)
    st_buf = lax.dynamic_update_slice(st_buf, enc_state[None], (i, 0, 0))
    times_enc = i + 1

    # dtw for this outer step (observed == True); zeros when times == 1.
    # The decoder reuses dtw_cache[-1], i.e. this same dtw.
    dtw = dtw_proxy(x_buf, times_enc, k=0.01)
    dtw = jnp.where(times_enc == 1, jnp.zeros_like(dtw), dtw)

    h_enc, h_dec, pred_nb = rollout_call(kp, x_buf, st_buf, dtw, i)

    outputs_final = jnp.transpose(pred_nb)                        # (B, N)

    # Controller + baseline: one tiny matmul, left to XLA inline (no dispatch).
    dec_flat = h_dec.reshape(B, N * H)
    i_col = jnp.full((B, 1), 1.0, jnp.float32) * i.astype(jnp.float32)
    c_in = jnp.concatenate([dec_flat, i_col], axis=1)             # (B, N*H + 1)
    logits = jnp.dot(c_in, kp["w_cb"]) + kp["b_cb"]               # (B, 2N)

    probs = jax.nn.sigmoid(logits[:, :N])
    probs = (1.0 - epsilon) * probs + epsilon * 0.05
    b_t = logits[:, N:]
    a_t = jax.random.bernoulli(key, probs).astype(jnp.float32)
    p_t = a_t * jnp.log(probs) + (1.0 - a_t) * jnp.log(1.0 - probs)
    w_t = -jnp.log(probs)

    predictions = jnp.where((a_t == 1.0) & (predictions == 0.0),
                            outputs_final, predictions)
    halt_points = jnp.where((halt_points == 0.0) & (a_t == 1.0),
                            (i + 1).astype(jnp.float32), halt_points)
    remaining = jnp.sum((halt_points == 0.0).astype(jnp.int32))

    return (h_enc, st_buf, outputs_final, a_t, p_t, w_t, b_t,
            predictions, halt_points, remaining)


# ============================================================================
# DSTN forward
# ============================================================================
def dstn_forward(params, cfg, inputs, key):
    B, T, N = inputs.shape
    H = cfg["hidden_dim"]
    kp = params

    # Fixed (T+1)-padded buffers in kernel layout -> one compile for everything.
    x_buf = jnp.transpose(inputs, (1, 2, 0)).astype(jnp.float32)   # (T, N, B)
    x_buf = jnp.concatenate([x_buf, jnp.zeros((1, N, B), jnp.float32)], axis=0)
    st_buf = jnp.zeros((T + 1, N, B * H), jnp.float32)
    enc_state = jnp.zeros((N, B * H), jnp.float32)
    halt_points = jnp.zeros((B, N), jnp.float32)
    predictions = jnp.zeros((B, N), jnp.float32)
    outputs_final = jnp.zeros((B, N), jnp.float32)
    eps = jnp.float32(cfg["epsilon"])

    actions, log_pis, halt_probs, baselines = [], [], [], []
    i = 0
    for i in range(T - 9):
        key, sub = jax.random.split(key)
        (enc_state, st_buf, outputs_final, a_t, p_t, w_t, b_t,
         predictions, halt_points, remaining) = outer_step(
            kp, x_buf, st_buf, enc_state, halt_points, predictions,
            jnp.int32(i), sub, eps)
        actions.append(a_t)
        log_pis.append(p_t)
        halt_probs.append(w_t)
        baselines.append(b_t)
        # Data-dependent early stop (reference semantics): one small host sync
        # per OUTER iteration; everything inside the iteration is one dispatch.
        if int(remaining) == 0:
            break

    predictions = jnp.where(predictions == 0.0, outputs_final, predictions)
    halt_points = jnp.where(halt_points == 0.0, float(i + 1), halt_points)

    baselines_s = jnp.stack(baselines)                   # (T', B, N)
    log_pi = jnp.stack(log_pis)                          # (T', B, N)
    wait_penalty = jnp.mean(
        jnp.sum(jnp.sum(jnp.stack(halt_probs), axis=0), axis=1))

    n_steps = len(actions)
    t_idx = jnp.arange(n_steps, dtype=jnp.float32)
    grad_mask = (t_idx[None, :, None] < halt_points[:, None, :]).astype(jnp.float32)
    grad_mask = jnp.transpose(grad_mask, (1, 0, 2))      # (T', B, N)

    return (predictions, jnp.mean(halt_points) / T, grad_mask,
            baselines_s.astype(jnp.float32), log_pi, wait_penalty)


# ============================================================================
# Parameter initialization (deterministic)
# ============================================================================
def xavier_uniform(key, shape):
    fan_in, fan_out = shape
    bound = math.sqrt(6.0 / (fan_in + fan_out))
    return jax.random.uniform(key, shape, jnp.float32, -bound, bound)


def linear_init(key, in_f, out_f):
    k1, k2 = jax.random.split(key)
    bound = 1.0 / math.sqrt(in_f)
    w = jax.random.uniform(k1, (in_f, out_f), jnp.float32, -bound, bound)
    b = jax.random.uniform(k2, (out_f,), jnp.float32, -bound, bound)
    return w, b


def _repeat_block_diag(block, n):
    r, c = block.shape
    out = jnp.zeros((n * r, n * c), jnp.float32)
    for b in range(n):
        out = out.at[b * r:(b + 1) * r, b * c:(b + 1) * c].set(block)
    return out


def build_dstn(key, adj, hidden_dim, spectrum_similarity_matrix,
               time_delay_matrix, epsilon, sample_rate, batch_size):
    N = adj.shape[0]
    H = hidden_dim
    B = batch_size
    assert N % 2 == 0, "torch.chunk over the flattened gate vector assumes even N"

    spec = jnp.where(spectrum_similarity_matrix < 0.7, 0.0,
                     spectrum_similarity_matrix)
    lap = calculate_normalized_laplacian(adj)
    spec_lap = calculate_normalized_laplacian(spec)
    eye = jnp.eye(N, dtype=jnp.float32)

    keys = jax.random.split(key, 6)
    gc1_w = xavier_uniform(keys[0], (H + 1, 2 * H))
    gc2_w = xavier_uniform(keys[1], (H + 1, H))
    fc_c_w, fc_c_b = linear_init(keys[2], N * H + 1, N)
    fc_b_w, fc_b_b = linear_init(keys[3], N * H + 1, N)
    lin_w, lin_b = linear_init(keys[4], H, 1)

    rows = jnp.arange(N)[:, None]
    cols = jnp.arange(N)[None, :]
    eyeH = jnp.eye(H, dtype=jnp.float32)
    zH = jnp.zeros((H, H), jnp.float32)
    csel_lo_blk = jnp.concatenate([eyeH, zH], axis=0)    # (2H, H): cols [0:H]
    csel_hi_blk = jnp.concatenate([zH, eyeH], axis=0)    # (2H, H): cols [H:2H]

    params = {
        # graph conv weights, split into input-column / hidden parts and
        # replicated block-diagonally so both batches share one matmul.
        "wx1": _repeat_block_diag(gc1_w[0:1, :], B),     # (B, B*2H)
        "wh1": _repeat_block_diag(gc1_w[1:, :], B),      # (B*H, B*2H)
        "b1": jnp.tile(jnp.full((1, 2 * H), 1.0, jnp.float32), (1, B)),
        "wx2": _repeat_block_diag(gc2_w[0:1, :], B),     # (B, B*H)
        "wh2": _repeat_block_diag(gc2_w[1:, :], B),      # (B*H, B*H)
        "b2": jnp.tile(jnp.zeros((1, H), jnp.float32), (1, B)),
        # per-timestep adjacency = dtwt * coef + base (reference:
        # multi -> (dtw + I + lap + spec_lap)/3, else (dtw + spec_lap + I)/2)
        "base_m": (eye + lap + spec_lap) / 3.0,
        "base_nm": (spec_lap + eye) / 2.0,
        "td": jnp.ceil(jnp.abs(jnp.asarray(time_delay_matrix, jnp.float32))
                       / sample_rate).astype(jnp.int32),
        # output projection nn.Linear(H, 1), block-diagonal over batches
        "lw_bd": _repeat_block_diag(lin_w, B),           # (B*H, B)
        "lb": lin_b.reshape(1, 1),
        # controller + baseline fused into one matmul (done by XLA inline)
        "w_cb": jnp.concatenate([fc_c_w, fc_b_w], axis=1),
        "b_cb": jnp.concatenate([fc_c_b, fc_b_b], axis=0).reshape(1, 2 * N),
        # constants implementing torch.chunk on the flat (N*2H) gate vector
        # without any in-kernel reshape: row duplication + per-batch column
        # selection + row-parity mix.
        "selR": (cols == rows // 2).astype(jnp.float32),
        "selU": (cols == (N // 2 + rows // 2)).astype(jnp.float32),
        "csel_lo": _repeat_block_diag(csel_lo_blk, B),   # (B*2H, B*H)
        "csel_hi": _repeat_block_diag(csel_hi_blk, B),   # (B*2H, B*H)
        "even": ((jnp.arange(N) % 2) == 0).astype(jnp.float32).reshape(N, 1),
    }
    cfg = {"hidden_dim": H, "num_nodes": N, "epsilon": epsilon,
           "sample_rate": sample_rate, "batch_size": B}
    return params, cfg


# ============================================================================
# Main
# ============================================================================
if __name__ == "__main__":
    B, T, N, H = 2, 10, 8, 8
    key = jax.random.PRNGKey(0)
    k_adj, k_spec, k_td, k_x, k_p, k_fwd = jax.random.split(key, 6)

    adj = (jax.random.uniform(k_adj, (N, N)) > 0.5).astype(jnp.float32)
    adj = jnp.maximum(adj, adj.T) * (1.0 - jnp.eye(N))
    spectrum_similarity_matrix = jax.random.uniform(k_spec, (N, N))
    time_delay_matrix = jax.random.randint(k_td, (N, N), 0, 3).astype(jnp.float32)
    inputs = jax.random.normal(k_x, (B, T, N), jnp.float32)

    params, cfg = build_dstn(k_p, adj, H, spectrum_similarity_matrix,
                             time_delay_matrix, epsilon=0.1, sample_rate=1.0,
                             batch_size=B)

    out = dstn_forward(params, cfg, inputs, k_fwd)
    jax.block_until_ready(out)
    preds, halt_frac, grad_mask, baselines, log_pi, wait_penalty = out
    assert preds.shape == (B, N)
    assert grad_mask.shape[1:] == (B, N)
    assert baselines.shape == log_pi.shape
    print("KERNEL_OK")
</pallas_src>

<mosaic_0001>
module attributes {stable_mosaic.version = 11 : i64} {
  func.func @_rollout_kernel(%arg0: memref<1xi32, #tpu.memory_space<smem>>, %arg1: memref<11x8x2xf32, #tpu.memory_space<vmem>>, %arg2: memref<11x8x16xf32, #tpu.memory_space<vmem>>, %arg3: memref<8x8xf32, #tpu.memory_space<vmem>>, %arg4: memref<8x8xi32, #tpu.memory_space<vmem>>, %arg5: memref<8x8xf32, #tpu.memory_space<vmem>>, %arg6: memref<8x8xf32, #tpu.memory_space<vmem>>, %arg7: memref<2x32xf32, #tpu.memory_space<vmem>>, %arg8: memref<16x32xf32, #tpu.memory_space<vmem>>, %arg9: memref<1x32xf32, #tpu.memory_space<vmem>>, %arg10: memref<2x16xf32, #tpu.memory_space<vmem>>, %arg11: memref<16x16xf32, #tpu.memory_space<vmem>>, %arg12: memref<1x16xf32, #tpu.memory_space<vmem>>, %arg13: memref<8x8xf32, #tpu.memory_space<vmem>>, %arg14: memref<8x8xf32, #tpu.memory_space<vmem>>, %arg15: memref<32x16xf32, #tpu.memory_space<vmem>>, %arg16: memref<32x16xf32, #tpu.memory_space<vmem>>, %arg17: memref<8x1xf32, #tpu.memory_space<vmem>>, %arg18: memref<16x2xf32, #tpu.memory_space<vmem>>, %arg19: memref<1x1xf32, #tpu.memory_space<vmem>>, %arg20: memref<8x16xf32, #tpu.memory_space<vmem>>, %arg21: memref<16x8xf32, #tpu.memory_space<vmem>>, %arg22: memref<8x2xf32, #tpu.memory_space<vmem>>, %arg23: memref<11x8x2xf32, #tpu.memory_space<vmem>>, %arg24: memref<11x8x16xf32, #tpu.memory_space<vmem>>) attributes {dimension_semantics = [], scalar_prefetch = 0 : i64, scratch_operands = 2 : i64, tpu.core_type = #tpu.core_type<tc>} {
    %c0 = arith.constant 0 : index
    %0 = memref.load %arg0[%c0] : memref<1xi32, #tpu.memory_space<smem>>
    %c1_i32 = arith.constant 1 : i32
    %1 = arith.addi %0, %c1_i32 : i32
    %c9_i32 = arith.constant 9 : i32
    %2 = arith.subi %c9_i32, %0 : i32
    %c0_0 = arith.constant 0 : index
    %c0_1 = arith.constant 0 : index
    %3 = vector.load %arg3[%c0_0, %c0_1] : memref<8x8xf32, #tpu.memory_space<vmem>>, vector<8x8xf32>
    %cst = arith.constant 0.000000e+00 : f32
    %4 = vector.broadcast %cst : f32 to vector<8x8xf32>
    %5 = arith.cmpf one, %3, %4 : vector<8x8xf32>
    %c0_2 = arith.constant 0 : index
    %c0_3 = arith.constant 0 : index
    %6 = vector.load %arg4[%c0_2, %c0_3] : memref<8x8xi32, #tpu.memory_space<vmem>>, vector<8x8xi32>
    %c0_4 = arith.constant 0 : index
    %c0_5 = arith.constant 0 : index
    %7 = vector.load %arg5[%c0_4, %c0_5] : memref<8x8xf32, #tpu.memory_space<vmem>>, vector<8x8xf32>
    %c0_6 = arith.constant 0 : index
    %c0_7 = arith.constant 0 : index
    %8 = vector.load %arg6[%c0_6, %c0_7] : memref<8x8xf32, #tpu.memory_space<vmem>>, vector<8x8xf32>
    %c0_8 = arith.constant 0 : index
    %c0_9 = arith.constant 0 : index
    %9 = vector.load %arg7[%c0_8, %c0_9] : memref<2x32xf32, #tpu.memory_space<vmem>>, vector<2x32xf32>
    %c0_10 = arith.constant 0 : index
    %c0_11 = arith.constant 0 : index
    %10 = vector.load %arg8[%c0_10, %c0_11] : memref<16x32xf32, #tpu.memory_space<vmem>>, vector<16x32xf32>
    %c0_12 = arith.constant 0 : index
    %c0_13 = arith.constant 0 : index
    %11 = vector.load %arg9[%c0_12, %c0_13] : memref<1x32xf32, #tpu.memory_space<vmem>>, vector<1x32xf32>
    %c0_14 = arith.constant 0 : index
    %c0_15 = arith.constant 0 : index
    %12 = vector.load %arg10[%c0_14, %c0_15] : memref<2x16xf32, #tpu.memory_space<vmem>>, vector<2x16xf32>
    %c0_16 = arith.constant 0 : index
    %c0_17 = arith.constant 0 : index
    %13 = vector.load %arg11[%c0_16, %c0_17] : memref<16x16xf32, #tpu.memory_space<vmem>>, vector<16x16xf32>
    %c0_18 = arith.constant 0 : index
    %c0_19 = arith.constant 0 : index
    %14 = vector.load %arg12[%c0_18, %c0_19] : memref<1x16xf32, #tpu.memory_space<vmem>>, vector<1x16xf32>
    %c0_20 = arith.constant 0 : index
    %c0_21 = arith.constant 0 : index
    %15 = vector.load %arg13[%c0_20, %c0_21] : memref<8x8xf32, #tpu.memory_space<vmem>>, vector<8x8xf32>
    %c0_22 = arith.constant 0 : index
    %c0_23 = arith.constant 0 : index
    %16 = vector.load %arg14[%c0_22, %c0_23] : memref<8x8xf32, #tpu.memory_space<vmem>>, vector<8x8xf32>
    %c0_24 = arith.constant 0 : index
    %c0_25 = arith.constant 0 : index
    %17 = vector.load %arg15[%c0_24, %c0_25] : memref<32x16xf32, #tpu.memory_space<vmem>>, vector<32x16xf32>
    %c0_26 = arith.constant 0 : index
    %c0_27 = arith.constant 0 : index
    %18 = vector.load %arg16[%c0_26, %c0_27] : memref<32x16xf32, #tpu.memory_space<vmem>>, vector<32x16xf32>
    %c0_28 = arith.constant 0 : index
    %c0_29 = arith.constant 0 : index
    %19 = vector.load %arg17[%c0_28, %c0_29] : memref<8x1xf32, #tpu.memory_space<vmem>>, vector<8x1xf32>
    %cst_30 = arith.constant 1.000000e+00 : f32
    %20 = vector.broadcast %cst_30 : f32 to vector<8x1xf32>
    %21 = arith.subf %20, %19 : vector<8x1xf32>
    %c0_31 = arith.constant 0 : index
    %c0_32 = arith.constant 0 : index
    %22 = vector.load %arg18[%c0_31, %c0_32] : memref<16x2xf32, #tpu.memory_space<vmem>>, vector<16x2xf32>
    %c0_33 = arith.constant 0 : index
    %c0_34 = arith.constant 0 : index
    %23 = vector.load %arg19[%c0_33, %c0_34] : memref<1x1xf32, #tpu.memory_space<vmem>>, vector<1x1xf32>
    %c0_35 = arith.constant 0 : index
    %c0_36 = arith.constant 0 : index
    %c0_37 = arith.constant 0 : index
    %24 = vector.load %arg1[%c0_35, %c0_36, %c0_37] : memref<11x8x2xf32, #tpu.memory_space<vmem>>, vector<11x8x2xf32>
    %c0_38 = arith.constant 0 : index
    %c0_39 = arith.constant 0 : index
    %c0_40 = arith.constant 0 : index
    %25 = vector.load %arg23[%c0_38, %c0_39, %c0_40] : memref<11x8x2xf32, #tpu.memory_space<vmem>>, vector<11x8x2xf32>
    tpu.vector_store %arg23[%c0_38, %c0_39, %c0_40], %24 {strides = array<i32>} : memref<11x8x2xf32, #tpu.memory_space<vmem>>, vector<11x8x2xf32>,
    %c0_41 = arith.constant 0 : index
    %c0_42 = arith.constant 0 : index
    %c0_43 = arith.constant 0 : index
    %26 = vector.load %arg2[%c0_41, %c0_42, %c0_43] : memref<11x8x16xf32, #tpu.memory_space<vmem>>, vector<11x8x16xf32>
    %c0_44 = arith.constant 0 : index
    %c0_45 = arith.constant 0 : index
    %c0_46 = arith.constant 0 : index
    %27 = vector.load %arg24[%c0_44, %c0_45, %c0_46] : memref<11x8x16xf32, #tpu.memory_space<vmem>>, vector<11x8x16xf32>
    tpu.vector_store %arg24[%c0_44, %c0_45, %c0_46], %26 {strides = array<i32>} : memref<11x8x16xf32, #tpu.memory_space<vmem>>, vector<11x8x16xf32>,
    %cst_47 = arith.constant 0.000000e+00 : f32
    %28 = vector.broadcast %cst_47 : f32 to vector<8x32xf32>
    %cst_48 = arith.constant 0.000000e+00 : f32
    %29 = vector.broadcast %cst_48 : f32 to vector<8x16xf32>
    %c0_i32 = arith.constant 0 : i32
    %30 = arith.cmpi sgt, %1, %c0_i32 : i32
    %31 = arith.extui %30 : i1 to i32
    %32 = arith.sitofp %31 : i32 to f32
    %c1_i32_49 = arith.constant 1 : i32
    %33 = arith.subi %1, %c1_i32_49 : i32
    %c0_i32_50 = arith.constant 0 : i32
    %34 = arith.cmpi eq, %33, %c0_i32_50 : i32
    %35 = arith.extui %34 : i1 to i32
    %36 = arith.sitofp %35 : i32 to f32
    %cst_51 = arith.constant -0.166666672 : f32
    %37 = arith.mulf %36, %cst_51 : f32
    %cst_52 = arith.constant 5.000000e-01 : f32
    %38 = arith.addf %cst_52, %37 : f32
    %39 = arith.mulf %38, %32 : f32
    %40 = arith.subf %8, %7 : vector<8x8xf32>
    %41 = vector.broadcast %36 : f32 to vector<8x8xf32>
    %42 = arith.mulf %41, %40 : vector<8x8xf32>
    %43 = arith.addf %7, %42 : vector<8x8xf32>
    %44 = vector.broadcast %32 : f32 to vector<8x8xf32>
    %45 = arith.mulf %43, %44 : vector<8x8xf32>
    %46 = vector.broadcast %1 : i32 to vector<8x8xi32>
    %47 = arith.subi %46, %6 : vector<8x8xi32>
    %c1_i32_53 = arith.constant 1 : i32
    %48 = vector.broadcast %c1_i32_53 : i32 to vector<8x8xi32>
    %49 = arith.cmpi slt, %47, %48 : vector<8x8xi32>
    %50 = arith.andi %5, %49 : vector<8x8xi1>
    %cst_54 = arith.constant 0.000000e+00 : f32
    %51 = vector.broadcast %cst_54 : f32 to vector<8x8xf32>
    %52 = arith.select %50, %3, %51 : vector<8x8xi1>, vector<8x8xf32>
    %53 = vector.broadcast %39 : f32 to vector<8x8xf32>
    %54 = arith.mulf %52, %53 : vector<8x8xf32>
    %55 = arith.addf %54, %45 : vector<8x8xf32>
    %c0_55 = arith.constant 0 : index
    %c0_56 = arith.constant 0 : index
    %c0_57 = arith.constant 0 : index
    %56 = vector.load %arg23[%c0_55, %c0_56, %c0_57] : memref<11x8x2xf32, #tpu.memory_space<vmem>>, vector<1x8x2xf32>
    %57 = vector.shape_cast %56 : vector<1x8x2xf32> to vector<8x2xf32>
    %c0_58 = arith.constant 0 : index
    %c0_59 = arith.constant 0 : index
    %c0_60 = arith.constant 0 : index
    %58 = vector.load %arg24[%c0_58, %c0_59, %c0_60] : memref<11x8x16xf32, #tpu.memory_space<vmem>>, vector<1x8x16xf32>
    %59 = vector.shape_cast %58 : vector<1x8x16xf32> to vector<8x16xf32>
    %cst_61 = arith.constant dense<0.000000e+00> : vector<8x32xf32>
    %60 = tpu.matmul %57, %9, %cst_61 {dimension_numbers = #tpu.dot_dimension_numbers<[1], [0], [0], [1], [0, 0, 1, 1], [], []>} : vector<8x2xf32>, vector<2x32xf32>, vector<8x32xf32> -> vector<8x32xf32>
    %cst_62 = arith.constant dense<0.000000e+00> : vector<8x32xf32>
    %61 = tpu.matmul %59, %10, %cst_62 {dimension_numbers = #tpu.dot_dimension_numbers<[1], [0], [0], [1], [0, 0, 1, 1], [], []>} : vector<8x16xf32>, vector<16x32xf32>, vector<8x32xf32> -> vector<8x32xf32>
    %62 = arith.addf %60, %61 : vector<8x32xf32>
    %cst_63 = arith.constant dense<0.000000e+00> : vector<8x32xf32>
    %63 = tpu.matmul %55, %62, %cst_63 {dimension_numbers = #tpu.dot_dimension_numbers<[1], [0], [0], [1], [0, 0, 1, 1], [], []>} : vector<8x8xf32>, vector<8x32xf32>, vector<8x32xf32> -> vector<8x32xf32>
    %64 = arith.addf %28, %63 : vector<8x32xf32>
    %65 = vector.broadcast %32 : f32 to vector<1x32xf32>
    %66 = arith.mulf %11, %65 : vector<1x32xf32>
    %67 = vector.broadcast %66 : vector<1x32xf32> to vector<8x32xf32>
    %68 = arith.addf %64, %67 : vector<8x32xf32>
    %69 = arith.negf %68 : vector<8x32xf32>
    %70 = math.exp %69 : vector<8x32xf32>
    %cst_64 = arith.constant 1.000000e+00 : f32
    %71 = vector.broadcast %cst_64 : f32 to vector<8x32xf32>
    %72 = arith.addf %71, %70 : vector<8x32xf32>
    %73 = arith.divf %71, %72 : vector<8x32xf32>
    %cst_65 = arith.constant dense<0.000000e+00> : vector<8x32xf32>
    %74 = tpu.matmul %15, %73, %cst_65 {dimension_numbers = #tpu.dot_dimension_numbers<[1], [0], [0], [1], [0, 0, 1, 1], [], []>} : vector<8x8xf32>, vector<8x32xf32>, vector<8x32xf32> -> vector<8x32xf32>
    %cst_66 = arith.constant dense<0.000000e+00> : vector<8x16xf32>
    %75 = tpu.matmul %74, %17, %cst_66 {dimension_numbers = #tpu.dot_dimension_numbers<[1], [0], [0], [1], [0, 0, 1, 1], [], []>} : vector<8x32xf32>, vector<32x16xf32>, vector<8x16xf32> -> vector<8x16xf32>
    %76 = vector.broadcast %19 : vector<8x1xf32> to vector<8x16xf32>
    %77 = arith.mulf %75, %76 : vector<8x16xf32>
    %cst_67 = arith.constant dense<0.000000e+00> : vector<8x16xf32>
    %78 = tpu.matmul %74, %18, %cst_67 {dimension_numbers = #tpu.dot_dimension_numbers<[1], [0], [0], [1], [0, 0, 1, 1], [], []>} : vector<8x32xf32>, vector<32x16xf32>, vector<8x16xf32> -> vector<8x16xf32>
    %79 = vector.broadcast %21 : vector<8x1xf32> to vector<8x16xf32>
    %80 = arith.mulf %78, %79 : vector<8x16xf32>
    %81 = arith.addf %77, %80 : vector<8x16xf32>
    %cst_68 = arith.constant dense<0.000000e+00> : vector<8x16xf32>
    %82 = tpu.matmul %57, %12, %cst_68 {dimension_numbers = #tpu.dot_dimension_numbers<[1], [0], [0], [1], [0, 0, 1, 1], [], []>} : vector<8x2xf32>, vector<2x16xf32>, vector<8x16xf32> -> vector<8x16xf32>
    %83 = arith.mulf %81, %59 : vector<8x16xf32>
    %cst_69 = arith.constant dense<0.000000e+00> : vector<8x16xf32>
    %84 = tpu.matmul %83, %13, %cst_69 {dimension_numbers = #tpu.dot_dimension_numbers<[1], [0], [0], [1], [0, 0, 1, 1], [], []>} : vector<8x16xf32>, vector<16x16xf32>, vector<8x16xf32> -> vector<8x16xf32>
    %85 = arith.addf %82, %84 : vector<8x16xf32>
    %cst_70 = arith.constant dense<0.000000e+00> : vector<8x16xf32>
    %86 = tpu.matmul %55, %85, %cst_70 {dimension_numbers = #tpu.dot_dimension_numbers<[1], [0], [0], [1], [0, 0, 1, 1], [], []>} : vector<8x8xf32>, vector<8x16xf32>, vector<8x16xf32> -> vector<8x16xf32>
    %87 = arith.addf %29, %86 : vector<8x16xf32>
    %88 = vector.broadcast %32 : f32 to vector<1x16xf32>
    %89 = arith.mulf %14, %88 : vector<1x16xf32>
    %90 = vector.broadcast %89 : vector<1x16xf32> to vector<8x16xf32>
    %91 = arith.addf %87, %90 : vector<8x16xf32>
    %c1_i32_71 = arith.constant 1 : i32
    %92 = arith.cmpi sgt, %1, %c1_i32_71 : i32
    %93 = arith.extui %92 : i1 to i32
    %94 = arith.sitofp %93 : i32 to f32
    %c1_i32_72 = arith.constant 1 : i32
    %95 = arith.subi %1, %c1_i32_72 : i32
    %c1_i32_73 = arith.constant 1 : i32
    %96 = arith.cmpi eq, %95, %c1_i32_73 : i32
    %97 = arith.extui %96 : i1 to i32
    %98 = arith.sitofp %97 : i32 to f32
    %cst_74 = arith.constant -0.166666672 : f32
    %99 = arith.mulf %98, %cst_74 : f32
    %cst_75 = arith.constant 5.000000e-01 : f32
    %100 = arith.addf %cst_75, %99 : f32
    %101 = arith.mulf %100, %94 : f32
    %102 = arith.subf %8, %7 : vector<8x8xf32>
    %103 = vector.broadcast %98 : f32 to vector<8x8xf32>
    %104 = arith.mulf %103, %102 : vector<8x8xf32>
    %105 = arith.addf %7, %104 : vector<8x8xf32>
    %106 = vector.broadcast %94 : f32 to vector<8x8xf32>
    %107 = arith.mulf %105, %106 : vector<8x8xf32>
    %108 = vector.broadcast %1 : i32 to vector<8x8xi32>
    %109 = arith.subi %108, %6 : vector<8x8xi32>
    %c2_i32 = arith.constant 2 : i32
    %110 = vector.broadcast %c2_i32 : i32 to vector<8x8xi32>
    %111 = arith.cmpi slt, %109, %110 : vector<8x8xi32>
    %112 = arith.andi %5, %111 : vector<8x8xi1>
    %cst_76 = arith.constant 0.000000e+00 : f32
    %113 = vector.broadcast %cst_76 : f32 to vector<8x8xf32>
    %114 = arith.select %112, %3, %113 : vector<8x8xi1>, vector<8x8xf32>
    %115 = vector.broadcast %101 : f32 to vector<8x8xf32>
    %116 = arith.mulf %114, %115 : vector<8x8xf32>
    %117 = arith.addf %116, %107 : vector<8x8xf32>
    %c1 = arith.constant 1 : index
    %c0_77 = arith.constant 0 : index
    %c0_78 = arith.constant 0 : index
    %118 = vector.load %arg23[%c1, %c0_77, %c0_78] : memref<11x8x2xf32, #tpu.memory_space<vmem>>, vector<1x8x2xf32>
    %119 = vector.shape_cast %118 : vector<1x8x2xf32> to vector<8x2xf32>
    %c1_79 = arith.constant 1 : index
    %c0_80 = arith.constant 0 : index
    %c0_81 = arith.constant 0 : index
    %120 = vector.load %arg24[%c1_79, %c0_80, %c0_81] : memref<11x8x16xf32, #tpu.memory_space<vmem>>, vector<1x8x16xf32>
    %121 = vector.shape_cast %120 : vector<1x8x16xf32> to vector<8x16xf32>
    %cst_82 = arith.constant dense<0.000000e+00> : vector<8x32xf32>
    %122 = tpu.matmul %119, %9, %cst_82 {dimension_numbers = #tpu.dot_dimension_numbers<[1], [0], [0], [1], [0, 0, 1, 1], [], []>} : vector<8x2xf32>, vector<2x32xf32>, vector<8x32xf32> -> vector<8x32xf32>
    %cst_83 = arith.constant dense<0.000000e+00> : vector<8x32xf32>
    %123 = tpu.matmul %121, %10, %cst_83 {dimension_numbers = #tpu.dot_dimension_numbers<[1], [0], [0], [1], [0, 0, 1, 1], [], []>} : vector<8x16xf32>, vector<16x32xf32>, vector<8x32xf32> -> vector<8x32xf32>
    %124 = arith.addf %122, %123 : vector<8x32xf32>
    %cst_84 = arith.constant dense<0.000000e+00> : vector<8x32xf32>
    %125 = tpu.matmul %117, %124, %cst_84 {dimension_numbers = #tpu.dot_dimension_numbers<[1], [0], [0], [1], [0, 0, 1, 1], [], []>} : vector<8x8xf32>, vector<8x32xf32>, vector<8x32xf32> -> vector<8x32xf32>
    %126 = arith.addf %68, %125 : vector<8x32xf32>
    %127 = vector.broadcast %94 : f32 to vector<1x32xf32>
    %128 = arith.mulf %11, %127 : vector<1x32xf32>
    %129 = vector.broadcast %128 : vector<1x32xf32> to vector<8x32xf32>
    %130 = arith.addf %126, %129 : vector<8x32xf32>
    %131 = arith.negf %130 : vector<8x32xf32>
    %132 = math.exp %131 : vector<8x32xf32>
    %cst_85 = arith.constant 1.000000e+00 : f32
    %133 = vector.broadcast %cst_85 : f32 to vector<8x32xf32>
    %134 = arith.addf %133, %132 : vector<8x32xf32>
    %135 = arith.divf %133, %134 : vector<8x32xf32>
    %cst_86 = arith.constant dense<0.000000e+00> : vector<8x32xf32>
    %136 = tpu.matmul %15, %135, %cst_86 {dimension_numbers = #tpu.dot_dimension_numbers<[1], [0], [0], [1], [0, 0, 1, 1], [], []>} : vector<8x8xf32>, vector<8x32xf32>, vector<8x32xf32> -> vector<8x32xf32>
    %cst_87 = arith.constant dense<0.000000e+00> : vector<8x16xf32>
    %137 = tpu.matmul %136, %17, %cst_87 {dimension_numbers = #tpu.dot_dimension_numbers<[1], [0], [0], [1], [0, 0, 1, 1], [], []>} : vector<8x32xf32>, vector<32x16xf32>, vector<8x16xf32> -> vector<8x16xf32>
    %138 = vector.broadcast %19 : vector<8x1xf32> to vector<8x16xf32>
    %139 = arith.mulf %137, %138 : vector<8x16xf32>
    %cst_88 = arith.constant dense<0.000000e+00> : vector<8x16xf32>
    %140 = tpu.matmul %136, %18, %cst_88 {dimension_numbers = #tpu.dot_dimension_numbers<[1], [0], [0], [1], [0, 0, 1, 1], [], []>} : vector<8x32xf32>, vector<32x16xf32>, vector<8x16xf32> -> vector<8x16xf32>
    %141 = vector.broadcast %21 : vector<8x1xf32> to vector<8x16xf32>
    %142 = arith.mulf %140, %141 : vector<8x16xf32>
    %143 = arith.addf %139, %142 : vector<8x16xf32>
    %cst_89 = arith.constant dense<0.000000e+00> : vector<8x16xf32>
    %144 = tpu.matmul %119, %12, %cst_89 {dimension_numbers = #tpu.dot_dimension_numbers<[1], [0], [0], [1], [0, 0, 1, 1], [], []>} : vector<8x2xf32>, vector<2x16xf32>, vector<8x16xf32> -> vector<8x16xf32>
    %145 = arith.mulf %143, %121 : vector<8x16xf32>
    %cst_90 = arith.constant dense<0.000000e+00> : vector<8x16xf32>
    %146 = tpu.matmul %145, %13, %cst_90 {dimension_numbers = #tpu.dot_dimension_numbers<[1], [0], [0], [1], [0, 0, 1, 1], [], []>} : vector<8x16xf32>, vector<16x16xf32>, vector<8x16xf32> -> vector<8x16xf32>
    %147 = arith.addf %144, %146 : vector<8x16xf32>
    %cst_91 = arith.constant dense<0.000000e+00> : vector<8x16xf32>
    %148 = tpu.matmul %117, %147, %cst_91 {dimension_numbers = #tpu.dot_dimension_numbers<[1], [0], [0], [1], [0, 0, 1, 1], [], []>} : vector<8x8xf32>, vector<8x16xf32>, vector<8x16xf32> -> vector<8x16xf32>
    %149 = arith.addf %91, %148 : vector<8x16xf32>
    %150 = vector.broadcast %94 : f32 to vector<1x16xf32>
    %151 = arith.mulf %14, %150 : vector<1x16xf32>
    %152 = vector.broadcast %151 : vector<1x16xf32> to vector<8x16xf32>
    %153 = arith.addf %149, %152 : vector<8x16xf32>
    %c2_i32_92 = arith.constant 2 : i32
    %154 = arith.cmpi sgt, %1, %c2_i32_92 : i32
    %155 = arith.extui %154 : i1 to i32
    %156 = arith.sitofp %155 : i32 to f32
    %c1_i32_93 = arith.constant 1 : i32
    %157 = arith.subi %1, %c1_i32_93 : i32
    %c2_i32_94 = arith.constant 2 : i32
    %158 = arith.cmpi eq, %157, %c2_i32_94 : i32
    %159 = arith.extui %158 : i1 to i32
    %160 = arith.sitofp %159 : i32 to f32
    %cst_95 = arith.constant -0.166666672 : f32
    %161 = arith.mulf %160, %cst_95 : f32
    %cst_96 = arith.constant 5.000000e-01 : f32
    %162 = arith.addf %cst_96, %161 : f32
    %163 = arith.mulf %162, %156 : f32
    %164 = arith.subf %8, %7 : vector<8x8xf32>
    %165 = vector.broadcast %160 : f32 to vector<8x8xf32>
    %166 = arith.mulf %165, %164 : vector<8x8xf32>
    %167 = arith.addf %7, %166 : vector<8x8xf32>
    %168 = vector.broadcast %156 : f32 to vector<8x8xf32>
    %169 = arith.mulf %167, %168 : vector<8x8xf32>
    %170 = vector.broadcast %1 : i32 to vector<8x8xi32>
    %171 = arith.subi %170, %6 : vector<8x8xi32>
    %c3_i32 = arith.constant 3 : i32
    %172 = vector.broadcast %c3_i32 : i32 to vector<8x8xi32>
    %173 = arith.cmpi slt, %171, %172 : vector<8x8xi32>
    %174 = arith.andi %5, %173 : vector<8x8xi1>
    %cst_97 = arith.constant 0.000000e+00 : f32
    %175 = vector.broadcast %cst_97 : f32 to vector<8x8xf32>
    %176 = arith.select %174, %3, %175 : vector<8x8xi1>, vector<8x8xf32>
    %177 = vector.broadcast %163 : f32 to vector<8x8xf32>
    %178 = arith.mulf %176, %177 : vector<8x8xf32>
    %179 = arith.addf %178, %169 : vector<8x8xf32>
    %c2 = arith.constant 2 : index
    %c0_98 = arith.constant 0 : index
    %c0_99 = arith.constant 0 : index
    %180 = vector.load %arg23[%c2, %c0_98, %c0_99] : memref<11x8x2xf32, #tpu.memory_space<vmem>>, vector<1x8x2xf32>
    %181 = vector.shape_cast %180 : vector<1x8x2xf32> to vector<8x2xf32>
    %c2_100 = arith.constant 2 : index
    %c0_101 = arith.constant 0 : index
    %c0_102 = arith.constant 0 : index
    %182 = vector.load %arg24[%c2_100, %c0_101, %c0_102] : memref<11x8x16xf32, #tpu.memory_space<vmem>>, vector<1x8x16xf32>
    %183 = vector.shape_cast %182 : vector<1x8x16xf32> to vector<8x16xf32>
    %cst_103 = arith.constant dense<0.000000e+00> : vector<8x32xf32>
    %184 = tpu.matmul %181, %9, %cst_103 {dimension_numbers = #tpu.dot_dimension_numbers<[1], [0], [0], [1], [0, 0, 1, 1], [], []>} : vector<8x2xf32>, vector<2x32xf32>, vector<8x32xf32> -> vector<8x32xf32>
    %cst_104 = arith.constant dense<0.000000e+00> : vector<8x32xf32>
    %185 = tpu.matmul %183, %10, %cst_104 {dimension_numbers = #tpu.dot_dimension_numbers<[1], [0], [0], [1], [0, 0, 1, 1], [], []>} : vector<8x16xf32>, vector<16x32xf32>, vector<8x32xf32> -> vector<8x32xf32>
    %186 = arith.addf %184, %185 : vector<8x32xf32>
    %cst_105 = arith.constant dense<0.000000e+00> : vector<8x32xf32>
    %187 = tpu.matmul %179, %186, %cst_105 {dimension_numbers = #tpu.dot_dimension_numbers<[1], [0], [0], [1], [0, 0, 1, 1], [], []>} : vector<8x8xf32>, vector<8x32xf32>, vector<8x32xf32> -> vector<8x32xf32>
    %188 = arith.addf %130, %187 : vector<8x32xf32>
    %189 = vector.broadcast %156 : f32 to vector<1x32xf32>
    %190 = arith.mulf %11, %189 : vector<1x32xf32>
    %191 = vector.broadcast %190 : vector<1x32xf32> to vector<8x32xf32>
    %192 = arith.addf %188, %191 : vector<8x32xf32>
    %193 = arith.negf %192 : vector<8x32xf32>
    %194 = math.exp %193 : vector<8x32xf32>
    %cst_106 = arith.constant 1.000000e+00 : f32
    %195 = vector.broadcast %cst_106 : f32 to vector<8x32xf32>
    %196 = arith.addf %195, %194 : vector<8x32xf32>
    %197 = arith.divf %195, %196 : vector<8x32xf32>
    %cst_107 = arith.constant dense<0.000000e+00> : vector<8x32xf32>
    %198 = tpu.matmul %15, %197, %cst_107 {dimension_numbers = #tpu.dot_dimension_numbers<[1], [0], [0], [1], [0, 0, 1, 1], [], []>} : vector<8x8xf32>, vector<8x32xf32>, vector<8x32xf32> -> vector<8x32xf32>
    %cst_108 = arith.constant dense<0.000000e+00> : vector<8x16xf32>
    %199 = tpu.matmul %198, %17, %cst_108 {dimension_numbers = #tpu.dot_dimension_numbers<[1], [0], [0], [1], [0, 0, 1, 1], [], []>} : vector<8x32xf32>, vector<32x16xf32>, vector<8x16xf32> -> vector<8x16xf32>
    %200 = vector.broadcast %19 : vector<8x1xf32> to vector<8x16xf32>
    %201 = arith.mulf %199, %200 : vector<8x16xf32>
    %cst_109 = arith.constant dense<0.000000e+00> : vector<8x16xf32>
    %202 = tpu.matmul %198, %18, %cst_109 {dimension_numbers = #tpu.dot_dimension_numbers<[1], [0], [0], [1], [0, 0, 1, 1], [], []>} : vector<8x32xf32>, vector<32x16xf32>, vector<8x16xf32> -> vector<8x16xf32>
    %203 = vector.broadcast %21 : vector<8x1xf32> to vector<8x16xf32>
    %204 = arith.mulf %202, %203 : vector<8x16xf32>
    %205 = arith.addf %201, %204 : vector<8x16xf32>
    %cst_110 = arith.constant dense<0.000000e+00> : vector<8x16xf32>
    %206 = tpu.matmul %181, %12, %cst_110 {dimension_numbers = #tpu.dot_dimension_numbers<[1], [0], [0], [1], [0, 0, 1, 1], [], []>} : vector<8x2xf32>, vector<2x16xf32>, vector<8x16xf32> -> vector<8x16xf32>
    %207 = arith.mulf %205, %183 : vector<8x16xf32>
    %cst_111 = arith.constant dense<0.000000e+00> : vector<8x16xf32>
    %208 = tpu.matmul %207, %13, %cst_111 {dimension_numbers = #tpu.dot_dimension_numbers<[1], [0], [0], [1], [0, 0, 1, 1], [], []>} : vector<8x16xf32>, vector<16x16xf32>, vector<8x16xf32> -> vector<8x16xf32>
    %209 = arith.addf %206, %208 : vector<8x16xf32>
    %cst_112 = arith.constant dense<0.000000e+00> : vector<8x16xf32>
    %210 = tpu.matmul %179, %209, %cst_112 {dimension_numbers = #tpu.dot_dimension_numbers<[1], [0], [0], [1], [0, 0, 1, 1], [], []>} : vector<8x8xf32>, vector<8x16xf32>, vector<8x16xf32> -> vector<8x16xf32>
    %211 = arith.addf %153, %210 : vector<8x16xf32>
    %212 = vector.broadcast %156 : f32 to vector<1x16xf32>
    %213 = arith.mulf %14, %212 : vector<1x16xf32>
    %214 = vector.broadcast %213 : vector<1x16xf32> to vector<8x16xf32>
    %215 = arith.addf %211, %214 : vector<8x16xf32>
    %c3_i32_113 = arith.constant 3 : i32
    %216 = arith.cmpi sgt, %1, %c3_i32_113 : i32
    %217 = arith.extui %216 : i1 to i32
    %218 = arith.sitofp %217 : i32 to f32
    %c1_i32_114 = arith.constant 1 : i32
    %219 = arith.subi %1, %c1_i32_114 : i32
    %c3_i32_115 = arith.constant 3 : i32
    %220 = arith.cmpi eq, %219, %c3_i32_115 : i32
    %221 = arith.extui %220 : i1 to i32
    %222 = arith.sitofp %221 : i32 to f32
    %cst_116 = arith.constant -0.166666672 : f32
    %223 = arith.mulf %222, %cst_116 : f32
    %cst_117 = arith.constant 5.000000e-01 : f32
    %224 = arith.addf %cst_117, %223 : f32
    %225 = arith.mulf %224, %218 : f32
    %226 = arith.subf %8, %7 : vector<8x8xf32>
    %227 = vector.broadcast %222 : f32 to vector<8x8xf32>
    %228 = arith.mulf %227, %226 : vector<8x8xf32>
    %229 = arith.addf %7, %228 : vector<8x8xf32>
    %230 = vector.broadcast %218 : f32 to vector<8x8xf32>
    %231 = arith.mulf %229, %230 : vector<8x8xf32>
    %232 = vector.broadcast %1 : i32 to vector<8x8xi32>
    %233 = arith.subi %232, %6 : vector<8x8xi32>
    %c4_i32 = arith.constant 4 : i32
    %234 = vector.broadcast %c4_i32 : i32 to vector<8x8xi32>
    %235 = arith.cmpi slt, %233, %234 : vector<8x8xi32>
    %236 = arith.andi %5, %235 : vector<8x8xi1>
    %cst_118 = arith.constant 0.000000e+00 : f32
    %237 = vector.broadcast %cst_118 : f32 to vector<8x8xf32>
    %238 = arith.select %236, %3, %237 : vector<8x8xi1>, vector<8x8xf32>
    %239 = vector.broadcast %225 : f32 to vector<8x8xf32>
    %240 = arith.mulf %238, %239 : vector<8x8xf32>
    %241 = arith.addf %240, %231 : vector<8x8xf32>
    %c3 = arith.constant 3 : index
    %c0_119 = arith.constant 0 : index
    %c0_120 = arith.constant 0 : index
    %242 = vector.load %arg23[%c3, %c0_119, %c0_120] : memref<11x8x2xf32, #tpu.memory_space<vmem>>, vector<1x8x2xf32>
    %243 = vector.shape_cast %242 : vector<1x8x2xf32> to vector<8x2xf32>
    %c3_121 = arith.constant 3 : index
    %c0_122 = arith.constant 0 : index
    %c0_123 = arith.constant 0 : index
    %244 = vector.load %arg24[%c3_121, %c0_122, %c0_123] : memref<11x8x16xf32, #tpu.memory_space<vmem>>, vector<1x8x16xf32>
    %245 = vector.shape_cast %244 : vector<1x8x16xf32> to vector<8x16xf32>
    %cst_124 = arith.constant dense<0.000000e+00> : vector<8x32xf32>
    %246 = tpu.matmul %243, %9, %cst_124 {dimension_numbers = #tpu.dot_dimension_numbers<[1], [0], [0], [1], [0, 0, 1, 1], [], []>} : vector<8x2xf32>, vector<2x32xf32>, vector<8x32xf32> -> vector<8x32xf32>
    %cst_125 = arith.constant dense<0.000000e+00> : vector<8x32xf32>
    %247 = tpu.matmul %245, %10, %cst_125 {dimension_numbers = #tpu.dot_dimension_numbers<[1], [0], [0], [1], [0, 0, 1, 1], [], []>} : vector<8x16xf32>, vector<16x32xf32>, vector<8x32xf32> -> vector<8x32xf32>
    %248 = arith.addf %246, %247 : vector<8x32xf32>
    %cst_126 = arith.constant dense<0.000000e+00> : vector<8x32xf32>
    %249 = tpu.matmul %241, %248, %cst_126 {dimension_numbers = #tpu.dot_dimension_numbers<[1], [0], [0], [1], [0, 0, 1, 1], [], []>} : vector<8x8xf32>, vector<8x32xf32>, vector<8x32xf32> -> vector<8x32xf32>
    %250 = arith.addf %192, %249 : vector<8x32xf32>
    %251 = vector.broadcast %218 : f32 to vector<1x32xf32>
    %252 = arith.mulf %11, %251 : vector<1x32xf32>
    %253 = vector.broadcast %252 : vector<1x32xf32> to vector<8x32xf32>
    %254 = arith.addf %250, %253 : vector<8x32xf32>
    %255 = arith.negf %254 : vector<8x32xf32>
    %256 = math.exp %255 : vector<8x32xf32>
    %cst_127 = arith.constant 1.000000e+00 : f32
    %257 = vector.broadcast %cst_127 : f32 to vector<8x32xf32>
    %258 = arith.addf %257, %256 : vector<8x32xf32>
    %259 = arith.divf %257, %258 : vector<8x32xf32>
    %cst_128 = arith.constant dense<0.000000e+00> : vector<8x32xf32>
    %260 = tpu.matmul %15, %259, %cst_128 {dimension_numbers = #tpu.dot_dimension_numbers<[1], [0], [0], [1], [0, 0, 1, 1], [], []>} : vector<8x8xf32>, vector<8x32xf32>, vector<8x32xf32> -> vector<8x32xf32>
    %cst_129 = arith.constant dense<0.000000e+00> : vector<8x16xf32>
    %261 = tpu.matmul %260, %17, %cst_129 {dimension_numbers = #tpu.dot_dimension_numbers<[1], [0], [0], [1], [0, 0, 1, 1], [], []>} : vector<8x32xf32>, vector<32x16xf32>, vector<8x16xf32> -> vector<8x16xf32>
    %262 = vector.broadcast %19 : vector<8x1xf32> to vector<8x16xf32>
    %263 = arith.mulf %261, %262 : vector<8x16xf32>
    %cst_130 = arith.constant dense<0.000000e+00> : vector<8x16xf32>
    %264 = tpu.matmul %260, %18, %cst_130 {dimension_numbers = #tpu.dot_dimension_numbers<[1], [0], [0], [1], [0, 0, 1, 1], [], []>} : vector<8x32xf32>, vector<32x16xf32>, vector<8x16xf32> -> vector<8x16xf32>
    %265 = vector.broadcast %21 : vector<8x1xf32> to vector<8x16xf32>
    %266 = arith.mulf %264, %265 : vector<8x16xf32>
    %267 = arith.addf %263, %266 : vector<8x16xf32>
    %cst_131 = arith.constant dense<0.000000e+00> : vector<8x16xf32>
    %268 = tpu.matmul %243, %12, %cst_131 {dimension_numbers = #tpu.dot_dimension_numbers<[1], [0], [0], [1], [0, 0, 1, 1], [], []>} : vector<8x2xf32>, vector<2x16xf32>, vector<8x16xf32> -> vector<8x16xf32>
    %269 = arith.mulf %267, %245 : vector<8x16xf32>
    %cst_132 = arith.constant dense<0.000000e+00> : vector<8x16xf32>
    %270 = tpu.matmul %269, %13, %cst_132 {dimension_numbers = #tpu.dot_dimension_numbers<[1], [0], [0], [1], [0, 0, 1, 1], [], []>} : vector<8x16xf32>, vector<16x16xf32>, vector<8x16xf32> -> vector<8x16xf32>
    %271 = arith.addf %268, %270 : vector<8x16xf32>
    %cst_133 = arith.constant dense<0.000000e+00> : vector<8x16xf32>
    %272 = tpu.matmul %241, %271, %cst_133 {dimension_numbers = #tpu.dot_dimension_numbers<[1], [0], [0], [1], [0, 0, 1, 1], [], []>} : vector<8x8xf32>, vector<8x16xf32>, vector<8x16xf32> -> vector<8x16xf32>
    %273 = arith.addf %215, %272 : vector<8x16xf32>
    %274 = vector.broadcast %218 : f32 to vector<1x16xf32>
    %275 = arith.mulf %14, %274 : vector<1x16xf32>
    %276 = vector.broadcast %275 : vector<1x16xf32> to vector<8x16xf32>
    %277 = arith.addf %273, %276 : vector<8x16xf32>
    %c4_i32_134 = arith.constant 4 : i32
    %278 = arith.cmpi sgt, %1, %c4_i32_134 : i32
    %279 = arith.extui %278 : i1 to i32
    %280 = arith.sitofp %279 : i32 to f32
    %c1_i32_135 = arith.constant 1 : i32
    %281 = arith.subi %1, %c1_i32_135 : i32
    %c4_i32_136 = arith.constant 4 : i32
    %282 = arith.cmpi eq, %281, %c4_i32_136 : i32
    %283 = arith.extui %282 : i1 to i32
    %284 = arith.sitofp %283 : i32 to f32
    %cst_137 = arith.constant -0.166666672 : f32
    %285 = arith.mulf %284, %cst_137 : f32
    %cst_138 = arith.constant 5.000000e-01 : f32
    %286 = arith.addf %cst_138, %285 : f32
    %287 = arith.mulf %286, %280 : f32
    %288 = arith.subf %8, %7 : vector<8x8xf32>
    %289 = vector.broadcast %284 : f32 to vector<8x8xf32>
    %290 = arith.mulf %289, %288 : vector<8x8xf32>
    %291 = arith.addf %7, %290 : vector<8x8xf32>
    %292 = vector.broadcast %280 : f32 to vector<8x8xf32>
    %293 = arith.mulf %291, %292 : vector<8x8xf32>
    %294 = vector.broadcast %1 : i32 to vector<8x8xi32>
    %295 = arith.subi %294, %6 : vector<8x8xi32>
    %c5_i32 = arith.constant 5 : i32
    %296 = vector.broadcast %c5_i32 : i32 to vector<8x8xi32>
    %297 = arith.cmpi slt, %295, %296 : vector<8x8xi32>
    %298 = arith.andi %5, %297 : vector<8x8xi1>
    %cst_139 = arith.constant 0.000000e+00 : f32
    %299 = vector.broadcast %cst_139 : f32 to vector<8x8xf32>
    %300 = arith.select %298, %3, %299 : vector<8x8xi1>, vector<8x8xf32>
    %301 = vector.broadcast %287 : f32 to vector<8x8xf32>
    %302 = arith.mulf %300, %301 : vector<8x8xf32>
    %303 = arith.addf %302, %293 : vector<8x8xf32>
    %c4 = arith.constant 4 : index
    %c0_140 = arith.constant 0 : index
    %c0_141 = arith.constant 0 : index
    %304 = vector.load %arg23[%c4, %c0_140, %c0_141] : memref<11x8x2xf32, #tpu.memory_space<vmem>>, vector<1x8x2xf32>
    %305 = vector.shape_cast %304 : vector<1x8x2xf32> to vector<8x2xf32>
    %c4_142 = arith.constant 4 : index
    %c0_143 = arith.constant 0 : index
    %c0_144 = arith.constant 0 : index
    %306 = vector.load %arg24[%c4_142, %c0_143, %c0_144] : memref<11x8x16xf32, #tpu.memory_space<vmem>>, vector<1x8x16xf32>
    %307 = vector.shape_cast %306 : vector<1x8x16xf32> to vector<8x16xf32>
    %cst_145 = arith.constant dense<0.000000e+00> : vector<8x32xf32>
    %308 = tpu.matmul %305, %9, %cst_145 {dimension_numbers = #tpu.dot_dimension_numbers<[1], [0], [0], [1], [0, 0, 1, 1], [], []>} : vector<8x2xf32>, vector<2x32xf32>, vector<8x32xf32> -> vector<8x32xf32>
    %cst_146 = arith.constant dense<0.000000e+00> : vector<8x32xf32>
    %309 = tpu.matmul %307, %10, %cst_146 {dimension_numbers = #tpu.dot_dimension_numbers<[1], [0], [0], [1], [0, 0, 1, 1], [], []>} : vector<8x16xf32>, vector<16x32xf32>, vector<8x32xf32> -> vector<8x32xf32>
    %310 = arith.addf %308, %309 : vector<8x32xf32>
    %cst_147 = arith.constant dense<0.000000e+00> : vector<8x32xf32>
    %311 = tpu.matmul %303, %310, %cst_147 {dimension_numbers = #tpu.dot_dimension_numbers<[1], [0], [0], [1], [0, 0, 1, 1], [], []>} : vector<8x8xf32>, vector<8x32xf32>, vector<8x32xf32> -> vector<8x32xf32>
    %312 = arith.addf %254, %311 : vector<8x32xf32>
    %313 = vector.broadcast %280 : f32 to vector<1x32xf32>
    %314 = arith.mulf %11, %313 : vector<1x32xf32>
    %315 = vector.broadcast %314 : vector<1x32xf32> to vector<8x32xf32>
    %316 = arith.addf %312, %315 : vector<8x32xf32>
    %317 = arith.negf %316 : vector<8x32xf32>
    %318 = math.exp %317 : vector<8x32xf32>
    %cst_148 = arith.constant 1.000000e+00 : f32
    %319 = vector.broadcast %cst_148 : f32 to vector<8x32xf32>
    %320 = arith.addf %319, %318 : vector<8x32xf32>
    %321 = arith.divf %319, %320 : vector<8x32xf32>
    %cst_149 = arith.constant dense<0.000000e+00> : vector<8x32xf32>
    %322 = tpu.matmul %15, %321, %cst_149 {dimension_numbers = #tpu.dot_dimension_numbers<[1], [0], [0], [1], [0, 0, 1, 1], [], []>} : vector<8x8xf32>, vector<8x32xf32>, vector<8x32xf32> -> vector<8x32xf32>
    %cst_150 = arith.constant dense<0.000000e+00> : vector<8x16xf32>
    %323 = tpu.matmul %322, %17, %cst_150 {dimension_numbers = #tpu.dot_dimension_numbers<[1], [0], [0], [1], [0, 0, 1, 1], [], []>} : vector<8x32xf32>, vector<32x16xf32>, vector<8x16xf32> -> vector<8x16xf32>
    %324 = vector.broadcast %19 : vector<8x1xf32> to vector<8x16xf32>
    %325 = arith.mulf %323, %324 : vector<8x16xf32>
    %cst_151 = arith.constant dense<0.000000e+00> : vector<8x16xf32>
    %326 = tpu.matmul %322, %18, %cst_151 {dimension_numbers = #tpu.dot_dimension_numbers<[1], [0], [0], [1], [0, 0, 1, 1], [], []>} : vector<8x32xf32>, vector<32x16xf32>, vector<8x16xf32> -> vector<8x16xf32>
    %327 = vector.broadcast %21 : vector<8x1xf32> to vector<8x16xf32>
    %328 = arith.mulf %326, %327 : vector<8x16xf32>
    %329 = arith.addf %325, %328 : vector<8x16xf32>
    %cst_152 = arith.constant dense<0.000000e+00> : vector<8x16xf32>
    %330 = tpu.matmul %305, %12, %cst_152 {dimension_numbers = #tpu.dot_dimension_numbers<[1], [0], [0], [1], [0, 0, 1, 1], [], []>} : vector<8x2xf32>, vector<2x16xf32>, vector<8x16xf32> -> vector<8x16xf32>
    %331 = arith.mulf %329, %307 : vector<8x16xf32>
    %cst_153 = arith.constant dense<0.000000e+00> : vector<8x16xf32>
    %332 = tpu.matmul %331, %13, %cst_153 {dimension_numbers = #tpu.dot_dimension_numbers<[1], [0], [0], [1], [0, 0, 1, 1], [], []>} : vector<8x16xf32>, vector<16x16xf32>, vector<8x16xf32> -> vector<8x16xf32>
    %333 = arith.addf %330, %332 : vector<8x16xf32>
    %cst_154 = arith.constant dense<0.000000e+00> : vector<8x16xf32>
    %334 = tpu.matmul %303, %333, %cst_154 {dimension_numbers = #tpu.dot_dimension_numbers<[1], [0], [0], [1], [0, 0, 1, 1], [], []>} : vector<8x8xf32>, vector<8x16xf32>, vector<8x16xf32> -> vector<8x16xf32>
    %335 = arith.addf %277, %334 : vector<8x16xf32>
    %336 = vector.broadcast %280 : f32 to vector<1x16xf32>
    %337 = arith.mulf %14, %336 : vector<1x16xf32>
    %338 = vector.broadcast %337 : vector<1x16xf32> to vector<8x16xf32>
    %339 = arith.addf %335, %338 : vector<8x16xf32>
    %c5_i32_155 = arith.constant 5 : i32
    %340 = arith.cmpi sgt, %1, %c5_i32_155 : i32
    %341 = arith.extui %340 : i1 to i32
    %342 = arith.sitofp %341 : i32 to f32
    %c1_i32_156 = arith.constant 1 : i32
    %343 = arith.subi %1, %c1_i32_156 : i32
    %c5_i32_157 = arith.constant 5 : i32
    %344 = arith.cmpi eq, %343, %c5_i32_157 : i32
    %345 = arith.extui %344 : i1 to i32
    %346 = arith.sitofp %345 : i32 to f32
    %cst_158 = arith.constant -0.166666672 : f32
    %347 = arith.mulf %346, %cst_158 : f32
    %cst_159 = arith.constant 5.000000e-01 : f32
    %348 = arith.addf %cst_159, %347 : f32
    %349 = arith.mulf %348, %342 : f32
    %350 = arith.subf %8, %7 : vector<8x8xf32>
    %351 = vector.broadcast %346 : f32 to vector<8x8xf32>
    %352 = arith.mulf %351, %350 : vector<8x8xf32>
    %353 = arith.addf %7, %352 : vector<8x8xf32>
    %354 = vector.broadcast %342 : f32 to vector<8x8xf32>
    %355 = arith.mulf %353, %354 : vector<8x8xf32>
    %356 = vector.broadcast %1 : i32 to vector<8x8xi32>
    %357 = arith.subi %356, %6 : vector<8x8xi32>
    %c6_i32 = arith.constant 6 : i32
    %358 = vector.broadcast %c6_i32 : i32 to vector<8x8xi32>
    %359 = arith.cmpi slt, %357, %358 : vector<8x8xi32>
    %360 = arith.andi %5, %359 : vector<8x8xi1>
    %cst_160 = arith.constant 0.000000e+00 : f32
    %361 = vector.broadcast %cst_160 : f32 to vector<8x8xf32>
    %362 = arith.select %360, %3, %361 : vector<8x8xi1>, vector<8x8xf32>
    %363 = vector.broadcast %349 : f32 to vector<8x8xf32>
    %364 = arith.mulf %362, %363 : vector<8x8xf32>
    %365 = arith.addf %364, %355 : vector<8x8xf32>
    %c5 = arith.constant 5 : index
    %c0_161 = arith.constant 0 : index
    %c0_162 = arith.constant 0 : index
    %366 = vector.load %arg23[%c5, %c0_161, %c0_162] : memref<11x8x2xf32, #tpu.memory_space<vmem>>, vector<1x8x2xf32>
    %367 = vector.shape_cast %366 : vector<1x8x2xf32> to vector<8x2xf32>
    %c5_163 = arith.constant 5 : index
    %c0_164 = arith.constant 0 : index
    %c0_165 = arith.constant 0 : index
    %368 = vector.load %arg24[%c5_163, %c0_164, %c0_165] : memref<11x8x16xf32, #tpu.memory_space<vmem>>, vector<1x8x16xf32>
    %369 = vector.shape_cast %368 : vector<1x8x16xf32> to vector<8x16xf32>
    %cst_166 = arith.constant dense<0.000000e+00> : vector<8x32xf32>
    %370 = tpu.matmul %367, %9, %cst_166 {dimension_numbers = #tpu.dot_dimension_numbers<[1], [0], [0], [1], [0, 0, 1, 1], [], []>} : vector<8x2xf32>, vector<2x32xf32>, vector<8x32xf32> -> vector<8x32xf32>
    %cst_167 = arith.constant dense<0.000000e+00> : vector<8x32xf32>
    %371 = tpu.matmul %369, %10, %cst_167 {dimension_numbers = #tpu.dot_dimension_numbers<[1], [0], [0], [1], [0, 0, 1, 1], [], []>} : vector<8x16xf32>, vector<16x32xf32>, vector<8x32xf32> -> vector<8x32xf32>
    %372 = arith.addf %370, %371 : vector<8x32xf32>
    %cst_168 = arith.constant dense<0.000000e+00> : vector<8x32xf32>
    %373 = tpu.matmul %365, %372, %cst_168 {dimension_numbers = #tpu.dot_dimension_numbers<[1], [0], [0], [1], [0, 0, 1, 1], [], []>} : vector<8x8xf32>, vector<8x32xf32>, vector<8x32xf32> -> vector<8x32xf32>
    %374 = arith.addf %316, %373 : vector<8x32xf32>
    %375 = vector.broadcast %342 : f32 to vector<1x32xf32>
    %376 = arith.mulf %11, %375 : vector<1x32xf32>
    %377 = vector.broadcast %376 : vector<1x32xf32> to vector<8x32xf32>
    %378 = arith.addf %374, %377 : vector<8x32xf32>
    %379 = arith.negf %378 : vector<8x32xf32>
    %380 = math.exp %379 : vector<8x32xf32>
    %cst_169 = arith.constant 1.000000e+00 : f32
    %381 = vector.broadcast %cst_169 : f32 to vector<8x32xf32>
    %382 = arith.addf %381, %380 : vector<8x32xf32>
    %383 = arith.divf %381, %382 : vector<8x32xf32>
    %cst_170 = arith.constant dense<0.000000e+00> : vector<8x32xf32>
    %384 = tpu.matmul %15, %383, %cst_170 {dimension_numbers = #tpu.dot_dimension_numbers<[1], [0], [0], [1], [0, 0, 1, 1], [], []>} : vector<8x8xf32>, vector<8x32xf32>, vector<8x32xf32> -> vector<8x32xf32>
    %cst_171 = arith.constant dense<0.000000e+00> : vector<8x16xf32>
    %385 = tpu.matmul %384, %17, %cst_171 {dimension_numbers = #tpu.dot_dimension_numbers<[1], [0], [0], [1], [0, 0, 1, 1], [], []>} : vector<8x32xf32>, vector<32x16xf32>, vector<8x16xf32> -> vector<8x16xf32>
    %386 = vector.broadcast %19 : vector<8x1xf32> to vector<8x16xf32>
    %387 = arith.mulf %385, %386 : vector<8x16xf32>
    %cst_172 = arith.constant dense<0.000000e+00> : vector<8x16xf32>
    %388 = tpu.matmul %384, %18, %cst_172 {dimension_numbers = #tpu.dot_dimension_numbers<[1], [0], [0], [1], [0, 0, 1, 1], [], []>} : vector<8x32xf32>, vector<32x16xf32>, vector<8x16xf32> -> vector<8x16xf32>
    %389 = vector.broadcast %21 : vector<8x1xf32> to vector<8x16xf32>
    %390 = arith.mulf %388, %389 : vector<8x16xf32>
    %391 = arith.addf %387, %390 : vector<8x16xf32>
    %cst_173 = arith.constant dense<0.000000e+00> : vector<8x16xf32>
    %392 = tpu.matmul %367, %12, %cst_173 {dimension_numbers = #tpu.dot_dimension_numbers<[1], [0], [0], [1], [0, 0, 1, 1], [], []>} : vector<8x2xf32>, vector<2x16xf32>, vector<8x16xf32> -> vector<8x16xf32>
    %393 = arith.mulf %391, %369 : vector<8x16xf32>
    %cst_174 = arith.constant dense<0.000000e+00> : vector<8x16xf32>
    %394 = tpu.matmul %393, %13, %cst_174 {dimension_numbers = #tpu.dot_dimension_numbers<[1], [0], [0], [1], [0, 0, 1, 1], [], []>} : vector<8x16xf32>, vector<16x16xf32>, vector<8x16xf32> -> vector<8x16xf32>
    %395 = arith.addf %392, %394 : vector<8x16xf32>
    %cst_175 = arith.constant dense<0.000000e+00> : vector<8x16xf32>
    %396 = tpu.matmul %365, %395, %cst_175 {dimension_numbers = #tpu.dot_dimension_numbers<[1], [0], [0], [1], [0, 0, 1, 1], [], []>} : vector<8x8xf32>, vector<8x16xf32>, vector<8x16xf32> -> vector<8x16xf32>
    %397 = arith.addf %339, %396 : vector<8x16xf32>
    %398 = vector.broadcast %342 : f32 to vector<1x16xf32>
    %399 = arith.mulf %14, %398 : vector<1x16xf32>
    %400 = vector.broadcast %399 : vector<1x16xf32> to vector<8x16xf32>
    %401 = arith.addf %397, %400 : vector<8x16xf32>
    %c6_i32_176 = arith.constant 6 : i32
    %402 = arith.cmpi sgt, %1, %c6_i32_176 : i32
    %403 = arith.extui %402 : i1 to i32
    %404 = arith.sitofp %403 : i32 to f32
    %c1_i32_177 = arith.constant 1 : i32
    %405 = arith.subi %1, %c1_i32_177 : i32
    %c6_i32_178 = arith.constant 6 : i32
    %406 = arith.cmpi eq, %405, %c6_i32_178 : i32
    %407 = arith.extui %406 : i1 to i32
    %408 = arith.sitofp %407 : i32 to f32
    %cst_179 = arith.constant -0.166666672 : f32
    %409 = arith.mulf %408, %cst_179 : f32
    %cst_180 = arith.constant 5.000000e-01 : f32
    %410 = arith.addf %cst_180, %409 : f32
    %411 = arith.mulf %410, %404 : f32
    %412 = arith.subf %8, %7 : vector<8x8xf32>
    %413 = vector.broadcast %408 : f32 to vector<8x8xf32>
    %414 = arith.mulf %413, %412 : vector<8x8xf32>
    %415 = arith.addf %7, %414 : vector<8x8xf32>
    %416 = vector.broadcast %404 : f32 to vector<8x8xf32>
    %417 = arith.mulf %415, %416 : vector<8x8xf32>
    %418 = vector.broadcast %1 : i32 to vector<8x8xi32>
    %419 = arith.subi %418, %6 : vector<8x8xi32>
    %c7_i32 = arith.constant 7 : i32
    %420 = vector.broadcast %c7_i32 : i32 to vector<8x8xi32>
    %421 = arith.cmpi slt, %419, %420 : vector<8x8xi32>
    %422 = arith.andi %5, %421 : vector<8x8xi1>
    %cst_181 = arith.constant 0.000000e+00 : f32
    %423 = vector.broadcast %cst_181 : f32 to vector<8x8xf32>
    %424 = arith.select %422, %3, %423 : vector<8x8xi1>, vector<8x8xf32>
    %425 = vector.broadcast %411 : f32 to vector<8x8xf32>
    %426 = arith.mulf %424, %425 : vector<8x8xf32>
    %427 = arith.addf %426, %417 : vector<8x8xf32>
    %c6 = arith.constant 6 : index
    %c0_182 = arith.constant 0 : index
    %c0_183 = arith.constant 0 : index
    %428 = vector.load %arg23[%c6, %c0_182, %c0_183] : memref<11x8x2xf32, #tpu.memory_space<vmem>>, vector<1x8x2xf32>
    %429 = vector.shape_cast %428 : vector<1x8x2xf32> to vector<8x2xf32>
    %c6_184 = arith.constant 6 : index
    %c0_185 = arith.constant 0 : index
    %c0_186 = arith.constant 0 : index
    %430 = vector.load %arg24[%c6_184, %c0_185, %c0_186] : memref<11x8x16xf32, #tpu.memory_space<vmem>>, vector<1x8x16xf32>
    %431 = vector.shape_cast %430 : vector<1x8x16xf32> to vector<8x16xf32>
    %cst_187 = arith.constant dense<0.000000e+00> : vector<8x32xf32>
    %432 = tpu.matmul %429, %9, %cst_187 {dimension_numbers = #tpu.dot_dimension_numbers<[1], [0], [0], [1], [0, 0, 1, 1], [], []>} : vector<8x2xf32>, vector<2x32xf32>, vector<8x32xf32> -> vector<8x32xf32>
    %cst_188 = arith.constant dense<0.000000e+00> : vector<8x32xf32>
    %433 = tpu.matmul %431, %10, %cst_188 {dimension_numbers = #tpu.dot_dimension_numbers<[1], [0], [0], [1], [0, 0, 1, 1], [], []>} : vector<8x16xf32>, vector<16x32xf32>, vector<8x32xf32> -> vector<8x32xf32>
    %434 = arith.addf %432, %433 : vector<8x32xf32>
    %cst_189 = arith.constant dense<0.000000e+00> : vector<8x32xf32>
    %435 = tpu.matmul %427, %434, %cst_189 {dimension_numbers = #tpu.dot_dimension_numbers<[1], [0], [0], [1], [0, 0, 1, 1], [], []>} : vector<8x8xf32>, vector<8x32xf32>, vector<8x32xf32> -> vector<8x32xf32>
    %436 = arith.addf %378, %435 : vector<8x32xf32>
    %437 = vector.broadcast %404 : f32 to vector<1x32xf32>
    %438 = arith.mulf %11, %437 : vector<1x32xf32>
    %439 = vector.broadcast %438 : vector<1x32xf32> to vector<8x32xf32>
    %440 = arith.addf %436, %439 : vector<8x32xf32>
    %441 = arith.negf %440 : vector<8x32xf32>
    %442 = math.exp %441 : vector<8x32xf32>
    %cst_190 = arith.constant 1.000000e+00 : f32
    %443 = vector.broadcast %cst_190 : f32 to vector<8x32xf32>
    %444 = arith.addf %443, %442 : vector<8x32xf32>
    %445 = arith.divf %443, %444 : vector<8x32xf32>
    %cst_191 = arith.constant dense<0.000000e+00> : vector<8x32xf32>
    %446 = tpu.matmul %15, %445, %cst_191 {dimension_numbers = #tpu.dot_dimension_numbers<[1], [0], [0], [1], [0, 0, 1, 1], [], []>} : vector<8x8xf32>, vector<8x32xf32>, vector<8x32xf32> -> vector<8x32xf32>
    %cst_192 = arith.constant dense<0.000000e+00> : vector<8x16xf32>
    %447 = tpu.matmul %446, %17, %cst_192 {dimension_numbers = #tpu.dot_dimension_numbers<[1], [0], [0], [1], [0, 0, 1, 1], [], []>} : vector<8x32xf32>, vector<32x16xf32>, vector<8x16xf32> -> vector<8x16xf32>
    %448 = vector.broadcast %19 : vector<8x1xf32> to vector<8x16xf32>
    %449 = arith.mulf %447, %448 : vector<8x16xf32>
    %cst_193 = arith.constant dense<0.000000e+00> : vector<8x16xf32>
    %450 = tpu.matmul %446, %18, %cst_193 {dimension_numbers = #tpu.dot_dimension_numbers<[1], [0], [0], [1], [0, 0, 1, 1], [], []>} : vector<8x32xf32>, vector<32x16xf32>, vector<8x16xf32> -> vector<8x16xf32>
    %451 = vector.broadcast %21 : vector<8x1xf32> to vector<8x16xf32>
    %452 = arith.mulf %450, %451 : vector<8x16xf32>
    %453 = arith.addf %449, %452 : vector<8x16xf32>
    %cst_194 = arith.constant dense<0.000000e+00> : vector<8x16xf32>
    %454 = tpu.matmul %429, %12, %cst_194 {dimension_numbers = #tpu.dot_dimension_numbers<[1], [0], [0], [1], [0, 0, 1, 1], [], []>} : vector<8x2xf32>, vector<2x16xf32>, vector<8x16xf32> -> vector<8x16xf32>
    %455 = arith.mulf %453, %431 : vector<8x16xf32>
    %cst_195 = arith.constant dense<0.000000e+00> : vector<8x16xf32>
    %456 = tpu.matmul %455, %13, %cst_195 {dimension_numbers = #tpu.dot_dimension_numbers<[1], [0], [0], [1], [0, 0, 1, 1], [], []>} : vector<8x16xf32>, vector<16x16xf32>, vector<8x16xf32> -> vector<8x16xf32>
    %457 = arith.addf %454, %456 : vector<8x16xf32>
    %cst_196 = arith.constant dense<0.000000e+00> : vector<8x16xf32>
    %458 = tpu.matmul %427, %457, %cst_196 {dimension_numbers = #tpu.dot_dimension_numbers<[1], [0], [0], [1], [0, 0, 1, 1], [], []>} : vector<8x8xf32>, vector<8x16xf32>, vector<8x16xf32> -> vector<8x16xf32>
    %459 = arith.addf %401, %458 : vector<8x16xf32>
    %460 = vector.broadcast %404 : f32 to vector<1x16xf32>
    %461 = arith.mulf %14, %460 : vector<1x16xf32>
    %462 = vector.broadcast %461 : vector<1x16xf32> to vector<8x16xf32>
    %463 = arith.addf %459, %462 : vector<8x16xf32>
    %c7_i32_197 = arith.constant 7 : i32
    %464 = arith.cmpi sgt, %1, %c7_i32_197 : i32
    %465 = arith.extui %464 : i1 to i32
    %466 = arith.sitofp %465 : i32 to f32
    %c1_i32_198 = arith.constant 1 : i32
    %467 = arith.subi %1, %c1_i32_198 : i32
    %c7_i32_199 = arith.constant 7 : i32
    %468 = arith.cmpi eq, %467, %c7_i32_199 : i32
    %469 = arith.extui %468 : i1 to i32
    %470 = arith.sitofp %469 : i32 to f32
    %cst_200 = arith.constant -0.166666672 : f32
    %471 = arith.mulf %470, %cst_200 : f32
    %cst_201 = arith.constant 5.000000e-01 : f32
    %472 = arith.addf %cst_201, %471 : f32
    %473 = arith.mulf %472, %466 : f32
    %474 = arith.subf %8, %7 : vector<8x8xf32>
    %475 = vector.broadcast %470 : f32 to vector<8x8xf32>
    %476 = arith.mulf %475, %474 : vector<8x8xf32>
    %477 = arith.addf %7, %476 : vector<8x8xf32>
    %478 = vector.broadcast %466 : f32 to vector<8x8xf32>
    %479 = arith.mulf %477, %478 : vector<8x8xf32>
    %480 = vector.broadcast %1 : i32 to vector<8x8xi32>
    %481 = arith.subi %480, %6 : vector<8x8xi32>
    %c8_i32 = arith.constant 8 : i32
    %482 = vector.broadcast %c8_i32 : i32 to vector<8x8xi32>
    %483 = arith.cmpi slt, %481, %482 : vector<8x8xi32>
    %484 = arith.andi %5, %483 : vector<8x8xi1>
    %cst_202 = arith.constant 0.000000e+00 : f32
    %485 = vector.broadcast %cst_202 : f32 to vector<8x8xf32>
    %486 = arith.select %484, %3, %485 : vector<8x8xi1>, vector<8x8xf32>
    %487 = vector.broadcast %473 : f32 to vector<8x8xf32>
    %488 = arith.mulf %486, %487 : vector<8x8xf32>
    %489 = arith.addf %488, %479 : vector<8x8xf32>
    %c7 = arith.constant 7 : index
    %c0_203 = arith.constant 0 : index
    %c0_204 = arith.constant 0 : index
    %490 = vector.load %arg23[%c7, %c0_203, %c0_204] : memref<11x8x2xf32, #tpu.memory_space<vmem>>, vector<1x8x2xf32>
    %491 = vector.shape_cast %490 : vector<1x8x2xf32> to vector<8x2xf32>
    %c7_205 = arith.constant 7 : index
    %c0_206 = arith.constant 0 : index
    %c0_207 = arith.constant 0 : index
    %492 = vector.load %arg24[%c7_205, %c0_206, %c0_207] : memref<11x8x16xf32, #tpu.memory_space<vmem>>, vector<1x8x16xf32>
    %493 = vector.shape_cast %492 : vector<1x8x16xf32> to vector<8x16xf32>
    %cst_208 = arith.constant dense<0.000000e+00> : vector<8x32xf32>
    %494 = tpu.matmul %491, %9, %cst_208 {dimension_numbers = #tpu.dot_dimension_numbers<[1], [0], [0], [1], [0, 0, 1, 1], [], []>} : vector<8x2xf32>, vector<2x32xf32>, vector<8x32xf32> -> vector<8x32xf32>
    %cst_209 = arith.constant dense<0.000000e+00> : vector<8x32xf32>
    %495 = tpu.matmul %493, %10, %cst_209 {dimension_numbers = #tpu.dot_dimension_numbers<[1], [0], [0], [1], [0, 0, 1, 1], [], []>} : vector<8x16xf32>, vector<16x32xf32>, vector<8x32xf32> -> vector<8x32xf32>
    %496 = arith.addf %494, %495 : vector<8x32xf32>
    %cst_210 = arith.constant dense<0.000000e+00> : vector<8x32xf32>
    %497 = tpu.matmul %489, %496, %cst_210 {dimension_numbers = #tpu.dot_dimension_numbers<[1], [0], [0], [1], [0, 0, 1, 1], [], []>} : vector<8x8xf32>, vector<8x32xf32>, vector<8x32xf32> -> vector<8x32xf32>
    %498 = arith.addf %440, %497 : vector<8x32xf32>
    %499 = vector.broadcast %466 : f32 to vector<1x32xf32>
    %500 = arith.mulf %11, %499 : vector<1x32xf32>
    %501 = vector.broadcast %500 : vector<1x32xf32> to vector<8x32xf32>
    %502 = arith.addf %498, %501 : vector<8x32xf32>
    %503 = arith.negf %502 : vector<8x32xf32>
    %504 = math.exp %503 : vector<8x32xf32>
    %cst_211 = arith.constant 1.000000e+00 : f32
    %505 = vector.broadcast %cst_211 : f32 to vector<8x32xf32>
    %506 = arith.addf %505, %504 : vector<8x32xf32>
    %507 = arith.divf %505, %506 : vector<8x32xf32>
    %cst_212 = arith.constant dense<0.000000e+00> : vector<8x32xf32>
    %508 = tpu.matmul %15, %507, %cst_212 {dimension_numbers = #tpu.dot_dimension_numbers<[1], [0], [0], [1], [0, 0, 1, 1], [], []>} : vector<8x8xf32>, vector<8x32xf32>, vector<8x32xf32> -> vector<8x32xf32>
    %cst_213 = arith.constant dense<0.000000e+00> : vector<8x16xf32>
    %509 = tpu.matmul %508, %17, %cst_213 {dimension_numbers = #tpu.dot_dimension_numbers<[1], [0], [0], [1], [0, 0, 1, 1], [], []>} : vector<8x32xf32>, vector<32x16xf32>, vector<8x16xf32> -> vector<8x16xf32>
    %510 = vector.broadcast %19 : vector<8x1xf32> to vector<8x16xf32>
    %511 = arith.mulf %509, %510 : vector<8x16xf32>
    %cst_214 = arith.constant dense<0.000000e+00> : vector<8x16xf32>
    %512 = tpu.matmul %508, %18, %cst_214 {dimension_numbers = #tpu.dot_dimension_numbers<[1], [0], [0], [1], [0, 0, 1, 1], [], []>} : vector<8x32xf32>, vector<32x16xf32>, vector<8x16xf32> -> vector<8x16xf32>
    %513 = vector.broadcast %21 : vector<8x1xf32> to vector<8x16xf32>
    %514 = arith.mulf %512, %513 : vector<8x16xf32>
    %515 = arith.addf %511, %514 : vector<8x16xf32>
    %cst_215 = arith.constant dense<0.000000e+00> : vector<8x16xf32>
    %516 = tpu.matmul %491, %12, %cst_215 {dimension_numbers = #tpu.dot_dimension_numbers<[1], [0], [0], [1], [0, 0, 1, 1], [], []>} : vector<8x2xf32>, vector<2x16xf32>, vector<8x16xf32> -> vector<8x16xf32>
    %517 = arith.mulf %515, %493 : vector<8x16xf32>
    %cst_216 = arith.constant dense<0.000000e+00> : vector<8x16xf32>
    %518 = tpu.matmul %517, %13, %cst_216 {dimension_numbers = #tpu.dot_dimension_numbers<[1], [0], [0], [1], [0, 0, 1, 1], [], []>} : vector<8x16xf32>, vector<16x16xf32>, vector<8x16xf32> -> vector<8x16xf32>
    %519 = arith.addf %516, %518 : vector<8x16xf32>
    %cst_217 = arith.constant dense<0.000000e+00> : vector<8x16xf32>
    %520 = tpu.matmul %489, %519, %cst_217 {dimension_numbers = #tpu.dot_dimension_numbers<[1], [0], [0], [1], [0, 0, 1, 1], [], []>} : vector<8x8xf32>, vector<8x16xf32>, vector<8x16xf32> -> vector<8x16xf32>
    %521 = arith.addf %463, %520 : vector<8x16xf32>
    %522 = vector.broadcast %466 : f32 to vector<1x16xf32>
    %523 = arith.mulf %14, %522 : vector<1x16xf32>
    %524 = vector.broadcast %523 : vector<1x16xf32> to vector<8x16xf32>
    %525 = arith.addf %521, %524 : vector<8x16xf32>
    %c8_i32_218 = arith.constant 8 : i32
    %526 = arith.cmpi sgt, %1, %c8_i32_218 : i32
    %527 = arith.extui %526 : i1 to i32
    %528 = arith.sitofp %527 : i32 to f32
    %c1_i32_219 = arith.constant 1 : i32
    %529 = arith.subi %1, %c1_i32_219 : i32
    %c8_i32_220 = arith.constant 8 : i32
    %530 = arith.cmpi eq, %529, %c8_i32_220 : i32
    %531 = arith.extui %530 : i1 to i32
    %532 = arith.sitofp %531 : i32 to f32
    %cst_221 = arith.constant -0.166666672 : f32
    %533 = arith.mulf %532, %cst_221 : f32
    %cst_222 = arith.constant 5.000000e-01 : f32
    %534 = arith.addf %cst_222, %533 : f32
    %535 = arith.mulf %534, %528 : f32
    %536 = arith.subf %8, %7 : vector<8x8xf32>
    %537 = vector.broadcast %532 : f32 to vector<8x8xf32>
    %538 = arith.mulf %537, %536 : vector<8x8xf32>
    %539 = arith.addf %7, %538 : vector<8x8xf32>
    %540 = vector.broadcast %528 : f32 to vector<8x8xf32>
    %541 = arith.mulf %539, %540 : vector<8x8xf32>
    %542 = vector.broadcast %1 : i32 to vector<8x8xi32>
    %543 = arith.subi %542, %6 : vector<8x8xi32>
    %c9_i32_223 = arith.constant 9 : i32
    %544 = vector.broadcast %c9_i32_223 : i32 to vector<8x8xi32>
    %545 = arith.cmpi slt, %543, %544 : vector<8x8xi32>
    %546 = arith.andi %5, %545 : vector<8x8xi1>
    %cst_224 = arith.constant 0.000000e+00 : f32
    %547 = vector.broadcast %cst_224 : f32 to vector<8x8xf32>
    %548 = arith.select %546, %3, %547 : vector<8x8xi1>, vector<8x8xf32>
    %549 = vector.broadcast %535 : f32 to vector<8x8xf32>
    %550 = arith.mulf %548, %549 : vector<8x8xf32>
    %551 = arith.addf %550, %541 : vector<8x8xf32>
    %c8 = arith.constant 8 : index
    %c0_225 = arith.constant 0 : index
    %c0_226 = arith.constant 0 : index
    %552 = vector.load %arg23[%c8, %c0_225, %c0_226] : memref<11x8x2xf32, #tpu.memory_space<vmem>>, vector<1x8x2xf32>
    %553 = vector.shape_cast %552 : vector<1x8x2xf32> to vector<8x2xf32>
    %c8_227 = arith.constant 8 : index
    %c0_228 = arith.constant 0 : index
    %c0_229 = arith.constant 0 : index
    %554 = vector.load %arg24[%c8_227, %c0_228, %c0_229] : memref<11x8x16xf32, #tpu.memory_space<vmem>>, vector<1x8x16xf32>
    %555 = vector.shape_cast %554 : vector<1x8x16xf32> to vector<8x16xf32>
    %cst_230 = arith.constant dense<0.000000e+00> : vector<8x32xf32>
    %556 = tpu.matmul %553, %9, %cst_230 {dimension_numbers = #tpu.dot_dimension_numbers<[1], [0], [0], [1], [0, 0, 1, 1], [], []>} : vector<8x2xf32>, vector<2x32xf32>, vector<8x32xf32> -> vector<8x32xf32>
    %cst_231 = arith.constant dense<0.000000e+00> : vector<8x32xf32>
    %557 = tpu.matmul %555, %10, %cst_231 {dimension_numbers = #tpu.dot_dimension_numbers<[1], [0], [0], [1], [0, 0, 1, 1], [], []>} : vector<8x16xf32>, vector<16x32xf32>, vector<8x32xf32> -> vector<8x32xf32>
    %558 = arith.addf %556, %557 : vector<8x32xf32>
    %cst_232 = arith.constant dense<0.000000e+00> : vector<8x32xf32>
    %559 = tpu.matmul %551, %558, %cst_232 {dimension_numbers = #tpu.dot_dimension_numbers<[1], [0], [0], [1], [0, 0, 1, 1], [], []>} : vector<8x8xf32>, vector<8x32xf32>, vector<8x32xf32> -> vector<8x32xf32>
    %560 = arith.addf %502, %559 : vector<8x32xf32>
    %561 = vector.broadcast %528 : f32 to vector<1x32xf32>
    %562 = arith.mulf %11, %561 : vector<1x32xf32>
    %563 = vector.broadcast %562 : vector<1x32xf32> to vector<8x32xf32>
    %564 = arith.addf %560, %563 : vector<8x32xf32>
    %565 = arith.negf %564 : vector<8x32xf32>
    %566 = math.exp %565 : vector<8x32xf32>
    %cst_233 = arith.constant 1.000000e+00 : f32
    %567 = vector.broadcast %cst_233 : f32 to vector<8x32xf32>
    %568 = arith.addf %567, %566 : vector<8x32xf32>
    %569 = arith.divf %567, %568 : vector<8x32xf32>
    %cst_234 = arith.constant dense<0.000000e+00> : vector<8x32xf32>
    %570 = tpu.matmul %15, %569, %cst_234 {dimension_numbers = #tpu.dot_dimension_numbers<[1], [0], [0], [1], [0, 0, 1, 1], [], []>} : vector<8x8xf32>, vector<8x32xf32>, vector<8x32xf32> -> vector<8x32xf32>
    %cst_235 = arith.constant dense<0.000000e+00> : vector<8x16xf32>
    %571 = tpu.matmul %570, %17, %cst_235 {dimension_numbers = #tpu.dot_dimension_numbers<[1], [0], [0], [1], [0, 0, 1, 1], [], []>} : vector<8x32xf32>, vector<32x16xf32>, vector<8x16xf32> -> vector<8x16xf32>
    %572 = vector.broadcast %19 : vector<8x1xf32> to vector<8x16xf32>
    %573 = arith.mulf %571, %572 : vector<8x16xf32>
    %cst_236 = arith.constant dense<0.000000e+00> : vector<8x16xf32>
    %574 = tpu.matmul %570, %18, %cst_236 {dimension_numbers = #tpu.dot_dimension_numbers<[1], [0], [0], [1], [0, 0, 1, 1], [], []>} : vector<8x32xf32>, vector<32x16xf32>, vector<8x16xf32> -> vector<8x16xf32>
    %575 = vector.broadcast %21 : vector<8x1xf32> to vector<8x16xf32>
    %576 = arith.mulf %574, %575 : vector<8x16xf32>
    %577 = arith.addf %573, %576 : vector<8x16xf32>
    %cst_237 = arith.constant dense<0.000000e+00> : vector<8x16xf32>
    %578 = tpu.matmul %553, %12, %cst_237 {dimension_numbers = #tpu.dot_dimension_numbers<[1], [0], [0], [1], [0, 0, 1, 1], [], []>} : vector<8x2xf32>, vector<2x16xf32>, vector<8x16xf32> -> vector<8x16xf32>
    %579 = arith.mulf %577, %555 : vector<8x16xf32>
    %cst_238 = arith.constant dense<0.000000e+00> : vector<8x16xf32>
    %580 = tpu.matmul %579, %13, %cst_238 {dimension_numbers = #tpu.dot_dimension_numbers<[1], [0], [0], [1], [0, 0, 1, 1], [], []>} : vector<8x16xf32>, vector<16x16xf32>, vector<8x16xf32> -> vector<8x16xf32>
    %581 = arith.addf %578, %580 : vector<8x16xf32>
    %cst_239 = arith.constant dense<0.000000e+00> : vector<8x16xf32>
    %582 = tpu.matmul %551, %581, %cst_239 {dimension_numbers = #tpu.dot_dimension_numbers<[1], [0], [0], [1], [0, 0, 1, 1], [], []>} : vector<8x8xf32>, vector<8x16xf32>, vector<8x16xf32> -> vector<8x16xf32>
    %583 = arith.addf %525, %582 : vector<8x16xf32>
    %584 = vector.broadcast %528 : f32 to vector<1x16xf32>
    %585 = arith.mulf %14, %584 : vector<1x16xf32>
    %586 = vector.broadcast %585 : vector<1x16xf32> to vector<8x16xf32>
    %587 = arith.addf %583, %586 : vector<8x16xf32>
    %c9_i32_240 = arith.constant 9 : i32
    %588 = arith.cmpi sgt, %1, %c9_i32_240 : i32
    %589 = arith.extui %588 : i1 to i32
    %590 = arith.sitofp %589 : i32 to f32
    %c1_i32_241 = arith.constant 1 : i32
    %591 = arith.subi %1, %c1_i32_241 : i32
    %c9_i32_242 = arith.constant 9 : i32
    %592 = arith.cmpi eq, %591, %c9_i32_242 : i32
    %593 = arith.extui %592 : i1 to i32
    %594 = arith.sitofp %593 : i32 to f32
    %cst_243 = arith.constant -0.166666672 : f32
    %595 = arith.mulf %594, %cst_243 : f32
    %cst_244 = arith.constant 5.000000e-01 : f32
    %596 = arith.addf %cst_244, %595 : f32
    %597 = arith.mulf %596, %590 : f32
    %598 = arith.subf %8, %7 : vector<8x8xf32>
    %599 = vector.broadcast %594 : f32 to vector<8x8xf32>
    %600 = arith.mulf %599, %598 : vector<8x8xf32>
    %601 = arith.addf %7, %600 : vector<8x8xf32>
    %602 = vector.broadcast %590 : f32 to vector<8x8xf32>
    %603 = arith.mulf %601, %602 : vector<8x8xf32>
    %604 = vector.broadcast %1 : i32 to vector<8x8xi32>
    %605 = arith.subi %604, %6 : vector<8x8xi32>
    %c10_i32 = arith.constant 10 : i32
    %606 = vector.broadcast %c10_i32 : i32 to vector<8x8xi32>
    %607 = arith.cmpi slt, %605, %606 : vector<8x8xi32>
    %608 = arith.andi %5, %607 : vector<8x8xi1>
    %cst_245 = arith.constant 0.000000e+00 : f32
    %609 = vector.broadcast %cst_245 : f32 to vector<8x8xf32>
    %610 = arith.select %608, %3, %609 : vector<8x8xi1>, vector<8x8xf32>
    %611 = vector.broadcast %597 : f32 to vector<8x8xf32>
    %612 = arith.mulf %610, %611 : vector<8x8xf32>
    %613 = arith.addf %612, %603 : vector<8x8xf32>
    %c9 = arith.constant 9 : index
    %c0_246 = arith.constant 0 : index
    %c0_247 = arith.constant 0 : index
    %614 = vector.load %arg23[%c9, %c0_246, %c0_247] : memref<11x8x2xf32, #tpu.memory_space<vmem>>, vector<1x8x2xf32>
    %615 = vector.shape_cast %614 : vector<1x8x2xf32> to vector<8x2xf32>
    %c9_248 = arith.constant 9 : index
    %c0_249 = arith.constant 0 : index
    %c0_250 = arith.constant 0 : index
    %616 = vector.load %arg24[%c9_248, %c0_249, %c0_250] : memref<11x8x16xf32, #tpu.memory_space<vmem>>, vector<1x8x16xf32>
    %617 = vector.shape_cast %616 : vector<1x8x16xf32> to vector<8x16xf32>
    %cst_251 = arith.constant dense<0.000000e+00> : vector<8x32xf32>
    %618 = tpu.matmul %615, %9, %cst_251 {dimension_numbers = #tpu.dot_dimension_numbers<[1], [0], [0], [1], [0, 0, 1, 1], [], []>} : vector<8x2xf32>, vector<2x32xf32>, vector<8x32xf32> -> vector<8x32xf32>
    %cst_252 = arith.constant dense<0.000000e+00> : vector<8x32xf32>
    %619 = tpu.matmul %617, %10, %cst_252 {dimension_numbers = #tpu.dot_dimension_numbers<[1], [0], [0], [1], [0, 0, 1, 1], [], []>} : vector<8x16xf32>, vector<16x32xf32>, vector<8x32xf32> -> vector<8x32xf32>
    %620 = arith.addf %618, %619 : vector<8x32xf32>
    %cst_253 = arith.constant dense<0.000000e+00> : vector<8x32xf32>
    %621 = tpu.matmul %613, %620, %cst_253 {dimension_numbers = #tpu.dot_dimension_numbers<[1], [0], [0], [1], [0, 0, 1, 1], [], []>} : vector<8x8xf32>, vector<8x32xf32>, vector<8x32xf32> -> vector<8x32xf32>
    %622 = arith.addf %564, %621 : vector<8x32xf32>
    %623 = vector.broadcast %590 : f32 to vector<1x32xf32>
    %624 = arith.mulf %11, %623 : vector<1x32xf32>
    %625 = vector.broadcast %624 : vector<1x32xf32> to vector<8x32xf32>
    %626 = arith.addf %622, %625 : vector<8x32xf32>
    %627 = arith.negf %626 : vector<8x32xf32>
    %628 = math.exp %627 : vector<8x32xf32>
    %cst_254 = arith.constant 1.000000e+00 : f32
    %629 = vector.broadcast %cst_254 : f32 to vector<8x32xf32>
    %630 = arith.addf %629, %628 : vector<8x32xf32>
    %631 = arith.divf %629, %630 : vector<8x32xf32>
    %cst_255 = arith.constant dense<0.000000e+00> : vector<8x32xf32>
    %632 = tpu.matmul %15, %631, %cst_255 {dimension_numbers = #tpu.dot_dimension_numbers<[1], [0], [0], [1], [0, 0, 1, 1], [], []>} : vector<8x8xf32>, vector<8x32xf32>, vector<8x32xf32> -> vector<8x32xf32>
    %cst_256 = arith.constant dense<0.000000e+00> : vector<8x16xf32>
    %633 = tpu.matmul %632, %17, %cst_256 {dimension_numbers = #tpu.dot_dimension_numbers<[1], [0], [0], [1], [0, 0, 1, 1], [], []>} : vector<8x32xf32>, vector<32x16xf32>, vector<8x16xf32> -> vector<8x16xf32>
    %634 = vector.broadcast %19 : vector<8x1xf32> to vector<8x16xf32>
    %635 = arith.mulf %633, %634 : vector<8x16xf32>
    %cst_257 = arith.constant dense<0.000000e+00> : vector<8x16xf32>
    %636 = tpu.matmul %632, %18, %cst_257 {dimension_numbers = #tpu.dot_dimension_numbers<[1], [0], [0], [1], [0, 0, 1, 1], [], []>} : vector<8x32xf32>, vector<32x16xf32>, vector<8x16xf32> -> vector<8x16xf32>
    %637 = vector.broadcast %21 : vector<8x1xf32> to vector<8x16xf32>
    %638 = arith.mulf %636, %637 : vector<8x16xf32>
    %639 = arith.addf %635, %638 : vector<8x16xf32>
    %cst_258 = arith.constant dense<0.000000e+00> : vector<8x16xf32>
    %640 = tpu.matmul %615, %12, %cst_258 {dimension_numbers = #tpu.dot_dimension_numbers<[1], [0], [0], [1], [0, 0, 1, 1], [], []>} : vector<8x2xf32>, vector<2x16xf32>, vector<8x16xf32> -> vector<8x16xf32>
    %641 = arith.mulf %639, %617 : vector<8x16xf32>
    %cst_259 = arith.constant dense<0.000000e+00> : vector<8x16xf32>
    %642 = tpu.matmul %641, %13, %cst_259 {dimension_numbers = #tpu.dot_dimension_numbers<[1], [0], [0], [1], [0, 0, 1, 1], [], []>} : vector<8x16xf32>, vector<16x16xf32>, vector<8x16xf32> -> vector<8x16xf32>
    %643 = arith.addf %640, %642 : vector<8x16xf32>
    %cst_260 = arith.constant dense<0.000000e+00> : vector<8x16xf32>
    %644 = tpu.matmul %613, %643, %cst_260 {dimension_numbers = #tpu.dot_dimension_numbers<[1], [0], [0], [1], [0, 0, 1, 1], [], []>} : vector<8x8xf32>, vector<8x16xf32>, vector<8x16xf32> -> vector<8x16xf32>
    %645 = arith.addf %587, %644 : vector<8x16xf32>
    %646 = vector.broadcast %590 : f32 to vector<1x16xf32>
    %647 = arith.mulf %14, %646 : vector<1x16xf32>
    %648 = vector.broadcast %647 : vector<1x16xf32> to vector<8x16xf32>
    %649 = arith.addf %645, %648 : vector<8x16xf32>
    %c1_i32_261 = arith.constant 1 : i32
    %650 = arith.subi %1, %c1_i32_261 : i32
    %651 = arith.index_cast %650 : i32 to index
    %c0_262 = arith.constant 0 : index
    %c0_263 = arith.constant 0 : index
    %652 = vector.load %arg24[%651, %c0_262, %c0_263] : memref<11x8x16xf32, #tpu.memory_space<vmem>>, vector<1x8x16xf32>
    %653 = vector.shape_cast %652 : vector<1x8x16xf32> to vector<8x16xf32>
    %654 = arith.negf %626 : vector<8x32xf32>
    %655 = math.exp %654 : vector<8x32xf32>
    %cst_264 = arith.constant 1.000000e+00 : f32
    %656 = vector.broadcast %cst_264 : f32 to vector<8x32xf32>
    %657 = arith.addf %656, %655 : vector<8x32xf32>
    %658 = arith.divf %656, %657 : vector<8x32xf32>
    %cst_265 = arith.constant dense<0.000000e+00> : vector<8x32xf32>
    %659 = tpu.matmul %16, %658, %cst_265 {dimension_numbers = #tpu.dot_dimension_numbers<[1], [0], [0], [1], [0, 0, 1, 1], [], []>} : vector<8x8xf32>, vector<8x32xf32>, vector<8x32xf32> -> vector<8x32xf32>
    %cst_266 = arith.constant dense<0.000000e+00> : vector<8x16xf32>
    %660 = tpu.matmul %659, %17, %cst_266 {dimension_numbers = #tpu.dot_dimension_numbers<[1], [0], [0], [1], [0, 0, 1, 1], [], []>} : vector<8x32xf32>, vector<32x16xf32>, vector<8x16xf32> -> vector<8x16xf32>
    %661 = vector.broadcast %19 : vector<8x1xf32> to vector<8x16xf32>
    %662 = arith.mulf %660, %661 : vector<8x16xf32>
    %cst_267 = arith.constant dense<0.000000e+00> : vector<8x16xf32>
    %663 = tpu.matmul %659, %18, %cst_267 {dimension_numbers = #tpu.dot_dimension_numbers<[1], [0], [0], [1], [0, 0, 1, 1], [], []>} : vector<8x32xf32>, vector<32x16xf32>, vector<8x16xf32> -> vector<8x16xf32>
    %664 = vector.broadcast %21 : vector<8x1xf32> to vector<8x16xf32>
    %665 = arith.mulf %663, %664 : vector<8x16xf32>
    %666 = arith.addf %662, %665 : vector<8x16xf32>
    %667 = math.tanh %649 : vector<8x16xf32>
    %668 = arith.mulf %666, %653 : vector<8x16xf32>
    %cst_268 = arith.constant 1.000000e+00 : f32
    %669 = vector.broadcast %cst_268 : f32 to vector<8x16xf32>
    %670 = arith.subf %669, %666 : vector<8x16xf32>
    %671 = arith.mulf %670, %667 : vector<8x16xf32>
    %672 = arith.addf %668, %671 : vector<8x16xf32>
    %c0_269 = arith.constant 0 : index
    %c0_270 = arith.constant 0 : index
    %673 = vector.load %arg20[%c0_269, %c0_270] : memref<8x16xf32, #tpu.memory_space<vmem>>, vector<8x16xf32>
    tpu.vector_store %arg20[%c0_269, %c0_270], %672 {strides = array<i32>} : memref<8x16xf32, #tpu.memory_space<vmem>>, vector<8x16xf32>,
    %674 = arith.index_cast %1 : i32 to index
    %c0_271 = arith.constant 0 : index
    %c0_272 = arith.constant 0 : index
    %675 = vector.load %arg24[%674, %c0_271, %c0_272] : memref<11x8x16xf32, #tpu.memory_space<vmem>>, vector<1x8x16xf32>
    %676 = vector.shape_cast %675 : vector<1x8x16xf32> to vector<8x16xf32>
    %677 = vector.shape_cast %672 : vector<8x16xf32> to vector<1x8x16xf32>
    tpu.vector_store %arg24[%674, %c0_271, %c0_272], %677 {strides = array<i32>} : memref<11x8x16xf32, #tpu.memory_space<vmem>>, vector<1x8x16xf32>,
    %c1_i32_273 = arith.constant 1 : i32
    %678 = arith.subi %1, %c1_i32_273 : i32
    %679 = arith.index_cast %678 : i32 to index
    %c0_274 = arith.constant 0 : index
    %c0_275 = arith.constant 0 : index
    %680 = vector.load %arg23[%679, %c0_274, %c0_275] : memref<11x8x2xf32, #tpu.memory_space<vmem>>, vector<1x8x2xf32>
    %681 = vector.shape_cast %680 : vector<1x8x2xf32> to vector<8x2xf32>
    %682 = arith.index_cast %1 : i32 to index
    %c0_276 = arith.constant 0 : index
    %c0_277 = arith.constant 0 : index
    %683 = vector.load %arg23[%682, %c0_276, %c0_277] : memref<11x8x2xf32, #tpu.memory_space<vmem>>, vector<1x8x2xf32>
    %684 = vector.shape_cast %683 : vector<1x8x2xf32> to vector<8x2xf32>
    %685 = vector.shape_cast %681 : vector<8x2xf32> to vector<1x8x2xf32>
    tpu.vector_store %arg23[%682, %c0_276, %c0_277], %685 {strides = array<i32>} : memref<11x8x2xf32, #tpu.memory_space<vmem>>, vector<1x8x2xf32>,
    %c0_i32_278 = arith.constant 0 : i32
    %686 = arith.subi %2, %c0_i32_278 : i32
    %687 = arith.addi %c0_i32_278, %686 : i32
    %c1_i32_279 = arith.constant 1 : i32
    %688 = scf.for %arg25 = %c0_i32_278 to %687 step %c1_i32_279 iter_args(%arg26 = %672) -> (vector<8x16xf32>)  : i32 {
      %c2_i32_287 = arith.constant 2 : i32
      %697 = arith.addi %0, %c2_i32_287 : i32
      %698 = arith.addi %697, %arg25 : i32
      %cst_288 = arith.constant 0.000000e+00 : f32
      %699 = vector.broadcast %cst_288 : f32 to vector<8x32xf32>
      %cst_289 = arith.constant 0.000000e+00 : f32
      %700 = vector.broadcast %cst_289 : f32 to vector<8x16xf32>
      %c0_i32_290 = arith.constant 0 : i32
      %701 = arith.cmpi sgt, %698, %c0_i32_290 : i32
      %702 = arith.extui %701 : i1 to i32
      %703 = arith.sitofp %702 : i32 to f32
      %c1_i32_291 = arith.constant 1 : i32
      %704 = arith.subi %698, %c1_i32_291 : i32
      %c0_i32_292 = arith.constant 0 : i32
      %705 = arith.cmpi eq, %704, %c0_i32_292 : i32
      %706 = arith.extui %705 : i1 to i32
      %707 = arith.sitofp %706 : i32 to f32
      %cst_293 = arith.constant -0.166666672 : f32
      %708 = arith.mulf %707, %cst_293 : f32
      %cst_294 = arith.constant 5.000000e-01 : f32
      %709 = arith.addf %cst_294, %708 : f32
      %710 = arith.mulf %709, %703 : f32
      %711 = arith.subf %8, %7 : vector<8x8xf32>
      %712 = vector.broadcast %707 : f32 to vector<8x8xf32>
      %713 = arith.mulf %712, %711 : vector<8x8xf32>
      %714 = arith.addf %7, %713 : vector<8x8xf32>
      %715 = vector.broadcast %703 : f32 to vector<8x8xf32>
      %716 = arith.mulf %714, %715 : vector<8x8xf32>
      %717 = vector.broadcast %698 : i32 to vector<8x8xi32>
      %718 = arith.subi %717, %6 : vector<8x8xi32>
      %c1_i32_295 = arith.constant 1 : i32
      %719 = vector.broadcast %c1_i32_295 : i32 to vector<8x8xi32>
      %720 = arith.cmpi slt, %718, %719 : vector<8x8xi32>
      %721 = arith.andi %5, %720 : vector<8x8xi1>
      %cst_296 = arith.constant 0.000000e+00 : f32
      %722 = vector.broadcast %cst_296 : f32 to vector<8x8xf32>
      %723 = arith.select %721, %3, %722 : vector<8x8xi1>, vector<8x8xf32>
      %724 = vector.broadcast %710 : f32 to vector<8x8xf32>
      %725 = arith.mulf %723, %724 : vector<8x8xf32>
      %726 = arith.addf %725, %716 : vector<8x8xf32>
      %c0_297 = arith.constant 0 : index
      %c0_298 = arith.constant 0 : index
      %c0_299 = arith.constant 0 : index
      %727 = vector.load %arg23[%c0_297, %c0_298, %c0_299] : memref<11x8x2xf32, #tpu.memory_space<vmem>>, vector<1x8x2xf32>
      %728 = vector.shape_cast %727 : vector<1x8x2xf32> to vector<8x2xf32>
      %c0_300 = arith.constant 0 : index
      %c0_301 = arith.constant 0 : index
      %c0_302 = arith.constant 0 : index
      %729 = vector.load %arg24[%c0_300, %c0_301, %c0_302] : memref<11x8x16xf32, #tpu.memory_space<vmem>>, vector<1x8x16xf32>
      %730 = vector.shape_cast %729 : vector<1x8x16xf32> to vector<8x16xf32>
      %cst_303 = arith.constant dense<0.000000e+00> : vector<8x32xf32>
      %731 = tpu.matmul %728, %9, %cst_303 {dimension_numbers = #tpu.dot_dimension_numbers<[1], [0], [0], [1], [0, 0, 1, 1], [], []>} : vector<8x2xf32>, vector<2x32xf32>, vector<8x32xf32> -> vector<8x32xf32>
      %cst_304 = arith.constant dense<0.000000e+00> : vector<8x32xf32>
      %732 = tpu.matmul %730, %10, %cst_304 {dimension_numbers = #tpu.dot_dimension_numbers<[1], [0], [0], [1], [0, 0, 1, 1], [], []>} : vector<8x16xf32>, vector<16x32xf32>, vector<8x32xf32> -> vector<8x32xf32>
      %733 = arith.addf %731, %732 : vector<8x32xf32>
      %cst_305 = arith.constant dense<0.000000e+00> : vector<8x32xf32>
      %734 = tpu.matmul %726, %733, %cst_305 {dimension_numbers = #tpu.dot_dimension_numbers<[1], [0], [0], [1], [0, 0, 1, 1], [], []>} : vector<8x8xf32>, vector<8x32xf32>, vector<8x32xf32> -> vector<8x32xf32>
      %735 = arith.addf %699, %734 : vector<8x32xf32>
      %736 = vector.broadcast %703 : f32 to vector<1x32xf32>
      %737 = arith.mulf %11, %736 : vector<1x32xf32>
      %738 = vector.broadcast %737 : vector<1x32xf32> to vector<8x32xf32>
      %739 = arith.addf %735, %738 : vector<8x32xf32>
      %740 = arith.negf %739 : vector<8x32xf32>
      %741 = math.exp %740 : vector<8x32xf32>
      %cst_306 = arith.constant 1.000000e+00 : f32
      %742 = vector.broadcast %cst_306 : f32 to vector<8x32xf32>
      %743 = arith.addf %742, %741 : vector<8x32xf32>
      %744 = arith.divf %742, %743 : vector<8x32xf32>
      %cst_307 = arith.constant dense<0.000000e+00> : vector<8x32xf32>
      %745 = tpu.matmul %15, %744, %cst_307 {dimension_numbers = #tpu.dot_dimension_numbers<[1], [0], [0], [1], [0, 0, 1, 1], [], []>} : vector<8x8xf32>, vector<8x32xf32>, vector<8x32xf32> -> vector<8x32xf32>
      %cst_308 = arith.constant dense<0.000000e+00> : vector<8x16xf32>
      %746 = tpu.matmul %745, %17, %cst_308 {dimension_numbers = #tpu.dot_dimension_numbers<[1], [0], [0], [1], [0, 0, 1, 1], [], []>} : vector<8x32xf32>, vector<32x16xf32>, vector<8x16xf32> -> vector<8x16xf32>
      %747 = vector.broadcast %19 : vector<8x1xf32> to vector<8x16xf32>
      %748 = arith.mulf %746, %747 : vector<8x16xf32>
      %cst_309 = arith.constant dense<0.000000e+00> : vector<8x16xf32>
      %749 = tpu.matmul %745, %18, %cst_309 {dimension_numbers = #tpu.dot_dimension_numbers<[1], [0], [0], [1], [0, 0, 1, 1], [], []>} : vector<8x32xf32>, vector<32x16xf32>, vector<8x16xf32> -> vector<8x16xf32>
      %750 = vector.broadcast %21 : vector<8x1xf32> to vector<8x16xf32>
      %751 = arith.mulf %749, %750 : vector<8x16xf32>
      %752 = arith.addf %748, %751 : vector<8x16xf32>
      %cst_310 = arith.constant dense<0.000000e+00> : vector<8x16xf32>
      %753 = tpu.matmul %728, %12, %cst_310 {dimension_numbers = #tpu.dot_dimension_numbers<[1], [0], [0], [1], [0, 0, 1, 1], [], []>} : vector<8x2xf32>, vector<2x16xf32>, vector<8x16xf32> -> vector<8x16xf32>
      %754 = arith.mulf %752, %730 : vector<8x16xf32>
      %cst_311 = arith.constant dense<0.000000e+00> : vector<8x16xf32>
      %755 = tpu.matmul %754, %13, %cst_311 {dimension_numbers = #tpu.dot_dimension_numbers<[1], [0], [0], [1], [0, 0, 1, 1], [], []>} : vector<8x16xf32>, vector<16x16xf32>, vector<8x16xf32> -> vector<8x16xf32>
      %756 = arith.addf %753, %755 : vector<8x16xf32>
      %cst_312 = arith.constant dense<0.000000e+00> : vector<8x16xf32>
      %757 = tpu.matmul %726, %756, %cst_312 {dimension_numbers = #tpu.dot_dimension_numbers<[1], [0], [0], [1], [0, 0, 1, 1], [], []>} : vector<8x8xf32>, vector<8x16xf32>, vector<8x16xf32> -> vector<8x16xf32>
      %758 = arith.addf %700, %757 : vector<8x16xf32>
      %759 = vector.broadcast %703 : f32 to vector<1x16xf32>
      %760 = arith.mulf %14, %759 : vector<1x16xf32>
      %761 = vector.broadcast %760 : vector<1x16xf32> to vector<8x16xf32>
      %762 = arith.addf %758, %761 : vector<8x16xf32>
      %c1_i32_313 = arith.constant 1 : i32
      %763 = arith.cmpi sgt, %698, %c1_i32_313 : i32
      %764 = arith.extui %763 : i1 to i32
      %765 = arith.sitofp %764 : i32 to f32
      %c1_i32_314 = arith.constant 1 : i32
      %766 = arith.subi %698, %c1_i32_314 : i32
      %c1_i32_315 = arith.constant 1 : i32
      %767 = arith.cmpi eq, %766, %c1_i32_315 : i32
      %768 = arith.extui %767 : i1 to i32
      %769 = arith.sitofp %768 : i32 to f32
      %cst_316 = arith.constant -0.166666672 : f32
      %770 = arith.mulf %769, %cst_316 : f32
      %cst_317 = arith.constant 5.000000e-01 : f32
      %771 = arith.addf %cst_317, %770 : f32
      %772 = arith.mulf %771, %765 : f32
      %773 = arith.subf %8, %7 : vector<8x8xf32>
      %774 = vector.broadcast %769 : f32 to vector<8x8xf32>
      %775 = arith.mulf %774, %773 : vector<8x8xf32>
      %776 = arith.addf %7, %775 : vector<8x8xf32>
      %777 = vector.broadcast %765 : f32 to vector<8x8xf32>
      %778 = arith.mulf %776, %777 : vector<8x8xf32>
      %779 = vector.broadcast %698 : i32 to vector<8x8xi32>
      %780 = arith.subi %779, %6 : vector<8x8xi32>
      %c2_i32_318 = arith.constant 2 : i32
      %781 = vector.broadcast %c2_i32_318 : i32 to vector<8x8xi32>
      %782 = arith.cmpi slt, %780, %781 : vector<8x8xi32>
      %783 = arith.andi %5, %782 : vector<8x8xi1>
      %cst_319 = arith.constant 0.000000e+00 : f32
      %784 = vector.broadcast %cst_319 : f32 to vector<8x8xf32>
      %785 = arith.select %783, %3, %784 : vector<8x8xi1>, vector<8x8xf32>
      %786 = vector.broadcast %772 : f32 to vector<8x8xf32>
      %787 = arith.mulf %785, %786 : vector<8x8xf32>
      %788 = arith.addf %787, %778 : vector<8x8xf32>
      %c1_320 = arith.constant 1 : index
      %c0_321 = arith.constant 0 : index
      %c0_322 = arith.constant 0 : index
      %789 = vector.load %arg23[%c1_320, %c0_321, %c0_322] : memref<11x8x2xf32, #tpu.memory_space<vmem>>, vector<1x8x2xf32>
      %790 = vector.shape_cast %789 : vector<1x8x2xf32> to vector<8x2xf32>
      %c1_323 = arith.constant 1 : index
      %c0_324 = arith.constant 0 : index
      %c0_325 = arith.constant 0 : index
      %791 = vector.load %arg24[%c1_323, %c0_324, %c0_325] : memref<11x8x16xf32, #tpu.memory_space<vmem>>, vector<1x8x16xf32>
      %792 = vector.shape_cast %791 : vector<1x8x16xf32> to vector<8x16xf32>
      %cst_326 = arith.constant dense<0.000000e+00> : vector<8x32xf32>
      %793 = tpu.matmul %790, %9, %cst_326 {dimension_numbers = #tpu.dot_dimension_numbers<[1], [0], [0], [1], [0, 0, 1, 1], [], []>} : vector<8x2xf32>, vector<2x32xf32>, vector<8x32xf32> -> vector<8x32xf32>
      %cst_327 = arith.constant dense<0.000000e+00> : vector<8x32xf32>
      %794 = tpu.matmul %792, %10, %cst_327 {dimension_numbers = #tpu.dot_dimension_numbers<[1], [0], [0], [1], [0, 0, 1, 1], [], []>} : vector<8x16xf32>, vector<16x32xf32>, vector<8x32xf32> -> vector<8x32xf32>
      %795 = arith.addf %793, %794 : vector<8x32xf32>
      %cst_328 = arith.constant dense<0.000000e+00> : vector<8x32xf32>
      %796 = tpu.matmul %788, %795, %cst_328 {dimension_numbers = #tpu.dot_dimension_numbers<[1], [0], [0], [1], [0, 0, 1, 1], [], []>} : vector<8x8xf32>, vector<8x32xf32>, vector<8x32xf32> -> vector<8x32xf32>
      %797 = arith.addf %739, %796 : vector<8x32xf32>
      %798 = vector.broadcast %765 : f32 to vector<1x32xf32>
      %799 = arith.mulf %11, %798 : vector<1x32xf32>
      %800 = vector.broadcast %799 : vector<1x32xf32> to vector<8x32xf32>
      %801 = arith.addf %797, %800 : vector<8x32xf32>
      %802 = arith.negf %801 : vector<8x32xf32>
      %803 = math.exp %802 : vector<8x32xf32>
      %cst_329 = arith.constant 1.000000e+00 : f32
      %804 = vector.broadcast %cst_329 : f32 to vector<8x32xf32>
      %805 = arith.addf %804, %803 : vector<8x32xf32>
      %806 = arith.divf %804, %805 : vector<8x32xf32>
      %cst_330 = arith.constant dense<0.000000e+00> : vector<8x32xf32>
      %807 = tpu.matmul %15, %806, %cst_330 {dimension_numbers = #tpu.dot_dimension_numbers<[1], [0], [0], [1], [0, 0, 1, 1], [], []>} : vector<8x8xf32>, vector<8x32xf32>, vector<8x32xf32> -> vector<8x32xf32>
      %cst_331 = arith.constant dense<0.000000e+00> : vector<8x16xf32>
      %808 = tpu.matmul %807, %17, %cst_331 {dimension_numbers = #tpu.dot_dimension_numbers<[1], [0], [0], [1], [0, 0, 1, 1], [], []>} : vector<8x32xf32>, vector<32x16xf32>, vector<8x16xf32> -> vector<8x16xf32>
      %809 = vector.broadcast %19 : vector<8x1xf32> to vector<8x16xf32>
      %810 = arith.mulf %808, %809 : vector<8x16xf32>
      %cst_332 = arith.constant dense<0.000000e+00> : vector<8x16xf32>
      %811 = tpu.matmul %807, %18, %cst_332 {dimension_numbers = #tpu.dot_dimension_numbers<[1], [0], [0], [1], [0, 0, 1, 1], [], []>} : vector<8x32xf32>, vector<32x16xf32>, vector<8x16xf32> -> vector<8x16xf32>
      %812 = vector.broadcast %21 : vector<8x1xf32> to vector<8x16xf32>
      %813 = arith.mulf %811, %812 : vector<8x16xf32>
      %814 = arith.addf %810, %813 : vector<8x16xf32>
      %cst_333 = arith.constant dense<0.000000e+00> : vector<8x16xf32>
      %815 = tpu.matmul %790, %12, %cst_333 {dimension_numbers = #tpu.dot_dimension_numbers<[1], [0], [0], [1], [0, 0, 1, 1], [], []>} : vector<8x2xf32>, vector<2x16xf32>, vector<8x16xf32> -> vector<8x16xf32>
      %816 = arith.mulf %814, %792 : vector<8x16xf32>
      %cst_334 = arith.constant dense<0.000000e+00> : vector<8x16xf32>
      %817 = tpu.matmul %816, %13, %cst_334 {dimension_numbers = #tpu.dot_dimension_numbers<[1], [0], [0], [1], [0, 0, 1, 1], [], []>} : vector<8x16xf32>, vector<16x16xf32>, vector<8x16xf32> -> vector<8x16xf32>
      %818 = arith.addf %815, %817 : vector<8x16xf32>
      %cst_335 = arith.constant dense<0.000000e+00> : vector<8x16xf32>
      %819 = tpu.matmul %788, %818, %cst_335 {dimension_numbers = #tpu.dot_dimension_numbers<[1], [0], [0], [1], [0, 0, 1, 1], [], []>} : vector<8x8xf32>, vector<8x16xf32>, vector<8x16xf32> -> vector<8x16xf32>
      %820 = arith.addf %762, %819 : vector<8x16xf32>
      %821 = vector.broadcast %765 : f32 to vector<1x16xf32>
      %822 = arith.mulf %14, %821 : vector<1x16xf32>
      %823 = vector.broadcast %822 : vector<1x16xf32> to vector<8x16xf32>
      %824 = arith.addf %820, %823 : vector<8x16xf32>
      %c2_i32_336 = arith.constant 2 : i32
      %825 = arith.cmpi sgt, %698, %c2_i32_336 : i32
      %826 = arith.extui %825 : i1 to i32
      %827 = arith.sitofp %826 : i32 to f32
      %c1_i32_337 = arith.constant 1 : i32
      %828 = arith.subi %698, %c1_i32_337 : i32
      %c2_i32_338 = arith.constant 2 : i32
      %829 = arith.cmpi eq, %828, %c2_i32_338 : i32
      %830 = arith.extui %829 : i1 to i32
      %831 = arith.sitofp %830 : i32 to f32
      %cst_339 = arith.constant -0.166666672 : f32
      %832 = arith.mulf %831, %cst_339 : f32
      %cst_340 = arith.constant 5.000000e-01 : f32
      %833 = arith.addf %cst_340, %832 : f32
      %834 = arith.mulf %833, %827 : f32
      %835 = arith.subf %8, %7 : vector<8x8xf32>
      %836 = vector.broadcast %831 : f32 to vector<8x8xf32>
      %837 = arith.mulf %836, %835 : vector<8x8xf32>
      %838 = arith.addf %7, %837 : vector<8x8xf32>
      %839 = vector.broadcast %827 : f32 to vector<8x8xf32>
      %840 = arith.mulf %838, %839 : vector<8x8xf32>
      %841 = vector.broadcast %698 : i32 to vector<8x8xi32>
      %842 = arith.subi %841, %6 : vector<8x8xi32>
      %c3_i32_341 = arith.constant 3 : i32
      %843 = vector.broadcast %c3_i32_341 : i32 to vector<8x8xi32>
      %844 = arith.cmpi slt, %842, %843 : vector<8x8xi32>
      %845 = arith.andi %5, %844 : vector<8x8xi1>
      %cst_342 = arith.constant 0.000000e+00 : f32
      %846 = vector.broadcast %cst_342 : f32 to vector<8x8xf32>
      %847 = arith.select %845, %3, %846 : vector<8x8xi1>, vector<8x8xf32>
      %848 = vector.broadcast %834 : f32 to vector<8x8xf32>
      %849 = arith.mulf %847, %848 : vector<8x8xf32>
      %850 = arith.addf %849, %840 : vector<8x8xf32>
      %c2_343 = arith.constant 2 : index
      %c0_344 = arith.constant 0 : index
      %c0_345 = arith.constant 0 : index
      %851 = vector.load %arg23[%c2_343, %c0_344, %c0_345] : memref<11x8x2xf32, #tpu.memory_space<vmem>>, vector<1x8x2xf32>
      %852 = vector.shape_cast %851 : vector<1x8x2xf32> to vector<8x2xf32>
      %c2_346 = arith.constant 2 : index
      %c0_347 = arith.constant 0 : index
      %c0_348 = arith.constant 0 : index
      %853 = vector.load %arg24[%c2_346, %c0_347, %c0_348] : memref<11x8x16xf32, #tpu.memory_space<vmem>>, vector<1x8x16xf32>
      %854 = vector.shape_cast %853 : vector<1x8x16xf32> to vector<8x16xf32>
      %cst_349 = arith.constant dense<0.000000e+00> : vector<8x32xf32>
      %855 = tpu.matmul %852, %9, %cst_349 {dimension_numbers = #tpu.dot_dimension_numbers<[1], [0], [0], [1], [0, 0, 1, 1], [], []>} : vector<8x2xf32>, vector<2x32xf32>, vector<8x32xf32> -> vector<8x32xf32>
      %cst_350 = arith.constant dense<0.000000e+00> : vector<8x32xf32>
      %856 = tpu.matmul %854, %10, %cst_350 {dimension_numbers = #tpu.dot_dimension_numbers<[1], [0], [0], [1], [0, 0, 1, 1], [], []>} : vector<8x16xf32>, vector<16x32xf32>, vector<8x32xf32> -> vector<8x32xf32>
      %857 = arith.addf %855, %856 : vector<8x32xf32>
      %cst_351 = arith.constant dense<0.000000e+00> : vector<8x32xf32>
      %858 = tpu.matmul %850, %857, %cst_351 {dimension_numbers = #tpu.dot_dimension_numbers<[1], [0], [0], [1], [0, 0, 1, 1], [], []>} : vector<8x8xf32>, vector<8x32xf32>, vector<8x32xf32> -> vector<8x32xf32>
      %859 = arith.addf %801, %858 : vector<8x32xf32>
      %860 = vector.broadcast %827 : f32 to vector<1x32xf32>
      %861 = arith.mulf %11, %860 : vector<1x32xf32>
      %862 = vector.broadcast %861 : vector<1x32xf32> to vector<8x32xf32>
      %863 = arith.addf %859, %862 : vector<8x32xf32>
      %864 = arith.negf %863 : vector<8x32xf32>
      %865 = math.exp %864 : vector<8x32xf32>
      %cst_352 = arith.constant 1.000000e+00 : f32
      %866 = vector.broadcast %cst_352 : f32 to vector<8x32xf32>
      %867 = arith.addf %866, %865 : vector<8x32xf32>
      %868 = arith.divf %866, %867 : vector<8x32xf32>
      %cst_353 = arith.constant dense<0.000000e+00> : vector<8x32xf32>
      %869 = tpu.matmul %15, %868, %cst_353 {dimension_numbers = #tpu.dot_dimension_numbers<[1], [0], [0], [1], [0, 0, 1, 1], [], []>} : vector<8x8xf32>, vector<8x32xf32>, vector<8x32xf32> -> vector<8x32xf32>
      %cst_354 = arith.constant dense<0.000000e+00> : vector<8x16xf32>
      %870 = tpu.matmul %869, %17, %cst_354 {dimension_numbers = #tpu.dot_dimension_numbers<[1], [0], [0], [1], [0, 0, 1, 1], [], []>} : vector<8x32xf32>, vector<32x16xf32>, vector<8x16xf32> -> vector<8x16xf32>
      %871 = vector.broadcast %19 : vector<8x1xf32> to vector<8x16xf32>
      %872 = arith.mulf %870, %871 : vector<8x16xf32>
      %cst_355 = arith.constant dense<0.000000e+00> : vector<8x16xf32>
      %873 = tpu.matmul %869, %18, %cst_355 {dimension_numbers = #tpu.dot_dimension_numbers<[1], [0], [0], [1], [0, 0, 1, 1], [], []>} : vector<8x32xf32>, vector<32x16xf32>, vector<8x16xf32> -> vector<8x16xf32>
      %874 = vector.broadcast %21 : vector<8x1xf32> to vector<8x16xf32>
      %875 = arith.mulf %873, %874 : vector<8x16xf32>
      %876 = arith.addf %872, %875 : vector<8x16xf32>
      %cst_356 = arith.constant dense<0.000000e+00> : vector<8x16xf32>
      %877 = tpu.matmul %852, %12, %cst_356 {dimension_numbers = #tpu.dot_dimension_numbers<[1], [0], [0], [1], [0, 0, 1, 1], [], []>} : vector<8x2xf32>, vector<2x16xf32>, vector<8x16xf32> -> vector<8x16xf32>
      %878 = arith.mulf %876, %854 : vector<8x16xf32>
      %cst_357 = arith.constant dense<0.000000e+00> : vector<8x16xf32>
      %879 = tpu.matmul %878, %13, %cst_357 {dimension_numbers = #tpu.dot_dimension_numbers<[1], [0], [0], [1], [0, 0, 1, 1], [], []>} : vector<8x16xf32>, vector<16x16xf32>, vector<8x16xf32> -> vector<8x16xf32>
      %880 = arith.addf %877, %879 : vector<8x16xf32>
      %cst_358 = arith.constant dense<0.000000e+00> : vector<8x16xf32>
      %881 = tpu.matmul %850, %880, %cst_358 {dimension_numbers = #tpu.dot_dimension_numbers<[1], [0], [0], [1], [0, 0, 1, 1], [], []>} : vector<8x8xf32>, vector<8x16xf32>, vector<8x16xf32> -> vector<8x16xf32>
      %882 = arith.addf %824, %881 : vector<8x16xf32>
      %883 = vector.broadcast %827 : f32 to vector<1x16xf32>
      %884 = arith.mulf %14, %883 : vector<1x16xf32>
      %885 = vector.broadcast %884 : vector<1x16xf32> to vector<8x16xf32>
      %886 = arith.addf %882, %885 : vector<8x16xf32>
      %c3_i32_359 = arith.constant 3 : i32
      %887 = arith.cmpi sgt, %698, %c3_i32_359 : i32
      %888 = arith.extui %887 : i1 to i32
      %889 = arith.sitofp %888 : i32 to f32
      %c1_i32_360 = arith.constant 1 : i32
      %890 = arith.subi %698, %c1_i32_360 : i32
      %c3_i32_361 = arith.constant 3 : i32
      %891 = arith.cmpi eq, %890, %c3_i32_361 : i32
      %892 = arith.extui %891 : i1 to i32
      %893 = arith.sitofp %892 : i32 to f32
      %cst_362 = arith.constant -0.166666672 : f32
      %894 = arith.mulf %893, %cst_362 : f32
      %cst_363 = arith.constant 5.000000e-01 : f32
      %895 = arith.addf %cst_363, %894 : f32
      %896 = arith.mulf %895, %889 : f32
      %897 = arith.subf %8, %7 : vector<8x8xf32>
      %898 = vector.broadcast %893 : f32 to vector<8x8xf32>
      %899 = arith.mulf %898, %897 : vector<8x8xf32>
      %900 = arith.addf %7, %899 : vector<8x8xf32>
      %901 = vector.broadcast %889 : f32 to vector<8x8xf32>
      %902 = arith.mulf %900, %901 : vector<8x8xf32>
      %903 = vector.broadcast %698 : i32 to vector<8x8xi32>
      %904 = arith.subi %903, %6 : vector<8x8xi32>
      %c4_i32_364 = arith.constant 4 : i32
      %905 = vector.broadcast %c4_i32_364 : i32 to vector<8x8xi32>
      %906 = arith.cmpi slt, %904, %905 : vector<8x8xi32>
      %907 = arith.andi %5, %906 : vector<8x8xi1>
      %cst_365 = arith.constant 0.000000e+00 : f32
      %908 = vector.broadcast %cst_365 : f32 to vector<8x8xf32>
      %909 = arith.select %907, %3, %908 : vector<8x8xi1>, vector<8x8xf32>
      %910 = vector.broadcast %896 : f32 to vector<8x8xf32>
      %911 = arith.mulf %909, %910 : vector<8x8xf32>
      %912 = arith.addf %911, %902 : vector<8x8xf32>
      %c3_366 = arith.constant 3 : index
      %c0_367 = arith.constant 0 : index
      %c0_368 = arith.constant 0 : index
      %913 = vector.load %arg23[%c3_366, %c0_367, %c0_368] : memref<11x8x2xf32, #tpu.memory_space<vmem>>, vector<1x8x2xf32>
      %914 = vector.shape_cast %913 : vector<1x8x2xf32> to vector<8x2xf32>
      %c3_369 = arith.constant 3 : index
      %c0_370 = arith.constant 0 : index
      %c0_371 = arith.constant 0 : index
      %915 = vector.load %arg24[%c3_369, %c0_370, %c0_371] : memref<11x8x16xf32, #tpu.memory_space<vmem>>, vector<1x8x16xf32>
      %916 = vector.shape_cast %915 : vector<1x8x16xf32> to vector<8x16xf32>
      %cst_372 = arith.constant dense<0.000000e+00> : vector<8x32xf32>
      %917 = tpu.matmul %914, %9, %cst_372 {dimension_numbers = #tpu.dot_dimension_numbers<[1], [0], [0], [1], [0, 0, 1, 1], [], []>} : vector<8x2xf32>, vector<2x32xf32>, vector<8x32xf32> -> vector<8x32xf32>
      %cst_373 = arith.constant dense<0.000000e+00> : vector<8x32xf32>
      %918 = tpu.matmul %916, %10, %cst_373 {dimension_numbers = #tpu.dot_dimension_numbers<[1], [0], [0], [1], [0, 0, 1, 1], [], []>} : vector<8x16xf32>, vector<16x32xf32>, vector<8x32xf32> -> vector<8x32xf32>
      %919 = arith.addf %917, %918 : vector<8x32xf32>
      %cst_374 = arith.constant dense<0.000000e+00> : vector<8x32xf32>
      %920 = tpu.matmul %912, %919, %cst_374 {dimension_numbers = #tpu.dot_dimension_numbers<[1], [0], [0], [1], [0, 0, 1, 1], [], []>} : vector<8x8xf32>, vector<8x32xf32>, vector<8x32xf32> -> vector<8x32xf32>
      %921 = arith.addf %863, %920 : vector<8x32xf32>
      %922 = vector.broadcast %889 : f32 to vector<1x32xf32>
      %923 = arith.mulf %11, %922 : vector<1x32xf32>
      %924 = vector.broadcast %923 : vector<1x32xf32> to vector<8x32xf32>
      %925 = arith.addf %921, %924 : vector<8x32xf32>
      %926 = arith.negf %925 : vector<8x32xf32>
      %927 = math.exp %926 : vector<8x32xf32>
      %cst_375 = arith.constant 1.000000e+00 : f32
      %928 = vector.broadcast %cst_375 : f32 to vector<8x32xf32>
      %929 = arith.addf %928, %927 : vector<8x32xf32>
      %930 = arith.divf %928, %929 : vector<8x32xf32>
      %cst_376 = arith.constant dense<0.000000e+00> : vector<8x32xf32>
      %931 = tpu.matmul %15, %930, %cst_376 {dimension_numbers = #tpu.dot_dimension_numbers<[1], [0], [0], [1], [0, 0, 1, 1], [], []>} : vector<8x8xf32>, vector<8x32xf32>, vector<8x32xf32> -> vector<8x32xf32>
      %cst_377 = arith.constant dense<0.000000e+00> : vector<8x16xf32>
      %932 = tpu.matmul %931, %17, %cst_377 {dimension_numbers = #tpu.dot_dimension_numbers<[1], [0], [0], [1], [0, 0, 1, 1], [], []>} : vector<8x32xf32>, vector<32x16xf32>, vector<8x16xf32> -> vector<8x16xf32>
      %933 = vector.broadcast %19 : vector<8x1xf32> to vector<8x16xf32>
      %934 = arith.mulf %932, %933 : vector<8x16xf32>
      %cst_378 = arith.constant dense<0.000000e+00> : vector<8x16xf32>
      %935 = tpu.matmul %931, %18, %cst_378 {dimension_numbers = #tpu.dot_dimension_numbers<[1], [0], [0], [1], [0, 0, 1, 1], [], []>} : vector<8x32xf32>, vector<32x16xf32>, vector<8x16xf32> -> vector<8x16xf32>
      %936 = vector.broadcast %21 : vector<8x1xf32> to vector<8x16xf32>
      %937 = arith.mulf %935, %936 : vector<8x16xf32>
      %938 = arith.addf %934, %937 : vector<8x16xf32>
      %cst_379 = arith.constant dense<0.000000e+00> : vector<8x16xf32>
      %939 = tpu.matmul %914, %12, %cst_379 {dimension_numbers = #tpu.dot_dimension_numbers<[1], [0], [0], [1], [0, 0, 1, 1], [], []>} : vector<8x2xf32>, vector<2x16xf32>, vector<8x16xf32> -> vector<8x16xf32>
      %940 = arith.mulf %938, %916 : vector<8x16xf32>
      %cst_380 = arith.constant dense<0.000000e+00> : vector<8x16xf32>
      %941 = tpu.matmul %940, %13, %cst_380 {dimension_numbers = #tpu.dot_dimension_numbers<[1], [0], [0], [1], [0, 0, 1, 1], [], []>} : vector<8x16xf32>, vector<16x16xf32>, vector<8x16xf32> -> vector<8x16xf32>
      %942 = arith.addf %939, %941 : vector<8x16xf32>
      %cst_381 = arith.constant dense<0.000000e+00> : vector<8x16xf32>
      %943 = tpu.matmul %912, %942, %cst_381 {dimension_numbers = #tpu.dot_dimension_numbers<[1], [0], [0], [1], [0, 0, 1, 1], [], []>} : vector<8x8xf32>, vector<8x16xf32>, vector<8x16xf32> -> vector<8x16xf32>
      %944 = arith.addf %886, %943 : vector<8x16xf32>
      %945 = vector.broadcast %889 : f32 to vector<1x16xf32>
      %946 = arith.mulf %14, %945 : vector<1x16xf32>
      %947 = vector.broadcast %946 : vector<1x16xf32> to vector<8x16xf32>
      %948 = arith.addf %944, %947 : vector<8x16xf32>
      %c4_i32_382 = arith.constant 4 : i32
      %949 = arith.cmpi sgt, %698, %c4_i32_382 : i32
      %950 = arith.extui %949 : i1 to i32
      %951 = arith.sitofp %950 : i32 to f32
      %c1_i32_383 = arith.constant 1 : i32
      %952 = arith.subi %698, %c1_i32_383 : i32
      %c4_i32_384 = arith.constant 4 : i32
      %953 = arith.cmpi eq, %952, %c4_i32_384 : i32
      %954 = arith.extui %953 : i1 to i32
      %955 = arith.sitofp %954 : i32 to f32
      %cst_385 = arith.constant -0.166666672 : f32
      %956 = arith.mulf %955, %cst_385 : f32
      %cst_386 = arith.constant 5.000000e-01 : f32
      %957 = arith.addf %cst_386, %956 : f32
      %958 = arith.mulf %957, %951 : f32
      %959 = arith.subf %8, %7 : vector<8x8xf32>
      %960 = vector.broadcast %955 : f32 to vector<8x8xf32>
      %961 = arith.mulf %960, %959 : vector<8x8xf32>
      %962 = arith.addf %7, %961 : vector<8x8xf32>
      %963 = vector.broadcast %951 : f32 to vector<8x8xf32>
      %964 = arith.mulf %962, %963 : vector<8x8xf32>
      %965 = vector.broadcast %698 : i32 to vector<8x8xi32>
      %966 = arith.subi %965, %6 : vector<8x8xi32>
      %c5_i32_387 = arith.constant 5 : i32
      %967 = vector.broadcast %c5_i32_387 : i32 to vector<8x8xi32>
      %968 = arith.cmpi slt, %966, %967 : vector<8x8xi32>
      %969 = arith.andi %5, %968 : vector<8x8xi1>
      %cst_388 = arith.constant 0.000000e+00 : f32
      %970 = vector.broadcast %cst_388 : f32 to vector<8x8xf32>
      %971 = arith.select %969, %3, %970 : vector<8x8xi1>, vector<8x8xf32>
      %972 = vector.broadcast %958 : f32 to vector<8x8xf32>
      %973 = arith.mulf %971, %972 : vector<8x8xf32>
      %974 = arith.addf %973, %964 : vector<8x8xf32>
      %c4_389 = arith.constant 4 : index
      %c0_390 = arith.constant 0 : index
      %c0_391 = arith.constant 0 : index
      %975 = vector.load %arg23[%c4_389, %c0_390, %c0_391] : memref<11x8x2xf32, #tpu.memory_space<vmem>>, vector<1x8x2xf32>
      %976 = vector.shape_cast %975 : vector<1x8x2xf32> to vector<8x2xf32>
      %c4_392 = arith.constant 4 : index
      %c0_393 = arith.constant 0 : index
      %c0_394 = arith.constant 0 : index
      %977 = vector.load %arg24[%c4_392, %c0_393, %c0_394] : memref<11x8x16xf32, #tpu.memory_space<vmem>>, vector<1x8x16xf32>
      %978 = vector.shape_cast %977 : vector<1x8x16xf32> to vector<8x16xf32>
      %cst_395 = arith.constant dense<0.000000e+00> : vector<8x32xf32>
      %979 = tpu.matmul %976, %9, %cst_395 {dimension_numbers = #tpu.dot_dimension_numbers<[1], [0], [0], [1], [0, 0, 1, 1], [], []>} : vector<8x2xf32>, vector<2x32xf32>, vector<8x32xf32> -> vector<8x32xf32>
      %cst_396 = arith.constant dense<0.000000e+00> : vector<8x32xf32>
      %980 = tpu.matmul %978, %10, %cst_396 {dimension_numbers = #tpu.dot_dimension_numbers<[1], [0], [0], [1], [0, 0, 1, 1], [], []>} : vector<8x16xf32>, vector<16x32xf32>, vector<8x32xf32> -> vector<8x32xf32>
      %981 = arith.addf %979, %980 : vector<8x32xf32>
      %cst_397 = arith.constant dense<0.000000e+00> : vector<8x32xf32>
      %982 = tpu.matmul %974, %981, %cst_397 {dimension_numbers = #tpu.dot_dimension_numbers<[1], [0], [0], [1], [0, 0, 1, 1], [], []>} : vector<8x8xf32>, vector<8x32xf32>, vector<8x32xf32> -> vector<8x32xf32>
      %983 = arith.addf %925, %982 : vector<8x32xf32>
      %984 = vector.broadcast %951 : f32 to vector<1x32xf32>
      %985 = arith.mulf %11, %984 : vector<1x32xf32>
      %986 = vector.broadcast %985 : vector<1x32xf32> to vector<8x32xf32>
      %987 = arith.addf %983, %986 : vector<8x32xf32>
      %988 = arith.negf %987 : vector<8x32xf32>
      %989 = math.exp %988 : vector<8x32xf32>
      %cst_398 = arith.constant 1.000000e+00 : f32
      %990 = vector.broadcast %cst_398 : f32 to vector<8x32xf32>
      %991 = arith.addf %990, %989 : vector<8x32xf32>
      %992 = arith.divf %990, %991 : vector<8x32xf32>
      %cst_399 = arith.constant dense<0.000000e+00> : vector<8x32xf32>
      %993 = tpu.matmul %15, %992, %cst_399 {dimension_numbers = #tpu.dot_dimension_numbers<[1], [0], [0], [1], [0, 0, 1, 1], [], []>} : vector<8x8xf32>, vector<8x32xf32>, vector<8x32xf32> -> vector<8x32xf32>
      %cst_400 = arith.constant dense<0.000000e+00> : vector<8x16xf32>
      %994 = tpu.matmul %993, %17, %cst_400 {dimension_numbers = #tpu.dot_dimension_numbers<[1], [0], [0], [1], [0, 0, 1, 1], [], []>} : vector<8x32xf32>, vector<32x16xf32>, vector<8x16xf32> -> vector<8x16xf32>
      %995 = vector.broadcast %19 : vector<8x1xf32> to vector<8x16xf32>
      %996 = arith.mulf %994, %995 : vector<8x16xf32>
      %cst_401 = arith.constant dense<0.000000e+00> : vector<8x16xf32>
      %997 = tpu.matmul %993, %18, %cst_401 {dimension_numbers = #tpu.dot_dimension_numbers<[1], [0], [0], [1], [0, 0, 1, 1], [], []>} : vector<8x32xf32>, vector<32x16xf32>, vector<8x16xf32> -> vector<8x16xf32>
      %998 = vector.broadcast %21 : vector<8x1xf32> to vector<8x16xf32>
      %999 = arith.mulf %997, %998 : vector<8x16xf32>
      %1000 = arith.addf %996, %999 : vector<8x16xf32>
      %cst_402 = arith.constant dense<0.000000e+00> : vector<8x16xf32>
      %1001 = tpu.matmul %976, %12, %cst_402 {dimension_numbers = #tpu.dot_dimension_numbers<[1], [0], [0], [1], [0, 0, 1, 1], [], []>} : vector<8x2xf32>, vector<2x16xf32>, vector<8x16xf32> -> vector<8x16xf32>
      %1002 = arith.mulf %1000, %978 : vector<8x16xf32>
      %cst_403 = arith.constant dense<0.000000e+00> : vector<8x16xf32>
      %1003 = tpu.matmul %1002, %13, %cst_403 {dimension_numbers = #tpu.dot_dimension_numbers<[1], [0], [0], [1], [0, 0, 1, 1], [], []>} : vector<8x16xf32>, vector<16x16xf32>, vector<8x16xf32> -> vector<8x16xf32>
      %1004 = arith.addf %1001, %1003 : vector<8x16xf32>
      %cst_404 = arith.constant dense<0.000000e+00> : vector<8x16xf32>
      %1005 = tpu.matmul %974, %1004, %cst_404 {dimension_numbers = #tpu.dot_dimension_numbers<[1], [0], [0], [1], [0, 0, 1, 1], [], []>} : vector<8x8xf32>, vector<8x16xf32>, vector<8x16xf32> -> vector<8x16xf32>
      %1006 = arith.addf %948, %1005 : vector<8x16xf32>
      %1007 = vector.broadcast %951 : f32 to vector<1x16xf32>
      %1008 = arith.mulf %14, %1007 : vector<1x16xf32>
      %1009 = vector.broadcast %1008 : vector<1x16xf32> to vector<8x16xf32>
      %1010 = arith.addf %1006, %1009 : vector<8x16xf32>
      %c5_i32_405 = arith.constant 5 : i32
      %1011 = arith.cmpi sgt, %698, %c5_i32_405 : i32
      %1012 = arith.extui %1011 : i1 to i32
      %1013 = arith.sitofp %1012 : i32 to f32
      %c1_i32_406 = arith.constant 1 : i32
      %1014 = arith.subi %698, %c1_i32_406 : i32
      %c5_i32_407 = arith.constant 5 : i32
      %1015 = arith.cmpi eq, %1014, %c5_i32_407 : i32
      %1016 = arith.extui %1015 : i1 to i32
      %1017 = arith.sitofp %1016 : i32 to f32
      %cst_408 = arith.constant -0.166666672 : f32
      %1018 = arith.mulf %1017, %cst_408 : f32
      %cst_409 = arith.constant 5.000000e-01 : f32
      %1019 = arith.addf %cst_409, %1018 : f32
      %1020 = arith.mulf %1019, %1013 : f32
      %1021 = arith.subf %8, %7 : vector<8x8xf32>
      %1022 = vector.broadcast %1017 : f32 to vector<8x8xf32>
      %1023 = arith.mulf %1022, %1021 : vector<8x8xf32>
      %1024 = arith.addf %7, %1023 : vector<8x8xf32>
      %1025 = vector.broadcast %1013 : f32 to vector<8x8xf32>
      %1026 = arith.mulf %1024, %1025 : vector<8x8xf32>
      %1027 = vector.broadcast %698 : i32 to vector<8x8xi32>
      %1028 = arith.subi %1027, %6 : vector<8x8xi32>
      %c6_i32_410 = arith.constant 6 : i32
      %1029 = vector.broadcast %c6_i32_410 : i32 to vector<8x8xi32>
      %1030 = arith.cmpi slt, %1028, %1029 : vector<8x8xi32>
      %1031 = arith.andi %5, %1030 : vector<8x8xi1>
      %cst_411 = arith.constant 0.000000e+00 : f32
      %1032 = vector.broadcast %cst_411 : f32 to vector<8x8xf32>
      %1033 = arith.select %1031, %3, %1032 : vector<8x8xi1>, vector<8x8xf32>
      %1034 = vector.broadcast %1020 : f32 to vector<8x8xf32>
      %1035 = arith.mulf %1033, %1034 : vector<8x8xf32>
      %1036 = arith.addf %1035, %1026 : vector<8x8xf32>
      %c5_412 = arith.constant 5 : index
      %c0_413 = arith.constant 0 : index
      %c0_414 = arith.constant 0 : index
      %1037 = vector.load %arg23[%c5_412, %c0_413, %c0_414] : memref<11x8x2xf32, #tpu.memory_space<vmem>>, vector<1x8x2xf32>
      %1038 = vector.shape_cast %1037 : vector<1x8x2xf32> to vector<8x2xf32>
      %c5_415 = arith.constant 5 : index
      %c0_416 = arith.constant 0 : index
      %c0_417 = arith.constant 0 : index
      %1039 = vector.load %arg24[%c5_415, %c0_416, %c0_417] : memref<11x8x16xf32, #tpu.memory_space<vmem>>, vector<1x8x16xf32>
      %1040 = vector.shape_cast %1039 : vector<1x8x16xf32> to vector<8x16xf32>
      %cst_418 = arith.constant dense<0.000000e+00> : vector<8x32xf32>
      %1041 = tpu.matmul %1038, %9, %cst_418 {dimension_numbers = #tpu.dot_dimension_numbers<[1], [0], [0], [1], [0, 0, 1, 1], [], []>} : vector<8x2xf32>, vector<2x32xf32>, vector<8x32xf32> -> vector<8x32xf32>
      %cst_419 = arith.constant dense<0.000000e+00> : vector<8x32xf32>
      %1042 = tpu.matmul %1040, %10, %cst_419 {dimension_numbers = #tpu.dot_dimension_numbers<[1], [0], [0], [1], [0, 0, 1, 1], [], []>} : vector<8x16xf32>, vector<16x32xf32>, vector<8x32xf32> -> vector<8x32xf32>
      %1043 = arith.addf %1041, %1042 : vector<8x32xf32>
      %cst_420 = arith.constant dense<0.000000e+00> : vector<8x32xf32>
      %1044 = tpu.matmul %1036, %1043, %cst_420 {dimension_numbers = #tpu.dot_dimension_numbers<[1], [0], [0], [1], [0, 0, 1, 1], [], []>} : vector<8x8xf32>, vector<8x32xf32>, vector<8x32xf32> -> vector<8x32xf32>
      %1045 = arith.addf %987, %1044 : vector<8x32xf32>
      %1046 = vector.broadcast %1013 : f32 to vector<1x32xf32>
      %1047 = arith.mulf %11, %1046 : vector<1x32xf32>
      %1048 = vector.broadcast %1047 : vector<1x32xf32> to vector<8x32xf32>
      %1049 = arith.addf %1045, %1048 : vector<8x32xf32>
      %1050 = arith.negf %1049 : vector<8x32xf32>
      %1051 = math.exp %1050 : vector<8x32xf32>
      %cst_421 = arith.constant 1.000000e+00 : f32
      %1052 = vector.broadcast %cst_421 : f32 to vector<8x32xf32>
      %1053 = arith.addf %1052, %1051 : vector<8x32xf32>
      %1054 = arith.divf %1052, %1053 : vector<8x32xf32>
      %cst_422 = arith.constant dense<0.000000e+00> : vector<8x32xf32>
      %1055 = tpu.matmul %15, %1054, %cst_422 {dimension_numbers = #tpu.dot_dimension_numbers<[1], [0], [0], [1], [0, 0, 1, 1], [], []>} : vector<8x8xf32>, vector<8x32xf32>, vector<8x32xf32> -> vector<8x32xf32>
      %cst_423 = arith.constant dense<0.000000e+00> : vector<8x16xf32>
      %1056 = tpu.matmul %1055, %17, %cst_423 {dimension_numbers = #tpu.dot_dimension_numbers<[1], [0], [0], [1], [0, 0, 1, 1], [], []>} : vector<8x32xf32>, vector<32x16xf32>, vector<8x16xf32> -> vector<8x16xf32>
      %1057 = vector.broadcast %19 : vector<8x1xf32> to vector<8x16xf32>
      %1058 = arith.mulf %1056, %1057 : vector<8x16xf32>
      %cst_424 = arith.constant dense<0.000000e+00> : vector<8x16xf32>
      %1059 = tpu.matmul %1055, %18, %cst_424 {dimension_numbers = #tpu.dot_dimension_numbers<[1], [0], [0], [1], [0, 0, 1, 1], [], []>} : vector<8x32xf32>, vector<32x16xf32>, vector<8x16xf32> -> vector<8x16xf32>
      %1060 = vector.broadcast %21 : vector<8x1xf32> to vector<8x16xf32>
      %1061 = arith.mulf %1059, %1060 : vector<8x16xf32>
      %1062 = arith.addf %1058, %1061 : vector<8x16xf32>
      %cst_425 = arith.constant dense<0.000000e+00> : vector<8x16xf32>
      %1063 = tpu.matmul %1038, %12, %cst_425 {dimension_numbers = #tpu.dot_dimension_numbers<[1], [0], [0], [1], [0, 0, 1, 1], [], []>} : vector<8x2xf32>, vector<2x16xf32>, vector<8x16xf32> -> vector<8x16xf32>
      %1064 = arith.mulf %1062, %1040 : vector<8x16xf32>
      %cst_426 = arith.constant dense<0.000000e+00> : vector<8x16xf32>
      %1065 = tpu.matmul %1064, %13, %cst_426 {dimension_numbers = #tpu.dot_dimension_numbers<[1], [0], [0], [1], [0, 0, 1, 1], [], []>} : vector<8x16xf32>, vector<16x16xf32>, vector<8x16xf32> -> vector<8x16xf32>
      %1066 = arith.addf %1063, %1065 : vector<8x16xf32>
      %cst_427 = arith.constant dense<0.000000e+00> : vector<8x16xf32>
      %1067 = tpu.matmul %1036, %1066, %cst_427 {dimension_numbers = #tpu.dot_dimension_numbers<[1], [0], [0], [1], [0, 0, 1, 1], [], []>} : vector<8x8xf32>, vector<8x16xf32>, vector<8x16xf32> -> vector<8x16xf32>
      %1068 = arith.addf %1010, %1067 : vector<8x16xf32>
      %1069 = vector.broadcast %1013 : f32 to vector<1x16xf32>
      %1070 = arith.mulf %14, %1069 : vector<1x16xf32>
      %1071 = vector.broadcast %1070 : vector<1x16xf32> to vector<8x16xf32>
      %1072 = arith.addf %1068, %1071 : vector<8x16xf32>
      %c6_i32_428 = arith.constant 6 : i32
      %1073 = arith.cmpi sgt, %698, %c6_i32_428 : i32
      %1074 = arith.extui %1073 : i1 to i32
      %1075 = arith.sitofp %1074 : i32 to f32
      %c1_i32_429 = arith.constant 1 : i32
      %1076 = arith.subi %698, %c1_i32_429 : i32
      %c6_i32_430 = arith.constant 6 : i32
      %1077 = arith.cmpi eq, %1076, %c6_i32_430 : i32
      %1078 = arith.extui %1077 : i1 to i32
      %1079 = arith.sitofp %1078 : i32 to f32
      %cst_431 = arith.constant -0.166666672 : f32
      %1080 = arith.mulf %1079, %cst_431 : f32
      %cst_432 = arith.constant 5.000000e-01 : f32
      %1081 = arith.addf %cst_432, %1080 : f32
      %1082 = arith.mulf %1081, %1075 : f32
      %1083 = arith.subf %8, %7 : vector<8x8xf32>
      %1084 = vector.broadcast %1079 : f32 to vector<8x8xf32>
      %1085 = arith.mulf %1084, %1083 : vector<8x8xf32>
      %1086 = arith.addf %7, %1085 : vector<8x8xf32>
      %1087 = vector.broadcast %1075 : f32 to vector<8x8xf32>
      %1088 = arith.mulf %1086, %1087 : vector<8x8xf32>
      %1089 = vector.broadcast %698 : i32 to vector<8x8xi32>
      %1090 = arith.subi %1089, %6 : vector<8x8xi32>
      %c7_i32_433 = arith.constant 7 : i32
      %1091 = vector.broadcast %c7_i32_433 : i32 to vector<8x8xi32>
      %1092 = arith.cmpi slt, %1090, %1091 : vector<8x8xi32>
      %1093 = arith.andi %5, %1092 : vector<8x8xi1>
      %cst_434 = arith.constant 0.000000e+00 : f32
      %1094 = vector.broadcast %cst_434 : f32 to vector<8x8xf32>
      %1095 = arith.select %1093, %3, %1094 : vector<8x8xi1>, vector<8x8xf32>
      %1096 = vector.broadcast %1082 : f32 to vector<8x8xf32>
      %1097 = arith.mulf %1095, %1096 : vector<8x8xf32>
      %1098 = arith.addf %1097, %1088 : vector<8x8xf32>
      %c6_435 = arith.constant 6 : index
      %c0_436 = arith.constant 0 : index
      %c0_437 = arith.constant 0 : index
      %1099 = vector.load %arg23[%c6_435, %c0_436, %c0_437] : memref<11x8x2xf32, #tpu.memory_space<vmem>>, vector<1x8x2xf32>
      %1100 = vector.shape_cast %1099 : vector<1x8x2xf32> to vector<8x2xf32>
      %c6_438 = arith.constant 6 : index
      %c0_439 = arith.constant 0 : index
      %c0_440 = arith.constant 0 : index
      %1101 = vector.load %arg24[%c6_438, %c0_439, %c0_440] : memref<11x8x16xf32, #tpu.memory_space<vmem>>, vector<1x8x16xf32>
      %1102 = vector.shape_cast %1101 : vector<1x8x16xf32> to vector<8x16xf32>
      %cst_441 = arith.constant dense<0.000000e+00> : vector<8x32xf32>
      %1103 = tpu.matmul %1100, %9, %cst_441 {dimension_numbers = #tpu.dot_dimension_numbers<[1], [0], [0], [1], [0, 0, 1, 1], [], []>} : vector<8x2xf32>, vector<2x32xf32>, vector<8x32xf32> -> vector<8x32xf32>
      %cst_442 = arith.constant dense<0.000000e+00> : vector<8x32xf32>
      %1104 = tpu.matmul %1102, %10, %cst_442 {dimension_numbers = #tpu.dot_dimension_numbers<[1], [0], [0], [1], [0, 0, 1, 1], [], []>} : vector<8x16xf32>, vector<16x32xf32>, vector<8x32xf32> -> vector<8x32xf32>
      %1105 = arith.addf %1103, %1104 : vector<8x32xf32>
      %cst_443 = arith.constant dense<0.000000e+00> : vector<8x32xf32>
      %1106 = tpu.matmul %1098, %1105, %cst_443 {dimension_numbers = #tpu.dot_dimension_numbers<[1], [0], [0], [1], [0, 0, 1, 1], [], []>} : vector<8x8xf32>, vector<8x32xf32>, vector<8x32xf32> -> vector<8x32xf32>
      %1107 = arith.addf %1049, %1106 : vector<8x32xf32>
      %1108 = vector.broadcast %1075 : f32 to vector<1x32xf32>
      %1109 = arith.mulf %11, %1108 : vector<1x32xf32>
      %1110 = vector.broadcast %1109 : vector<1x32xf32> to vector<8x32xf32>
      %1111 = arith.addf %1107, %1110 : vector<8x32xf32>
      %1112 = arith.negf %1111 : vector<8x32xf32>
      %1113 = math.exp %1112 : vector<8x32xf32>
      %cst_444 = arith.constant 1.000000e+00 : f32
      %1114 = vector.broadcast %cst_444 : f32 to vector<8x32xf32>
      %1115 = arith.addf %1114, %1113 : vector<8x32xf32>
      %1116 = arith.divf %1114, %1115 : vector<8x32xf32>
      %cst_445 = arith.constant dense<0.000000e+00> : vector<8x32xf32>
      %1117 = tpu.matmul %15, %1116, %cst_445 {dimension_numbers = #tpu.dot_dimension_numbers<[1], [0], [0], [1], [0, 0, 1, 1], [], []>} : vector<8x8xf32>, vector<8x32xf32>, vector<8x32xf32> -> vector<8x32xf32>
      %cst_446 = arith.constant dense<0.000000e+00> : vector<8x16xf32>
      %1118 = tpu.matmul %1117, %17, %cst_446 {dimension_numbers = #tpu.dot_dimension_numbers<[1], [0], [0], [1], [0, 0, 1, 1], [], []>} : vector<8x32xf32>, vector<32x16xf32>, vector<8x16xf32> -> vector<8x16xf32>
      %1119 = vector.broadcast %19 : vector<8x1xf32> to vector<8x16xf32>
      %1120 = arith.mulf %1118, %1119 : vector<8x16xf32>
      %cst_447 = arith.constant dense<0.000000e+00> : vector<8x16xf32>
      %1121 = tpu.matmul %1117, %18, %cst_447 {dimension_numbers = #tpu.dot_dimension_numbers<[1], [0], [0], [1], [0, 0, 1, 1], [], []>} : vector<8x32xf32>, vector<32x16xf32>, vector<8x16xf32> -> vector<8x16xf32>
      %1122 = vector.broadcast %21 : vector<8x1xf32> to vector<8x16xf32>
      %1123 = arith.mulf %1121, %1122 : vector<8x16xf32>
      %1124 = arith.addf %1120, %1123 : vector<8x16xf32>
      %cst_448 = arith.constant dense<0.000000e+00> : vector<8x16xf32>
      %1125 = tpu.matmul %1100, %12, %cst_448 {dimension_numbers = #tpu.dot_dimension_numbers<[1], [0], [0], [1], [0, 0, 1, 1], [], []>} : vector<8x2xf32>, vector<2x16xf32>, vector<8x16xf32> -> vector<8x16xf32>
      %1126 = arith.mulf %1124, %1102 : vector<8x16xf32>
      %cst_449 = arith.constant dense<0.000000e+00> : vector<8x16xf32>
      %1127 = tpu.matmul %1126, %13, %cst_449 {dimension_numbers = #tpu.dot_dimension_numbers<[1], [0], [0], [1], [0, 0, 1, 1], [], []>} : vector<8x16xf32>, vector<16x16xf32>, vector<8x16xf32> -> vector<8x16xf32>
      %1128 = arith.addf %1125, %1127 : vector<8x16xf32>
      %cst_450 = arith.constant dense<0.000000e+00> : vector<8x16xf32>
      %1129 = tpu.matmul %1098, %1128, %cst_450 {dimension_numbers = #tpu.dot_dimension_numbers<[1], [0], [0], [1], [0, 0, 1, 1], [], []>} : vector<8x8xf32>, vector<8x16xf32>, vector<8x16xf32> -> vector<8x16xf32>
      %1130 = arith.addf %1072, %1129 : vector<8x16xf32>
      %1131 = vector.broadcast %1075 : f32 to vector<1x16xf32>
      %1132 = arith.mulf %14, %1131 : vector<1x16xf32>
      %1133 = vector.broadcast %1132 : vector<1x16xf32> to vector<8x16xf32>
      %1134 = arith.addf %1130, %1133 : vector<8x16xf32>
      %c7_i32_451 = arith.constant 7 : i32
      %1135 = arith.cmpi sgt, %698, %c7_i32_451 : i32
      %1136 = arith.extui %1135 : i1 to i32
      %1137 = arith.sitofp %1136 : i32 to f32
      %c1_i32_452 = arith.constant 1 : i32
      %1138 = arith.subi %698, %c1_i32_452 : i32
      %c7_i32_453 = arith.constant 7 : i32
      %1139 = arith.cmpi eq, %1138, %c7_i32_453 : i32
      %1140 = arith.extui %1139 : i1 to i32
      %1141 = arith.sitofp %1140 : i32 to f32
      %cst_454 = arith.constant -0.166666672 : f32
      %1142 = arith.mulf %1141, %cst_454 : f32
      %cst_455 = arith.constant 5.000000e-01 : f32
      %1143 = arith.addf %cst_455, %1142 : f32
      %1144 = arith.mulf %1143, %1137 : f32
      %1145 = arith.subf %8, %7 : vector<8x8xf32>
      %1146 = vector.broadcast %1141 : f32 to vector<8x8xf32>
      %1147 = arith.mulf %1146, %1145 : vector<8x8xf32>
      %1148 = arith.addf %7, %1147 : vector<8x8xf32>
      %1149 = vector.broadcast %1137 : f32 to vector<8x8xf32>
      %1150 = arith.mulf %1148, %1149 : vector<8x8xf32>
      %1151 = vector.broadcast %698 : i32 to vector<8x8xi32>
      %1152 = arith.subi %1151, %6 : vector<8x8xi32>
      %c8_i32_456 = arith.constant 8 : i32
      %1153 = vector.broadcast %c8_i32_456 : i32 to vector<8x8xi32>
      %1154 = arith.cmpi slt, %1152, %1153 : vector<8x8xi32>
      %1155 = arith.andi %5, %1154 : vector<8x8xi1>
      %cst_457 = arith.constant 0.000000e+00 : f32
      %1156 = vector.broadcast %cst_457 : f32 to vector<8x8xf32>
      %1157 = arith.select %1155, %3, %1156 : vector<8x8xi1>, vector<8x8xf32>
      %1158 = vector.broadcast %1144 : f32 to vector<8x8xf32>
      %1159 = arith.mulf %1157, %1158 : vector<8x8xf32>
      %1160 = arith.addf %1159, %1150 : vector<8x8xf32>
      %c7_458 = arith.constant 7 : index
      %c0_459 = arith.constant 0 : index
      %c0_460 = arith.constant 0 : index
      %1161 = vector.load %arg23[%c7_458, %c0_459, %c0_460] : memref<11x8x2xf32, #tpu.memory_space<vmem>>, vector<1x8x2xf32>
      %1162 = vector.shape_cast %1161 : vector<1x8x2xf32> to vector<8x2xf32>
      %c7_461 = arith.constant 7 : index
      %c0_462 = arith.constant 0 : index
      %c0_463 = arith.constant 0 : index
      %1163 = vector.load %arg24[%c7_461, %c0_462, %c0_463] : memref<11x8x16xf32, #tpu.memory_space<vmem>>, vector<1x8x16xf32>
      %1164 = vector.shape_cast %1163 : vector<1x8x16xf32> to vector<8x16xf32>
      %cst_464 = arith.constant dense<0.000000e+00> : vector<8x32xf32>
      %1165 = tpu.matmul %1162, %9, %cst_464 {dimension_numbers = #tpu.dot_dimension_numbers<[1], [0], [0], [1], [0, 0, 1, 1], [], []>} : vector<8x2xf32>, vector<2x32xf32>, vector<8x32xf32> -> vector<8x32xf32>
      %cst_465 = arith.constant dense<0.000000e+00> : vector<8x32xf32>
      %1166 = tpu.matmul %1164, %10, %cst_465 {dimension_numbers = #tpu.dot_dimension_numbers<[1], [0], [0], [1], [0, 0, 1, 1], [], []>} : vector<8x16xf32>, vector<16x32xf32>, vector<8x32xf32> -> vector<8x32xf32>
      %1167 = arith.addf %1165, %1166 : vector<8x32xf32>
      %cst_466 = arith.constant dense<0.000000e+00> : vector<8x32xf32>
      %1168 = tpu.matmul %1160, %1167, %cst_466 {dimension_numbers = #tpu.dot_dimension_numbers<[1], [0], [0], [1], [0, 0, 1, 1], [], []>} : vector<8x8xf32>, vector<8x32xf32>, vector<8x32xf32> -> vector<8x32xf32>
      %1169 = arith.addf %1111, %1168 : vector<8x32xf32>
      %1170 = vector.broadcast %1137 : f32 to vector<1x32xf32>
      %1171 = arith.mulf %11, %1170 : vector<1x32xf32>
      %1172 = vector.broadcast %1171 : vector<1x32xf32> to vector<8x32xf32>
      %1173 = arith.addf %1169, %1172 : vector<8x32xf32>
      %1174 = arith.negf %1173 : vector<8x32xf32>
      %1175 = math.exp %1174 : vector<8x32xf32>
      %cst_467 = arith.constant 1.000000e+00 : f32
      %1176 = vector.broadcast %cst_467 : f32 to vector<8x32xf32>
      %1177 = arith.addf %1176, %1175 : vector<8x32xf32>
      %1178 = arith.divf %1176, %1177 : vector<8x32xf32>
      %cst_468 = arith.constant dense<0.000000e+00> : vector<8x32xf32>
      %1179 = tpu.matmul %15, %1178, %cst_468 {dimension_numbers = #tpu.dot_dimension_numbers<[1], [0], [0], [1], [0, 0, 1, 1], [], []>} : vector<8x8xf32>, vector<8x32xf32>, vector<8x32xf32> -> vector<8x32xf32>
      %cst_469 = arith.constant dense<0.000000e+00> : vector<8x16xf32>
      %1180 = tpu.matmul %1179, %17, %cst_469 {dimension_numbers = #tpu.dot_dimension_numbers<[1], [0], [0], [1], [0, 0, 1, 1], [], []>} : vector<8x32xf32>, vector<32x16xf32>, vector<8x16xf32> -> vector<8x16xf32>
      %1181 = vector.broadcast %19 : vector<8x1xf32> to vector<8x16xf32>
      %1182 = arith.mulf %1180, %1181 : vector<8x16xf32>
      %cst_470 = arith.constant dense<0.000000e+00> : vector<8x16xf32>
      %1183 = tpu.matmul %1179, %18, %cst_470 {dimension_numbers = #tpu.dot_dimension_numbers<[1], [0], [0], [1], [0, 0, 1, 1], [], []>} : vector<8x32xf32>, vector<32x16xf32>, vector<8x16xf32> -> vector<8x16xf32>
      %1184 = vector.broadcast %21 : vector<8x1xf32> to vector<8x16xf32>
      %1185 = arith.mulf %1183, %1184 : vector<8x16xf32>
      %1186 = arith.addf %1182, %1185 : vector<8x16xf32>
      %cst_471 = arith.constant dense<0.000000e+00> : vector<8x16xf32>
      %1187 = tpu.matmul %1162, %12, %cst_471 {dimension_numbers = #tpu.dot_dimension_numbers<[1], [0], [0], [1], [0, 0, 1, 1], [], []>} : vector<8x2xf32>, vector<2x16xf32>, vector<8x16xf32> -> vector<8x16xf32>
      %1188 = arith.mulf %1186, %1164 : vector<8x16xf32>
      %cst_472 = arith.constant dense<0.000000e+00> : vector<8x16xf32>
      %1189 = tpu.matmul %1188, %13, %cst_472 {dimension_numbers = #tpu.dot_dimension_numbers<[1], [0], [0], [1], [0, 0, 1, 1], [], []>} : vector<8x16xf32>, vector<16x16xf32>, vector<8x16xf32> -> vector<8x16xf32>
      %1190 = arith.addf %1187, %1189 : vector<8x16xf32>
      %cst_473 = arith.constant dense<0.000000e+00> : vector<8x16xf32>
      %1191 = tpu.matmul %1160, %1190, %cst_473 {dimension_numbers = #tpu.dot_dimension_numbers<[1], [0], [0], [1], [0, 0, 1, 1], [], []>} : vector<8x8xf32>, vector<8x16xf32>, vector<8x16xf32> -> vector<8x16xf32>
      %1192 = arith.addf %1134, %1191 : vector<8x16xf32>
      %1193 = vector.broadcast %1137 : f32 to vector<1x16xf32>
      %1194 = arith.mulf %14, %1193 : vector<1x16xf32>
      %1195 = vector.broadcast %1194 : vector<1x16xf32> to vector<8x16xf32>
      %1196 = arith.addf %1192, %1195 : vector<8x16xf32>
      %c8_i32_474 = arith.constant 8 : i32
      %1197 = arith.cmpi sgt, %698, %c8_i32_474 : i32
      %1198 = arith.extui %1197 : i1 to i32
      %1199 = arith.sitofp %1198 : i32 to f32
      %c1_i32_475 = arith.constant 1 : i32
      %1200 = arith.subi %698, %c1_i32_475 : i32
      %c8_i32_476 = arith.constant 8 : i32
      %1201 = arith.cmpi eq, %1200, %c8_i32_476 : i32
      %1202 = arith.extui %1201 : i1 to i32
      %1203 = arith.sitofp %1202 : i32 to f32
      %cst_477 = arith.constant -0.166666672 : f32
      %1204 = arith.mulf %1203, %cst_477 : f32
      %cst_478 = arith.constant 5.000000e-01 : f32
      %1205 = arith.addf %cst_478, %1204 : f32
      %1206 = arith.mulf %1205, %1199 : f32
      %1207 = arith.subf %8, %7 : vector<8x8xf32>
      %1208 = vector.broadcast %1203 : f32 to vector<8x8xf32>
      %1209 = arith.mulf %1208, %1207 : vector<8x8xf32>
      %1210 = arith.addf %7, %1209 : vector<8x8xf32>
      %1211 = vector.broadcast %1199 : f32 to vector<8x8xf32>
      %1212 = arith.mulf %1210, %1211 : vector<8x8xf32>
      %1213 = vector.broadcast %698 : i32 to vector<8x8xi32>
      %1214 = arith.subi %1213, %6 : vector<8x8xi32>
      %c9_i32_479 = arith.constant 9 : i32
      %1215 = vector.broadcast %c9_i32_479 : i32 to vector<8x8xi32>
      %1216 = arith.cmpi slt, %1214, %1215 : vector<8x8xi32>
      %1217 = arith.andi %5, %1216 : vector<8x8xi1>
      %cst_480 = arith.constant 0.000000e+00 : f32
      %1218 = vector.broadcast %cst_480 : f32 to vector<8x8xf32>
      %1219 = arith.select %1217, %3, %1218 : vector<8x8xi1>, vector<8x8xf32>
      %1220 = vector.broadcast %1206 : f32 to vector<8x8xf32>
      %1221 = arith.mulf %1219, %1220 : vector<8x8xf32>
      %1222 = arith.addf %1221, %1212 : vector<8x8xf32>
      %c8_481 = arith.constant 8 : index
      %c0_482 = arith.constant 0 : index
      %c0_483 = arith.constant 0 : index
      %1223 = vector.load %arg23[%c8_481, %c0_482, %c0_483] : memref<11x8x2xf32, #tpu.memory_space<vmem>>, vector<1x8x2xf32>
      %1224 = vector.shape_cast %1223 : vector<1x8x2xf32> to vector<8x2xf32>
      %c8_484 = arith.constant 8 : index
      %c0_485 = arith.constant 0 : index
      %c0_486 = arith.constant 0 : index
      %1225 = vector.load %arg24[%c8_484, %c0_485, %c0_486] : memref<11x8x16xf32, #tpu.memory_space<vmem>>, vector<1x8x16xf32>
      %1226 = vector.shape_cast %1225 : vector<1x8x16xf32> to vector<8x16xf32>
      %cst_487 = arith.constant dense<0.000000e+00> : vector<8x32xf32>
      %1227 = tpu.matmul %1224, %9, %cst_487 {dimension_numbers = #tpu.dot_dimension_numbers<[1], [0], [0], [1], [0, 0, 1, 1], [], []>} : vector<8x2xf32>, vector<2x32xf32>, vector<8x32xf32> -> vector<8x32xf32>
      %cst_488 = arith.constant dense<0.000000e+00> : vector<8x32xf32>
      %1228 = tpu.matmul %1226, %10, %cst_488 {dimension_numbers = #tpu.dot_dimension_numbers<[1], [0], [0], [1], [0, 0, 1, 1], [], []>} : vector<8x16xf32>, vector<16x32xf32>, vector<8x32xf32> -> vector<8x32xf32>
      %1229 = arith.addf %1227, %1228 : vector<8x32xf32>
      %cst_489 = arith.constant dense<0.000000e+00> : vector<8x32xf32>
      %1230 = tpu.matmul %1222, %1229, %cst_489 {dimension_numbers = #tpu.dot_dimension_numbers<[1], [0], [0], [1], [0, 0, 1, 1], [], []>} : vector<8x8xf32>, vector<8x32xf32>, vector<8x32xf32> -> vector<8x32xf32>
      %1231 = arith.addf %1173, %1230 : vector<8x32xf32>
      %1232 = vector.broadcast %1199 : f32 to vector<1x32xf32>
      %1233 = arith.mulf %11, %1232 : vector<1x32xf32>
      %1234 = vector.broadcast %1233 : vector<1x32xf32> to vector<8x32xf32>
      %1235 = arith.addf %1231, %1234 : vector<8x32xf32>
      %1236 = arith.negf %1235 : vector<8x32xf32>
      %1237 = math.exp %1236 : vector<8x32xf32>
      %cst_490 = arith.constant 1.000000e+00 : f32
      %1238 = vector.broadcast %cst_490 : f32 to vector<8x32xf32>
      %1239 = arith.addf %1238, %1237 : vector<8x32xf32>
      %1240 = arith.divf %1238, %1239 : vector<8x32xf32>
      %cst_491 = arith.constant dense<0.000000e+00> : vector<8x32xf32>
      %1241 = tpu.matmul %15, %1240, %cst_491 {dimension_numbers = #tpu.dot_dimension_numbers<[1], [0], [0], [1], [0, 0, 1, 1], [], []>} : vector<8x8xf32>, vector<8x32xf32>, vector<8x32xf32> -> vector<8x32xf32>
      %cst_492 = arith.constant dense<0.000000e+00> : vector<8x16xf32>
      %1242 = tpu.matmul %1241, %17, %cst_492 {dimension_numbers = #tpu.dot_dimension_numbers<[1], [0], [0], [1], [0, 0, 1, 1], [], []>} : vector<8x32xf32>, vector<32x16xf32>, vector<8x16xf32> -> vector<8x16xf32>
      %1243 = vector.broadcast %19 : vector<8x1xf32> to vector<8x16xf32>
      %1244 = arith.mulf %1242, %1243 : vector<8x16xf32>
      %cst_493 = arith.constant dense<0.000000e+00> : vector<8x16xf32>
      %1245 = tpu.matmul %1241, %18, %cst_493 {dimension_numbers = #tpu.dot_dimension_numbers<[1], [0], [0], [1], [0, 0, 1, 1], [], []>} : vector<8x32xf32>, vector<32x16xf32>, vector<8x16xf32> -> vector<8x16xf32>
      %1246 = vector.broadcast %21 : vector<8x1xf32> to vector<8x16xf32>
      %1247 = arith.mulf %1245, %1246 : vector<8x16xf32>
      %1248 = arith.addf %1244, %1247 : vector<8x16xf32>
      %cst_494 = arith.constant dense<0.000000e+00> : vector<8x16xf32>
      %1249 = tpu.matmul %1224, %12, %cst_494 {dimension_numbers = #tpu.dot_dimension_numbers<[1], [0], [0], [1], [0, 0, 1, 1], [], []>} : vector<8x2xf32>, vector<2x16xf32>, vector<8x16xf32> -> vector<8x16xf32>
      %1250 = arith.mulf %1248, %1226 : vector<8x16xf32>
      %cst_495 = arith.constant dense<0.000000e+00> : vector<8x16xf32>
      %1251 = tpu.matmul %1250, %13, %cst_495 {dimension_numbers = #tpu.dot_dimension_numbers<[1], [0], [0], [1], [0, 0, 1, 1], [], []>} : vector<8x16xf32>, vector<16x16xf32>, vector<8x16xf32> -> vector<8x16xf32>
      %1252 = arith.addf %1249, %1251 : vector<8x16xf32>
      %cst_496 = arith.constant dense<0.000000e+00> : vector<8x16xf32>
      %1253 = tpu.matmul %1222, %1252, %cst_496 {dimension_numbers = #tpu.dot_dimension_numbers<[1], [0], [0], [1], [0, 0, 1, 1], [], []>} : vector<8x8xf32>, vector<8x16xf32>, vector<8x16xf32> -> vector<8x16xf32>
      %1254 = arith.addf %1196, %1253 : vector<8x16xf32>
      %1255 = vector.broadcast %1199 : f32 to vector<1x16xf32>
      %1256 = arith.mulf %14, %1255 : vector<1x16xf32>
      %1257 = vector.broadcast %1256 : vector<1x16xf32> to vector<8x16xf32>
      %1258 = arith.addf %1254, %1257 : vector<8x16xf32>
      %c9_i32_497 = arith.constant 9 : i32
      %1259 = arith.cmpi sgt, %698, %c9_i32_497 : i32
      %1260 = arith.extui %1259 : i1 to i32
      %1261 = arith.sitofp %1260 : i32 to f32
      %c1_i32_498 = arith.constant 1 : i32
      %1262 = arith.subi %698, %c1_i32_498 : i32
      %c9_i32_499 = arith.constant 9 : i32
      %1263 = arith.cmpi eq, %1262, %c9_i32_499 : i32
      %1264 = arith.extui %1263 : i1 to i32
      %1265 = arith.sitofp %1264 : i32 to f32
      %cst_500 = arith.constant -0.166666672 : f32
      %1266 = arith.mulf %1265, %cst_500 : f32
      %cst_501 = arith.constant 5.000000e-01 : f32
      %1267 = arith.addf %cst_501, %1266 : f32
      %1268 = arith.mulf %1267, %1261 : f32
      %1269 = arith.subf %8, %7 : vector<8x8xf32>
      %1270 = vector.broadcast %1265 : f32 to vector<8x8xf32>
      %1271 = arith.mulf %1270, %1269 : vector<8x8xf32>
      %1272 = arith.addf %7, %1271 : vector<8x8xf32>
      %1273 = vector.broadcast %1261 : f32 to vector<8x8xf32>
      %1274 = arith.mulf %1272, %1273 : vector<8x8xf32>
      %1275 = vector.broadcast %698 : i32 to vector<8x8xi32>
      %1276 = arith.subi %1275, %6 : vector<8x8xi32>
      %c10_i32_502 = arith.constant 10 : i32
      %1277 = vector.broadcast %c10_i32_502 : i32 to vector<8x8xi32>
      %1278 = arith.cmpi slt, %1276, %1277 : vector<8x8xi32>
      %1279 = arith.andi %5, %1278 : vector<8x8xi1>
      %cst_503 = arith.constant 0.000000e+00 : f32
      %1280 = vector.broadcast %cst_503 : f32 to vector<8x8xf32>
      %1281 = arith.select %1279, %3, %1280 : vector<8x8xi1>, vector<8x8xf32>
      %1282 = vector.broadcast %1268 : f32 to vector<8x8xf32>
      %1283 = arith.mulf %1281, %1282 : vector<8x8xf32>
      %1284 = arith.addf %1283, %1274 : vector<8x8xf32>
      %c9_504 = arith.constant 9 : index
      %c0_505 = arith.constant 0 : index
      %c0_506 = arith.constant 0 : index
      %1285 = vector.load %arg23[%c9_504, %c0_505, %c0_506] : memref<11x8x2xf32, #tpu.memory_space<vmem>>, vector<1x8x2xf32>
      %1286 = vector.shape_cast %1285 : vector<1x8x2xf32> to vector<8x2xf32>
      %c9_507 = arith.constant 9 : index
      %c0_508 = arith.constant 0 : index
      %c0_509 = arith.constant 0 : index
      %1287 = vector.load %arg24[%c9_507, %c0_508, %c0_509] : memref<11x8x16xf32, #tpu.memory_space<vmem>>, vector<1x8x16xf32>
      %1288 = vector.shape_cast %1287 : vector<1x8x16xf32> to vector<8x16xf32>
      %cst_510 = arith.constant dense<0.000000e+00> : vector<8x32xf32>
      %1289 = tpu.matmul %1286, %9, %cst_510 {dimension_numbers = #tpu.dot_dimension_numbers<[1], [0], [0], [1], [0, 0, 1, 1], [], []>} : vector<8x2xf32>, vector<2x32xf32>, vector<8x32xf32> -> vector<8x32xf32>
      %cst_511 = arith.constant dense<0.000000e+00> : vector<8x32xf32>
      %1290 = tpu.matmul %1288, %10, %cst_511 {dimension_numbers = #tpu.dot_dimension_numbers<[1], [0], [0], [1], [0, 0, 1, 1], [], []>} : vector<8x16xf32>, vector<16x32xf32>, vector<8x32xf32> -> vector<8x32xf32>
      %1291 = arith.addf %1289, %1290 : vector<8x32xf32>
      %cst_512 = arith.constant dense<0.000000e+00> : vector<8x32xf32>
      %1292 = tpu.matmul %1284, %1291, %cst_512 {dimension_numbers = #tpu.dot_dimension_numbers<[1], [0], [0], [1], [0, 0, 1, 1], [], []>} : vector<8x8xf32>, vector<8x32xf32>, vector<8x32xf32> -> vector<8x32xf32>
      %1293 = arith.addf %1235, %1292 : vector<8x32xf32>
      %1294 = vector.broadcast %1261 : f32 to vector<1x32xf32>
      %1295 = arith.mulf %11, %1294 : vector<1x32xf32>
      %1296 = vector.broadcast %1295 : vector<1x32xf32> to vector<8x32xf32>
      %1297 = arith.addf %1293, %1296 : vector<8x32xf32>
      %1298 = arith.negf %1297 : vector<8x32xf32>
      %1299 = math.exp %1298 : vector<8x32xf32>
      %cst_513 = arith.constant 1.000000e+00 : f32
      %1300 = vector.broadcast %cst_513 : f32 to vector<8x32xf32>
      %1301 = arith.addf %1300, %1299 : vector<8x32xf32>
      %1302 = arith.divf %1300, %1301 : vector<8x32xf32>
      %cst_514 = arith.constant dense<0.000000e+00> : vector<8x32xf32>
      %1303 = tpu.matmul %15, %1302, %cst_514 {dimension_numbers = #tpu.dot_dimension_numbers<[1], [0], [0], [1], [0, 0, 1, 1], [], []>} : vector<8x8xf32>, vector<8x32xf32>, vector<8x32xf32> -> vector<8x32xf32>
      %cst_515 = arith.constant dense<0.000000e+00> : vector<8x16xf32>
      %1304 = tpu.matmul %1303, %17, %cst_515 {dimension_numbers = #tpu.dot_dimension_numbers<[1], [0], [0], [1], [0, 0, 1, 1], [], []>} : vector<8x32xf32>, vector<32x16xf32>, vector<8x16xf32> -> vector<8x16xf32>
      %1305 = vector.broadcast %19 : vector<8x1xf32> to vector<8x16xf32>
      %1306 = arith.mulf %1304, %1305 : vector<8x16xf32>
      %cst_516 = arith.constant dense<0.000000e+00> : vector<8x16xf32>
      %1307 = tpu.matmul %1303, %18, %cst_516 {dimension_numbers = #tpu.dot_dimension_numbers<[1], [0], [0], [1], [0, 0, 1, 1], [], []>} : vector<8x32xf32>, vector<32x16xf32>, vector<8x16xf32> -> vector<8x16xf32>
      %1308 = vector.broadcast %21 : vector<8x1xf32> to vector<8x16xf32>
      %1309 = arith.mulf %1307, %1308 : vector<8x16xf32>
      %1310 = arith.addf %1306, %1309 : vector<8x16xf32>
      %cst_517 = arith.constant dense<0.000000e+00> : vector<8x16xf32>
      %1311 = tpu.matmul %1286, %12, %cst_517 {dimension_numbers = #tpu.dot_dimension_numbers<[1], [0], [0], [1], [0, 0, 1, 1], [], []>} : vector<8x2xf32>, vector<2x16xf32>, vector<8x16xf32> -> vector<8x16xf32>
      %1312 = arith.mulf %1310, %1288 : vector<8x16xf32>
      %cst_518 = arith.constant dense<0.000000e+00> : vector<8x16xf32>
      %1313 = tpu.matmul %1312, %13, %cst_518 {dimension_numbers = #tpu.dot_dimension_numbers<[1], [0], [0], [1], [0, 0, 1, 1], [], []>} : vector<8x16xf32>, vector<16x16xf32>, vector<8x16xf32> -> vector<8x16xf32>
      %1314 = arith.addf %1311, %1313 : vector<8x16xf32>
      %cst_519 = arith.constant dense<0.000000e+00> : vector<8x16xf32>
      %1315 = tpu.matmul %1284, %1314, %cst_519 {dimension_numbers = #tpu.dot_dimension_numbers<[1], [0], [0], [1], [0, 0, 1, 1], [], []>} : vector<8x8xf32>, vector<8x16xf32>, vector<8x16xf32> -> vector<8x16xf32>
      %1316 = arith.addf %1258, %1315 : vector<8x16xf32>
      %1317 = vector.broadcast %1261 : f32 to vector<1x16xf32>
      %1318 = arith.mulf %14, %1317 : vector<1x16xf32>
      %1319 = vector.broadcast %1318 : vector<1x16xf32> to vector<8x16xf32>
      %1320 = arith.addf %1316, %1319 : vector<8x16xf32>
      %c1_i32_520 = arith.constant 1 : i32
      %1321 = arith.subi %698, %c1_i32_520 : i32
      %1322 = arith.index_cast %1321 : i32 to index
      %c0_521 = arith.constant 0 : index
      %c0_522 = arith.constant 0 : index
      %1323 = vector.load %arg24[%1322, %c0_521, %c0_522] : memref<11x8x16xf32, #tpu.memory_space<vmem>>, vector<1x8x16xf32>
      %1324 = vector.shape_cast %1323 : vector<1x8x16xf32> to vector<8x16xf32>
      %1325 = arith.negf %1297 : vector<8x32xf32>
      %1326 = math.exp %1325 : vector<8x32xf32>
      %cst_523 = arith.constant 1.000000e+00 : f32
      %1327 = vector.broadcast %cst_523 : f32 to vector<8x32xf32>
      %1328 = arith.addf %1327, %1326 : vector<8x32xf32>
      %1329 = arith.divf %1327, %1328 : vector<8x32xf32>
      %cst_524 = arith.constant dense<0.000000e+00> : vector<8x32xf32>
      %1330 = tpu.matmul %16, %1329, %cst_524 {dimension_numbers = #tpu.dot_dimension_numbers<[1], [0], [0], [1], [0, 0, 1, 1], [], []>} : vector<8x8xf32>, vector<8x32xf32>, vector<8x32xf32> -> vector<8x32xf32>
      %cst_525 = arith.constant dense<0.000000e+00> : vector<8x16xf32>
      %1331 = tpu.matmul %1330, %17, %cst_525 {dimension_numbers = #tpu.dot_dimension_numbers<[1], [0], [0], [1], [0, 0, 1, 1], [], []>} : vector<8x32xf32>, vector<32x16xf32>, vector<8x16xf32> -> vector<8x16xf32>
      %1332 = vector.broadcast %19 : vector<8x1xf32> to vector<8x16xf32>
      %1333 = arith.mulf %1331, %1332 : vector<8x16xf32>
      %cst_526 = arith.constant dense<0.000000e+00> : vector<8x16xf32>
      %1334 = tpu.matmul %1330, %18, %cst_526 {dimension_numbers = #tpu.dot_dimension_numbers<[1], [0], [0], [1], [0, 0, 1, 1], [], []>} : vector<8x32xf32>, vector<32x16xf32>, vector<8x16xf32> -> vector<8x16xf32>
      %1335 = vector.broadcast %21 : vector<8x1xf32> to vector<8x16xf32>
      %1336 = arith.mulf %1334, %1335 : vector<8x16xf32>
      %1337 = arith.addf %1333, %1336 : vector<8x16xf32>
      %1338 = math.tanh %1320 : vector<8x16xf32>
      %1339 = arith.mulf %1337, %1324 : vector<8x16xf32>
      %cst_527 = arith.constant 1.000000e+00 : f32
      %1340 = vector.broadcast %cst_527 : f32 to vector<8x16xf32>
      %1341 = arith.subf %1340, %1337 : vector<8x16xf32>
      %1342 = arith.mulf %1341, %1338 : vector<8x16xf32>
      %1343 = arith.addf %1339, %1342 : vector<8x16xf32>
      %cst_528 = arith.constant dense<0.000000e+00> : vector<8x2xf32>
      %1344 = tpu.matmul %1343, %22, %cst_528 {dimension_numbers = #tpu.dot_dimension_numbers<[1], [0], [0], [1], [0, 0, 1, 1], [], []>} : vector<8x16xf32>, vector<16x2xf32>, vector<8x2xf32> -> vector<8x2xf32>
      %1345 = vector.broadcast %23 : vector<1x1xf32> to vector<8x2xf32>
      %1346 = arith.addf %1344, %1345 : vector<8x2xf32>
      %1347 = arith.index_cast %698 : i32 to index
      %c0_529 = arith.constant 0 : index
      %c0_530 = arith.constant 0 : index
      %1348 = vector.load %arg23[%1347, %c0_529, %c0_530] : memref<11x8x2xf32, #tpu.memory_space<vmem>>, vector<1x8x2xf32>
      %1349 = vector.shape_cast %1348 : vector<1x8x2xf32> to vector<8x2xf32>
      %1350 = vector.shape_cast %1346 : vector<8x2xf32> to vector<1x8x2xf32>
      tpu.vector_store %arg23[%1347, %c0_529, %c0_530], %1350 {strides = array<i32>} : memref<11x8x2xf32, #tpu.memory_space<vmem>>, vector<1x8x2xf32>,
      %1351 = arith.index_cast %698 : i32 to index
      %c0_531 = arith.constant 0 : index
      %c0_532 = arith.constant 0 : index
      %1352 = vector.load %arg24[%1351, %c0_531, %c0_532] : memref<11x8x16xf32, #tpu.memory_space<vmem>>, vector<1x8x16xf32>
      %1353 = vector.shape_cast %1352 : vector<1x8x16xf32> to vector<8x16xf32>
      %1354 = vector.shape_cast %1343 : vector<8x16xf32> to vector<1x8x16xf32>
      tpu.vector_store %arg24[%1351, %c0_531, %c0_532], %1354 {strides = array<i32>} : memref<11x8x16xf32, #tpu.memory_space<vmem>>, vector<1x8x16xf32>,
      scf.yield %1343 : vector<8x16xf32>
    }
    %689 = vector.extract_strided_slice %688 {offsets = [0, 0], sizes = [8, 8], strides = [1, 1]} : vector<8x16xf32> to vector<8x8xf32>
    %c0_280 = arith.constant 0 : index
    %c0_281 = arith.constant 0 : index
    %690 = vector.load %arg21[%c0_280, %c0_281] : memref<16x8xf32, #tpu.memory_space<vmem>>, vector<8x8xf32>
    tpu.vector_store %arg21[%c0_280, %c0_281], %689 {strides = array<i32>} : memref<16x8xf32, #tpu.memory_space<vmem>>, vector<8x8xf32>,
    %691 = vector.extract_strided_slice %688 {offsets = [0, 8], sizes = [8, 8], strides = [1, 1]} : vector<8x16xf32> to vector<8x8xf32>
    %c8_282 = arith.constant 8 : index
    %c0_283 = arith.constant 0 : index
    %692 = vector.load %arg21[%c8_282, %c0_283] : memref<16x8xf32, #tpu.memory_space<vmem>>, vector<8x8xf32>
    tpu.vector_store %arg21[%c8_282, %c0_283], %691 {strides = array<i32>} : memref<16x8xf32, #tpu.memory_space<vmem>>, vector<8x8xf32>,
    %cst_284 = arith.constant dense<0.000000e+00> : vector<8x2xf32>
    %693 = tpu.matmul %688, %22, %cst_284 {dimension_numbers = #tpu.dot_dimension_numbers<[1], [0], [0], [1], [0, 0, 1, 1], [], []>} : vector<8x16xf32>, vector<16x2xf32>, vector<8x2xf32> -> vector<8x2xf32>
    %694 = vector.broadcast %23 : vector<1x1xf32> to vector<8x2xf32>
    %695 = arith.addf %693, %694 : vector<8x2xf32>
    %c0_285 = arith.constant 0 : index
    %c0_286 = arith.constant 0 : index
    %696 = vector.load %arg22[%c0_285, %c0_286] : memref<8x2xf32, #tpu.memory_space<vmem>>, vector<8x2xf32>
    tpu.vector_store %arg22[%c0_285, %c0_286], %695 {strides = array<i32>} : memref<8x2xf32, #tpu.memory_space<vmem>>, vector<8x2xf32>,
    return
  }
}

</mosaic_0001>

<bundles_post_ra>
// kernel: outer_step.1
= control target key start
LH: loop header
LB: loop body
LE: loop exit
PB: predicated region body
PF: predicated region fallthrough
CT: control target
= control target key end

     0   :  { %s19638_s0 = inlined_call_operand.<no memory space> [shape: s32[1], index: 0, kind: input, shape index: {}]   ;;  %s19639_s1 = inlined_call_operand.vmem [shape: f32[11,8,2], index: 1, kind: input, shape index: {}]   ;;  %s19640_s2 = inlined_call_operand.vmem [shape: f32[11,8,16], index: 2, kind: input, shape index: {}]   ;;  %s19641_s3 = inlined_call_operand.vmem [shape: f32[8,8], index: 3, kind: input, shape index: {}]   ;;  %s19642_s4 = inlined_call_operand.vmem [shape: s32[8,8], index: 4, kind: input, shape index: {}]   ;;  %s19643_s5 = inlined_call_operand.vmem [shape: f32[8,8], index: 5, kind: input, shape index: {}]   ;;  %s19644_s6 = inlined_call_operand.vmem [shape: f32[8,8], index: 6, kind: input, shape index: {}]   ;;  %s19645_s7 = inlined_call_operand.vmem [shape: f32[2,32], index: 7, kind: input, shape index: {}]   ;;  %s19646_s8 = inlined_call_operand.vmem [shape: f32[16,32], index: 8, kind: input, shape index: {}]   ;;  %s19647_s9 = inlined_call_operand.vmem [shape: f32[1,32], index: 9, kind: input, shape index: {}]   ;;  %s19648_s10 = inlined_call_operand.vmem [shape: f32[2,16], index: 10, kind: input, shape index: {}]   ;;  %s19649_s11 = inlined_call_operand.vmem [shape: f32[16,16], index: 11, kind: input, shape index: {}]   ;;  %s19650_s12 = inlined_call_operand.vmem [shape: f32[1,16], index: 12, kind: input, shape index: {}]   ;;  %s19651_s13 = inlined_call_operand.vmem [shape: f32[8,8], index: 13, kind: input, shape index: {}]   ;;  %s19652_s14 = inlined_call_operand.vmem [shape: f32[8,8], index: 14, kind: input, shape index: {}]   ;;  %s19653_s15 = inlined_call_operand.vmem [shape: f32[32,16], index: 15, kind: input, shape index: {}]   ;;  %s19654_s16 = inlined_call_operand.vmem [shape: f32[32,16], index: 16, kind: input, shape index: {}]   ;;  %s19655_s17 = inlined_call_operand.vmem [shape: f32[8,1], index: 17, kind: input, shape index: {}]   ;;  %s19656_s18 = inlined_call_operand.vmem [shape: f32[16,2], index: 18, kind: input, shape index: {}]   ;;  %s19657_s19 = inlined_call_operand.<no memory space> [shape: f32[1,1], index: 19, kind: input, shape index: {}]   ;;  %s19658_s20 = inlined_call_operand.hbm [shape: f32[8,16], index: 20, kind: output, shape index: {0}]   ;;  %s19659_s21 = inlined_call_operand.vmem [shape: f32[16,8], index: 21, kind: output, shape index: {1}]   ;;  %s19660_s22 = inlined_call_operand.vmem [shape: f32[8,2], index: 22, kind: output, shape index: {2}]  }
   0x1   :  { %19677 = sst [smem:[#allocation15_spill]] %s19638_s0  ;;  %v29_v0 = vstv %s19657_s19 }
   0x2   :  { %19678 = sst [smem:[#allocation16_spill]] %s19639_s1  ;;  %30 = vst [vmem:[#allocation5] sm:$0x1] %v29_v0 }
   0x3   :  { %19679 = sst [smem:[#allocation17_spill]] %s19640_s2 }
   0x4   :  { %19680 = sst [smem:[#allocation18_spill]] %s19641_s3 }
   0x5   :  { %19681 = sst [smem:[#allocation19_spill]] %s19642_s4 }
   0x6   :  { %19682 = sst [smem:[#allocation20_spill]] %s19643_s5 }
   0x7   :  { %19683 = sst [smem:[#allocation21_spill]] %s19644_s6 }
   0x8   :  { %19684 = sst [smem:[#allocation22_spill]] %s19660_s22 }
   0x9   :  { %31 = vsyncpa [#allocation7], 0  ;;  %s19685_s4 = sld [smem:[#allocation15_spill]]  ;;  %v17182_v1 = vld [vmem:[%s19656_s18] sm:$0xff]  ;;  %v17187_v2 = vld [vmem:[%s19656_s18 + $0x8] sm:$0xff]  ;;  %v19668_v4 = vmov 0.0   ;;  %v326_v36 = vlaneseq }
   0xa   :  { %19686 = vst [vmem:[#allocation9_spill] sm:$0xff] %v17182_v1  ;;  %19687 = vst [vmem:[#allocation10_spill] sm:$0xff] %v17187_v2  ;;  %v17189_v3 = vld [vmem:[#allocation5] sm:$0x1]  ;;  %15590 = vmatprep.subr.mxu0 %v19668_v4  ;;  %v17195_v5 = vld [vmem:[%s19646_s8 + $0x8] sm:$0xff]  ;;  %15597 = vmatprep.subr.mxu1 %v19668_v4  ;;  %vm250_vm0 = vcmask 1041408  }
   0xb   :  { %19688 = vst [vmem:[#allocation11_spill] sm:$0xff] %v17189_v3  ;;  %v17201_v6 = vld [vmem:[%s19646_s8] sm:$0xff]  ;;  %15591 = vmatpush3.msra.mxu0 %v17195_v5  ;;  %vm17051_vm1 = vmmov 0   ;;  %s19689_s28 = sld [smem:[#allocation17_spill]]  ;;  %vm137_vm2 = vcmask 130048   ;;  %vm114_vm3 = vcmask 15360  }
   0xc   :  { %15594 = vmatprep.mubr.msk.f32.mxu0 %vm17051_vm1, %v19668_v4  ;;  %v17209_v7 = vld [vmem:[%s19645_s7] sm:$0x3]  ;;  %s19690_s23 = sld [smem:[#allocation16_spill]]  ;;  %15592 = vmatprep.subr.mxu0 %v19668_v4  ;;  %vm331_vm7 = vcmask 64512   ;;  %v17293_v33 = vld [vmem:[%s19653_s15 + $0x18] sm:$0xff]  ;;  %v17300_v34 = vld [vmem:[%s19653_s15 + $0x10] sm:$0xff] }
   0xd   :  { %15598 = vmatpush3.msk.msra.mxu1 %vm250_vm0, %v17209_v7  ;;  %15593 = vmatpush3.msra.mxu0 %v17201_v6  ;;  %s19691_s27 = sld [smem:[#allocation19_spill]]  ;;  %v17307_v35 = vld [vmem:[%s19653_s15 + $0x8] sm:$0xff]  ;;  %v327_v37 = vshrl.u32 %v326_v36, 7  ;;  %v17314_v38 = vld [vmem:[%s19647_s9] sm:$0x1]  ;;  %v17332_v50 = vld [vmem:[%s19654_s16 + $0x18] sm:$0xff] }
   0xe   :  { %15599 = vmatprep.mubr.msk.f32.mxu1 %vm17051_vm1, %v19668_v4  ;;  %15602 = vmatprep.subr.mxu1 %v19668_v4  ;;  %s19692_s1 = sld [smem:[#allocation20_spill]]  ;;  %v17327_v48 = vld [vmem:[%s19651_s13] sm:$0xff]  ;;  %v17340_v51 = vld [vmem:[%s19654_s16 + $0x10] sm:$0xff]  ;;  %v17349_v52 = vld [vmem:[%s19654_s16 + $0x8] sm:$0xff]  ;;  %v19667_v56 = vmov 0   ;;  %vm484_vm8 = vcmask 261120  }
   0xf   :  { %15607 = vmatprep.subr.mxu0 %v19668_v4  ;;  %p152_p0 = scmp.eq.s32.totalorder %s19685_s4, 0  ;;  %s17245_s25 = sadd.s32 1, %s19685_s4  ;;  %v17318_v40 = vsub.s32 0, %v327_v37  ;;  %v17358_v53 = vld [vmem:[%s19653_s15] sm:$0xff]  ;;  %16902 = vset.pattern.permute.xlu0 %v19667_v56  ;;  %v17382_v60 = vld [vmem:[%s19649_s11 + $0x8] sm:$0xff] }
  0x10   :  { %p149_p1 = scmp.gt.s32.totalorder %s17245_s25, 0  ;;  %v164_v13 = vstv %s17245_s25  ;;  %s19693_s6 = sld [smem:[#allocation21_spill]]  ;;  %v17363_v54 = vld [vmem:[%s19654_s16] sm:$0xff] }
  0x11   :  { %v126_v8 = vld [vmem:[%s19689_s28] sm:$0xff]  ;;  %s153_s24 = scalar_select %p152_p0, 1, 0  ;;  %v132_v56 = vld [vmem:[%s19689_s28 + $0x30] sm:$0xff] }
  0x12   :  { %v103_v9 = vld [vmem:[%s19690_s23] sm:$0xff]  ;;  %138 = vst.msk [vmem:[#allocation3] sm:$0xff] %vm137_vm2, %v126_v8  ;;  %s150_s3 = scalar_select %p149_p1, 1, 0  ;;  %144 = vst.msk [vmem:[#allocation3 + $0x30] sm:$0xff] %vm137_vm2, %v132_v56 }
  0x13   :  { %115 = vst.msk [vmem:[#allocation2] sm:$0xff] %vm114_vm3, %v103_v9  ;;  %s154_s26 = scvt.s32.f32 %s153_s24  ;;  %v17251_v12 = vld [vmem:[%s19691_s27] sm:$0xff]  ;;  %s19694_s18 = sld [smem:[#allocation18_spill]] }
  0x14   :  { %v17257_v14 = vld [vmem:[%s19692_s1] sm:$0xff]  ;;  %v17263_v16 = vsub.s32 %v164_v13, %v17251_v12  ;;  %s151_s2 = scvt.s32.f32 %s150_s3  ;;  %p868_p2 = scmp.eq.s32.totalorder %s19685_s4, 1 }
  0x15   :  { %s155_s0 = smul.f32 -0.16666667, %s154_s26  ;;  %v159_v19 = vstv %s154_s26  ;;  %v98_v55 = vld [vmem:[%s19655_s17] sm:$0xff]  ;;  %p865_p3 = scmp.gt.s32.totalorder %s17245_s25, 1 }
  0x16   :  { %v79_v15 = vld [vmem:[%s19693_s6] sm:$0xff]  ;;  %vm166_vm5 = vcmp.lt.s32.totalorder %v17263_v16, 1  ;;  %v17279_v22 = vstv %s151_s2  ;;  %560 = vperm.xlu0 %16902, %v98_v55   ;;  %v99_v57 = vsub.f32 1.0, %v98_v55  ;;  %vm879_vm9 = vcmp.lt.s32.totalorder %v17263_v16, 2  ;;  %p1565_p4 = scmp.eq.s32.totalorder %s19685_s4, 2  ;;  %p1562_p5 = scmp.gt.s32.totalorder %s17245_s25, 2 }
  0x17   :  { %v17271_v18 = vsub.f32 %v79_v15, %v17257_v14  ;;  %s156_s27 = sadd.f32 0.5, %s155_s0  ;;  %v324_v39 = vmul.f32 %v17279_v22, %v17314_v38  ;;  %v17387_v61 = vld [vmem:[%s19648_s10] sm:$0x3]  ;;  %vm1576_vm11 = vcmp.lt.s32.totalorder %v17263_v16, 3  ;;  %p2262_p6 = scmp.eq.s32.totalorder %s19685_s4, 3  ;;  %vm2273_vm13 = vcmp.lt.s32.totalorder %v17263_v16, 4 }
  0x18   :  { %19695 = vst [vmem:[#allocation12_spill] sm:$0xff] %v17387_v61  ;;  %v17398_v62 = vld [vmem:[%s19649_s11] sm:$0xff]  ;;  %p2259_p7 = scmp.gt.s32.totalorder %s17245_s25, 3  ;;  %p2959_p8 = scmp.eq.s32.totalorder %s19685_s4, 4  ;;  %vm2970_vm15 = vcmp.lt.s32.totalorder %v17263_v16, 5 }
  0x19   :  { %v17227_v10 = vld [vmem:[#allocation3] sm:$0xff]  ;;  %v17268_v17 = vld [vmem:[%s19694_s18] sm:$0xff]  ;;  %v160_v20 = vmul.f32 %v159_v19, %v17271_v18  ;;  %s157_s29 = smul.f32 %s156_s27, %s151_s2  ;;  %v329_v41 = vrot.slane %v324_v39, %v17318_v40  ;;  %19696 = vst [vmem:[#allocation13_spill] sm:$0xff] %v17398_v62  ;;  %p2956_p9 = scmp.gt.s32.totalorder %s17245_s25, 4 }
  0x1a   :  { %v17229_v11 = vld [vmem:[#allocation2] sm:$0xff]  ;;  %15595 = vmatmul.mubr.msk.f32.vlgmr.msra.gmra.mxu0 %vm137_vm2, %v17227_v10  ;;  %vm76_vm4 = vcmp.ne.f32.partialorder %v17268_v17, 0.0  ;;  %636 = vperm.xlu0 %16902, %v99_v57   ;;  %s869_s2 = scalar_select %p868_p2, 1, 0 }
  0x1b   :  { %15600 = vmatmul.mubr.msk.f32.vlgmr.msra.gmra.mxu1 %vm114_vm3, %v17229_v11  ;;  %15609 = vmatprep.mubr.msk.f32.mxu0 %vm17051_vm1, %v19668_v4  ;;  %vm167_vm6 = vmand %vm76_vm4, %vm166_vm5  ;;  %v161_v21 = vadd.f32 %v160_v20, %v17257_v14  ;;  %v169_v24 = vstv %s157_s29  ;;  %s866_s27 = scalar_select %p865_p3, 1, 0 }
  0x1c   :  { %15604 = vmatprep.mubr.msk.f32.mxu1 %vm17051_vm1, %v19668_v4  ;;  %v168_v23 = vsel %vm167_vm6, %v17268_v17, 0.0  ;;  %s870_s17 = scvt.s32.f32 %s869_s2  ;;  %vm880_vm10 = vmand %vm76_vm4, %vm879_vm9  ;;  %p3656_p10 = scmp.eq.s32.totalorder %s19685_s4, 5  ;;  %vm3667_vm6 = vcmp.lt.s32.totalorder %v17263_v16, 6 }
  0x1d   :  { %v163_v25 = vmul.f32 %v17279_v22, %v161_v21  ;;  %v170_v26 = vmul.f32 %v169_v24, %v168_v23  ;;  %v127_v23 = vld [vmem:[%s19689_s28 + $0x8] sm:$0xff]  ;;  %s867_s22 = scvt.s32.f32 %s866_s27  ;;  %vm1577_vm12 = vmand %vm76_vm4, %vm1576_vm11  ;;  %p3653_p11 = scmp.gt.s32.totalorder %s17245_s25, 5 }
  0x1e   :  { %139 = vst.msk [vmem:[#allocation3 + $0x8] sm:$0xff] %vm137_vm2, %v127_v23  ;;  %s871_s29 = smul.f32 -0.16666667, %s870_s17  ;;  %v874_v36 = vstv %s870_s17  ;;  %vm2274_vm14 = vmand %vm76_vm4, %vm2273_vm13  ;;  %p4353_p12 = scmp.eq.s32.totalorder %s19685_s4, 6 }
  0x1f   :  { %v17283_v29 = vadd.f32 %v170_v26, %v163_v25  ;;  %v104_v25 = vld [vmem:[%s19690_s23 + $0x8] sm:$0xff]  ;;  %v875_v37 = vmul.f32 %v874_v36, %v17271_v18  ;;  %s1566_s2 = scalar_select %p1565_p4, 1, 0  ;;  %vm2971_vm5 = vmand %vm76_vm4, %vm2970_vm15 }
  0x20   :  { %116 = vst.msk [vmem:[#allocation2 + $0x8] sm:$0xff] %vm114_vm3, %v104_v25  ;;  %s872_s0 = sadd.f32 0.5, %s871_s29  ;;  %vm3668_vm9 = vmand %vm76_vm4, %vm3667_vm6  ;;  %p4350_p13 = scmp.gt.s32.totalorder %s17245_s25, 6 }
  0x21   :  { %v876_v39 = vadd.f32 %v875_v37, %v17257_v14  ;;  %s1567_s17 = scvt.s32.f32 %s1566_s2  ;;  %p5050_p0 = scmp.eq.s32.totalorder %s19685_s4, 7 }
  0x22   :  { %s873_s26 = smul.f32 %s872_s0, %s867_s22  ;;  %p5047_p1 = scmp.gt.s32.totalorder %s17245_s25, 7 }
  0x23   :  { %s1563_s27 = scalar_select %p1562_p5, 1, 0 }
  0x24   :  { %s1568_s29 = smul.f32 -0.16666667, %s1567_s17  ;;  %p5747_p2 = scmp.eq.s32.totalorder %s19685_s4, 8 }
  0x25   :  { %p5744_p3 = scmp.gt.s32.totalorder %s17245_s25, 8  ;;  %p6444_p4 = scmp.eq.s32.totalorder %s19685_s4, 9 }
  0x26   :  { %s1569_s3 = sadd.f32 0.5, %s1568_s29  ;;  %p6441_p5 = scmp.gt.s32.totalorder %s17245_s25, 9 }
  0x91   :  { %v17409_v63 = vpop.permute.xlu0 %560 }
  0x95   :  { %v17411_v0 = vpop.permute.xlu0 %636 }
  0xda   :  { %v243_v27 = vpop.f32.mrf.mxu0 }
  0xdb   :  { %v320_v28 = vpop.f32.mrf.mxu1 }
  0xdc   :  { %v321_v30 = vadd.f32 %v320_v28, %v243_v27  ;;  %v15596_v31 = vpop.f32.mrf.mxu0 }
  0xdd   :  { %v15601_v32 = vpop.f32.mrf.mxu1  ;;  %v17440_v31 = vld [vmem:[#allocation2 + $0x8] sm:$0xff] }
  0xde   :  { %15603 = vmatpush3.msra.mxu1 %v321_v30 }
  0xdf   :  { %15605 = vmatmul.mubr.msk.f32.vlgmr.msra.gmra.mxu1 %vm331_vm7, %v17283_v29  ;;  %15612 = vmatprep.subr.mxu1 %v19668_v4 }
  0xe0   :  { %15620 = vmatprep.mubr.msk.f32.mxu1 %vm17051_vm1, %v19668_v4  ;;  %15613 = vmatpush3.msra.mxu1 %v17293_v33 }
  0xe1   :  { %15614 = vmatprep.subr.mxu1 %v19668_v4 }
  0xe2   :  { %15615 = vmatpush3.msra.mxu1 %v17300_v34 }
  0xe3   :  { %15616 = vmatprep.subr.mxu1 %v19668_v4 }
  0xe4   :  { %15617 = vmatpush3.msra.mxu1 %v17307_v35 }
  0xe5   :  { %15618 = vmatprep.subr.mxu1 %v19668_v4 }
  0xe6   :  { %15619 = vmatpush3.msra.mxu1 %v17358_v53 }
  0xe7   :  { %15634 = vmatprep.subr.mxu1 %v19668_v4 }
 0x19f   :  { %v401_v42 = vpop.f32.mrf.mxu1 }
 0x1a0   :  { %v17321_v43 = vadd.f32 %v401_v42, %v329_v41  ;;  %v17456_v41 = vstv %s867_s22  ;;  %v881_v42 = vsel %vm880_vm10, %v17268_v17, 0.0  ;;  %s2260_s22 = scalar_select %p2259_p7, 1, 0  ;;  %vm4364_vm10 = vcmp.lt.s32.totalorder %v17263_v16, 7 }
 0x1a1   :  { %v15606_v44 = vpop.f32.mrf.mxu1  ;;  %vm4365_vm11 = vmand %vm76_vm4, %vm4364_vm10 }
 0x1a2   :  { %v14784_v45 = vmul.f32 -1.442695, %v17321_v43  ;;  %v882_v44 = vstv %s873_s26  ;;  %s1564_s26 = scvt.s32.f32 %s1563_s27 }
 0x1a3   :  { %s2263_s27 = scalar_select %p2262_p6, 1, 0 }
 0x1a4   :  { %16903 = vpow2.f32 %v14784_v45  ;;  %s1570_s30 = smul.f32 %s1569_s3, %s1564_s26 }
 0x1a5   :  { %s2264_s29 = scvt.s32.f32 %s2263_s27 }
 0x1a6   :  { %s2960_s27 = scalar_select %p2959_p8, 1, 0 }
 0x1a7   :  { %s2265_s0 = smul.f32 -0.16666667, %s2264_s29 }
 0x1a9   :  { %s2266_s3 = sadd.f32 0.5, %s2265_s0 }
 0x1b1   :  { %v16904_v46 = vpop.eup %16903 }
 0x1b2   :  { %v408_v47 = vadd.f32 1.0, %v16904_v46  ;;  %v878_v46 = vmul.f32 %v17456_v41, %v876_v39 }
 0x1b4   :  { %16905 = vrcp.f32 %v408_v47  ;;  %v883_v47 = vmul.f32 %v882_v44, %v881_v42  ;;  %v128_v42 = vld [vmem:[%s19689_s28 + $0x10] sm:$0xff] }
 0x1b5   :  { %140 = vst.msk [vmem:[#allocation3 + $0x10] sm:$0xff] %vm137_vm2, %v128_v42  ;;  %v105_v44 = vld [vmem:[%s19690_s23 + $0x10] sm:$0xff] }
 0x1b6   :  { %v17462_v57 = vadd.f32 %v883_v47, %v878_v46  ;;  %117 = vst.msk [vmem:[#allocation2 + $0x10] sm:$0xff] %vm114_vm3, %v105_v44 }
 0x1bc   :  { %v17532_v46 = vld [vmem:[#allocation3 + $0x10] sm:$0xff] }
 0x1c1   :  { %v16906_v49 = vpop.eup %16905 }
 0x1c2   :  { %15608 = vmatpush3.msra.mxu0 %v16906_v49 }
 0x1c3   :  { %15610 = vmatmul.mubr.msk.f32.vlgmr.msra.gmra.mxu0 %vm331_vm7, %v17327_v48  ;;  %15623 = vmatprep.subr.mxu0 %v19668_v4 }
 0x1c4   :  { %15624 = vmatpush3.msra.mxu0 %v17332_v50  ;;  %15631 = vmatprep.mubr.msk.f32.mxu0 %vm17051_vm1, %v19668_v4 }
 0x1c5   :  { %15625 = vmatprep.subr.mxu0 %v19668_v4 }
 0x1c6   :  { %15626 = vmatpush3.msra.mxu0 %v17340_v51 }
 0x1c7   :  { %15627 = vmatprep.subr.mxu0 %v19668_v4 }
 0x1c8   :  { %15628 = vmatpush3.msra.mxu0 %v17349_v52 }
 0x1c9   :  { %15629 = vmatprep.subr.mxu0 %v19668_v4 }
 0x1ca   :  { %15630 = vmatpush3.msra.mxu0 %v17363_v54 }
 0x1cb   :  { %15641 = vmatprep.subr.mxu0 %v19668_v4 }
 0x283   :  { %v480_v58 = vpop.f32.mrf.mxu0 }
 0x284   :  { %15621 = vmatmul.mubr.msk.f32.vlgmr.msra.gmra.mxu1 %vm484_vm8, %v480_v58  ;;  %15632 = vmatmul.mubr.msk.f32.vlgmr.msra.gmra.mxu0 %vm484_vm8, %v480_v58 }
 0x285   :  { %v15611_v59 = vpop.f32.mrf.mxu0  ;;  %15643 = vmatprep.mubr.msk.f32.mxu0 %vm17051_vm1, %v19668_v4  ;;  %15638 = vmatprep.mubr.msk.f32.mxu1 %vm17051_vm1, %v19668_v4 }
 0x286   :  { %15635 = vmatpush3.msra.mxu1 %v17382_v60  ;;  %15642 = vmatpush3.msk.msra.mxu0 %vm250_vm0, %v17387_v61 }
 0x287   :  { %15636 = vmatprep.subr.mxu1 %v19668_v4  ;;  %15651 = vmatprep.subr.mxu0 %v19668_v4 }
 0x288   :  { %15644 = vmatmul.mubr.msk.f32.vlgmr.msra.gmra.mxu0 %vm114_vm3, %v17229_v11  ;;  %15637 = vmatpush3.msra.mxu1 %v17398_v62 }
 0x289   :  { %15646 = vmatprep.subr.mxu1 %v19668_v4  ;;  %15652 = vmatpush3.msra.mxu0 %v17195_v5 }
 0x28a   :  { %15653 = vmatprep.subr.mxu0 %v19668_v4  ;;  %15655 = vmatprep.mubr.msk.f32.mxu0 %vm17051_vm1, %v19668_v4 }
 0x28b   :  { %15654 = vmatpush3.msra.mxu0 %v17201_v6 }
 0x28c   :  { %15663 = vmatprep.subr.mxu0 %v19668_v4 }
 0x344   :  { %v554_v8 = vpop.f32.mrf.mxu1  ;;  %v630_v9 = vpop.f32.mrf.mxu0 }
 0x345   :  { %v563_v11 = vmul.f32 %v17409_v63, %v554_v8  ;;  %v639_v13 = vmul.f32 %v17411_v0, %v630_v9  ;;  %v1109_v8 = vmul.f32 %v17456_v41, %v17314_v38 }
 0x346   :  { %v15622_v15 = vpop.f32.mrf.mxu1  ;;  %v15633_v19 = vpop.f32.mrf.mxu0 }
 0x347   :  { %v640_v20 = vadd.f32 %v639_v13, %v563_v11  ;;  %v1114_v9 = vrot.slane %v1109_v8, %v17318_v40  ;;  %v1571_v8 = vstv %s1567_s17  ;;  %s5745_s17 = scalar_select %p5744_p3, 1, 0 }
 0x348   :  { %v784_v24 = vpop.f32.mrf.mxu0 }
 0x349   :  { %v641_v21 = vmul.f32 %v640_v20, %v17227_v10  ;;  %v17427_v10 = vld [vmem:[#allocation3 + $0x8] sm:$0xff] }
 0x34a   :  { %v15645_v26 = vpop.f32.mrf.mxu0  ;;  %15656 = vmatmul.mubr.msk.f32.vlgmr.msra.gmra.mxu0 %vm137_vm2, %v17427_v10 }
 0x34b   :  { %15639 = vmatmul.mubr.msk.f32.vlgmr.msra.gmra.mxu1 %vm137_vm2, %v641_v21  ;;  %15665 = vmatprep.mubr.msk.f32.mxu0 %vm17051_vm1, %v19668_v4 }
 0x34c   :  { %15648 = vmatprep.mubr.msk.f32.mxu1 %vm17051_vm1, %v19668_v4 }
 0x40a   :  { %v958_v32 = vpop.f32.mrf.mxu0 }
 0x40b   :  { %v711_v27 = vpop.f32.mrf.mxu1 }
 0x40c   :  { %v785_v28 = vadd.f32 %v784_v24, %v711_v27 }
 0x40d   :  { %v15640_v30 = vpop.f32.mrf.mxu1 }
 0x40e   :  { %15647 = vmatpush3.msra.mxu1 %v785_v28 }
 0x40f   :  { %15649 = vmatmul.mubr.msk.f32.vlgmr.msra.gmra.mxu1 %vm331_vm7, %v17283_v29  ;;  %15658 = vmatprep.subr.mxu1 %v19668_v4  ;;  %v15657_v29 = vpop.f32.mrf.mxu0 }
 0x410   :  { %15659 = vmatpush3.msk.msra.mxu1 %vm250_vm0, %v17209_v7  ;;  %15660 = vmatprep.mubr.msk.f32.mxu1 %vm17051_vm1, %v19668_v4 }
 0x411   :  { %15668 = vmatprep.subr.mxu1 %v19668_v4 }
 0x413   :  { %15661 = vmatmul.mubr.msk.f32.vlgmr.msra.gmra.mxu1 %vm114_vm3, %v17440_v31 }
 0x414   :  { %15670 = vmatprep.mubr.msk.f32.mxu1 %vm17051_vm1, %v19668_v4 }
 0x4cf   :  { %v17459_v45 = vpop.f32.mrf.mxu1 }
 0x4d1   :  { %v15650_v49 = vpop.f32.mrf.mxu1 }
 0x4d3   :  { %v1031_v55 = vpop.f32.mrf.mxu1 }
 0x4d4   :  { %v1032_v58 = vadd.f32 %v1031_v55, %v958_v32  ;;  %v17545_v55 = vld [vmem:[#allocation2 + $0x10] sm:$0xff] }
 0x4d5   :  { %v15662_v59 = vpop.f32.mrf.mxu1 }
 0x4d6   :  { %15664 = vmatpush3.msra.mxu0 %v1032_v58  ;;  %v17559_v59 = vld [vmem:[%s19650_s12] sm:$0x1] }
 0x4d7   :  { %15666 = vmatmul.mubr.msk.f32.vlgmr.msra.gmra.mxu0 %vm331_vm7, %v17462_v57  ;;  %15673 = vmatprep.subr.mxu0 %v19668_v4  ;;  %19697 = vst [vmem:[#allocation14_spill] sm:$0xff] %v17559_v59 }
 0x4d8   :  { %15674 = vmatpush3.msra.mxu0 %v17293_v33  ;;  %15681 = vmatprep.mubr.msk.f32.mxu0 %vm17051_vm1, %v19668_v4 }
 0x4d9   :  { %15675 = vmatprep.subr.mxu0 %v19668_v4 }
 0x4da   :  { %15676 = vmatpush3.msra.mxu0 %v17300_v34 }
 0x4db   :  { %15677 = vmatprep.subr.mxu0 %v19668_v4 }
 0x4dc   :  { %15678 = vmatpush3.msra.mxu0 %v17307_v35 }
 0x4dd   :  { %15679 = vmatprep.subr.mxu0 %v19668_v4 }
 0x4de   :  { %15680 = vmatpush3.msra.mxu0 %v17358_v53 }
 0x4df   :  { %15695 = vmatprep.subr.mxu0 %v19668_v4 }
 0x597   :  { %v1104_v11 = vpop.f32.mrf.mxu0 }
 0x598   :  { %v1108_v13 = vadd.f32 %v1104_v11, %v17321_v43  ;;  %v1572_v11 = vmul.f32 %v1571_v8, %v17271_v18 }
 0x599   :  { %v15667_v15 = vpop.f32.mrf.mxu0 }
 0x59a   :  { %v17481_v19 = vadd.f32 %v1114_v9, %v1108_v13  ;;  %v788_v9 = vmul.f32 %v17279_v22, %v17559_v59  ;;  %v1573_v15 = vadd.f32 %v1572_v11, %v17257_v14 }
 0x59c   :  { %v14796_v20 = vmul.f32 -1.442695, %v17481_v19  ;;  %v793_v13 = vrot.slane %v788_v9, %v17318_v40 }
 0x59e   :  { %16907 = vpow2.f32 %v14796_v20  ;;  %v17569_v20 = vstv %s1564_s26  ;;  %s2261_s26 = scvt.s32.f32 %s2260_s22 }
 0x59f   :  { %s2957_s22 = scalar_select %p2956_p9, 1, 0 }
 0x5ab   :  { %v16908_v21 = vpop.eup %16907 }
 0x5ac   :  { %v1120_v23 = vadd.f32 1.0, %v16908_v21  ;;  %v1578_v21 = vsel %vm1577_vm12, %v17268_v17, 0.0  ;;  %vm5061_vm12 = vcmp.lt.s32.totalorder %v17263_v16, 8 }
 0x5ad   :  { %vm5062_vm13 = vmand %vm76_vm4, %vm5061_vm12 }
 0x5ae   :  { %16909 = vrcp.f32 %v1120_v23  ;;  %v1579_v23 = vstv %s1570_s30  ;;  %s2267_s30 = smul.f32 %s2266_s3, %s2261_s26 }
 0x5bb   :  { %v16910_v24 = vpop.eup %16909 }
 0x5bc   :  { %15669 = vmatpush3.msra.mxu1 %v16910_v24  ;;  %v862_v24 = vadd.f32 %v17459_v45, %v793_v13  ;;  %v1806_v45 = vmul.f32 %v17569_v20, %v17314_v38 }
 0x5bd   :  { %15671 = vmatmul.mubr.msk.f32.vlgmr.msra.gmra.mxu1 %vm331_vm7, %v17327_v48  ;;  %15684 = vmatprep.subr.mxu1 %v19668_v4 }
 0x5be   :  { %15685 = vmatpush3.msra.mxu1 %v17332_v50  ;;  %15692 = vmatprep.mubr.msk.f32.mxu1 %vm17051_vm1, %v19668_v4 }
 0x5bf   :  { %15686 = vmatprep.subr.mxu1 %v19668_v4 }
 0x5c0   :  { %15687 = vmatpush3.msra.mxu1 %v17340_v51 }
 0x5c1   :  { %15688 = vmatprep.subr.mxu1 %v19668_v4 }
 0x5c2   :  { %15689 = vmatpush3.msra.mxu1 %v17349_v52 }
 0x5c3   :  { %15690 = vmatprep.subr.mxu1 %v19668_v4 }
 0x5c4   :  { %15691 = vmatpush3.msra.mxu1 %v17363_v54 }
 0x5c5   :  { %15702 = vmatprep.subr.mxu1 %v19668_v4 }
 0x67d   :  { %v1189_v43 = vpop.f32.mrf.mxu1 }
 0x67e   :  { %15682 = vmatmul.mubr.msk.f32.vlgmr.msra.gmra.mxu0 %vm484_vm8, %v1189_v43  ;;  %15693 = vmatmul.mubr.msk.f32.vlgmr.msra.gmra.mxu1 %vm484_vm8, %v1189_v43  ;;  %v1575_v43 = vmul.f32 %v17569_v20, %v1573_v15 }
 0x67f   :  { %v15672_v25 = vpop.f32.mrf.mxu1  ;;  %15696 = vmatpush3.msra.mxu0 %v17382_v60  ;;  %15703 = vmatpush3.msk.msra.mxu1 %vm250_vm0, %v17387_v61 }
 0x680   :  { %15704 = vmatprep.mubr.msk.f32.mxu1 %vm17051_vm1, %v19668_v4  ;;  %15697 = vmatprep.subr.mxu0 %v19668_v4  ;;  %v1580_v25 = vmul.f32 %v1579_v23, %v1578_v21 }
 0x681   :  { %15698 = vmatpush3.msra.mxu0 %v17398_v62  ;;  %15699 = vmatprep.mubr.msk.f32.mxu0 %vm17051_vm1, %v19668_v4 }
 0x682   :  { %15705 = vmatmul.mubr.msk.f32.vlgmr.msra.gmra.mxu1 %vm114_vm3, %v17440_v31  ;;  %15707 = vmatprep.subr.mxu0 %v19668_v4 }
 0x683   :  { %15712 = vmatprep.subr.mxu1 %v19668_v4  ;;  %15716 = vmatprep.mubr.msk.f32.mxu1 %vm17051_vm1, %v19668_v4 }
 0x684   :  { %15713 = vmatpush3.msra.mxu1 %v17195_v5 }
 0x685   :  { %15714 = vmatprep.subr.mxu1 %v19668_v4 }
 0x686   :  { %15715 = vmatpush3.msra.mxu1 %v17201_v6 }
 0x687   :  { %15724 = vmatprep.subr.mxu1 %v19668_v4  ;;  %15717 = vmatmul.mubr.msk.f32.vlgmr.msra.gmra.mxu1 %vm137_vm2, %v17532_v46 }
 0x688   :  { %15726 = vmatprep.mubr.msk.f32.mxu1 %vm17051_vm1, %v19668_v4 }
 0x73e   :  { %v1262_v26 = vpop.f32.mrf.mxu0  ;;  %v1333_v27 = vpop.f32.mrf.mxu1 }
 0x73f   :  { %v1266_v28 = vmul.f32 %v1262_v26, %v17409_v63  ;;  %v1337_v30 = vmul.f32 %v1333_v27, %v17411_v0 }
 0x740   :  { %v15683_v31 = vpop.f32.mrf.mxu0  ;;  %v15694_v32 = vpop.f32.mrf.mxu1 }
 0x741   :  { %v1338_v29 = vadd.f32 %v1337_v30, %v1266_v28  ;;  %v17576_v30 = vadd.f32 %v1580_v25, %v1575_v43  ;;  %v106_v43 = vld [vmem:[%s19690_s23 + $0x18] sm:$0xff] }
 0x742   :  { %v1479_v36 = vpop.f32.mrf.mxu1  ;;  %118 = vst.msk [vmem:[#allocation2 + $0x18] sm:$0xff] %vm114_vm3, %v106_v43 }
 0x743   :  { %v1339_v37 = vmul.f32 %v1338_v29, %v17427_v10  ;;  %v1811_v29 = vrot.slane %v1806_v45, %v17318_v40  ;;  %v2268_v45 = vstv %s2264_s29  ;;  %s2961_s29 = scvt.s32.f32 %s2960_s27 }
 0x744   :  { %v15706_v39 = vpop.f32.mrf.mxu1 }
 0x745   :  { %15700 = vmatmul.mubr.msk.f32.vlgmr.msra.gmra.mxu0 %vm137_vm2, %v1339_v37  ;;  %s2962_s0 = smul.f32 -0.16666667, %s2961_s29 }
 0x746   :  { %15709 = vmatprep.mubr.msk.f32.mxu0 %vm17051_vm1, %v19668_v4 }
 0x747   :  { %v1655_v58 = vpop.f32.mrf.mxu1  ;;  %s2963_s3 = sadd.f32 0.5, %s2962_s0 }
 0x748   :  { %s5048_s0 = scalar_select %p5047_p1, 1, 0 }
 0x805   :  { %v1409_v10 = vpop.f32.mrf.mxu0 }
 0x806   :  { %v1480_v47 = vadd.f32 %v1479_v36, %v1409_v10 }
 0x807   :  { %v15701_v49 = vpop.f32.mrf.mxu0 }
 0x808   :  { %15708 = vmatpush3.msra.mxu0 %v1480_v47 }
 0x809   :  { %15710 = vmatmul.mubr.msk.f32.vlgmr.msra.gmra.mxu0 %vm331_vm7, %v17462_v57  ;;  %15719 = vmatprep.subr.mxu0 %v19668_v4  ;;  %v15718_v57 = vpop.f32.mrf.mxu1 }
 0x80a   :  { %15720 = vmatpush3.msk.msra.mxu0 %vm250_vm0, %v17209_v7  ;;  %15721 = vmatprep.mubr.msk.f32.mxu0 %vm17051_vm1, %v19668_v4 }
 0x80b   :  { %15729 = vmatprep.subr.mxu0 %v19668_v4 }
 0x80d   :  { %15722 = vmatmul.mubr.msk.f32.vlgmr.msra.gmra.mxu0 %vm114_vm3, %v17545_v55 }
 0x80e   :  { %15731 = vmatprep.mubr.msk.f32.mxu0 %vm17051_vm1, %v19668_v4 }
 0x8c9   :  { %v1549_v22 = vpop.f32.mrf.mxu0 }
 0x8ca   :  { %v17574_v26 = vadd.f32 %v1549_v22, %v862_v24  ;;  %v129_v22 = vld [vmem:[%s19689_s28 + $0x18] sm:$0xff] }
 0x8cb   :  { %v15711_v27 = vpop.f32.mrf.mxu0  ;;  %141 = vst.msk [vmem:[#allocation3 + $0x18] sm:$0xff] %vm137_vm2, %v129_v22 }
 0x8cd   :  { %v1728_v28 = vpop.f32.mrf.mxu0 }
 0x8ce   :  { %v1729_v31 = vadd.f32 %v1728_v28, %v1655_v58 }
 0x8cf   :  { %v15723_v32 = vpop.f32.mrf.mxu0 }
 0x8d0   :  { %15725 = vmatpush3.msra.mxu1 %v1729_v31  ;;  %v17659_v31 = vld [vmem:[#allocation2 + $0x18] sm:$0xff] }
 0x8d1   :  { %15727 = vmatmul.mubr.msk.f32.vlgmr.msra.gmra.mxu1 %vm331_vm7, %v17576_v30  ;;  %15734 = vmatprep.subr.mxu1 %v19668_v4 }
 0x8d2   :  { %15735 = vmatpush3.msra.mxu1 %v17293_v33  ;;  %15742 = vmatprep.mubr.msk.f32.mxu1 %vm17051_vm1, %v19668_v4  ;;  %v17646_v25 = vld [vmem:[#allocation3 + $0x18] sm:$0xff] }
 0x8d3   :  { %15736 = vmatprep.subr.mxu1 %v19668_v4 }
 0x8d4   :  { %15737 = vmatpush3.msra.mxu1 %v17300_v34 }
 0x8d5   :  { %15738 = vmatprep.subr.mxu1 %v19668_v4 }
 0x8d6   :  { %15739 = vmatpush3.msra.mxu1 %v17307_v35 }
 0x8d7   :  { %15740 = vmatprep.subr.mxu1 %v19668_v4 }
 0x8d8   :  { %15741 = vmatpush3.msra.mxu1 %v17358_v53 }
 0x8d9   :  { %15756 = vmatprep.subr.mxu1 %v19668_v4 }
 0x991   :  { %v1801_v36 = vpop.f32.mrf.mxu1 }
 0x992   :  { %v1805_v37 = vadd.f32 %v1801_v36, %v17481_v19  ;;  %v2269_v36 = vmul.f32 %v2268_v45, %v17271_v18 }
 0x993   :  { %v15728_v39 = vpop.f32.mrf.mxu1 }
 0x994   :  { %v17595_v42 = vadd.f32 %v1811_v29, %v1805_v37  ;;  %v1554_v29 = vmul.f32 %v17456_v41, %v17559_v59  ;;  %v2270_v39 = vadd.f32 %v2269_v36, %v17257_v14 }
 0x996   :  { %v14808_v44 = vmul.f32 -1.442695, %v17595_v42  ;;  %v1559_v37 = vrot.slane %v1554_v29, %v17318_v40 }
 0x998   :  { %16911 = vpow2.f32 %v14808_v44  ;;  %v17678_v44 = vstv %s2261_s26  ;;  %s2958_s26 = scvt.s32.f32 %s2957_s22 }
 0x9a5   :  { %v16912_v10 = vpop.eup %16911 }
 0x9a6   :  { %v1817_v47 = vadd.f32 1.0, %v16912_v10  ;;  %v2275_v10 = vsel %vm2274_vm14, %v17268_v17, 0.0  ;;  %vm5758_vm14 = vcmp.lt.s32.totalorder %v17263_v16, 9 }
 0x9a7   :  { %vm5759_vm15 = vmand %vm76_vm4, %vm5758_vm14 }
 0x9a8   :  { %16913 = vrcp.f32 %v1817_v47  ;;  %v2276_v47 = vstv %s2267_s30  ;;  %s2964_s30 = smul.f32 %s2963_s3, %s2958_s26 }
 0x9b5   :  { %v16914_v49 = vpop.eup %16913 }
 0x9b6   :  { %15730 = vmatpush3.msra.mxu0 %v16914_v49  ;;  %v1561_v49 = vadd.f32 %v1559_v37, %v17574_v26  ;;  %v2503_v26 = vmul.f32 %v17678_v44, %v17314_v38 }
 0x9b7   :  { %15732 = vmatmul.mubr.msk.f32.vlgmr.msra.gmra.mxu0 %vm331_vm7, %v17327_v48  ;;  %15745 = vmatprep.subr.mxu0 %v19668_v4 }
 0x9b8   :  { %15746 = vmatpush3.msra.mxu0 %v17332_v50  ;;  %15753 = vmatprep.mubr.msk.f32.mxu0 %vm17051_vm1, %v19668_v4 }
 0x9b9   :  { %15747 = vmatprep.subr.mxu0 %v19668_v4 }
 0x9ba   :  { %15748 = vmatpush3.msra.mxu0 %v17340_v51 }
 0x9bb   :  { %15749 = vmatprep.subr.mxu0 %v19668_v4 }
 0x9bc   :  { %15750 = vmatpush3.msra.mxu0 %v17349_v52 }
 0x9bd   :  { %15751 = vmatprep.subr.mxu0 %v19668_v4 }
 0x9be   :  { %15752 = vmatpush3.msra.mxu0 %v17363_v54 }
 0x9bf   :  { %15763 = vmatprep.subr.mxu0 %v19668_v4 }
 0xa77   :  { %v1886_v19 = vpop.f32.mrf.mxu0 }
 0xa78   :  { %15743 = vmatmul.mubr.msk.f32.vlgmr.msra.gmra.mxu1 %vm484_vm8, %v1886_v19  ;;  %15754 = vmatmul.mubr.msk.f32.vlgmr.msra.gmra.mxu0 %vm484_vm8, %v1886_v19  ;;  %v2272_v19 = vmul.f32 %v17678_v44, %v2270_v39 }
 0xa79   :  { %v15733_v58 = vpop.f32.mrf.mxu0  ;;  %15757 = vmatpush3.msra.mxu1 %v17382_v60  ;;  %15764 = vmatpush3.msk.msra.mxu0 %vm250_vm0, %v17387_v61 }
 0xa7a   :  { %15765 = vmatprep.mubr.msk.f32.mxu0 %vm17051_vm1, %v19668_v4  ;;  %15758 = vmatprep.subr.mxu1 %v19668_v4  ;;  %v2277_v58 = vmul.f32 %v2276_v47, %v2275_v10 }
 0xa7b   :  { %15759 = vmatpush3.msra.mxu1 %v17398_v62  ;;  %15760 = vmatprep.mubr.msk.f32.mxu1 %vm17051_vm1, %v19668_v4 }
 0xa7c   :  { %15766 = vmatmul.mubr.msk.f32.vlgmr.msra.gmra.mxu0 %vm114_vm3, %v17545_v55  ;;  %15768 = vmatprep.subr.mxu1 %v19668_v4 }
 0xa7d   :  { %15773 = vmatprep.subr.mxu0 %v19668_v4  ;;  %15777 = vmatprep.mubr.msk.f32.mxu0 %vm17051_vm1, %v19668_v4 }
 0xa7e   :  { %15774 = vmatpush3.msra.mxu0 %v17195_v5 }
 0xa7f   :  { %15775 = vmatprep.subr.mxu0 %v19668_v4 }
 0xa80   :  { %15776 = vmatpush3.msra.mxu0 %v17201_v6 }
 0xa81   :  { %15785 = vmatprep.subr.mxu0 %v19668_v4  ;;  %15778 = vmatmul.mubr.msk.f32.vlgmr.msra.gmra.mxu0 %vm137_vm2, %v17646_v25 }
 0xa82   :  { %15787 = vmatprep.mubr.msk.f32.mxu0 %vm17051_vm1, %v19668_v4 }
 0xb38   :  { %v1959_v57 = vpop.f32.mrf.mxu1  ;;  %v2030_v8 = vpop.f32.mrf.mxu0 }
 0xb39   :  { %v1963_v9 = vmul.f32 %v1959_v57, %v17409_v63  ;;  %v2034_v55 = vmul.f32 %v2030_v8, %v17411_v0 }
 0xb3a   :  { %v15744_v11 = vpop.f32.mrf.mxu1  ;;  %v15755_v13 = vpop.f32.mrf.mxu0 }
 0xb3b   :  { %v2035_v15 = vadd.f32 %v2034_v55, %v1963_v9  ;;  %v17685_v55 = vadd.f32 %v2277_v58, %v2272_v19  ;;  %v107_v19 = vld [vmem:[%s19690_s23 + $0x20] sm:$0xff] }
 0xb3c   :  { %v2176_v21 = vpop.f32.mrf.mxu0  ;;  %119 = vst.msk [vmem:[#allocation2 + $0x20] sm:$0xff] %vm114_vm3, %v107_v19 }
 0xb3d   :  { %v2036_v23 = vmul.f32 %v2035_v15, %v17532_v46  ;;  %v2508_v15 = vrot.slane %v2503_v26, %v17318_v40  ;;  %v2965_v26 = vstv %s2961_s29 }
 0xb3e   :  { %v15767_v24 = vpop.f32.mrf.mxu0 }
 0xb3f   :  { %15761 = vmatmul.mubr.msk.f32.vlgmr.msra.gmra.mxu1 %vm137_vm2, %v2036_v23 }
 0xb40   :  { %15770 = vmatprep.mubr.msk.f32.mxu1 %vm17051_vm1, %v19668_v4 }
 0xb41   :  { %v2352_v32 = vpop.f32.mrf.mxu0 }
 0xbff   :  { %v2106_v46 = vpop.f32.mrf.mxu1 }
 0xc00   :  { %v2177_v27 = vadd.f32 %v2176_v21, %v2106_v46 }
 0xc01   :  { %v15762_v28 = vpop.f32.mrf.mxu1 }
 0xc02   :  { %15769 = vmatpush3.msra.mxu1 %v2177_v27 }
 0xc03   :  { %15771 = vmatmul.mubr.msk.f32.vlgmr.msra.gmra.mxu1 %vm331_vm7, %v17576_v30  ;;  %15780 = vmatprep.subr.mxu1 %v19668_v4  ;;  %v15779_v30 = vpop.f32.mrf.mxu0 }
 0xc04   :  { %15781 = vmatpush3.msk.msra.mxu1 %vm250_vm0, %v17209_v7  ;;  %15782 = vmatprep.mubr.msk.f32.mxu1 %vm17051_vm1, %v19668_v4 }
 0xc05   :  { %15790 = vmatprep.subr.mxu1 %v19668_v4 }
 0xc07   :  { %15783 = vmatmul.mubr.msk.f32.vlgmr.msra.gmra.mxu1 %vm114_vm3, %v17659_v31 }
 0xc08   :  { %15792 = vmatprep.mubr.msk.f32.mxu1 %vm17051_vm1, %v19668_v4 }
 0xcc3   :  { %v2246_v41 = vpop.f32.mrf.mxu1 }
 0xcc4   :  { %v17683_v57 = vadd.f32 %v2246_v41, %v1561_v49  ;;  %v130_v41 = vld [vmem:[%s19689_s28 + $0x20] sm:$0xff] }
 0xcc5   :  { %v15772_v8 = vpop.f32.mrf.mxu1  ;;  %142 = vst.msk [vmem:[#allocation3 + $0x20] sm:$0xff] %vm137_vm2, %v130_v41 }
 0xcc7   :  { %v2425_v9 = vpop.f32.mrf.mxu1 }
 0xcc8   :  { %v2426_v11 = vadd.f32 %v2425_v9, %v2352_v32 }
 0xcc9   :  { %v15784_v13 = vpop.f32.mrf.mxu1 }
 0xcca   :  { %15786 = vmatpush3.msra.mxu0 %v2426_v11  ;;  %v17768_v11 = vld [vmem:[#allocation2 + $0x20] sm:$0xff] }
 0xccb   :  { %15788 = vmatmul.mubr.msk.f32.vlgmr.msra.gmra.mxu0 %vm331_vm7, %v17685_v55  ;;  %15795 = vmatprep.subr.mxu0 %v19668_v4 }
 0xccc   :  { %15796 = vmatpush3.msra.mxu0 %v17293_v33  ;;  %15803 = vmatprep.mubr.msk.f32.mxu0 %vm17051_vm1, %v19668_v4  ;;  %v17755_v58 = vld [vmem:[#allocation3 + $0x20] sm:$0xff] }
 0xccd   :  { %15797 = vmatprep.subr.mxu0 %v19668_v4 }
 0xcce   :  { %15798 = vmatpush3.msra.mxu0 %v17300_v34 }
 0xccf   :  { %15799 = vmatprep.subr.mxu0 %v19668_v4 }
 0xcd0   :  { %15800 = vmatpush3.msra.mxu0 %v17307_v35 }
 0xcd1   :  { %15801 = vmatprep.subr.mxu0 %v19668_v4 }
 0xcd2   :  { %15802 = vmatpush3.msra.mxu0 %v17358_v53 }
 0xcd3   :  { %15817 = vmatprep.subr.mxu0 %v19668_v4 }
 0xd8b   :  { %v2498_v21 = vpop.f32.mrf.mxu0 }
 0xd8c   :  { %v2502_v23 = vadd.f32 %v2498_v21, %v17595_v42  ;;  %v2966_v21 = vmul.f32 %v2965_v26, %v17271_v18 }
 0xd8d   :  { %v15789_v24 = vpop.f32.mrf.mxu0 }
 0xd8e   :  { %v17704_v22 = vadd.f32 %v2508_v15, %v2502_v23  ;;  %v2251_v15 = vmul.f32 %v17569_v20, %v17559_v59  ;;  %v2967_v24 = vadd.f32 %v2966_v21, %v17257_v14 }
 0xd90   :  { %v14820_v43 = vmul.f32 -1.442695, %v17704_v22  ;;  %v2256_v23 = vrot.slane %v2251_v15, %v17318_v40 }
 0xd92   :  { %16915 = vpow2.f32 %v14820_v43  ;;  %v17787_v43 = vstv %s2958_s26  ;;  %s3657_s26 = scalar_select %p3656_p10, 1, 0 }
 0xd94   :  { %s3658_s3 = scvt.s32.f32 %s3657_s26 }
 0xd96   :  { %s3659_s5 = smul.f32 -0.16666667, %s3658_s3 }
 0xd98   :  { %s3660_s6 = sadd.f32 0.5, %s3659_s5 }
 0xd9f   :  { %v16916_v46 = vpop.eup %16915 }
 0xda0   :  { %v2514_v27 = vadd.f32 1.0, %v16916_v46  ;;  %v2972_v46 = vsel %vm2971_vm5, %v17268_v17, 0.0  ;;  %vm6455_vm5 = vcmp.lt.s32.totalorder %v17263_v16, 10 }
 0xda1   :  { %vm6456_vm6 = vmand %vm76_vm4, %vm6455_vm5 }
 0xda2   :  { %16917 = vrcp.f32 %v2514_v27  ;;  %v2973_v27 = vstv %s2964_s30  ;;  %s3654_s30 = scalar_select %p3653_p11, 1, 0 }
 0xda4   :  { %s3655_s19 = scvt.s32.f32 %s3654_s30 }
 0xda5   :  { %s6442_s30 = scalar_select %p6441_p5, 1, 0 }
 0xda6   :  { %s3661_s24 = smul.f32 %s3660_s6, %s3655_s19 }
 0xda7   :  { %s4351_s6 = scalar_select %p4350_p13, 1, 0 }
 0xdaf   :  { %v16918_v28 = vpop.eup %16917 }
 0xdb0   :  { %15791 = vmatpush3.msra.mxu1 %v16918_v28  ;;  %v2258_v28 = vadd.f32 %v2256_v23, %v17683_v57  ;;  %v3200_v57 = vmul.f32 %v17787_v43, %v17314_v38 }
 0xdb1   :  { %15793 = vmatmul.mubr.msk.f32.vlgmr.msra.gmra.mxu1 %vm331_vm7, %v17327_v48  ;;  %15806 = vmatprep.subr.mxu1 %v19668_v4 }
 0xdb2   :  { %15807 = vmatpush3.msra.mxu1 %v17332_v50  ;;  %15814 = vmatprep.mubr.msk.f32.mxu1 %vm17051_vm1, %v19668_v4 }
 0xdb3   :  { %15808 = vmatprep.subr.mxu1 %v19668_v4 }
 0xdb4   :  { %15809 = vmatpush3.msra.mxu1 %v17340_v51 }
 0xdb5   :  { %15810 = vmatprep.subr.mxu1 %v19668_v4 }
 0xdb6   :  { %15811 = vmatpush3.msra.mxu1 %v17349_v52 }
 0xdb7   :  { %15812 = vmatprep.subr.mxu1 %v19668_v4 }
 0xdb8   :  { %15813 = vmatpush3.msra.mxu1 %v17363_v54 }
 0xdb9   :  { %15824 = vmatprep.subr.mxu1 %v19668_v4 }
 0xe71   :  { %v2583_v42 = vpop.f32.mrf.mxu1 }
 0xe72   :  { %15804 = vmatmul.mubr.msk.f32.vlgmr.msra.gmra.mxu0 %vm484_vm8, %v2583_v42  ;;  %15815 = vmatmul.mubr.msk.f32.vlgmr.msra.gmra.mxu1 %vm484_vm8, %v2583_v42  ;;  %v2969_v42 = vmul.f32 %v17787_v43, %v2967_v24 }
 0xe73   :  { %v15794_v32 = vpop.f32.mrf.mxu1  ;;  %15818 = vmatpush3.msra.mxu0 %v17382_v60  ;;  %15825 = vmatpush3.msk.msra.mxu1 %vm250_vm0, %v17387_v61 }
 0xe74   :  { %15826 = vmatprep.mubr.msk.f32.mxu1 %vm17051_vm1, %v19668_v4  ;;  %15819 = vmatprep.subr.mxu0 %v19668_v4  ;;  %v2974_v32 = vmul.f32 %v2973_v27, %v2972_v46 }
 0xe75   :  { %15820 = vmatpush3.msra.mxu0 %v17398_v62  ;;  %15821 = vmatprep.mubr.msk.f32.mxu0 %vm17051_vm1, %v19668_v4 }
 0xe76   :  { %15827 = vmatmul.mubr.msk.f32.vlgmr.msra.gmra.mxu1 %vm114_vm3, %v17659_v31  ;;  %15829 = vmatprep.subr.mxu0 %v19668_v4 }
 0xe77   :  { %15834 = vmatprep.subr.mxu1 %v19668_v4  ;;  %15838 = vmatprep.mubr.msk.f32.mxu1 %vm17051_vm1, %v19668_v4 }
 0xe78   :  { %15835 = vmatpush3.msra.mxu1 %v17195_v5 }
 0xe79   :  { %15836 = vmatprep.subr.mxu1 %v19668_v4 }
 0xe7a   :  { %15837 = vmatpush3.msra.mxu1 %v17201_v6 }
 0xe7b   :  { %15846 = vmatprep.subr.mxu1 %v19668_v4  ;;  %15839 = vmatmul.mubr.msk.f32.vlgmr.msra.gmra.mxu1 %vm137_vm2, %v17755_v58 }
 0xe7c   :  { %15848 = vmatprep.mubr.msk.f32.mxu1 %vm17051_vm1, %v19668_v4 }
 0xf32   :  { %v2656_v30 = vpop.f32.mrf.mxu0  ;;  %v2727_v45 = vpop.f32.mrf.mxu1 }
 0xf33   :  { %v2660_v29 = vmul.f32 %v2656_v30, %v17409_v63  ;;  %v2731_v31 = vmul.f32 %v2727_v45, %v17411_v0 }
 0xf34   :  { %v15805_v36 = vpop.f32.mrf.mxu0  ;;  %v15816_v37 = vpop.f32.mrf.mxu1 }
 0xf35   :  { %v2732_v39 = vadd.f32 %v2731_v31, %v2660_v29  ;;  %v17794_v31 = vadd.f32 %v2974_v32, %v2969_v42  ;;  %v131_v32 = vld [vmem:[%s19689_s28 + $0x28] sm:$0xff] }
 0xf36   :  { %v2873_v10 = vpop.f32.mrf.mxu1  ;;  %143 = vst.msk [vmem:[#allocation3 + $0x28] sm:$0xff] %vm137_vm2, %v131_v32 }
 0xf37   :  { %v2733_v47 = vmul.f32 %v2732_v39, %v17646_v25  ;;  %v3205_v39 = vrot.slane %v3200_v57, %v17318_v40  ;;  %v17886_v57 = vld [vmem:[%s19645_s7] sm:$0x3] }
 0xf38   :  { %v15828_v49 = vpop.f32.mrf.mxu1 }
 0xf39   :  { %15822 = vmatmul.mubr.msk.f32.vlgmr.msra.gmra.mxu0 %vm137_vm2, %v2733_v47 }
 0xf3a   :  { %15831 = vmatprep.mubr.msk.f32.mxu0 %vm17051_vm1, %v19668_v4 }
 0xf3b   :  { %v3049_v13 = vpop.f32.mrf.mxu1 }
 0xff9   :  { %v2803_v25 = vpop.f32.mrf.mxu0 }
 0xffa   :  { %v2874_v8 = vadd.f32 %v2873_v10, %v2803_v25 }
 0xffb   :  { %v15823_v9 = vpop.f32.mrf.mxu0 }
 0xffc   :  { %15830 = vmatpush3.msra.mxu0 %v2874_v8 }
 0xffd   :  { %15832 = vmatmul.mubr.msk.f32.vlgmr.msra.gmra.mxu0 %vm331_vm7, %v17685_v55  ;;  %15841 = vmatprep.subr.mxu0 %v19668_v4  ;;  %v15840_v55 = vpop.f32.mrf.mxu1 }
 0xffe   :  { %15842 = vmatpush3.msk.msra.mxu0 %vm250_vm0, %v17209_v7  ;;  %15843 = vmatprep.mubr.msk.f32.mxu0 %vm17051_vm1, %v19668_v4  ;;  %v17849_v55 = vld [vmem:[%s19646_s8 + $0x8] sm:$0xff] }
 0xfff   :  { %15851 = vmatprep.subr.mxu0 %v19668_v4 }
0x1001   :  { %15844 = vmatmul.mubr.msk.f32.vlgmr.msra.gmra.mxu0 %vm114_vm3, %v17768_v11 }
0x1002   :  { %15853 = vmatprep.mubr.msk.f32.mxu0 %vm17051_vm1, %v19668_v4 }
0x10bd   :  { %v2943_v20 = vpop.f32.mrf.mxu0 }
0x10be   :  { %v17792_v30 = vadd.f32 %v2943_v20, %v2258_v28 }
0x10bf   :  { %v15833_v45 = vpop.f32.mrf.mxu0 }
0x10c0   :  { %v108_v45 = vld [vmem:[%s19690_s23 + $0x28] sm:$0xff] }
0x10c1   :  { %v3122_v29 = vpop.f32.mrf.mxu0  ;;  %120 = vst.msk [vmem:[#allocation2 + $0x28] sm:$0xff] %vm114_vm3, %v108_v45  ;;  %v17945_v45 = vld [vmem:[%s19653_s15 + $0x10] sm:$0xff] }
0x10c2   :  { %v3123_v36 = vadd.f32 %v3122_v29, %v3049_v13  ;;  %v17874_v29 = vld [vmem:[#allocation3 + $0x28] sm:$0xff] }
0x10c3   :  { %v15845_v37 = vpop.f32.mrf.mxu0 }
0x10c4   :  { %15847 = vmatpush3.msra.mxu1 %v3123_v36 }
0x10c5   :  { %15849 = vmatmul.mubr.msk.f32.vlgmr.msra.gmra.mxu1 %vm331_vm7, %v17794_v31  ;;  %15856 = vmatprep.subr.mxu1 %v19668_v4 }
0x10c6   :  { %15857 = vmatpush3.msra.mxu1 %v17293_v33  ;;  %15864 = vmatprep.mubr.msk.f32.mxu1 %vm17051_vm1, %v19668_v4 }
0x10c7   :  { %15858 = vmatprep.subr.mxu1 %v19668_v4 }
0x10c8   :  { %15859 = vmatpush3.msra.mxu1 %v17300_v34 }
0x10c9   :  { %15860 = vmatprep.subr.mxu1 %v19668_v4 }
0x10ca   :  { %15861 = vmatpush3.msra.mxu1 %v17307_v35 }
0x10cb   :  { %15862 = vmatprep.subr.mxu1 %v19668_v4 }
0x10cc   :  { %15863 = vmatpush3.msra.mxu1 %v17358_v53 }
0x10cd   :  { %15878 = vmatprep.subr.mxu1 %v19668_v4 }
0x1185   :  { %v3195_v10 = vpop.f32.mrf.mxu1 }
0x1186   :  { %v3199_v47 = vadd.f32 %v3195_v10, %v17704_v22 }
0x1187   :  { %v15850_v49 = vpop.f32.mrf.mxu1 }
0x1188   :  { %v17813_v41 = vadd.f32 %v3205_v39, %v3199_v47  ;;  %v17892_v39 = vld [vmem:[#allocation2 + $0x28] sm:$0xff]  ;;  %v3662_v47 = vstv %s3658_s3  ;;  %v2948_v49 = vmul.f32 %v17678_v44, %v17559_v59  ;;  %v17921_v44 = vld [vmem:[%s19694_s18] sm:$0xff] }
0x118a   :  { %v14832_v19 = vmul.f32 -1.442695, %v17813_v41 }
0x118c   :  { %16919 = vpow2.f32 %v14832_v19  ;;  %v3663_v19 = vmul.f32 %v3662_v47, %v17271_v18 }
0x1199   :  { %v16920_v25 = vpop.eup %16919 }
0x119a   :  { %v3211_v8 = vadd.f32 1.0, %v16920_v25  ;;  %v2953_v25 = vrot.slane %v2948_v49, %v17318_v40 }
0x119c   :  { %16921 = vrcp.f32 %v3211_v8  ;;  %v17913_v8 = vld [vmem:[%s19692_s1] sm:$0xff]  ;;  %s5746_s1 = scvt.s32.f32 %s5745_s17 }
0x11a9   :  { %v16922_v9 = vpop.eup %16921 }
0x11aa   :  { %15852 = vmatpush3.msra.mxu0 %v16922_v9  ;;  %v3664_v9 = vadd.f32 %v17913_v8, %v3663_v19 }
0x11ab   :  { %15854 = vmatmul.mubr.msk.f32.vlgmr.msra.gmra.mxu0 %vm331_vm7, %v17327_v48  ;;  %15867 = vmatprep.subr.mxu0 %v19668_v4 }
0x11ac   :  { %15868 = vmatpush3.msra.mxu0 %v17332_v50  ;;  %15875 = vmatprep.mubr.msk.f32.mxu0 %vm17051_vm1, %v19668_v4 }
0x11ad   :  { %15869 = vmatprep.subr.mxu0 %v19668_v4 }
0x11ae   :  { %15870 = vmatpush3.msra.mxu0 %v17340_v51 }
0x11af   :  { %15871 = vmatprep.subr.mxu0 %v19668_v4 }
0x11b0   :  { %15872 = vmatpush3.msra.mxu0 %v17349_v52 }
0x11b1   :  { %15873 = vmatprep.subr.mxu0 %v19668_v4 }
0x11b2   :  { %15874 = vmatpush3.msra.mxu0 %v17363_v54 }
0x11b3   :  { %15885 = vmatprep.subr.mxu0 %v19668_v4 }
0x126b   :  { %v3280_v22 = vpop.f32.mrf.mxu0 }
0x126c   :  { %15865 = vmatmul.mubr.msk.f32.vlgmr.msra.gmra.mxu1 %vm484_vm8, %v3280_v22  ;;  %15876 = vmatmul.mubr.msk.f32.vlgmr.msra.gmra.mxu0 %vm484_vm8, %v3280_v22  ;;  %v17916_v22 = vstv %s3655_s19 }
0x126d   :  { %v15855_v13 = vpop.f32.mrf.mxu0  ;;  %15879 = vmatpush3.msra.mxu1 %v17382_v60  ;;  %15886 = vmatpush3.msk.msra.mxu0 %vm250_vm0, %v17387_v61 }
0x126e   :  { %15887 = vmatprep.mubr.msk.f32.mxu0 %vm17051_vm1, %v19668_v4  ;;  %15880 = vmatprep.subr.mxu1 %v19668_v4  ;;  %v3669_v13 = vsel %vm3668_vm9, %v17921_v44, 0.0 }
0x126f   :  { %15881 = vmatpush3.msra.mxu1 %v17398_v62  ;;  %15882 = vmatprep.mubr.msk.f32.mxu1 %vm17051_vm1, %v19668_v4 }
0x1270   :  { %15888 = vmatmul.mubr.msk.f32.vlgmr.msra.gmra.mxu0 %vm114_vm3, %v17768_v11  ;;  %15890 = vmatprep.subr.mxu1 %v19668_v4  ;;  %v17856_v11 = vld [vmem:[%s19646_s8] sm:$0xff]  ;;  %s4352_s8 = scvt.s32.f32 %s4351_s6 }
0x1271   :  { %15895 = vmatprep.subr.mxu0 %v19668_v4  ;;  %15899 = vmatprep.mubr.msk.f32.mxu0 %vm17051_vm1, %v19668_v4 }
0x1272   :  { %15896 = vmatpush3.msra.mxu0 %v17849_v55 }
0x1273   :  { %15897 = vmatprep.subr.mxu0 %v19668_v4 }
0x1274   :  { %15898 = vmatpush3.msra.mxu0 %v17856_v11 }
0x1275   :  { %15907 = vmatprep.subr.mxu0 %v19668_v4  ;;  %15900 = vmatmul.mubr.msk.f32.vlgmr.msra.gmra.mxu0 %vm137_vm2, %v17874_v29 }
0x1276   :  { %15909 = vmatprep.mubr.msk.f32.mxu0 %vm17051_vm1, %v19668_v4 }
0x132c   :  { %v3353_v26 = vpop.f32.mrf.mxu1  ;;  %v3424_v15 = vpop.f32.mrf.mxu0 }
0x132d   :  { %v3357_v21 = vmul.f32 %v3353_v26, %v17409_v63  ;;  %v3428_v23 = vmul.f32 %v3424_v15, %v17411_v0  ;;  %v3670_v26 = vstv %s3661_s24  ;;  %v2955_v15 = vadd.f32 %v2953_v25, %v17792_v30  ;;  %v17936_v30 = vld [vmem:[%s19653_s15 + $0x18] sm:$0xff] }
0x132e   :  { %v15866_v24 = vpop.f32.mrf.mxu1  ;;  %v15877_v46 = vpop.f32.mrf.mxu0 }
0x132f   :  { %v3429_v27 = vadd.f32 %v3428_v23, %v3357_v21  ;;  %v3666_v23 = vmul.f32 %v17916_v22, %v3664_v9  ;;  %v3671_v24 = vmul.f32 %v3670_v26, %v3669_v13 }
0x1330   :  { %v3570_v28 = vpop.f32.mrf.mxu0 }
0x1331   :  { %v3430_v20 = vmul.f32 %v3429_v27, %v17755_v58 }
0x1332   :  { %v15889_v42 = vpop.f32.mrf.mxu0 }
0x1333   :  { %15883 = vmatmul.mubr.msk.f32.vlgmr.msra.gmra.mxu1 %vm137_vm2, %v3430_v20  ;;  %v17928_v20 = vadd.f32 %v3671_v24, %v3666_v23  ;;  %v17995_v23 = vld [vmem:[%s19654_s16 + $0x10] sm:$0xff]  ;;  %v18002_v24 = vld [vmem:[%s19654_s16 + $0x8] sm:$0xff] }
0x1334   :  { %15892 = vmatprep.mubr.msk.f32.mxu1 %vm17051_vm1, %v19668_v4 }
0x13f3   :  { %v3500_v58 = vpop.f32.mrf.mxu1 }
0x13f4   :  { %v3571_v36 = vadd.f32 %v3570_v28, %v3500_v58  ;;  %v17952_v58 = vld [vmem:[%s19653_s15 + $0x8] sm:$0xff] }
0x13f5   :  { %v15884_v37 = vpop.f32.mrf.mxu1 }
0x13f6   :  { %15891 = vmatpush3.msra.mxu1 %v3571_v36  ;;  %v17959_v36 = vld [vmem:[%s19653_s15] sm:$0xff] }
0x13f7   :  { %15893 = vmatmul.mubr.msk.f32.vlgmr.msra.gmra.mxu1 %vm331_vm7, %v17794_v31  ;;  %15902 = vmatprep.subr.mxu1 %v19668_v4  ;;  %v3746_v31 = vpop.f32.mrf.mxu0  ;;  %v17966_v37 = vld [vmem:[%s19647_s9] sm:$0x1]  ;;  %s4354_s9 = scalar_select %p4353_p12, 1, 0 }
0x13f8   :  { %15903 = vmatpush3.msk.msra.mxu1 %vm250_vm0, %v17886_v57  ;;  %15904 = vmatprep.mubr.msk.f32.mxu1 %vm17051_vm1, %v19668_v4 }
0x13f9   :  { %15912 = vmatprep.subr.mxu1 %v19668_v4  ;;  %v15901_v10 = vpop.f32.mrf.mxu0  ;;  %s4355_s19 = scvt.s32.f32 %s4354_s9 }
0x13fb   :  { %15905 = vmatmul.mubr.msk.f32.vlgmr.msra.gmra.mxu1 %vm114_vm3, %v17892_v39  ;;  %s4356_s24 = smul.f32 -0.16666667, %s4355_s19 }
0x13fc   :  { %15914 = vmatprep.mubr.msk.f32.mxu1 %vm17051_vm1, %v19668_v4 }
0x14b7   :  { %v3640_v21 = vpop.f32.mrf.mxu1 }
0x14b8   :  { %v17926_v46 = vadd.f32 %v3640_v21, %v2955_v15  ;;  %v17978_v21 = vld [vmem:[%s19651_s13] sm:$0xff]  ;;  %s4357_s13 = sadd.f32 0.5, %s4356_s24 }
0x14b9   :  { %v15894_v27 = vpop.f32.mrf.mxu1 }
0x14ba   :  { %v18009_v27 = vld [vmem:[%s19654_s16] sm:$0xff]  ;;  %s4358_s2 = smul.f32 %s4357_s13, %s4352_s8 }
0x14bb   :  { %v3819_v28 = vpop.f32.mrf.mxu1  ;;  %s5748_s13 = scalar_select %p5747_p2, 1, 0 }
0x14bc   :  { %v3820_v42 = vadd.f32 %v3819_v28, %v3746_v31  ;;  %v3897_v31 = vmul.f32 %v17966_v37, %v17916_v22 }
0x14bd   :  { %v15906_v32 = vpop.f32.mrf.mxu1 }
0x14be   :  { %15908 = vmatpush3.msra.mxu0 %v3820_v42  ;;  %v3902_v10 = vrot.slane %v3897_v31, %v17318_v40  ;;  %v18018_v32 = vld [vmem:[%s19649_s11 + $0x8] sm:$0xff]  ;;  %v18024_v31 = vld [vmem:[%s19648_s10] sm:$0x3] }
0x14bf   :  { %15910 = vmatmul.mubr.msk.f32.vlgmr.msra.gmra.mxu0 %vm331_vm7, %v17928_v20  ;;  %15917 = vmatprep.subr.mxu0 %v19668_v4 }
0x14c0   :  { %15918 = vmatpush3.msra.mxu0 %v17936_v30  ;;  %15925 = vmatprep.mubr.msk.f32.mxu0 %vm17051_vm1, %v19668_v4 }
0x14c1   :  { %15919 = vmatprep.subr.mxu0 %v19668_v4 }
0x14c2   :  { %15920 = vmatpush3.msra.mxu0 %v17945_v45 }
0x14c3   :  { %15921 = vmatprep.subr.mxu0 %v19668_v4 }
0x14c4   :  { %15922 = vmatpush3.msra.mxu0 %v17952_v58 }
0x14c5   :  { %15923 = vmatprep.subr.mxu0 %v19668_v4 }
0x14c6   :  { %15924 = vmatpush3.msra.mxu0 %v17959_v36 }
0x14c7   :  { %15939 = vmatprep.subr.mxu0 %v19668_v4 }
0x157f   :  { %v3892_v47 = vpop.f32.mrf.mxu0 }
0x1580   :  { %v3896_v49 = vadd.f32 %v3892_v47, %v17813_v41  ;;  %v17986_v41 = vld [vmem:[%s19654_s16 + $0x18] sm:$0xff]  ;;  %s5051_s16 = scalar_select %p5050_p0, 1, 0 }
0x1581   :  { %v15911_v19 = vpop.f32.mrf.mxu0 }
0x1582   :  { %v17972_v25 = vadd.f32 %v3902_v10, %v3896_v49  ;;  %v18034_v10 = vld [vmem:[%s19649_s11] sm:$0xff]  ;;  %s5052_s7 = scvt.s32.f32 %s5051_s16  ;;  %s5049_s11 = scvt.s32.f32 %s5048_s0 }
0x1584   :  { %v14844_v9 = vmul.f32 -1.442695, %v17972_v25  ;;  %s5053_s10 = smul.f32 -0.16666667, %s5052_s7 }
0x1586   :  { %16923 = vpow2.f32 %v14844_v9  ;;  %s5054_s26 = sadd.f32 0.5, %s5053_s10  ;;  %s14900_s10 = sshll.u32 %s19685_s4, 3 }
0x1588   :  { %s5055_s5 = smul.f32 %s5054_s26, %s5049_s11 }
0x1589   :  { %s6445_s26 = scalar_select %p6444_p4, 1, 0 }
0x158b   :  { %s6446_s3 = scvt.s32.f32 %s6445_s26  ;;  %s19699_s26 = ssub.s32 9, %s19685_s4 }
0x158c   :  { %p14908_p6 = scmp.le.s32.totalorder %s19699_s26, 0 }
0x1593   :  { %v16924_v13 = vpop.eup %16923 }
0x1594   :  { %v3908_v26 = vadd.f32 1.0, %v16924_v13 }
0x1596   :  { %16925 = vrcp.f32 %v3908_v26 }
0x15a3   :  { %v16926_v15 = vpop.eup %16925 }
0x15a4   :  { %15913 = vmatpush3.msra.mxu1 %v16926_v15 }
0x15a5   :  { %15915 = vmatmul.mubr.msk.f32.vlgmr.msra.gmra.mxu1 %vm331_vm7, %v17978_v21  ;;  %15928 = vmatprep.subr.mxu1 %v19668_v4 }
0x15a6   :  { %15929 = vmatpush3.msra.mxu1 %v17986_v41  ;;  %15936 = vmatprep.mubr.msk.f32.mxu1 %vm17051_vm1, %v19668_v4 }
0x15a7   :  { %15930 = vmatprep.subr.mxu1 %v19668_v4 }
0x15a8   :  { %15931 = vmatpush3.msra.mxu1 %v17995_v23 }
0x15a9   :  { %15932 = vmatprep.subr.mxu1 %v19668_v4 }
0x15aa   :  { %15933 = vmatpush3.msra.mxu1 %v18002_v24 }
0x15ab   :  { %15934 = vmatprep.subr.mxu1 %v19668_v4 }
0x15ac   :  { %15935 = vmatpush3.msra.mxu1 %v18009_v27 }
0x15ad   :  { %15946 = vmatprep.subr.mxu1 %v19668_v4 }
0x1665   :  { %v3977_v28 = vpop.f32.mrf.mxu1 }
0x1666   :  { %15926 = vmatmul.mubr.msk.f32.vlgmr.msra.gmra.mxu0 %vm484_vm8, %v3977_v28  ;;  %15937 = vmatmul.mubr.msk.f32.vlgmr.msra.gmra.mxu1 %vm484_vm8, %v3977_v28 }
0x1667   :  { %v15916_v42 = vpop.f32.mrf.mxu1  ;;  %15940 = vmatpush3.msra.mxu0 %v18018_v32  ;;  %15947 = vmatpush3.msk.msra.mxu1 %vm250_vm0, %v18024_v31 }
0x1668   :  { %15948 = vmatprep.mubr.msk.f32.mxu1 %vm17051_vm1, %v19668_v4  ;;  %15941 = vmatprep.subr.mxu0 %v19668_v4 }
0x1669   :  { %15942 = vmatpush3.msra.mxu0 %v18034_v10  ;;  %15943 = vmatprep.mubr.msk.f32.mxu0 %vm17051_vm1, %v19668_v4 }
0x166a   :  { %15949 = vmatmul.mubr.msk.f32.vlgmr.msra.gmra.mxu1 %vm114_vm3, %v17892_v39  ;;  %15951 = vmatprep.subr.mxu0 %v19668_v4 }
0x166b   :  { %15956 = vmatprep.subr.mxu1 %v19668_v4  ;;  %15960 = vmatprep.mubr.msk.f32.mxu1 %vm17051_vm1, %v19668_v4 }
0x166c   :  { %15957 = vmatpush3.msra.mxu1 %v17849_v55 }
0x166d   :  { %15958 = vmatprep.subr.mxu1 %v19668_v4 }
0x166e   :  { %15959 = vmatpush3.msra.mxu1 %v17856_v11 }
0x166f   :  { %15968 = vmatprep.subr.mxu1 %v19668_v4 }
0x1726   :  { %v4050_v47 = vpop.f32.mrf.mxu0  ;;  %v4121_v49 = vpop.f32.mrf.mxu1 }
0x1727   :  { %v4054_v19 = vmul.f32 %v4050_v47, %v17409_v63  ;;  %v4125_v39 = vmul.f32 %v4121_v49, %v17411_v0  ;;  %v109_v47 = vld [vmem:[%s19690_s23 + $0x30] sm:$0xff]  ;;  %v18063_v49 = vld [vmem:[#allocation3 + $0x30] sm:$0xff] }
0x1728   :  { %v15927_v9 = vpop.f32.mrf.mxu0  ;;  %v15938_v13 = vpop.f32.mrf.mxu1  ;;  %121 = vst.msk [vmem:[#allocation2 + $0x30] sm:$0xff] %vm114_vm3, %v109_v47  ;;  %15961 = vmatmul.mubr.msk.f32.vlgmr.msra.gmra.mxu1 %vm137_vm2, %v18063_v49  ;;  %v18095_v47 = vstv %s4352_s8 }
0x1729   :  { %v4126_v26 = vadd.f32 %v4125_v39, %v4054_v19  ;;  %15970 = vmatprep.mubr.msk.f32.mxu1 %vm17051_vm1, %v19668_v4  ;;  %v4359_v13 = vstv %s4355_s19 }
0x172a   :  { %v4267_v15 = vpop.f32.mrf.mxu1 }
0x172b   :  { %v4127_v28 = vmul.f32 %v4126_v26, %v17874_v29  ;;  %v3645_v26 = vmul.f32 %v17787_v43, %v17559_v59 }
0x172c   :  { %v15950_v42 = vpop.f32.mrf.mxu1 }
0x172d   :  { %15944 = vmatmul.mubr.msk.f32.vlgmr.msra.gmra.mxu0 %vm137_vm2, %v4127_v28  ;;  %v3650_v28 = vrot.slane %v3645_v26, %v17318_v40 }
0x172e   :  { %15953 = vmatprep.mubr.msk.f32.mxu0 %vm17051_vm1, %v19668_v4 }
0x172f   :  { %v18076_v56 = vld [vmem:[#allocation2 + $0x30] sm:$0xff] }
0x17e8   :  { %v4443_v9 = vpop.f32.mrf.mxu1 }
0x17ed   :  { %v4197_v29 = vpop.f32.mrf.mxu0 }
0x17ee   :  { %v4268_v19 = vadd.f32 %v4267_v15, %v4197_v29  ;;  %v4360_v15 = vmul.f32 %v4359_v13, %v17271_v18  ;;  %v4366_v29 = vsel %vm4365_vm11, %v17921_v44, 0.0 }
0x17ef   :  { %v15945_v39 = vpop.f32.mrf.mxu0 }
0x17f0   :  { %15952 = vmatpush3.msra.mxu0 %v4268_v19  ;;  %v4361_v42 = vadd.f32 %v17913_v8, %v4360_v15  ;;  %v4367_v19 = vstv %s4358_s2  ;;  %v3652_v39 = vadd.f32 %v3650_v28, %v17926_v46  ;;  %v19698_v15 = vmov 0.0   ;;  %s5749_s2 = scvt.s32.f32 %s5748_s13 }
0x17f1   :  { %15954 = vmatmul.mubr.msk.f32.vlgmr.msra.gmra.mxu0 %vm331_vm7, %v17928_v20  ;;  %15963 = vmatprep.subr.mxu0 %v19668_v4  ;;  %v15962_v20 = vpop.f32.mrf.mxu1 }
0x17f2   :  { %15964 = vmatpush3.msk.msra.mxu0 %vm250_vm0, %v17886_v57  ;;  %15965 = vmatprep.mubr.msk.f32.mxu0 %vm17051_vm1, %v19668_v4  ;;  %v4363_v20 = vmul.f32 %v18095_v47, %v4361_v42  ;;  %s5750_s27 = smul.f32 -0.16666667, %s5749_s2 }
0x17f3   :  { %15973 = vmatprep.subr.mxu0 %v19668_v4 }
0x17f4   :  { %s5751_s18 = sadd.f32 0.5, %s5750_s27 }
0x17f5   :  { %15966 = vmatmul.mubr.msk.f32.vlgmr.msra.gmra.mxu0 %vm114_vm3, %v18076_v56 }
0x17f6   :  { %15975 = vmatprep.mubr.msk.f32.mxu0 %vm17051_vm1, %v19668_v4  ;;  %v4368_v4 = vmul.f32 %v4367_v19, %v4366_v29  ;;  %s5752_s29 = smul.f32 %s5751_s18, %s5746_s1 }
0x17f8   :  { %v18102_v2 = vadd.f32 %v4368_v4, %v4363_v20 }
0x18b1   :  { %v4337_v43 = vpop.f32.mrf.mxu0 }
0x18b2   :  { %v18100_v13 = vadd.f32 %v4337_v43, %v3652_v39 }
0x18b3   :  { %v15955_v3 = vpop.f32.mrf.mxu0 }
0x18b5   :  { %v4516_v1 = vpop.f32.mrf.mxu0 }
0x18b6   :  { %v4517_v26 = vadd.f32 %v4516_v1, %v4443_v9  ;;  %v4594_v1 = vmul.f32 %v17966_v37, %v18095_v47 }
0x18b7   :  { %v15967_v59 = vpop.f32.mrf.mxu0 }
0x18b8   :  { %15969 = vmatpush3.msra.mxu1 %v4517_v26  ;;  %v4599_v3 = vrot.slane %v4594_v1, %v17318_v40 }
0x18b9   :  { %15971 = vmatmul.mubr.msk.f32.vlgmr.msra.gmra.mxu1 %vm331_vm7, %v18102_v2  ;;  %15978 = vmatprep.subr.mxu1 %v19698_v15 }
0x18ba   :  { %15979 = vmatpush3.msra.mxu1 %v17936_v30  ;;  %15986 = vmatprep.mubr.msk.f32.mxu1 %vm17051_vm1, %v19698_v15 }
0x18bb   :  { %15980 = vmatprep.subr.mxu1 %v19698_v15 }
0x18bc   :  { %15981 = vmatpush3.msra.mxu1 %v17945_v45 }
0x18bd   :  { %15982 = vmatprep.subr.mxu1 %v19698_v15 }
0x18be   :  { %15983 = vmatpush3.msra.mxu1 %v17952_v58 }
0x18bf   :  { %15984 = vmatprep.subr.mxu1 %v19698_v15 }
0x18c0   :  { %15985 = vmatpush3.msra.mxu1 %v17959_v36 }
0x18c1   :  { %16000 = vmatprep.subr.mxu1 %v19698_v15 }
0x1979   :  { %v4589_v4 = vpop.f32.mrf.mxu1 }
0x197a   :  { %v4593_v59 = vadd.f32 %v4589_v4, %v17972_v25 }
0x197b   :  { %v15972_v46 = vpop.f32.mrf.mxu1 }
0x197c   :  { %v18121_v9 = vadd.f32 %v4599_v3, %v4593_v59 }
0x197e   :  { %v14856_v28 = vmul.f32 -1.442695, %v18121_v9 }
0x1980   :  { %16927 = vpow2.f32 %v14856_v28 }
0x198d   :  { %v16928_v42 = vpop.eup %16927 }
0x198e   :  { %v4605_v29 = vadd.f32 1.0, %v16928_v42  ;;  %v133_v42 = vld [vmem:[%s19689_s28 + $0x38] sm:$0xff] }
0x198f   :  { %145 = vst.msk [vmem:[#allocation3 + $0x38] sm:$0xff] %vm137_vm2, %v133_v42  ;;  %v5064_v42 = vstv %s5055_s5  ;;  %s6447_s5 = smul.f32 -0.16666667, %s6446_s3 }
0x1990   :  { %16929 = vrcp.f32 %v4605_v29  ;;  %v110_v29 = vld [vmem:[%s19690_s23 + $0x38] sm:$0xff] }
0x1991   :  { %122 = vst.msk [vmem:[#allocation2 + $0x38] sm:$0xff] %vm114_vm3, %v110_v29  ;;  %s6448_s9 = sadd.f32 0.5, %s6447_s5 }
0x199d   :  { %v16930_v19 = vpop.eup %16929 }
0x199e   :  { %15974 = vmatpush3.msra.mxu0 %v16930_v19  ;;  %v18172_v19 = vld [vmem:[#allocation3 + $0x38] sm:$0xff] }
0x199f   :  { %15976 = vmatmul.mubr.msk.f32.vlgmr.msra.gmra.mxu0 %vm331_vm7, %v17978_v21  ;;  %15989 = vmatprep.subr.mxu0 %v19698_v15 }
0x19a0   :  { %15990 = vmatpush3.msra.mxu0 %v17986_v41  ;;  %15997 = vmatprep.mubr.msk.f32.mxu0 %vm17051_vm1, %v19698_v15 }
0x19a1   :  { %15991 = vmatprep.subr.mxu0 %v19698_v15 }
0x19a2   :  { %15992 = vmatpush3.msra.mxu0 %v17995_v23 }
0x19a3   :  { %15993 = vmatprep.subr.mxu0 %v19698_v15 }
0x19a4   :  { %15994 = vmatpush3.msra.mxu0 %v18002_v24 }
0x19a5   :  { %15995 = vmatprep.subr.mxu0 %v19698_v15 }
0x19a6   :  { %15996 = vmatpush3.msra.mxu0 %v18009_v27 }
0x19a7   :  { %16007 = vmatprep.subr.mxu0 %v19698_v15 }
0x1a5f   :  { %v4674_v25 = vpop.f32.mrf.mxu0 }
0x1a60   :  { %15987 = vmatmul.mubr.msk.f32.vlgmr.msra.gmra.mxu1 %vm484_vm8, %v4674_v25  ;;  %15998 = vmatmul.mubr.msk.f32.vlgmr.msra.gmra.mxu0 %vm484_vm8, %v4674_v25 }
0x1a61   :  { %v15977_v39 = vpop.f32.mrf.mxu0  ;;  %16001 = vmatpush3.msra.mxu1 %v18018_v32  ;;  %16008 = vmatpush3.msk.msra.mxu0 %vm250_vm0, %v18024_v31 }
0x1a62   :  { %16009 = vmatprep.mubr.msk.f32.mxu0 %vm17051_vm1, %v19698_v15  ;;  %16002 = vmatprep.subr.mxu1 %v19698_v15 }
0x1a63   :  { %16003 = vmatpush3.msra.mxu1 %v18034_v10  ;;  %16004 = vmatprep.mubr.msk.f32.mxu1 %vm17051_vm1, %v19698_v15 }
0x1a64   :  { %16010 = vmatmul.mubr.msk.f32.vlgmr.msra.gmra.mxu0 %vm114_vm3, %v18076_v56  ;;  %16012 = vmatprep.subr.mxu1 %v19698_v15 }
0x1a65   :  { %16017 = vmatprep.subr.mxu0 %v19698_v15  ;;  %16021 = vmatprep.mubr.msk.f32.mxu0 %vm17051_vm1, %v19698_v15 }
0x1a66   :  { %16018 = vmatpush3.msra.mxu0 %v17849_v55 }
0x1a67   :  { %16019 = vmatprep.subr.mxu0 %v19698_v15 }
0x1a68   :  { %16020 = vmatpush3.msra.mxu0 %v17856_v11 }
0x1a69   :  { %16029 = vmatprep.subr.mxu0 %v19698_v15  ;;  %16022 = vmatmul.mubr.msk.f32.vlgmr.msra.gmra.mxu0 %vm137_vm2, %v18172_v19 }
0x1a6a   :  { %16031 = vmatprep.mubr.msk.f32.mxu0 %vm17051_vm1, %v19698_v15 }
0x1b20   :  { %v4747_v43 = vpop.f32.mrf.mxu1  ;;  %v4818_v20 = vpop.f32.mrf.mxu0 }
0x1b21   :  { %v4751_v26 = vmul.f32 %v4747_v43, %v17409_v63  ;;  %v4822_v56 = vmul.f32 %v4818_v20, %v17411_v0  ;;  %v18185_v43 = vld [vmem:[#allocation2 + $0x38] sm:$0xff] }
0x1b22   :  { %v15988_v1 = vpop.f32.mrf.mxu1  ;;  %v15999_v3 = vpop.f32.mrf.mxu0 }
0x1b23   :  { %v4823_v4 = vadd.f32 %v4822_v56, %v4751_v26  ;;  %v5056_v26 = vstv %s5052_s7  ;;  %v18199_v56 = vld [vmem:[%s19650_s12] sm:$0x1]  ;;  %s6443_s12 = scvt.s32.f32 %s6442_s30 }
0x1b24   :  { %v4964_v59 = vpop.f32.mrf.mxu0  ;;  %v4342_v1 = vmul.f32 %v18199_v56, %v17916_v22  ;;  %v5057_v3 = vmul.f32 %v5056_v26, %v17271_v18 }
0x1b25   :  { %v4824_v46 = vmul.f32 %v4823_v4, %v18063_v49  ;;  %s6449_s19 = smul.f32 %s6448_s9, %s6443_s12 }
0x1b26   :  { %v16011_v28 = vpop.f32.mrf.mxu0  ;;  %v4347_v4 = vrot.slane %v4342_v1, %v17318_v40 }
0x1b27   :  { %16005 = vmatmul.mubr.msk.f32.vlgmr.msra.gmra.mxu1 %vm137_vm2, %v4824_v46  ;;  %v18209_v46 = vstv %s5049_s11  ;;  %v5063_v28 = vsel %vm5062_vm13, %v17921_v44, 0.0 }
0x1b28   :  { %16014 = vmatprep.mubr.msk.f32.mxu1 %vm17051_vm1, %v19698_v15  ;;  %v4349_v29 = vadd.f32 %v4347_v4, %v18100_v13 }
0x1b29   :  { %v5140_v20 = vpop.f32.mrf.mxu0 }
0x1be7   :  { %v4894_v49 = vpop.f32.mrf.mxu1 }
0x1be8   :  { %v4965_v25 = vadd.f32 %v4964_v59, %v4894_v49  ;;  %v5058_v59 = vadd.f32 %v17913_v8, %v5057_v3 }
0x1be9   :  { %v16006_v39 = vpop.f32.mrf.mxu1 }
0x1bea   :  { %16013 = vmatpush3.msra.mxu1 %v4965_v25  ;;  %v5060_v49 = vmul.f32 %v18209_v46, %v5058_v59  ;;  %v5065_v25 = vmul.f32 %v5064_v42, %v5063_v28 }
0x1beb   :  { %16015 = vmatmul.mubr.msk.f32.vlgmr.msra.gmra.mxu1 %vm331_vm7, %v18102_v2  ;;  %16024 = vmatprep.subr.mxu1 %v19698_v15  ;;  %v16023_v2 = vpop.f32.mrf.mxu0 }
0x1bec   :  { %16025 = vmatpush3.msk.msra.mxu1 %vm250_vm0, %v17886_v57  ;;  %16026 = vmatprep.mubr.msk.f32.mxu1 %vm17051_vm1, %v19698_v15  ;;  %v18216_v62 = vadd.f32 %v5065_v25, %v5060_v49 }
0x1bed   :  { %16034 = vmatprep.subr.mxu1 %v19698_v15 }
0x1bef   :  { %16027 = vmatmul.mubr.msk.f32.vlgmr.msra.gmra.mxu1 %vm114_vm3, %v18185_v43 }
0x1bf0   :  { %16036 = vmatprep.mubr.msk.f32.mxu1 %vm17051_vm1, %v19698_v15 }
0x1cab   :  { %v5034_v22 = vpop.f32.mrf.mxu1 }
0x1cac   :  { %v18214_v39 = vadd.f32 %v5034_v22, %v4349_v29 }
0x1cad   :  { %v16016_v2 = vpop.f32.mrf.mxu1 }
0x1caf   :  { %v5213_v26 = vpop.f32.mrf.mxu1 }
0x1cb0   :  { %v5214_v1 = vadd.f32 %v5213_v26, %v5140_v20 }
0x1cb1   :  { %v16028_v61 = vpop.f32.mrf.mxu1 }
0x1cb2   :  { %16030 = vmatpush3.msra.mxu0 %v5214_v1  ;;  %v5291_v61 = vmul.f32 %v17966_v37, %v18209_v46 }
0x1cb3   :  { %16032 = vmatmul.mubr.msk.f32.vlgmr.msra.gmra.mxu0 %vm331_vm7, %v18216_v62  ;;  %16039 = vmatprep.subr.mxu0 %v19698_v15 }
0x1cb4   :  { %16040 = vmatpush3.msra.mxu0 %v17936_v30  ;;  %16047 = vmatprep.mubr.msk.f32.mxu0 %vm17051_vm1, %v19698_v15  ;;  %v5296_v13 = vrot.slane %v5291_v61, %v17318_v40 }
0x1cb5   :  { %16041 = vmatprep.subr.mxu0 %v19698_v15 }
0x1cb6   :  { %16042 = vmatpush3.msra.mxu0 %v17945_v45 }
0x1cb7   :  { %16043 = vmatprep.subr.mxu0 %v19698_v15 }
0x1cb8   :  { %16044 = vmatpush3.msra.mxu0 %v17952_v58 }
0x1cb9   :  { %16045 = vmatprep.subr.mxu0 %v19698_v15 }
0x1cba   :  { %16046 = vmatpush3.msra.mxu0 %v17959_v36 }
0x1cbb   :  { %16061 = vmatprep.subr.mxu0 %v19698_v15 }
0x1d73   :  { %v5286_v20 = vpop.f32.mrf.mxu0 }
0x1d74   :  { %v5290_v3 = vadd.f32 %v5286_v20, %v18121_v9 }
0x1d75   :  { %v16033_v4 = vpop.f32.mrf.mxu0 }
0x1d76   :  { %v18235_v59 = vadd.f32 %v5296_v13, %v5290_v3 }
0x1d78   :  { %v14868_v28 = vmul.f32 -1.442695, %v18235_v59 }
0x1d7a   :  { %16931 = vpow2.f32 %v14868_v28  ;;  %v134_v28 = vld [vmem:[%s19689_s28 + $0x40] sm:$0xff] }
0x1d7b   :  { %146 = vst.msk [vmem:[#allocation3 + $0x40] sm:$0xff] %vm137_vm2, %v134_v28 }
0x1d87   :  { %v16932_v42 = vpop.eup %16931 }
0x1d88   :  { %v5302_v29 = vadd.f32 1.0, %v16932_v42  ;;  %v111_v42 = vld [vmem:[%s19690_s23 + $0x40] sm:$0xff] }
0x1d89   :  { %123 = vst.msk [vmem:[#allocation2 + $0x40] sm:$0xff] %vm114_vm3, %v111_v42 }
0x1d8a   :  { %16933 = vrcp.f32 %v5302_v29  ;;  %v18286_v29 = vld [vmem:[#allocation3 + $0x40] sm:$0xff] }
0x1d97   :  { %v16934_v22 = vpop.eup %16933 }
0x1d98   :  { %16035 = vmatpush3.msra.mxu1 %v16934_v22 }
0x1d99   :  { %16037 = vmatmul.mubr.msk.f32.vlgmr.msra.gmra.mxu1 %vm331_vm7, %v17978_v21  ;;  %16050 = vmatprep.subr.mxu1 %v19698_v15 }
0x1d9a   :  { %16051 = vmatpush3.msra.mxu1 %v17986_v41  ;;  %16058 = vmatprep.mubr.msk.f32.mxu1 %vm17051_vm1, %v19698_v15 }
0x1d9b   :  { %16052 = vmatprep.subr.mxu1 %v19698_v15 }
0x1d9c   :  { %16053 = vmatpush3.msra.mxu1 %v17995_v23 }
0x1d9d   :  { %16054 = vmatprep.subr.mxu1 %v19698_v15 }
0x1d9e   :  { %16055 = vmatpush3.msra.mxu1 %v18002_v24 }
0x1d9f   :  { %16056 = vmatprep.subr.mxu1 %v19698_v15 }
0x1da0   :  { %16057 = vmatpush3.msra.mxu1 %v18009_v27 }
0x1da1   :  { %16068 = vmatprep.subr.mxu1 %v19698_v15 }
0x1e59   :  { %v5371_v9 = vpop.f32.mrf.mxu1 }
0x1e5a   :  { %16048 = vmatmul.mubr.msk.f32.vlgmr.msra.gmra.mxu0 %vm484_vm8, %v5371_v9  ;;  %16059 = vmatmul.mubr.msk.f32.vlgmr.msra.gmra.mxu1 %vm484_vm8, %v5371_v9 }
0x1e5b   :  { %v16038_v49 = vpop.f32.mrf.mxu1  ;;  %16062 = vmatpush3.msra.mxu0 %v18018_v32  ;;  %16069 = vmatpush3.msk.msra.mxu1 %vm250_vm0, %v18024_v31 }
0x1e5c   :  { %16070 = vmatprep.mubr.msk.f32.mxu1 %vm17051_vm1, %v19698_v15  ;;  %16063 = vmatprep.subr.mxu0 %v19698_v15  ;;  %v18299_v49 = vld [vmem:[#allocation2 + $0x40] sm:$0xff] }
0x1e5d   :  { %16064 = vmatpush3.msra.mxu0 %v18034_v10  ;;  %16065 = vmatprep.mubr.msk.f32.mxu0 %vm17051_vm1, %v19698_v15 }
0x1e5e   :  { %16071 = vmatmul.mubr.msk.f32.vlgmr.msra.gmra.mxu1 %vm114_vm3, %v18185_v43  ;;  %16073 = vmatprep.subr.mxu0 %v19698_v15 }
0x1e5f   :  { %16078 = vmatprep.subr.mxu1 %v19698_v15  ;;  %16082 = vmatprep.mubr.msk.f32.mxu1 %vm17051_vm1, %v19698_v15 }
0x1e60   :  { %16079 = vmatpush3.msra.mxu1 %v17849_v55 }
0x1e61   :  { %16080 = vmatprep.subr.mxu1 %v19698_v15 }
0x1e62   :  { %16081 = vmatpush3.msra.mxu1 %v17856_v11 }
0x1e63   :  { %16090 = vmatprep.subr.mxu1 %v19698_v15  ;;  %16083 = vmatmul.mubr.msk.f32.vlgmr.msra.gmra.mxu1 %vm137_vm2, %v18286_v29 }
0x1e64   :  { %16092 = vmatprep.mubr.msk.f32.mxu1 %vm17051_vm1, %v19698_v15 }
0x1f1a   :  { %v5444_v25 = vpop.f32.mrf.mxu0  ;;  %v5515_v2 = vpop.f32.mrf.mxu1 }
0x1f1b   :  { %v5448_v26 = vmul.f32 %v5444_v25, %v17409_v63  ;;  %v5519_v43 = vmul.f32 %v5515_v2, %v17411_v0  ;;  %v5753_v2 = vstv %s5749_s2 }
0x1f1c   :  { %v16049_v1 = vpop.f32.mrf.mxu0  ;;  %v16060_v61 = vpop.f32.mrf.mxu1 }
0x1f1d   :  { %v5520_v13 = vadd.f32 %v5519_v43, %v5448_v26  ;;  %v5039_v26 = vmul.f32 %v18199_v56, %v18095_v47  ;;  %v5754_v43 = vmul.f32 %v5753_v2, %v17271_v18 }
0x1f1e   :  { %v5661_v20 = vpop.f32.mrf.mxu1 }
0x1f1f   :  { %v5521_v3 = vmul.f32 %v5520_v13, %v18172_v19  ;;  %v5044_v1 = vrot.slane %v5039_v26, %v17318_v40  ;;  %v5755_v61 = vadd.f32 %v17913_v8, %v5754_v43  ;;  %v18318_v13 = vstv %s5746_s1 }
0x1f20   :  { %v16072_v4 = vpop.f32.mrf.mxu1 }
0x1f21   :  { %16066 = vmatmul.mubr.msk.f32.vlgmr.msra.gmra.mxu0 %vm137_vm2, %v5521_v3  ;;  %v5761_v3 = vstv %s5752_s29  ;;  %v5046_v4 = vadd.f32 %v5044_v1, %v18214_v39  ;;  %v5757_v28 = vmul.f32 %v18318_v13, %v5755_v61  ;;  %v5988_v39 = vmul.f32 %v17966_v37, %v18318_v13 }
0x1f22   :  { %16075 = vmatprep.mubr.msk.f32.mxu0 %vm17051_vm1, %v19698_v15 }
0x1f23   :  { %v5837_v25 = vpop.f32.mrf.mxu1 }
0x1fe1   :  { %v5591_v19 = vpop.f32.mrf.mxu0 }
0x1fe2   :  { %v5662_v22 = vadd.f32 %v5661_v20, %v5591_v19  ;;  %v5760_v20 = vsel %vm5759_vm15, %v17921_v44, 0.0 }
0x1fe3   :  { %v16067_v9 = vpop.f32.mrf.mxu0  ;;  %v5762_v42 = vmul.f32 %v5761_v3, %v5760_v20 }
0x1fe4   :  { %16074 = vmatpush3.msra.mxu0 %v5662_v22 }
0x1fe5   :  { %16076 = vmatmul.mubr.msk.f32.vlgmr.msra.gmra.mxu0 %vm331_vm7, %v18216_v62  ;;  %16085 = vmatprep.subr.mxu0 %v19698_v15  ;;  %v16084_v62 = vpop.f32.mrf.mxu1 }
0x1fe6   :  { %16086 = vmatpush3.msk.msra.mxu0 %vm250_vm0, %v17886_v57  ;;  %16087 = vmatprep.mubr.msk.f32.mxu0 %vm17051_vm1, %v19698_v15  ;;  %v18325_v62 = vadd.f32 %v5762_v42, %v5757_v28 }
0x1fe7   :  { %16095 = vmatprep.subr.mxu0 %v19698_v15 }
0x1fe9   :  { %16088 = vmatmul.mubr.msk.f32.vlgmr.msra.gmra.mxu0 %vm114_vm3, %v18299_v49 }
0x1fea   :  { %16097 = vmatprep.mubr.msk.f32.mxu0 %vm17051_vm1, %v19698_v15 }
0x20a5   :  { %v5731_v47 = vpop.f32.mrf.mxu0 }
0x20a6   :  { %v18323_v19 = vadd.f32 %v5731_v47, %v5046_v4 }
0x20a7   :  { %v16077_v22 = vpop.f32.mrf.mxu0 }
0x20a9   :  { %v5910_v9 = vpop.f32.mrf.mxu0 }
0x20aa   :  { %v5911_v2 = vadd.f32 %v5910_v9, %v5837_v25  ;;  %v5993_v25 = vrot.slane %v5988_v39, %v17318_v40 }
0x20ab   :  { %v16089_v26 = vpop.f32.mrf.mxu0 }
0x20ac   :  { %16091 = vmatpush3.msra.mxu1 %v5911_v2 }
0x20ad   :  { %16093 = vmatmul.mubr.msk.f32.vlgmr.msra.gmra.mxu1 %vm331_vm7, %v18325_v62  ;;  %16100 = vmatprep.subr.mxu1 %v19698_v15 }
0x20ae   :  { %16101 = vmatpush3.msra.mxu1 %v17936_v30  ;;  %16108 = vmatprep.mubr.msk.f32.mxu1 %vm17051_vm1, %v19698_v15 }
0x20af   :  { %16102 = vmatprep.subr.mxu1 %v19698_v15 }
0x20b0   :  { %16103 = vmatpush3.msra.mxu1 %v17945_v45 }
0x20b1   :  { %16104 = vmatprep.subr.mxu1 %v19698_v15 }
0x20b2   :  { %16105 = vmatpush3.msra.mxu1 %v17952_v58 }
0x20b3   :  { %16106 = vmatprep.subr.mxu1 %v19698_v15 }
0x20b4   :  { %16107 = vmatpush3.msra.mxu1 %v17959_v36 }
0x20b5   :  { %16122 = vmatprep.subr.mxu1 %v19698_v15 }
0x216d   :  { %v5983_v43 = vpop.f32.mrf.mxu1 }
0x216e   :  { %v5987_v1 = vadd.f32 %v5983_v43, %v18235_v59 }
0x216f   :  { %v16094_v61 = vpop.f32.mrf.mxu1 }
0x2170   :  { %v18344_v20 = vadd.f32 %v5993_v25, %v5987_v1 }
0x2172   :  { %v14880_v3 = vmul.f32 -1.442695, %v18344_v20 }
0x2174   :  { %16935 = vpow2.f32 %v14880_v3 }
0x2181   :  { %v16936_v4 = vpop.eup %16935 }
0x2182   :  { %v5999_v47 = vadd.f32 1.0, %v16936_v4 }
0x2184   :  { %16937 = vrcp.f32 %v5999_v47 }
0x2191   :  { %v16938_v28 = vpop.eup %16937 }
0x2192   :  { %16096 = vmatpush3.msra.mxu0 %v16938_v28 }
0x2193   :  { %16098 = vmatmul.mubr.msk.f32.vlgmr.msra.gmra.mxu0 %vm331_vm7, %v17978_v21  ;;  %16111 = vmatprep.subr.mxu0 %v19698_v15 }
0x2194   :  { %16112 = vmatpush3.msra.mxu0 %v17986_v41  ;;  %16119 = vmatprep.mubr.msk.f32.mxu0 %vm17051_vm1, %v19698_v15 }
0x2195   :  { %16113 = vmatprep.subr.mxu0 %v19698_v15 }
0x2196   :  { %16114 = vmatpush3.msra.mxu0 %v17995_v23 }
0x2197   :  { %16115 = vmatprep.subr.mxu0 %v19698_v15 }
0x2198   :  { %16116 = vmatpush3.msra.mxu0 %v18002_v24 }
0x2199   :  { %16117 = vmatprep.subr.mxu0 %v19698_v15 }
0x219a   :  { %16118 = vmatpush3.msra.mxu0 %v18009_v27 }
0x219b   :  { %16129 = vmatprep.subr.mxu0 %v19698_v15 }
0x2253   :  { %v6068_v59 = vpop.f32.mrf.mxu0 }
0x2254   :  { %16109 = vmatmul.mubr.msk.f32.vlgmr.msra.gmra.mxu1 %vm484_vm8, %v6068_v59  ;;  %16120 = vmatmul.mubr.msk.f32.vlgmr.msra.gmra.mxu0 %vm484_vm8, %v6068_v59 }
0x2255   :  { %v16099_v42 = vpop.f32.mrf.mxu0  ;;  %16123 = vmatpush3.msra.mxu1 %v18018_v32  ;;  %16130 = vmatpush3.msk.msra.mxu0 %vm250_vm0, %v18024_v31 }
0x2256   :  { %16131 = vmatprep.mubr.msk.f32.mxu0 %vm17051_vm1, %v19698_v15  ;;  %16124 = vmatprep.subr.mxu1 %v19698_v15  ;;  %v5736_v42 = vmul.f32 %v18199_v56, %v18209_v46 }
0x2257   :  { %16125 = vmatpush3.msra.mxu1 %v18034_v10  ;;  %16126 = vmatprep.mubr.msk.f32.mxu1 %vm17051_vm1, %v19698_v15 }
0x2258   :  { %16132 = vmatmul.mubr.msk.f32.vlgmr.msra.gmra.mxu0 %vm114_vm3, %v18299_v49  ;;  %16134 = vmatprep.subr.mxu1 %v19698_v15 }
0x2259   :  { %16139 = vmatprep.subr.mxu0 %v19698_v15  ;;  %16143 = vmatprep.mubr.msk.f32.mxu0 %vm17051_vm1, %v19698_v15 }
0x225a   :  { %16140 = vmatpush3.msra.mxu0 %v17849_v55  ;;  %v135_v55 = vld [vmem:[%s19689_s28 + $0x48] sm:$0xff] }
0x225b   :  { %16141 = vmatprep.subr.mxu0 %v19698_v15  ;;  %147 = vst.msk [vmem:[#allocation3 + $0x48] sm:$0xff] %vm137_vm2, %v135_v55 }
0x225c   :  { %16142 = vmatpush3.msra.mxu0 %v17856_v11  ;;  %v112_v11 = vld [vmem:[%s19690_s23 + $0x48] sm:$0xff] }
0x225d   :  { %16151 = vmatprep.subr.mxu0 %v19698_v15  ;;  %124 = vst.msk [vmem:[#allocation2 + $0x48] sm:$0xff] %vm114_vm3, %v112_v11 }
0x2262   :  { %v18395_v3 = vld [vmem:[#allocation3 + $0x48] sm:$0xff] }
0x2263   :  { %16144 = vmatmul.mubr.msk.f32.vlgmr.msra.gmra.mxu0 %vm137_vm2, %v18395_v3 }
0x2264   :  { %16153 = vmatprep.mubr.msk.f32.mxu0 %vm17051_vm1, %v19698_v15  ;;  %v18408_v28 = vld [vmem:[#allocation2 + $0x48] sm:$0xff] }
0x2314   :  { %v6141_v22 = vpop.f32.mrf.mxu1  ;;  %v6212_v9 = vpop.f32.mrf.mxu0 }
0x2315   :  { %v6145_v2 = vmul.f32 %v6141_v22, %v17409_v63  ;;  %v6216_v49 = vmul.f32 %v6212_v9, %v17411_v0  ;;  %v5741_v9 = vrot.slane %v5736_v42, %v17318_v40 }
0x2316   :  { %v16110_v26 = vpop.f32.mrf.mxu1  ;;  %v16121_v39 = vpop.f32.mrf.mxu0 }
0x2317   :  { %v6217_v25 = vadd.f32 %v6216_v49, %v6145_v2  ;;  %v18427_v49 = vstv %s6443_s12  ;;  %v6457_v26 = vsel %vm6456_vm6, %v17921_v44, 0.0  ;;  %v6458_v39 = vstv %s6449_s19 }
0x2318   :  { %v6358_v43 = vpop.f32.mrf.mxu0 }
0x2319   :  { %v6218_v1 = vmul.f32 %v6217_v25, %v18286_v29  ;;  %v5743_v25 = vadd.f32 %v5741_v9, %v18323_v19 }
0x231a   :  { %v16133_v61 = vpop.f32.mrf.mxu0 }
0x231b   :  { %16127 = vmatmul.mubr.msk.f32.vlgmr.msra.gmra.mxu1 %vm137_vm2, %v6218_v1 }
0x231c   :  { %16136 = vmatprep.mubr.msk.f32.mxu1 %vm17051_vm1, %v19698_v15 }
0x2323   :  { %v6534_v59 = vpop.f32.mrf.mxu0 }
0x23db   :  { %v6288_v29 = vpop.f32.mrf.mxu1 }
0x23dc   :  { %v6359_v4 = vadd.f32 %v6358_v43, %v6288_v29  ;;  %v6459_v43 = vmul.f32 %v6458_v39, %v6457_v26 }
0x23dd   :  { %v16128_v47 = vpop.f32.mrf.mxu1 }
0x23de   :  { %16135 = vmatpush3.msra.mxu1 %v6359_v4 }
0x23df   :  { %16137 = vmatmul.mubr.msk.f32.vlgmr.msra.gmra.mxu1 %vm331_vm7, %v18325_v62  ;;  %16146 = vmatprep.subr.mxu1 %v19698_v15  ;;  %v16145_v62 = vpop.f32.mrf.mxu0 }
0x23e0   :  { %16147 = vmatpush3.msk.msra.mxu1 %vm250_vm0, %v17886_v57  ;;  %16148 = vmatprep.mubr.msk.f32.mxu1 %vm17051_vm1, %v19698_v15  ;;  %v6450_v57 = vstv %s6446_s3  ;;  %s18557_s3 = smov (!%p14908_p6), 0  }
0x23e1   :  { %16156 = vmatprep.subr.mxu1 %v19698_v15  ;;  %v6451_v22 = vmul.f32 %v6450_v57, %v17271_v18 }
0x23e3   :  { %16149 = vmatmul.mubr.msk.f32.vlgmr.msra.gmra.mxu1 %vm114_vm3, %v18408_v28  ;;  %v6452_v2 = vadd.f32 %v17913_v8, %v6451_v22  ;;  %v6685_v8 = vmul.f32 %v17966_v37, %v18427_v49 }
0x23e4   :  { %16158 = vmatprep.mubr.msk.f32.mxu1 %vm17051_vm1, %v19698_v15 }
0x23e5   :  { %v6454_v16 = vmul.f32 %v18427_v49, %v6452_v2  ;;  %v6690_v44 = vrot.slane %v6685_v8, %v17318_v40  ;;  %v7130_v8 = vmul.f32 %v18199_v56, %v18427_v49 }
0x23e7   :  { %v18434_v11 = vadd.f32 %v6459_v43, %v6454_v16  ;;  %v16965_v16 = vld [vmem:[%s19653_s15 + $0x10] sm:$0xff]  ;;  %v16966_v43 = vld [vmem:[%s19653_s15 + $0x8] sm:$0xff] }
0x249f   :  { %v6428_v46 = vpop.f32.mrf.mxu1 }
0x24a0   :  { %v18432_v1 = vadd.f32 %v6428_v46, %v5743_v25  ;;  %v16964_v46 = vld [vmem:[%s19653_s15 + $0x18] sm:$0xff] }
0x24a1   :  { %v16138_v61 = vpop.f32.mrf.mxu1 }
0x24a2   :  { %v16967_v61 = vld [vmem:[%s19653_s15] sm:$0xff]  ;;  %s7369_s15 = scalar_lea.vmem [#allocation2], %s14900_s10 }
0x24a3   :  { %v6607_v55 = vpop.f32.mrf.mxu1 }
0x24a4   :  { %v6608_v29 = vadd.f32 %v6607_v55, %v6534_v59  ;;  %v113_v55 = vld [vmem:[%s19690_s23 + $0x50] sm:$0xff] }
0x24a5   :  { %v16150_v4 = vpop.f32.mrf.mxu1  ;;  %125 = vst.msk [vmem:[#allocation2 + $0x50] sm:$0xff] %vm114_vm3, %v113_v55 }
0x24a6   :  { %16152 = vmatpush3.msra.mxu0 %v6608_v29  ;;  %v6433_v29 = vmul.f32 %v18199_v56, %v18318_v13 }
0x24a7   :  { %16154 = vmatmul.mubr.msk.f32.vlgmr.msra.gmra.mxu0 %vm331_vm7, %v18434_v11  ;;  %16161 = vmatprep.subr.mxu0 %v19698_v15 }
0x24a8   :  { %16162 = vmatpush3.msra.mxu0 %v17936_v30  ;;  %16169 = vmatprep.mubr.msk.f32.mxu0 %vm17051_vm1, %v19698_v15  ;;  %v6438_v4 = vrot.slane %v6433_v29, %v17318_v40 }
0x24a9   :  { %16163 = vmatprep.subr.mxu0 %v19698_v15 }
0x24aa   :  { %16164 = vmatpush3.msra.mxu0 %v17945_v45 }
0x24ab   :  { %16165 = vmatprep.subr.mxu0 %v19698_v15 }
0x24ac   :  { %16166 = vmatpush3.msra.mxu0 %v17952_v58 }
0x24ad   :  { %16167 = vmatprep.subr.mxu0 %v19698_v15 }
0x24ae   :  { %16168 = vmatpush3.msra.mxu0 %v17959_v36 }
0x24af   :  { %16183 = vmatprep.subr.mxu0 %v19698_v15 }
0x2567   :  { %v6680_v30 = vpop.f32.mrf.mxu0 }
0x2568   :  { %v6684_v19 = vadd.f32 %v6680_v30, %v18344_v20  ;;  %v7135_v30 = vrot.slane %v7130_v8, %v17318_v40 }
0x2569   :  { %v16155_v47 = vpop.f32.mrf.mxu0 }
0x256a   :  { %v6692_v45 = vadd.f32 %v6690_v44, %v6684_v19  ;;  %v6440_v44 = vadd.f32 %v6438_v4, %v18432_v1 }
0x256c   :  { %v14892_v59 = vmul.f32 -1.442695, %v6692_v45 }
0x256e   :  { %16939 = vpow2.f32 %v14892_v59 }
0x257b   :  { %v16940_v62 = vpop.eup %16939 }
0x257c   :  { %v6696_v58 = vadd.f32 1.0, %v16940_v62 }
0x257e   :  { %16941 = vrcp.f32 %v6696_v58 }
0x258b   :  { %v16942_v57 = vpop.eup %16941 }
0x258c   :  { %16157 = vmatpush3.msra.mxu1 %v16942_v57 }
0x258d   :  { %16159 = vmatmul.mubr.msk.f32.vlgmr.msra.gmra.mxu1 %vm331_vm7, %v17978_v21  ;;  %16172 = vmatprep.subr.mxu1 %v19698_v15  ;;  %v18485_v21 = vld [vmem:[%s19652_s14] sm:$0xff] }
0x258e   :  { %16173 = vmatpush3.msra.mxu1 %v17986_v41  ;;  %16180 = vmatprep.mubr.msk.f32.mxu1 %vm17051_vm1, %v19698_v15 }
0x258f   :  { %16174 = vmatprep.subr.mxu1 %v19698_v15 }
0x2590   :  { %16175 = vmatpush3.msra.mxu1 %v17995_v23 }
0x2591   :  { %16176 = vmatprep.subr.mxu1 %v19698_v15 }
0x2592   :  { %16177 = vmatpush3.msra.mxu1 %v18002_v24 }
0x2593   :  { %16178 = vmatprep.subr.mxu1 %v19698_v15 }
0x2594   :  { %16179 = vmatpush3.msra.mxu1 %v18009_v27 }
0x2595   :  { %16190 = vmatprep.subr.mxu1 %v19698_v15 }
0x264d   :  { %v6765_v36 = vpop.f32.mrf.mxu1 }
0x264e   :  { %16170 = vmatmul.mubr.msk.f32.vlgmr.msra.gmra.mxu0 %vm484_vm8, %v6765_v36  ;;  %16181 = vmatmul.mubr.msk.f32.vlgmr.msra.gmra.mxu1 %vm484_vm8, %v6765_v36 }
0x264f   :  { %v16160_v37 = vpop.f32.mrf.mxu1  ;;  %16191 = vmatpush3.msk.msra.mxu1 %vm250_vm0, %v18024_v31  ;;  %16192 = vmatprep.mubr.msk.f32.mxu1 %vm17051_vm1, %v19698_v15 }
0x2650   :  { %16200 = vmatprep.subr.mxu1 %v19698_v15  ;;  %16184 = vmatpush3.msra.mxu0 %v18018_v32 }
0x2651   :  { %16185 = vmatprep.subr.mxu0 %v19698_v15  ;;  %16187 = vmatprep.mubr.msk.f32.mxu0 %vm17051_vm1, %v19698_v15 }
0x2652   :  { %16193 = vmatmul.mubr.msk.f32.vlgmr.msra.gmra.mxu1 %vm114_vm3, %v18408_v28  ;;  %16186 = vmatpush3.msra.mxu0 %v18034_v10 }
0x2653   :  { %16201 = vmatpush3.msra.mxu1 %v16942_v57  ;;  %16202 = vmatprep.mubr.msk.f32.mxu1 %vm17051_vm1, %v19698_v15 }
0x2654   :  { %16216 = vmatprep.subr.mxu1 %v19698_v15  ;;  %16195 = vmatprep.subr.mxu0 %v19698_v15 }
0x2656   :  { %16203 = vmatmul.mubr.msk.f32.vlgmr.msra.gmra.mxu1 %vm331_vm7, %v18485_v21 }
0x2657   :  { %16217 = vmatpush3.msra.mxu1 %v17986_v41  ;;  %16224 = vmatprep.mubr.msk.f32.mxu1 %vm17051_vm1, %v19698_v15 }
0x2658   :  { %16218 = vmatprep.subr.mxu1 %v19698_v15 }
0x2659   :  { %16219 = vmatpush3.msra.mxu1 %v17995_v23 }
0x265a   :  { %16220 = vmatprep.subr.mxu1 %v19698_v15 }
0x265b   :  { %16221 = vmatpush3.msra.mxu1 %v18002_v24 }
0x265c   :  { %16222 = vmatprep.subr.mxu1 %v19698_v15 }
0x265d   :  { %16223 = vmatpush3.msra.mxu1 %v18009_v27 }
0x270e   :  { %v6838_v32 = vpop.f32.mrf.mxu0  ;;  %v6909_v31 = vpop.f32.mrf.mxu1 }
0x270f   :  { %v6842_v10 = vmul.f32 %v6838_v32, %v17409_v63  ;;  %v6913_v41 = vmul.f32 %v6909_v31, %v17411_v0 }
0x2710   :  { %v16171_v20 = vpop.f32.mrf.mxu0  ;;  %v16182_v28 = vpop.f32.mrf.mxu1 }
0x2711   :  { %v6914_v42 = vadd.f32 %v6913_v41, %v6842_v10 }
0x2712   :  { %v7055_v22 = vpop.f32.mrf.mxu1 }
0x2713   :  { %v6915_v23 = vmul.f32 %v6914_v42, %v18395_v3 }
0x2714   :  { %v16194_v9 = vpop.f32.mrf.mxu1 }
0x2715   :  { %16188 = vmatmul.mubr.msk.f32.vlgmr.msra.gmra.mxu0 %vm137_vm2, %v6915_v23 }
0x2716   :  { %v7210_v24 = vpop.f32.mrf.mxu1  ;;  %16197 = vmatprep.mubr.msk.f32.mxu0 %vm17051_vm1, %v19698_v15 }
0x2717   :  { %16225 = vmatmul.mubr.msk.f32.vlgmr.msra.gmra.mxu1 %vm484_vm8, %v7210_v24 }
0x2718   :  { %v16204_v27 = vpop.f32.mrf.mxu1 }
0x27d5   :  { %v6985_v2 = vpop.f32.mrf.mxu0 }
0x27d6   :  { %v7056_v26 = vadd.f32 %v7055_v22, %v6985_v2 }
0x27d7   :  { %v16189_v39 = vpop.f32.mrf.mxu0  ;;  %v7354_v25 = vpop.f32.mrf.mxu1 }
0x27d8   :  { %16196 = vmatpush3.msra.mxu0 %v7056_v26  ;;  %v7358_v58 = vmul.f32 %v7354_v25, %v17411_v0 }
0x27d9   :  { %16198 = vmatmul.mubr.msk.f32.vlgmr.msra.gmra.mxu0 %vm331_vm7, %v18434_v11  ;;  %16205 = vmatprep.subr.mxu0 %v19698_v15  ;;  %v16226_v3 = vpop.f32.mrf.mxu1  ;;  %v136_v11 = vld [vmem:[%s19689_s28 + $0x50] sm:$0xff]  ;;  %s7139_s28 = scalar_lea.vmem [#allocation3], %s14900_s10 }
0x27da   :  { %16206 = vmatpush3.msra.mxu0 %v16964_v46  ;;  %16213 = vmatprep.mubr.msk.f32.mxu0 %vm17051_vm1, %v19698_v15  ;;  %148 = vst.msk [vmem:[#allocation3 + $0x50] sm:$0xff] %vm137_vm2, %v136_v11 }
0x27db   :  { %16207 = vmatprep.subr.mxu0 %v19698_v15 }
0x27dc   :  { %16208 = vmatpush3.msra.mxu0 %v16965_v16 }
0x27dd   :  { %16209 = vmatprep.subr.mxu0 %v19698_v15 }
0x27de   :  { %16210 = vmatpush3.msra.mxu0 %v16966_v43 }
0x27df   :  { %16211 = vmatprep.subr.mxu0 %v19698_v15  ;;  %v7370_v15 = vld [vmem:[%s7369_s15] sm:$0xff] }
0x27e0   :  { %16212 = vmatpush3.msra.mxu0 %v16967_v61  ;;  %14907 = vst.msk [vmem:[%s7369_s15 + $0x8] sm:$0xff] %vm114_vm3, %v7370_v15 }
0x27e1   :  { %16214 = vmatmul.mubr.msk.f32.vlgmr.msra.gmra.mxu0 %vm484_vm8, %v7210_v24  ;;  %v7140_v13 = vld [vmem:[%s7139_s28] sm:$0xff] }
0x2899   :  { %v7125_v19 = vpop.f32.mrf.mxu0 }
0x289a   :  { %v7129_v47 = vadd.f32 %v7125_v19, %v6440_v44 }
0x289b   :  { %v16199_v45 = vpop.f32.mrf.mxu0 }
0x289c   :  { %v7137_v59 = vadd.f32 %v7135_v30, %v7129_v47 }
0x289e   :  { %16943 = vtanh.f32 %v7137_v59 }
0x28a1   :  { %v7283_v62 = vpop.f32.mrf.mxu0 }
0x28a2   :  { %v7287_v57 = vmul.f32 %v7283_v62, %v17409_v63 }
0x28a3   :  { %v16215_v36 = vpop.f32.mrf.mxu0 }
0x28a4   :  { %v7359_v37 = vadd.f32 %v7358_v58, %v7287_v57 }
0x28a6   :  { %v7361_v32 = vmul.f32 %v7359_v37, %v7140_v13  ;;  %v7362_v56 = vsub.f32 1.0, %v7359_v37 }
0x28ab   :  { %v16944_v49 = vpop.eup %16943 }
0x28ac   :  { %v7363_v1 = vmul.f32 %v16944_v49, %v7362_v56  ;;  %14775 = sbr.rel (%p14908_p6) target bundleno = 21009 (0x5211), region = 142 }
0x28ae   :  { %v7364_v31 = vadd.f32 %v7363_v1, %v7361_v32  }
0x28b0   :  { %7365 = vst.msk [vmem:[#allocation6] sm:$0xff] %vm137_vm2, %v7364_v31  ;;  %14905 = vst.msk [vmem:[%s7139_s28 + $0x8] sm:$0xff] %vm137_vm2, %v7364_v31 }
0x28b1 LB: > { %v17053_v10 = vmov 0.0   ;;  %v18564_v41 = vld [vmem:[#allocation2] sm:$0xff]  ;;  %vm17054_vm9 = vmmov 0   ;;  %s19700_s5 = sld [smem:[#allocation15_spill]]  ;;  %v19701_v59 = vld [vmem:[#allocation12_spill] sm:$0xff]  ;;  %s17044_s3 = sphi %s18557_s3, %s7376_s3  }
0x28b2   : > { %16227 = vmatprep.subr.mxu0 %v17053_v10  ;;  %16234 = vmatprep.subr.mxu1 %v17053_v10  ;;  %v19702_v62 = vld [vmem:[#allocation13_spill] sm:$0xff] }
0x28b3   : > { %16228 = vmatpush3.msra.mxu0 %v17195_v5  ;;  %16235 = vmatpush3.msk.msra.mxu1 %vm250_vm0, %v17209_v7 }
0x28b4   : > { %16236 = vmatprep.mubr.msk.f32.mxu1 %vm17054_vm9, %v17053_v10  ;;  %16229 = vmatprep.subr.mxu0 %v17053_v10 }
0x28b5   : > { %16237 = vmatmul.mubr.msk.f32.vlgmr.msra.gmra.mxu1 %vm114_vm3, %v18564_v41  ;;  %16230 = vmatpush3.msra.mxu0 %v17201_v6 }
0x28b6   : > { %16231 = vmatprep.mubr.msk.f32.mxu0 %vm17054_vm9, %v17053_v10  ;;  %16239 = vmatprep.subr.mxu1 %v17053_v10 }
0x28b7   : > { %v18572_v20 = vld [vmem:[#allocation3] sm:$0xff]  ;;  %16241 = vmatprep.mubr.msk.f32.mxu1 %vm17054_vm9, %v17053_v10  ;;  %16244 = vmatprep.subr.mxu0 %v17053_v10  ;;  %s7380_s12 = sadd.s32 2, %s19700_s5 }
0x28b8   : > { %16232 = vmatmul.mubr.msk.f32.vlgmr.msra.gmra.mxu0 %vm137_vm2, %v18572_v20  ;;  %s18591_s9 = sadd.s32 %s17044_s3, %s7380_s12 }
0x28b9   : > { %16246 = vmatprep.mubr.msk.f32.mxu0 %vm17054_vm9, %v17053_v10  ;;  %s18594_s19 = sadd.s32 4294967295, %s18591_s9  ;;  %p7382_p8 = scmp.gt.s32.totalorder %s18591_s9, 0  ;;  %v7397_v28 = vstv %s18591_s9 }
0x28ba   : > { %p7386_p7 = scmp.eq.s32.totalorder %s18594_s19, 0  ;;  %v18600_v42 = vsub.s32 %v7397_v28, %v17251_v12  ;;  %p8079_p9 = scmp.eq.s32.totalorder %s18594_s19, 1 }
0x28bb   : > { %s7383_s14 = scalar_select %p7382_p8, 1, 0 }
0x28bc   : > { %s7387_s25 = scalar_select %p7386_p7, 1, 0  ;;  %vm7399_vm10 = vcmp.lt.s32.totalorder %v18600_v42, 1  ;;  %vm8090_vm12 = vcmp.lt.s32.totalorder %v18600_v42, 2  ;;  %vm8785_vm14 = vcmp.lt.s32.totalorder %v18600_v42, 3  ;;  %vm9480_vm5 = vcmp.lt.s32.totalorder %v18600_v42, 4 }
0x28bd   : > { %s7384_s8 = scvt.s32.f32 %s7383_s14  ;;  %vm7400_vm11 = vmand %vm76_vm4, %vm7399_vm10  ;;  %p8076_p10 = scmp.gt.s32.totalorder %s18591_s9, 1  ;;  %vm10175_vm10 = vcmp.lt.s32.totalorder %v18600_v42, 5 }
0x28be   : > { %s7388_s6 = scvt.s32.f32 %s7387_s25  ;;  %v7401_v27 = vsel %vm7400_vm11, %v17268_v17, 0.0  ;;  %vm8091_vm13 = vmand %vm76_vm4, %vm8090_vm12  ;;  %p8774_p11 = scmp.eq.s32.totalorder %s18594_s19, 2  ;;  %vm10870_vm12 = vcmp.lt.s32.totalorder %v18600_v42, 6 }
0x28bf   : > { %v18607_v24 = vstv %s7384_s8  ;;  %s8080_s17 = scalar_select %p8079_p9, 1, 0  ;;  %vm8786_vm15 = vmand %vm76_vm4, %vm8785_vm14  ;;  %vm11565_vm14 = vcmp.lt.s32.totalorder %v18600_v42, 7 }
0x28c0   : > { %s7389_s24 = smul.f32 -0.16666667, %s7388_s6  ;;  %v7392_v22 = vstv %s7388_s6  ;;  %v7553_v55 = vmul.f32 %v18607_v24, %v17314_v38  ;;  %p8771_p12 = scmp.gt.s32.totalorder %s18591_s9, 2  ;;  %vm9481_vm6 = vmand %vm76_vm4, %vm9480_vm5  ;;  %vm12260_vm5 = vcmp.lt.s32.totalorder %v18600_v42, 8 }
0x28c1   : > { %v7393_v23 = vmul.f32 %v7392_v22, %v17271_v18  ;;  %s8081_s27 = scvt.s32.f32 %s8080_s17  ;;  %p9469_p13 = scmp.eq.s32.totalorder %s18594_s19, 3  ;;  %vm10176_vm11 = vmand %vm76_vm4, %vm10175_vm10  ;;  %vm12955_vm10 = vcmp.lt.s32.totalorder %v18600_v42, 9 }
0x28c2   : > { %s7390_s13 = sadd.f32 0.5, %s7389_s24  ;;  %v7558_v11 = vrot.slane %v7553_v55, %v17318_v40  ;;  %p9466_p0 = scmp.gt.s32.totalorder %s18591_s9, 3 }
0x28c3   : > { %v7394_v9 = vadd.f32 %v7393_v23, %v17257_v14  ;;  %s8077_s1 = scalar_select %p8076_p10, 1, 0 }
0x28c4   : > { %s7391_s2 = smul.f32 %s7390_s13, %s7384_s8  ;;  %p10164_p1 = scmp.eq.s32.totalorder %s18594_s19, 4 }
0x28c5   : > { %v7396_v26 = vmul.f32 %v18607_v24, %v7394_v9  ;;  %s8082_s18 = smul.f32 -0.16666667, %s8081_s27  ;;  %s8078_s29 = scvt.s32.f32 %s8077_s1 }
0x28c6   : > { %v7402_v2 = vstv %s7391_s2  ;;  %s8775_s7 = scalar_select %p8774_p11, 1, 0 }
0x28c7   : > { %v7403_v39 = vmul.f32 %v7402_v2, %v7401_v27  ;;  %s8083_s22 = sadd.f32 0.5, %s8082_s18  ;;  %v8085_v2 = vstv %s8081_s27  ;;  %p10161_p2 = scmp.gt.s32.totalorder %s18591_s9, 4 }
0x28c8   : > { %s8776_s0 = scvt.s32.f32 %s8775_s7  ;;  %p10859_p3 = scmp.eq.s32.totalorder %s18594_s19, 5 }
0x28c9   : > { %v18611_v16 = vadd.f32 %v7403_v39, %v7396_v26  ;;  %v8086_v26 = vmul.f32 %v8085_v2, %v17271_v18  ;;  %s8084_s16 = smul.f32 %s8083_s22, %s8078_s29  ;;  %v18767_v2 = vld [vmem:[#allocation3 + $0x10] sm:$0xff]  ;;  %p10856_p4 = scmp.gt.s32.totalorder %s18591_s9, 5 }
0x28ca   : > { %s8772_s10 = scalar_select %p8771_p12, 1, 0 }
0x28cb   : > { %v8087_v39 = vadd.f32 %v8086_v26, %v17257_v14  ;;  %s8777_s15 = smul.f32 -0.16666667, %s8776_s0  ;;  %p11554_p5 = scmp.eq.s32.totalorder %s18594_s19, 6 }
0x28cc   : > { %s8773_s28 = scvt.s32.f32 %s8772_s10  ;;  %p11551_p6 = scmp.gt.s32.totalorder %s18591_s9, 6 }
0x28cd   : > { %s8778_s23 = sadd.f32 0.5, %s8777_s15  ;;  %p12249_p7 = scmp.eq.s32.totalorder %s18594_s19, 7 }
0x28ce   : > { %s9470_s26 = scalar_select %p9469_p13, 1, 0 }
0x28cf   : > { %s8779_s11 = smul.f32 %s8778_s23, %s8773_s28  ;;  %p12246_p8 = scmp.gt.s32.totalorder %s18591_s9, 7 }
0x28d0   : > { %s9471_s4 = scvt.s32.f32 %s9470_s26  ;;  %p12944_p9 = scmp.eq.s32.totalorder %s18594_s19, 8 }
0x28d1   : > { %s9467_s30 = scalar_select %p9466_p0, 1, 0 }
0x28d2   : > { %s9472_s12 = smul.f32 -0.16666667, %s9471_s4  ;;  %p12941_p10 = scmp.gt.s32.totalorder %s18591_s9, 8 }
0x28d3   : > { %s9468_s25 = scvt.s32.f32 %s9467_s30  ;;  %p13639_p11 = scmp.eq.s32.totalorder %s18594_s19, 9 }
0x28d4   : > { %s9473_s6 = sadd.f32 0.5, %s9472_s12  ;;  %p13636_p12 = scmp.gt.s32.totalorder %s18591_s9, 9 }
0x28d5   : > { %s10165_s24 = scalar_select %p10164_p1, 1, 0 }
0x28d6   : > { %s9474_s14 = smul.f32 %s9473_s6, %s9468_s25  ;;  %s15030_s9 = sshll.u32 %s18594_s19, 3 }
0x28d7   : > { %s10166_s8 = scvt.s32.f32 %s10165_s24 }
0x28d8   : > { %s10162_s13 = scalar_select %p10161_p2, 1, 0 }
0x28d9   : > { %s10167_s2 = smul.f32 -0.16666667, %s10166_s8 }
0x28da   : > { %s10163_s17 = scvt.s32.f32 %s10162_s13 }
0x28db   : > { %s10168_s27 = sadd.f32 0.5, %s10167_s2 }
0x28dc   : > { %s10860_s18 = scalar_select %p10859_p3, 1, 0 }
0x28dd   : > { %s10169_s1 = smul.f32 %s10168_s27, %s10163_s17 }
0x28de   : > { %s10857_s22 = scalar_select %p10856_p4, 1, 0 }
0x28df   : > { %s11555_s15 = scalar_select %p11554_p5, 1, 0 }
0x28e0   : > { %s10858_s7 = scvt.s32.f32 %s10857_s22 }
0x28e1   : > { %s11552_s23 = scalar_select %p11551_p6, 1, 0 }
0x28e2   : > { %s12250_s12 = scalar_select %p12249_p7, 1, 0 }
0x28e3   : > { %s11553_s26 = scvt.s32.f32 %s11552_s23 }
0x28e4   : > { %s12247_s6 = scalar_select %p12246_p8, 1, 0 }
0x28e5   : > { %s12945_s2 = scalar_select %p12944_p9, 1, 0 }
0x28e6   : > { %s12248_s24 = scvt.s32.f32 %s12247_s6 }
0x28e7   : > { %s12942_s27 = scalar_select %p12941_p10, 1, 0 }
0x2975   : > { %v7549_v25 = vpop.f32.mrf.mxu1 }
0x2977   : > { %v16238_v46 = vpop.f32.mrf.mxu1 }
0x2978   : > { %v7476_v3 = vpop.f32.mrf.mxu0  ;;  %v8093_v46 = vstv %s8084_s16 }
0x2979   : > { %v7550_v43 = vadd.f32 %v7549_v25, %v7476_v3  ;;  %v18699_v25 = vstv %s8078_s29  ;;  %v8092_v3 = vsel %vm8091_vm13, %v17268_v17, 0.0  ;;  %s10861_s29 = scvt.s32.f32 %s10860_s18  ;;  %vm10871_vm13 = vmand %vm76_vm4, %vm10870_vm12  ;;  %s12943_s18 = scvt.s32.f32 %s12942_s27  ;;  %vm13650_vm12 = vcmp.lt.s32.totalorder %v18600_v42, 10 }
0x297a   : > { %v16233_v61 = vpop.f32.mrf.mxu0 }
0x297b   : > { %16240 = vmatpush3.msra.mxu1 %v7550_v43  ;;  %v8089_v43 = vmul.f32 %v18699_v25, %v8087_v39  ;;  %v8094_v61 = vmul.f32 %v8093_v46, %v8092_v3  ;;  %s10862_s16 = smul.f32 -0.16666667, %s10861_s29 }
0x297c   : > { %16242 = vmatmul.mubr.msk.f32.vlgmr.msra.gmra.mxu1 %vm331_vm7, %v18611_v16  ;;  %16249 = vmatprep.subr.mxu1 %v17053_v10 }
0x297d   : > { %16250 = vmatpush3.msra.mxu1 %v17293_v33  ;;  %16257 = vmatprep.mubr.msk.f32.mxu1 %vm17054_vm9, %v17053_v10 }
0x297e   : > { %16251 = vmatprep.subr.mxu1 %v17053_v10 }
0x297f   : > { %16252 = vmatpush3.msra.mxu1 %v17300_v34 }
0x2980   : > { %16253 = vmatprep.subr.mxu1 %v17053_v10 }
0x2981   : > { %16254 = vmatpush3.msra.mxu1 %v17307_v35 }
0x2982   : > { %16255 = vmatprep.subr.mxu1 %v17053_v10 }
0x2983   : > { %16256 = vmatpush3.msra.mxu1 %v17358_v53 }
0x2984   : > { %16271 = vmatprep.subr.mxu1 %v17053_v10 }
0x2a3c   : > { %v7629_v15 = vpop.f32.mrf.mxu1 }
0x2a3d   : > { %v18629_v29 = vadd.f32 %v7629_v15, %v7558_v11  ;;  %v18705_v15 = vadd.f32 %v8094_v61, %v8089_v43  ;;  %v8780_v61 = vstv %s8776_s0  ;;  %s10863_s0 = sadd.f32 0.5, %s10862_s16 }
0x2a3e   : > { %v16243_v4 = vpop.f32.mrf.mxu1  ;;  %s13640_s16 = scalar_select %p13639_p11, 1, 0 }
0x2a3f   : > { %v14914_v8 = vmul.f32 -1.442695, %v18629_v29  ;;  %s10864_s10 = smul.f32 %s10863_s0, %s10858_s7 }
0x2a40   : > { %s13637_s0 = scalar_select %p13636_p12, 1, 0 }
0x2a41   : > { %16969 = vpow2.f32 %v14914_v8 }
0x2a4e   : > { %v16970_v44 = vpop.eup %16969 }
0x2a4f   : > { %v7636_v30 = vadd.f32 1.0, %v16970_v44  ;;  %v8318_v44 = vmul.f32 %v18699_v25, %v17314_v38 }
0x2a51   : > { %16971 = vrcp.f32 %v7636_v30  ;;  %v8323_v30 = vrot.slane %v8318_v44, %v17318_v40  ;;  %v18797_v44 = vstv %s8773_s28  ;;  %s11556_s28 = scvt.s32.f32 %s11555_s15  ;;  %s13638_s15 = scvt.s32.f32 %s13637_s0 }
0x2a5e   : > { %v16972_v19 = vpop.eup %16971 }
0x2a5f   : > { %16245 = vmatpush3.msra.mxu0 %v16972_v19 }
0x2a60   : > { %16247 = vmatmul.mubr.msk.f32.vlgmr.msra.gmra.mxu0 %vm331_vm7, %v17327_v48  ;;  %16260 = vmatprep.subr.mxu0 %v17053_v10 }
0x2a61   : > { %16261 = vmatpush3.msra.mxu0 %v17332_v50  ;;  %16268 = vmatprep.mubr.msk.f32.mxu0 %vm17054_vm9, %v17053_v10 }
0x2a62   : > { %16262 = vmatprep.subr.mxu0 %v17053_v10 }
0x2a63   : > { %16263 = vmatpush3.msra.mxu0 %v17340_v51 }
0x2a64   : > { %16264 = vmatprep.subr.mxu0 %v17053_v10 }
0x2a65   : > { %16265 = vmatpush3.msra.mxu0 %v17349_v52 }
0x2a66   : > { %16266 = vmatprep.subr.mxu0 %v17053_v10 }
0x2a67   : > { %16267 = vmatpush3.msra.mxu0 %v17363_v54 }
0x2a68   : > { %16278 = vmatprep.subr.mxu0 %v17053_v10 }
0x2b20   : > { %v7705_v47 = vpop.f32.mrf.mxu0 }
0x2b21   : > { %16258 = vmatmul.mubr.msk.f32.vlgmr.msra.gmra.mxu1 %vm484_vm8, %v7705_v47  ;;  %16269 = vmatmul.mubr.msk.f32.vlgmr.msra.gmra.mxu0 %vm484_vm8, %v7705_v47 }
0x2b22   : > { %v16248_v45 = vpop.f32.mrf.mxu0  ;;  %16272 = vmatpush3.msra.mxu1 %v17382_v60  ;;  %16279 = vmatpush3.msk.msra.mxu0 %vm250_vm0, %v19701_v59 }
0x2b23   : > { %16280 = vmatprep.mubr.msk.f32.mxu0 %vm17054_vm9, %v17053_v10  ;;  %16273 = vmatprep.subr.mxu1 %v17053_v10 }
0x2b24   : > { %16274 = vmatpush3.msra.mxu1 %v19702_v62  ;;  %16275 = vmatprep.mubr.msk.f32.mxu1 %vm17054_vm9, %v17053_v10 }
0x2b25   : > { %16281 = vmatmul.mubr.msk.f32.vlgmr.msra.gmra.mxu0 %vm114_vm3, %v18564_v41  ;;  %16283 = vmatprep.subr.mxu1 %v17053_v10  ;;  %v18672_v41 = vld [vmem:[#allocation3 + $0x8] sm:$0xff] }
0x2b26   : > { %16288 = vmatprep.subr.mxu0 %v17053_v10  ;;  %16292 = vmatprep.mubr.msk.f32.mxu0 %vm17054_vm9, %v17053_v10 }
0x2b27   : > { %16289 = vmatpush3.msra.mxu0 %v17195_v5 }
0x2b28   : > { %16290 = vmatprep.subr.mxu0 %v17053_v10 }
0x2b29   : > { %16291 = vmatpush3.msra.mxu0 %v17201_v6 }
0x2b2a   : > { %16300 = vmatprep.subr.mxu0 %v17053_v10  ;;  %16293 = vmatmul.mubr.msk.f32.vlgmr.msra.gmra.mxu0 %vm137_vm2, %v18672_v41 }
0x2b2b   : > { %16302 = vmatprep.mubr.msk.f32.mxu0 %vm17054_vm9, %v17053_v10 }
0x2be1   : > { %v7778_v58 = vpop.f32.mrf.mxu1  ;;  %v7849_v57 = vpop.f32.mrf.mxu0 }
0x2be2   : > { %v7782_v13 = vmul.f32 %v7778_v58, %v17409_v63  ;;  %v7853_v36 = vmul.f32 %v7849_v57, %v17411_v0 }
0x2be3   : > { %v16259_v37 = vpop.f32.mrf.mxu1  ;;  %v16270_v32 = vpop.f32.mrf.mxu0 }
0x2be4   : > { %v7854_v56 = vadd.f32 %v7853_v36, %v7782_v13 }
0x2be5   : > { %v7995_v49 = vpop.f32.mrf.mxu0 }
0x2be6   : > { %v7855_v1 = vmul.f32 %v7854_v56, %v18572_v20  ;;  %v18685_v20 = vld [vmem:[#allocation2 + $0x8] sm:$0xff] }
0x2be7   : > { %v16282_v31 = vpop.f32.mrf.mxu0 }
0x2be8   : > { %16276 = vmatmul.mubr.msk.f32.vlgmr.msra.gmra.mxu1 %vm137_vm2, %v7855_v1 }
0x2be9   : > { %16285 = vmatprep.mubr.msk.f32.mxu1 %vm17054_vm9, %v17053_v10 }
0x2bea   : > { %v8167_v9 = vpop.f32.mrf.mxu0 }
0x2bec   : > { %v16294_v27 = vpop.f32.mrf.mxu0 }
0x2ca8   : > { %v7925_v28 = vpop.f32.mrf.mxu1 }
0x2ca9   : > { %v7996_v22 = vadd.f32 %v7995_v49, %v7925_v28 }
0x2caa   : > { %v16277_v23 = vpop.f32.mrf.mxu1 }
0x2cab   : > { %16284 = vmatpush3.msra.mxu1 %v7996_v22 }
0x2cac   : > { %16286 = vmatmul.mubr.msk.f32.vlgmr.msra.gmra.mxu1 %vm331_vm7, %v18611_v16  ;;  %16295 = vmatprep.subr.mxu1 %v17053_v10 }
0x2cad   : > { %16296 = vmatpush3.msk.msra.mxu1 %vm250_vm0, %v17209_v7  ;;  %16297 = vmatprep.mubr.msk.f32.mxu1 %vm17054_vm9, %v17053_v10 }
0x2cae   : > { %16305 = vmatprep.subr.mxu1 %v17053_v10 }
0x2cb0   : > { %16298 = vmatmul.mubr.msk.f32.vlgmr.msra.gmra.mxu1 %vm114_vm3, %v18685_v20 }
0x2cb1   : > { %16307 = vmatprep.mubr.msk.f32.mxu1 %vm17054_vm9, %v17053_v10 }
0x2d6c   : > { %v18702_v16 = vpop.f32.mrf.mxu1 }
0x2d6e   : > { %v16287_v55 = vpop.f32.mrf.mxu1 }
0x2d6f   : > { %v19703_v55 = vld [vmem:[#allocation14_spill] sm:$0xff] }
0x2d70   : > { %v8240_v11 = vpop.f32.mrf.mxu1 }
0x2d71   : > { %v8241_v4 = vadd.f32 %v8240_v11, %v8167_v9  ;;  %v7999_v11 = vmul.f32 %v18607_v24, %v19703_v55 }
0x2d72   : > { %v16299_v8 = vpop.f32.mrf.mxu1 }
0x2d73   : > { %16301 = vmatpush3.msra.mxu0 %v8241_v4  ;;  %v8004_v4 = vrot.slane %v7999_v11, %v17318_v40 }
0x2d74   : > { %16303 = vmatmul.mubr.msk.f32.vlgmr.msra.gmra.mxu0 %vm331_vm7, %v18705_v15  ;;  %16310 = vmatprep.subr.mxu0 %v17053_v10 }
0x2d75   : > { %16311 = vmatpush3.msra.mxu0 %v17293_v33  ;;  %16318 = vmatprep.mubr.msk.f32.mxu0 %vm17054_vm9, %v17053_v10 }
0x2d76   : > { %16312 = vmatprep.subr.mxu0 %v17053_v10 }
0x2d77   : > { %16313 = vmatpush3.msra.mxu0 %v17300_v34 }
0x2d78   : > { %16314 = vmatprep.subr.mxu0 %v17053_v10 }
0x2d79   : > { %16315 = vmatpush3.msra.mxu0 %v17307_v35 }
0x2d7a   : > { %16316 = vmatprep.subr.mxu0 %v17053_v10 }
0x2d7b   : > { %16317 = vmatpush3.msra.mxu0 %v17358_v53 }
0x2d7c   : > { %16332 = vmatprep.subr.mxu0 %v17053_v10 }
0x2e34   : > { %v8313_v19 = vpop.f32.mrf.mxu0 }
0x2e35   : > { %v8317_v47 = vadd.f32 %v8313_v19, %v18629_v29  ;;  %v8788_v19 = vstv %s8779_s11  ;;  %s11557_s11 = smul.f32 -0.16666667, %s11556_s28 }
0x2e36   : > { %v16304_v45 = vpop.f32.mrf.mxu0 }
0x2e37   : > { %v18724_v58 = vadd.f32 %v8323_v30, %v8317_v47  ;;  %v8787_v30 = vsel %vm8786_vm15, %v17268_v17, 0.0  ;;  %v8073_v47 = vadd.f32 %v18702_v16, %v8004_v4  ;;  %v9013_v16 = vmul.f32 %v18797_v44, %v17314_v38  ;;  %vm11566_vm15 = vmand %vm76_vm4, %vm11565_vm14 }
0x2e39   : > { %v14926_v57 = vmul.f32 -1.442695, %v18724_v58 }
0x2e3b   : > { %16973 = vpow2.f32 %v14926_v57  ;;  %v8789_v57 = vmul.f32 %v8788_v19, %v8787_v30  ;;  %v18866_v30 = vld [vmem:[#allocation3 + $0x18] sm:$0xff] }
0x2e48   : > { %v16974_v13 = vpop.eup %16973 }
0x2e49   : > { %v8329_v36 = vadd.f32 1.0, %v16974_v13 }
0x2e4b   : > { %16975 = vrcp.f32 %v8329_v36 }
0x2e58   : > { %v16976_v37 = vpop.eup %16975 }
0x2e59   : > { %16306 = vmatpush3.msra.mxu1 %v16976_v37 }
0x2e5a   : > { %16308 = vmatmul.mubr.msk.f32.vlgmr.msra.gmra.mxu1 %vm331_vm7, %v17327_v48  ;;  %16321 = vmatprep.subr.mxu1 %v17053_v10 }
0x2e5b   : > { %16322 = vmatpush3.msra.mxu1 %v17332_v50  ;;  %16329 = vmatprep.mubr.msk.f32.mxu1 %vm17054_vm9, %v17053_v10 }
0x2e5c   : > { %16323 = vmatprep.subr.mxu1 %v17053_v10 }
0x2e5d   : > { %16324 = vmatpush3.msra.mxu1 %v17340_v51 }
0x2e5e   : > { %16325 = vmatprep.subr.mxu1 %v17053_v10 }
0x2e5f   : > { %16326 = vmatpush3.msra.mxu1 %v17349_v52 }
0x2e60   : > { %16327 = vmatprep.subr.mxu1 %v17053_v10 }
0x2e61   : > { %16328 = vmatpush3.msra.mxu1 %v17363_v54 }
0x2e62   : > { %16339 = vmatprep.subr.mxu1 %v17053_v10 }
0x2f1a   : > { %v8398_v29 = vpop.f32.mrf.mxu1 }
0x2f1b   : > { %16319 = vmatmul.mubr.msk.f32.vlgmr.msra.gmra.mxu0 %vm484_vm8, %v8398_v29  ;;  %16330 = vmatmul.mubr.msk.f32.vlgmr.msra.gmra.mxu1 %vm484_vm8, %v8398_v29 }
0x2f1c   : > { %v16309_v32 = vpop.f32.mrf.mxu1  ;;  %16333 = vmatpush3.msra.mxu0 %v17382_v60  ;;  %16340 = vmatpush3.msk.msra.mxu1 %vm250_vm0, %v19701_v59 }
0x2f1d   : > { %16341 = vmatprep.mubr.msk.f32.mxu1 %vm17054_vm9, %v17053_v10  ;;  %16334 = vmatprep.subr.mxu0 %v17053_v10 }
0x2f1e   : > { %16335 = vmatpush3.msra.mxu0 %v19702_v62  ;;  %16336 = vmatprep.mubr.msk.f32.mxu0 %vm17054_vm9, %v17053_v10 }
0x2f1f   : > { %16342 = vmatmul.mubr.msk.f32.vlgmr.msra.gmra.mxu1 %vm114_vm3, %v18685_v20  ;;  %16344 = vmatprep.subr.mxu0 %v17053_v10 }
0x2f20   : > { %16349 = vmatprep.subr.mxu1 %v17053_v10  ;;  %16353 = vmatprep.mubr.msk.f32.mxu1 %vm17054_vm9, %v17053_v10 }
0x2f21   : > { %16350 = vmatpush3.msra.mxu1 %v17195_v5 }
0x2f22   : > { %16351 = vmatprep.subr.mxu1 %v17053_v10 }
0x2f23   : > { %16352 = vmatpush3.msra.mxu1 %v17201_v6 }
0x2f24   : > { %16361 = vmatprep.subr.mxu1 %v17053_v10  ;;  %16354 = vmatmul.mubr.msk.f32.vlgmr.msra.gmra.mxu1 %vm137_vm2, %v18767_v2 }
0x2f25   : > { %16363 = vmatprep.mubr.msk.f32.mxu1 %vm17054_vm9, %v17053_v10 }
0x2fdb   : > { %v8471_v56 = vpop.f32.mrf.mxu0  ;;  %v8542_v49 = vpop.f32.mrf.mxu1 }
0x2fdc   : > { %v8475_v1 = vmul.f32 %v8471_v56, %v17409_v63  ;;  %v8546_v31 = vmul.f32 %v8542_v49, %v17411_v0  ;;  %v9018_v49 = vrot.slane %v9013_v16, %v17318_v40  ;;  %v18896_v16 = vstv %s9468_s25  ;;  %s12251_s25 = scvt.s32.f32 %s12250_s12 }
0x2fdd   : > { %v16320_v28 = vpop.f32.mrf.mxu0  ;;  %v16331_v22 = vpop.f32.mrf.mxu1 }
0x2fde   : > { %v8547_v23 = vadd.f32 %v8546_v31, %v8475_v1 }
0x2fdf   : > { %v8688_v20 = vpop.f32.mrf.mxu1 }
0x2fe0   : > { %v8548_v9 = vmul.f32 %v8547_v23, %v18672_v41  ;;  %v18780_v41 = vld [vmem:[#allocation2 + $0x10] sm:$0xff] }
0x2fe1   : > { %v16343_v27 = vpop.f32.mrf.mxu1 }
0x2fe2   : > { %16337 = vmatmul.mubr.msk.f32.vlgmr.msra.gmra.mxu0 %vm137_vm2, %v8548_v9 }
0x2fe3   : > { %16346 = vmatprep.mubr.msk.f32.mxu0 %vm17054_vm9, %v17053_v10 }
0x2fe4   : > { %v8862_v46 = vpop.f32.mrf.mxu1 }
0x2fe6   : > { %v16355_v43 = vpop.f32.mrf.mxu1 }
0x30a2   : > { %v8618_v26 = vpop.f32.mrf.mxu0 }
0x30a3   : > { %v8689_v39 = vadd.f32 %v8688_v20, %v8618_v26 }
0x30a4   : > { %v16338_v3 = vpop.f32.mrf.mxu0 }
0x30a5   : > { %16345 = vmatpush3.msra.mxu0 %v8689_v39 }
0x30a6   : > { %16347 = vmatmul.mubr.msk.f32.vlgmr.msra.gmra.mxu0 %vm331_vm7, %v18705_v15  ;;  %16356 = vmatprep.subr.mxu0 %v17053_v10  ;;  %v8781_v15 = vmul.f32 %v8780_v61, %v17271_v18 }
0x30a7   : > { %16357 = vmatpush3.msk.msra.mxu0 %vm250_vm0, %v17209_v7  ;;  %16358 = vmatprep.mubr.msk.f32.mxu0 %vm17054_vm9, %v17053_v10 }
0x30a8   : > { %16366 = vmatprep.subr.mxu0 %v17053_v10  ;;  %v8782_v8 = vadd.f32 %v8781_v15, %v17257_v14 }
0x30aa   : > { %16359 = vmatmul.mubr.msk.f32.vlgmr.msra.gmra.mxu0 %vm114_vm3, %v18780_v41  ;;  %v8784_v45 = vmul.f32 %v18797_v44, %v8782_v8 }
0x30ab   : > { %16368 = vmatprep.mubr.msk.f32.mxu0 %vm17054_vm9, %v17053_v10 }
0x30ac   : > { %v18804_v29 = vadd.f32 %v8789_v57, %v8784_v45 }
0x3166   : > { %v8758_v24 = vpop.f32.mrf.mxu0 }
0x3167   : > { %v18802_v13 = vadd.f32 %v8758_v24, %v8073_v47 }
0x3168   : > { %v16348_v36 = vpop.f32.mrf.mxu0 }
0x3169   : > { %v9475_v36 = vstv %s9471_s4  ;;  %s11558_s4 = sadd.f32 0.5, %s11557_s11 }
0x316a   : > { %v8935_v37 = vpop.f32.mrf.mxu0 }
0x316b   : > { %v8936_v32 = vadd.f32 %v8935_v37, %v8862_v46  ;;  %v8763_v37 = vmul.f32 %v18699_v25, %v19703_v55  ;;  %s11559_s30 = smul.f32 %s11558_s4, %s11553_s26  ;;  %s14764_s4 = sadd.s32 %s17044_s3, %s19700_s5 }
0x316c   : > { %v16360_v56 = vpop.f32.mrf.mxu0  ;;  %s15035_s12 = sshll.u32 %s14764_s4, 3  ;;  %s7376_s3 = sadd.s32 1, %s17044_s3  }
0x316d   : > { %16362 = vmatpush3.msra.mxu1 %v8936_v32  ;;  %v8768_v32 = vrot.slane %v8763_v37, %v17318_v40  ;;  %s14766_s19 = scalar_lea.vmem [#allocation2], %s15035_s12 }
0x316e   : > { %16364 = vmatmul.mubr.msk.f32.vlgmr.msra.gmra.mxu1 %vm331_vm7, %v18804_v29  ;;  %16371 = vmatprep.subr.mxu1 %v17053_v10 }
0x316f   : > { %16372 = vmatpush3.msra.mxu1 %v17293_v33  ;;  %16379 = vmatprep.mubr.msk.f32.mxu1 %vm17054_vm9, %v17053_v10 }
0x3170   : > { %16373 = vmatprep.subr.mxu1 %v17053_v10 }
0x3171   : > { %16374 = vmatpush3.msra.mxu1 %v17300_v34 }
0x3172   : > { %16375 = vmatprep.subr.mxu1 %v17053_v10 }
0x3173   : > { %16376 = vmatpush3.msra.mxu1 %v17307_v35 }
0x3174   : > { %16377 = vmatprep.subr.mxu1 %v17053_v10 }
0x3175   : > { %16378 = vmatpush3.msra.mxu1 %v17358_v53 }
0x3176   : > { %16393 = vmatprep.subr.mxu1 %v17053_v10 }
0x322e   : > { %v9008_v1 = vpop.f32.mrf.mxu1 }
0x322f   : > { %v9012_v31 = vadd.f32 %v9008_v1, %v18724_v58  ;;  %v9483_v1 = vstv %s9474_s14  ;;  %s12252_s14 = smul.f32 -0.16666667, %s12251_s25 }
0x3230   : > { %v16365_v28 = vpop.f32.mrf.mxu1 }
0x3231   : > { %v18823_v22 = vadd.f32 %v9018_v49, %v9012_v31  ;;  %v9482_v49 = vsel %vm9481_vm6, %v17268_v17, 0.0  ;;  %v8770_v31 = vadd.f32 %v8768_v32, %v18802_v13  ;;  %v9708_v13 = vmul.f32 %v18896_v16, %v17314_v38  ;;  %vm12261_vm6 = vmand %vm76_vm4, %vm12260_vm5 }
0x3233   : > { %v14938_v23 = vmul.f32 -1.442695, %v18823_v22 }
0x3235   : > { %16977 = vpow2.f32 %v14938_v23  ;;  %v9484_v23 = vmul.f32 %v9483_v1, %v9482_v49  ;;  %v18965_v49 = vld [vmem:[#allocation3 + $0x20] sm:$0xff] }
0x3242   : > { %v16978_v20 = vpop.eup %16977 }
0x3243   : > { %v9024_v9 = vadd.f32 1.0, %v16978_v20 }
0x3245   : > { %16979 = vrcp.f32 %v9024_v9 }
0x3252   : > { %v16980_v27 = vpop.eup %16979 }
0x3253   : > { %16367 = vmatpush3.msra.mxu0 %v16980_v27 }
0x3254   : > { %16369 = vmatmul.mubr.msk.f32.vlgmr.msra.gmra.mxu0 %vm331_vm7, %v17327_v48  ;;  %16382 = vmatprep.subr.mxu0 %v17053_v10 }
0x3255   : > { %16383 = vmatpush3.msra.mxu0 %v17332_v50  ;;  %16390 = vmatprep.mubr.msk.f32.mxu0 %vm17054_vm9, %v17053_v10 }
0x3256   : > { %16384 = vmatprep.subr.mxu0 %v17053_v10 }
0x3257   : > { %16385 = vmatpush3.msra.mxu0 %v17340_v51 }
0x3258   : > { %16386 = vmatprep.subr.mxu0 %v17053_v10 }
0x3259   : > { %16387 = vmatpush3.msra.mxu0 %v17349_v52 }
0x325a   : > { %16388 = vmatprep.subr.mxu0 %v17053_v10 }
0x325b   : > { %16389 = vmatpush3.msra.mxu0 %v17363_v54 }
0x325c   : > { %16400 = vmatprep.subr.mxu0 %v17053_v10 }
0x3314   : > { %v9093_v58 = vpop.f32.mrf.mxu0 }
0x3315   : > { %16380 = vmatmul.mubr.msk.f32.vlgmr.msra.gmra.mxu1 %vm484_vm8, %v9093_v58  ;;  %16391 = vmatmul.mubr.msk.f32.vlgmr.msra.gmra.mxu0 %vm484_vm8, %v9093_v58 }
0x3316   : > { %v16370_v26 = vpop.f32.mrf.mxu0  ;;  %16394 = vmatpush3.msra.mxu1 %v17382_v60  ;;  %16401 = vmatpush3.msk.msra.mxu0 %vm250_vm0, %v19701_v59 }
0x3317   : > { %16402 = vmatprep.mubr.msk.f32.mxu0 %vm17054_vm9, %v17053_v10  ;;  %16395 = vmatprep.subr.mxu1 %v17053_v10 }
0x3318   : > { %16396 = vmatpush3.msra.mxu1 %v19702_v62  ;;  %16397 = vmatprep.mubr.msk.f32.mxu1 %vm17054_vm9, %v17053_v10 }
0x3319   : > { %16403 = vmatmul.mubr.msk.f32.vlgmr.msra.gmra.mxu0 %vm114_vm3, %v18780_v41  ;;  %16405 = vmatprep.subr.mxu1 %v17053_v10 }
0x331a   : > { %16410 = vmatprep.subr.mxu0 %v17053_v10  ;;  %16414 = vmatprep.mubr.msk.f32.mxu0 %vm17054_vm9, %v17053_v10 }
0x331b   : > { %16411 = vmatpush3.msra.mxu0 %v17195_v5 }
0x331c   : > { %16412 = vmatprep.subr.mxu0 %v17053_v10 }
0x331d   : > { %16413 = vmatpush3.msra.mxu0 %v17201_v6 }
0x331e   : > { %16422 = vmatprep.subr.mxu0 %v17053_v10  ;;  %16415 = vmatmul.mubr.msk.f32.vlgmr.msra.gmra.mxu0 %vm137_vm2, %v18866_v30 }
0x331f   : > { %16424 = vmatprep.mubr.msk.f32.mxu0 %vm17054_vm9, %v17053_v10 }
0x33d5   : > { %v9166_v39 = vpop.f32.mrf.mxu1  ;;  %v9237_v3 = vpop.f32.mrf.mxu0 }
0x33d6   : > { %v9170_v46 = vmul.f32 %v9166_v39, %v17409_v63  ;;  %v9241_v41 = vmul.f32 %v9237_v3, %v17411_v0  ;;  %v9713_v3 = vrot.slane %v9708_v13, %v17318_v40  ;;  %v18995_v13 = vstv %s10163_s17  ;;  %s12946_s17 = scvt.s32.f32 %s12945_s2 }
0x33d7   : > { %v16381_v43 = vpop.f32.mrf.mxu1  ;;  %v16392_v61 = vpop.f32.mrf.mxu0 }
0x33d8   : > { %v9242_v11 = vadd.f32 %v9241_v41, %v9170_v46 }
0x33d9   : > { %v9383_v15 = vpop.f32.mrf.mxu0 }
0x33da   : > { %v9243_v4 = vmul.f32 %v9242_v11, %v18767_v2  ;;  %v18879_v2 = vld [vmem:[#allocation2 + $0x18] sm:$0xff] }
0x33db   : > { %v16404_v8 = vpop.f32.mrf.mxu0 }
0x33dc   : > { %16398 = vmatmul.mubr.msk.f32.vlgmr.msra.gmra.mxu1 %vm137_vm2, %v9243_v4 }
0x33dd   : > { %16407 = vmatprep.mubr.msk.f32.mxu1 %vm17054_vm9, %v17053_v10 }
0x33de   : > { %v9557_v45 = vpop.f32.mrf.mxu0 }
0x33e0   : > { %v16416_v57 = vpop.f32.mrf.mxu0 }
0x349c   : > { %v9313_v19 = vpop.f32.mrf.mxu1 }
0x349d   : > { %v9384_v47 = vadd.f32 %v9383_v15, %v9313_v19 }
0x349e   : > { %v16399_v24 = vpop.f32.mrf.mxu1 }
0x349f   : > { %16406 = vmatpush3.msra.mxu1 %v9384_v47 }
0x34a0   : > { %16408 = vmatmul.mubr.msk.f32.vlgmr.msra.gmra.mxu1 %vm331_vm7, %v18804_v29  ;;  %16417 = vmatprep.subr.mxu1 %v17053_v10  ;;  %v9476_v29 = vmul.f32 %v9475_v36, %v17271_v18 }
0x34a1   : > { %16418 = vmatpush3.msk.msra.mxu1 %vm250_vm0, %v17209_v7  ;;  %16419 = vmatprep.mubr.msk.f32.mxu1 %vm17054_vm9, %v17053_v10 }
0x34a2   : > { %16427 = vmatprep.subr.mxu1 %v17053_v10  ;;  %v9477_v56 = vadd.f32 %v9476_v29, %v17257_v14 }
0x34a4   : > { %16420 = vmatmul.mubr.msk.f32.vlgmr.msra.gmra.mxu1 %vm114_vm3, %v18879_v2  ;;  %v9479_v28 = vmul.f32 %v18896_v16, %v9477_v56 }
0x34a5   : > { %16429 = vmatprep.mubr.msk.f32.mxu1 %vm17054_vm9, %v17053_v10 }
0x34a6   : > { %v18903_v58 = vadd.f32 %v9484_v23, %v9479_v28 }
0x3560   : > { %v9453_v25 = vpop.f32.mrf.mxu1 }
0x3561   : > { %v18901_v20 = vadd.f32 %v9453_v25, %v8770_v31 }
0x3562   : > { %v16409_v9 = vpop.f32.mrf.mxu1 }
0x3563   : > { %v10170_v9 = vstv %s10166_s8  ;;  %s12253_s8 = sadd.f32 0.5, %s12252_s14 }
0x3564   : > { %v9630_v27 = vpop.f32.mrf.mxu1 }
0x3565   : > { %v9631_v26 = vadd.f32 %v9630_v27, %v9557_v45  ;;  %v9458_v27 = vmul.f32 %v18797_v44, %v19703_v55  ;;  %s12254_s13 = smul.f32 %s12253_s8, %s12248_s24 }
0x3566   : > { %v16421_v39 = vpop.f32.mrf.mxu1 }
0x3567   : > { %16423 = vmatpush3.msra.mxu0 %v9631_v26  ;;  %v9463_v26 = vrot.slane %v9458_v27, %v17318_v40 }
0x3568   : > { %16425 = vmatmul.mubr.msk.f32.vlgmr.msra.gmra.mxu0 %vm331_vm7, %v18903_v58  ;;  %16432 = vmatprep.subr.mxu0 %v17053_v10 }
0x3569   : > { %16433 = vmatpush3.msra.mxu0 %v17293_v33  ;;  %16440 = vmatprep.mubr.msk.f32.mxu0 %vm17054_vm9, %v17053_v10 }
0x356a   : > { %16434 = vmatprep.subr.mxu0 %v17053_v10 }
0x356b   : > { %16435 = vmatpush3.msra.mxu0 %v17300_v34 }
0x356c   : > { %16436 = vmatprep.subr.mxu0 %v17053_v10 }
0x356d   : > { %16437 = vmatpush3.msra.mxu0 %v17307_v35 }
0x356e   : > { %16438 = vmatprep.subr.mxu0 %v17053_v10 }
0x356f   : > { %16439 = vmatpush3.msra.mxu0 %v17358_v53 }
0x3570   : > { %16454 = vmatprep.subr.mxu0 %v17053_v10 }
0x3628   : > { %v9703_v46 = vpop.f32.mrf.mxu0 }
0x3629   : > { %v9707_v41 = vadd.f32 %v9703_v46, %v18823_v22  ;;  %v10178_v46 = vstv %s10169_s1  ;;  %s12947_s1 = smul.f32 -0.16666667, %s12946_s17 }
0x362a   : > { %v16426_v43 = vpop.f32.mrf.mxu0 }
0x362b   : > { %v18922_v61 = vadd.f32 %v9713_v3, %v9707_v41  ;;  %v10177_v3 = vsel %vm10176_vm11, %v17268_v17, 0.0  ;;  %v9465_v41 = vadd.f32 %v9463_v26, %v18901_v20  ;;  %v10403_v20 = vmul.f32 %v18995_v13, %v17314_v38  ;;  %vm12956_vm11 = vmand %vm76_vm4, %vm12955_vm10 }
0x362d   : > { %v14950_v11 = vmul.f32 -1.442695, %v18922_v61 }
0x362f   : > { %16981 = vpow2.f32 %v14950_v11  ;;  %v10179_v11 = vmul.f32 %v10178_v46, %v10177_v3  ;;  %v19064_v3 = vld [vmem:[#allocation3 + $0x28] sm:$0xff] }
0x363c   : > { %v16982_v15 = vpop.eup %16981 }
0x363d   : > { %v9719_v4 = vadd.f32 1.0, %v16982_v15 }
0x363f   : > { %16983 = vrcp.f32 %v9719_v4 }
0x364c   : > { %v16984_v8 = vpop.eup %16983 }
0x364d   : > { %16428 = vmatpush3.msra.mxu1 %v16984_v8 }
0x364e   : > { %16430 = vmatmul.mubr.msk.f32.vlgmr.msra.gmra.mxu1 %vm331_vm7, %v17327_v48  ;;  %16443 = vmatprep.subr.mxu1 %v17053_v10 }
0x364f   : > { %16444 = vmatpush3.msra.mxu1 %v17332_v50  ;;  %16451 = vmatprep.mubr.msk.f32.mxu1 %vm17054_vm9, %v17053_v10 }
0x3650   : > { %16445 = vmatprep.subr.mxu1 %v17053_v10 }
0x3651   : > { %16446 = vmatpush3.msra.mxu1 %v17340_v51 }
0x3652   : > { %16447 = vmatprep.subr.mxu1 %v17053_v10 }
0x3653   : > { %16448 = vmatpush3.msra.mxu1 %v17349_v52 }
0x3654   : > { %16449 = vmatprep.subr.mxu1 %v17053_v10 }
0x3655   : > { %16450 = vmatpush3.msra.mxu1 %v17363_v54 }
0x3656   : > { %16461 = vmatprep.subr.mxu1 %v17053_v10 }
0x370e   : > { %v9788_v22 = vpop.f32.mrf.mxu1 }
0x370f   : > { %16441 = vmatmul.mubr.msk.f32.vlgmr.msra.gmra.mxu0 %vm484_vm8, %v9788_v22  ;;  %16452 = vmatmul.mubr.msk.f32.vlgmr.msra.gmra.mxu1 %vm484_vm8, %v9788_v22 }
0x3710   : > { %v16431_v19 = vpop.f32.mrf.mxu1  ;;  %16455 = vmatpush3.msra.mxu0 %v17382_v60  ;;  %16462 = vmatpush3.msk.msra.mxu1 %vm250_vm0, %v19701_v59 }
0x3711   : > { %16463 = vmatprep.mubr.msk.f32.mxu1 %vm17054_vm9, %v17053_v10  ;;  %16456 = vmatprep.subr.mxu0 %v17053_v10 }
0x3712   : > { %16457 = vmatpush3.msra.mxu0 %v19702_v62  ;;  %16458 = vmatprep.mubr.msk.f32.mxu0 %vm17054_vm9, %v17053_v10 }
0x3713   : > { %16464 = vmatmul.mubr.msk.f32.vlgmr.msra.gmra.mxu1 %vm114_vm3, %v18879_v2  ;;  %16466 = vmatprep.subr.mxu0 %v17053_v10 }
0x3714   : > { %16471 = vmatprep.subr.mxu1 %v17053_v10  ;;  %16475 = vmatprep.mubr.msk.f32.mxu1 %vm17054_vm9, %v17053_v10 }
0x3715   : > { %16472 = vmatpush3.msra.mxu1 %v17195_v5 }
0x3716   : > { %16473 = vmatprep.subr.mxu1 %v17053_v10 }
0x3717   : > { %16474 = vmatpush3.msra.mxu1 %v17201_v6 }
0x3718   : > { %16483 = vmatprep.subr.mxu1 %v17053_v10  ;;  %16476 = vmatmul.mubr.msk.f32.vlgmr.msra.gmra.mxu1 %vm137_vm2, %v18965_v49 }
0x3719   : > { %16485 = vmatprep.mubr.msk.f32.mxu1 %vm17054_vm9, %v17053_v10 }
0x37cf   : > { %v9861_v47 = vpop.f32.mrf.mxu0  ;;  %v9932_v24 = vpop.f32.mrf.mxu1 }
0x37d0   : > { %v9865_v45 = vmul.f32 %v9861_v47, %v17409_v63  ;;  %v9936_v2 = vmul.f32 %v9932_v24, %v17411_v0  ;;  %v10408_v24 = vrot.slane %v10403_v20, %v17318_v40  ;;  %v19094_v20 = vstv %s10858_s7  ;;  %s13641_s7 = scvt.s32.f32 %s13640_s16 }
0x37d1   : > { %v16442_v57 = vpop.f32.mrf.mxu0  ;;  %v16453_v36 = vpop.f32.mrf.mxu1 }
0x37d2   : > { %v9937_v37 = vadd.f32 %v9936_v2, %v9865_v45 }
0x37d3   : > { %v10078_v29 = vpop.f32.mrf.mxu1 }
0x37d4   : > { %v9938_v32 = vmul.f32 %v9937_v37, %v18866_v30  ;;  %v18978_v30 = vld [vmem:[#allocation2 + $0x20] sm:$0xff] }
0x37d5   : > { %v16465_v56 = vpop.f32.mrf.mxu1 }
0x37d6   : > { %16459 = vmatmul.mubr.msk.f32.vlgmr.msra.gmra.mxu0 %vm137_vm2, %v9938_v32 }
0x37d7   : > { %16468 = vmatprep.mubr.msk.f32.mxu0 %vm17054_vm9, %v17053_v10 }
0x37d8   : > { %v10252_v28 = vpop.f32.mrf.mxu1 }
0x37da   : > { %v16477_v23 = vpop.f32.mrf.mxu1 }
0x3896   : > { %v10008_v1 = vpop.f32.mrf.mxu0 }
0x3897   : > { %v10079_v31 = vadd.f32 %v10078_v29, %v10008_v1 }
0x3898   : > { %v16460_v25 = vpop.f32.mrf.mxu0 }
0x3899   : > { %16467 = vmatpush3.msra.mxu0 %v10079_v31 }
0x389a   : > { %16469 = vmatmul.mubr.msk.f32.vlgmr.msra.gmra.mxu0 %vm331_vm7, %v18903_v58  ;;  %16478 = vmatprep.subr.mxu0 %v17053_v10  ;;  %v10171_v58 = vmul.f32 %v10170_v9, %v17271_v18 }
0x389b   : > { %16479 = vmatpush3.msk.msra.mxu0 %vm250_vm0, %v17209_v7  ;;  %16480 = vmatprep.mubr.msk.f32.mxu0 %vm17054_vm9, %v17053_v10 }
0x389c   : > { %16488 = vmatprep.subr.mxu0 %v17053_v10  ;;  %v10172_v39 = vadd.f32 %v10171_v58, %v17257_v14 }
0x389e   : > { %16481 = vmatmul.mubr.msk.f32.vlgmr.msra.gmra.mxu0 %vm114_vm3, %v18978_v30  ;;  %v10174_v43 = vmul.f32 %v18995_v13, %v10172_v39 }
0x389f   : > { %16490 = vmatprep.mubr.msk.f32.mxu0 %vm17054_vm9, %v17053_v10 }
0x38a0   : > { %v19002_v22 = vadd.f32 %v10179_v11, %v10174_v43 }
0x395a   : > { %v10148_v44 = vpop.f32.mrf.mxu0 }
0x395b   : > { %v19000_v15 = vadd.f32 %v10148_v44, %v9465_v41 }
0x395c   : > { %v16470_v4 = vpop.f32.mrf.mxu0 }
0x395d   : > { %v10865_v4 = vstv %s10861_s29  ;;  %s12948_s29 = sadd.f32 0.5, %s12947_s1 }
0x395e   : > { %v10325_v8 = vpop.f32.mrf.mxu0 }
0x395f   : > { %v10326_v19 = vadd.f32 %v10325_v8, %v10252_v28  ;;  %v10153_v8 = vmul.f32 %v18896_v16, %v19703_v55  ;;  %s12949_s22 = smul.f32 %s12948_s29, %s12943_s18 }
0x3960   : > { %v16482_v47 = vpop.f32.mrf.mxu0 }
0x3961   : > { %16484 = vmatpush3.msra.mxu1 %v10326_v19  ;;  %v10158_v19 = vrot.slane %v10153_v8, %v17318_v40 }
0x3962   : > { %16486 = vmatmul.mubr.msk.f32.vlgmr.msra.gmra.mxu1 %vm331_vm7, %v19002_v22  ;;  %16493 = vmatprep.subr.mxu1 %v17053_v10 }
0x3963   : > { %16494 = vmatpush3.msra.mxu1 %v17293_v33  ;;  %16501 = vmatprep.mubr.msk.f32.mxu1 %vm17054_vm9, %v17053_v10 }
0x3964   : > { %16495 = vmatprep.subr.mxu1 %v17053_v10 }
0x3965   : > { %16496 = vmatpush3.msra.mxu1 %v17300_v34 }
0x3966   : > { %16497 = vmatprep.subr.mxu1 %v17053_v10 }
0x3967   : > { %16498 = vmatpush3.msra.mxu1 %v17307_v35 }
0x3968   : > { %16499 = vmatprep.subr.mxu1 %v17053_v10 }
0x3969   : > { %16500 = vmatpush3.msra.mxu1 %v17358_v53 }
0x396a   : > { %16515 = vmatprep.subr.mxu1 %v17053_v10 }
0x3a22   : > { %v10398_v45 = vpop.f32.mrf.mxu1 }
0x3a23   : > { %v10402_v2 = vadd.f32 %v10398_v45, %v18922_v61  ;;  %v10873_v45 = vstv %s10864_s10  ;;  %s13642_s10 = smul.f32 -0.16666667, %s13641_s7 }
0x3a24   : > { %v16487_v57 = vpop.f32.mrf.mxu1 }
0x3a25   : > { %v19021_v36 = vadd.f32 %v10408_v24, %v10402_v2  ;;  %v10872_v24 = vsel %vm10871_vm13, %v17268_v17, 0.0  ;;  %v10160_v2 = vadd.f32 %v10158_v19, %v19000_v15  ;;  %v11098_v15 = vmul.f32 %v19094_v20, %v17314_v38  ;;  %vm13651_vm13 = vmand %vm76_vm4, %vm13650_vm12 }
0x3a27   : > { %v14962_v37 = vmul.f32 -1.442695, %v19021_v36 }
0x3a29   : > { %16985 = vpow2.f32 %v14962_v37  ;;  %v10874_v37 = vmul.f32 %v10873_v45, %v10872_v24  ;;  %v19163_v24 = vld [vmem:[#allocation3 + $0x30] sm:$0xff] }
0x3a36   : > { %v16986_v29 = vpop.eup %16985 }
0x3a37   : > { %v10414_v32 = vadd.f32 1.0, %v16986_v29 }
0x3a39   : > { %16987 = vrcp.f32 %v10414_v32 }
0x3a46   : > { %v16988_v56 = vpop.eup %16987 }
0x3a47   : > { %16489 = vmatpush3.msra.mxu0 %v16988_v56 }
0x3a48   : > { %16491 = vmatmul.mubr.msk.f32.vlgmr.msra.gmra.mxu0 %vm331_vm7, %v17327_v48  ;;  %16504 = vmatprep.subr.mxu0 %v17053_v10 }
0x3a49   : > { %16505 = vmatpush3.msra.mxu0 %v17332_v50  ;;  %16512 = vmatprep.mubr.msk.f32.mxu0 %vm17054_vm9, %v17053_v10 }
0x3a4a   : > { %16506 = vmatprep.subr.mxu0 %v17053_v10 }
0x3a4b   : > { %16507 = vmatpush3.msra.mxu0 %v17340_v51 }
0x3a4c   : > { %16508 = vmatprep.subr.mxu0 %v17053_v10 }
0x3a4d   : > { %16509 = vmatpush3.msra.mxu0 %v17349_v52 }
0x3a4e   : > { %16510 = vmatprep.subr.mxu0 %v17053_v10 }
0x3a4f   : > { %16511 = vmatpush3.msra.mxu0 %v17363_v54 }
0x3a50   : > { %16522 = vmatprep.subr.mxu0 %v17053_v10 }
0x3b08   : > { %v10483_v61 = vpop.f32.mrf.mxu0 }
0x3b09   : > { %16502 = vmatmul.mubr.msk.f32.vlgmr.msra.gmra.mxu1 %vm484_vm8, %v10483_v61  ;;  %16513 = vmatmul.mubr.msk.f32.vlgmr.msra.gmra.mxu0 %vm484_vm8, %v10483_v61 }
0x3b0a   : > { %v16492_v1 = vpop.f32.mrf.mxu0  ;;  %16516 = vmatpush3.msra.mxu1 %v17382_v60  ;;  %16523 = vmatpush3.msk.msra.mxu0 %vm250_vm0, %v19701_v59 }
0x3b0b   : > { %16524 = vmatprep.mubr.msk.f32.mxu0 %vm17054_vm9, %v17053_v10  ;;  %16517 = vmatprep.subr.mxu1 %v17053_v10 }
0x3b0c   : > { %16518 = vmatpush3.msra.mxu1 %v19702_v62  ;;  %16519 = vmatprep.mubr.msk.f32.mxu1 %vm17054_vm9, %v17053_v10 }
0x3b0d   : > { %16525 = vmatmul.mubr.msk.f32.vlgmr.msra.gmra.mxu0 %vm114_vm3, %v18978_v30  ;;  %16527 = vmatprep.subr.mxu1 %v17053_v10 }
0x3b0e   : > { %16532 = vmatprep.subr.mxu0 %v17053_v10  ;;  %16536 = vmatprep.mubr.msk.f32.mxu0 %vm17054_vm9, %v17053_v10 }
0x3b0f   : > { %16533 = vmatpush3.msra.mxu0 %v17195_v5 }
0x3b10   : > { %16534 = vmatprep.subr.mxu0 %v17053_v10 }
0x3b11   : > { %16535 = vmatpush3.msra.mxu0 %v17201_v6 }
0x3b12   : > { %16544 = vmatprep.subr.mxu0 %v17053_v10  ;;  %16537 = vmatmul.mubr.msk.f32.vlgmr.msra.gmra.mxu0 %vm137_vm2, %v19064_v3 }
0x3b13   : > { %16546 = vmatprep.mubr.msk.f32.mxu0 %vm17054_vm9, %v17053_v10 }
0x3bc9   : > { %v10556_v31 = vpop.f32.mrf.mxu1  ;;  %v10627_v25 = vpop.f32.mrf.mxu0 }
0x3bca   : > { %v10560_v28 = vmul.f32 %v10556_v31, %v17409_v63  ;;  %v10631_v30 = vmul.f32 %v10627_v25, %v17411_v0  ;;  %v11103_v25 = vrot.slane %v11098_v15, %v17318_v40  ;;  %v19193_v15 = vstv %s11553_s26 }
0x3bcb   : > { %v16503_v23 = vpop.f32.mrf.mxu1  ;;  %v16514_v9 = vpop.f32.mrf.mxu0 }
0x3bcc   : > { %v10632_v27 = vadd.f32 %v10631_v30, %v10560_v28 }
0x3bcd   : > { %v10773_v58 = vpop.f32.mrf.mxu0 }
0x3bce   : > { %v10633_v26 = vmul.f32 %v10632_v27, %v18965_v49  ;;  %v19077_v49 = vld [vmem:[#allocation2 + $0x28] sm:$0xff] }
0x3bcf   : > { %v16526_v39 = vpop.f32.mrf.mxu0 }
0x3bd0   : > { %16520 = vmatmul.mubr.msk.f32.vlgmr.msra.gmra.mxu1 %vm137_vm2, %v10633_v26 }
0x3bd1   : > { %16529 = vmatprep.mubr.msk.f32.mxu1 %vm17054_vm9, %v17053_v10 }
0x3bd2   : > { %v10947_v43 = vpop.f32.mrf.mxu0 }
0x3bd4   : > { %v16538_v11 = vpop.f32.mrf.mxu0 }
0x3c90   : > { %v10703_v46 = vpop.f32.mrf.mxu1 }
0x3c91   : > { %v10774_v41 = vadd.f32 %v10773_v58, %v10703_v46 }
0x3c92   : > { %v16521_v44 = vpop.f32.mrf.mxu1 }
0x3c93   : > { %16528 = vmatpush3.msra.mxu1 %v10774_v41 }
0x3c94   : > { %16530 = vmatmul.mubr.msk.f32.vlgmr.msra.gmra.mxu1 %vm331_vm7, %v19002_v22  ;;  %16539 = vmatprep.subr.mxu1 %v17053_v10  ;;  %v10866_v22 = vmul.f32 %v10865_v4, %v17271_v18 }
0x3c95   : > { %16540 = vmatpush3.msk.msra.mxu1 %vm250_vm0, %v17209_v7  ;;  %16541 = vmatprep.mubr.msk.f32.mxu1 %vm17054_vm9, %v17053_v10 }
0x3c96   : > { %16549 = vmatprep.subr.mxu1 %v17053_v10  ;;  %v10867_v47 = vadd.f32 %v10866_v22, %v17257_v14 }
0x3c98   : > { %16542 = vmatmul.mubr.msk.f32.vlgmr.msra.gmra.mxu1 %vm114_vm3, %v19077_v49  ;;  %v10869_v57 = vmul.f32 %v19094_v20, %v10867_v47 }
0x3c99   : > { %16551 = vmatprep.mubr.msk.f32.mxu1 %vm17054_vm9, %v17053_v10 }
0x3c9a   : > { %v19101_v61 = vadd.f32 %v10874_v37, %v10869_v57 }
0x3d54   : > { %v10843_v16 = vpop.f32.mrf.mxu1 }
0x3d55   : > { %v19099_v29 = vadd.f32 %v10843_v16, %v10160_v2 }
0x3d56   : > { %v16531_v32 = vpop.f32.mrf.mxu1 }
0x3d57   : > { %v11560_v32 = vstv %s11556_s28  ;;  %s13643_s28 = sadd.f32 0.5, %s13642_s10 }
0x3d58   : > { %v11020_v56 = vpop.f32.mrf.mxu1 }
0x3d59   : > { %v11021_v1 = vadd.f32 %v11020_v56, %v10947_v43  ;;  %v10848_v56 = vmul.f32 %v18995_v13, %v19703_v55  ;;  %s13644_s23 = smul.f32 %s13643_s28, %s13638_s15 }
0x3d5a   : > { %v16543_v31 = vpop.f32.mrf.mxu1 }
0x3d5b   : > { %16545 = vmatpush3.msra.mxu0 %v11021_v1  ;;  %v10853_v1 = vrot.slane %v10848_v56, %v17318_v40 }
0x3d5c   : > { %16547 = vmatmul.mubr.msk.f32.vlgmr.msra.gmra.mxu0 %vm331_vm7, %v19101_v61  ;;  %16554 = vmatprep.subr.mxu0 %v17053_v10 }
0x3d5d   : > { %16555 = vmatpush3.msra.mxu0 %v17293_v33  ;;  %16562 = vmatprep.mubr.msk.f32.mxu0 %vm17054_vm9, %v17053_v10 }
0x3d5e   : > { %16556 = vmatprep.subr.mxu0 %v17053_v10 }
0x3d5f   : > { %16557 = vmatpush3.msra.mxu0 %v17300_v34 }
0x3d60   : > { %16558 = vmatprep.subr.mxu0 %v17053_v10 }
0x3d61   : > { %16559 = vmatpush3.msra.mxu0 %v17307_v35 }
0x3d62   : > { %16560 = vmatprep.subr.mxu0 %v17053_v10 }
0x3d63   : > { %16561 = vmatpush3.msra.mxu0 %v17358_v53 }
0x3d64   : > { %16576 = vmatprep.subr.mxu0 %v17053_v10 }
0x3e1c   : > { %v11093_v28 = vpop.f32.mrf.mxu0 }
0x3e1d   : > { %v11097_v30 = vadd.f32 %v11093_v28, %v19021_v36  ;;  %v11568_v28 = vstv %s11559_s30  ;;  %s14332_s30 = scalar_lea.vmem [#allocation3], %s15030_s9 }
0x3e1e   : > { %v16548_v23 = vpop.f32.mrf.mxu0 }
0x3e1f   : > { %v19120_v9 = vadd.f32 %v11103_v25, %v11097_v30  ;;  %v11567_v25 = vsel %vm11566_vm15, %v17268_v17, 0.0  ;;  %v10855_v30 = vadd.f32 %v10853_v1, %v19099_v29  ;;  %v11793_v29 = vmul.f32 %v19193_v15, %v17314_v38 }
0x3e21   : > { %v14974_v27 = vmul.f32 -1.442695, %v19120_v9 }
0x3e23   : > { %16989 = vpow2.f32 %v14974_v27  ;;  %v11569_v27 = vmul.f32 %v11568_v28, %v11567_v25  ;;  %v19262_v25 = vld [vmem:[#allocation3 + $0x38] sm:$0xff] }
0x3e30   : > { %v16990_v58 = vpop.eup %16989 }
0x3e31   : > { %v11109_v26 = vadd.f32 1.0, %v16990_v58 }
0x3e33   : > { %16991 = vrcp.f32 %v11109_v26 }
0x3e40   : > { %v16992_v39 = vpop.eup %16991 }
0x3e41   : > { %16550 = vmatpush3.msra.mxu1 %v16992_v39 }
0x3e42   : > { %16552 = vmatmul.mubr.msk.f32.vlgmr.msra.gmra.mxu1 %vm331_vm7, %v17327_v48  ;;  %16565 = vmatprep.subr.mxu1 %v17053_v10 }
0x3e43   : > { %16566 = vmatpush3.msra.mxu1 %v17332_v50  ;;  %16573 = vmatprep.mubr.msk.f32.mxu1 %vm17054_vm9, %v17053_v10 }
0x3e44   : > { %16567 = vmatprep.subr.mxu1 %v17053_v10 }
0x3e45   : > { %16568 = vmatpush3.msra.mxu1 %v17340_v51 }
0x3e46   : > { %16569 = vmatprep.subr.mxu1 %v17053_v10 }
0x3e47   : > { %16570 = vmatpush3.msra.mxu1 %v17349_v52 }
0x3e48   : > { %16571 = vmatprep.subr.mxu1 %v17053_v10 }
0x3e49   : > { %16572 = vmatpush3.msra.mxu1 %v17363_v54 }
0x3e4a   : > { %16583 = vmatprep.subr.mxu1 %v17053_v10 }
0x3f02   : > { %v11178_v36 = vpop.f32.mrf.mxu1 }
0x3f03   : > { %16563 = vmatmul.mubr.msk.f32.vlgmr.msra.gmra.mxu0 %vm484_vm8, %v11178_v36  ;;  %16574 = vmatmul.mubr.msk.f32.vlgmr.msra.gmra.mxu1 %vm484_vm8, %v11178_v36 }
0x3f04   : > { %v16553_v46 = vpop.f32.mrf.mxu1  ;;  %16577 = vmatpush3.msra.mxu0 %v17382_v60  ;;  %16584 = vmatpush3.msk.msra.mxu1 %vm250_vm0, %v19701_v59 }
0x3f05   : > { %16585 = vmatprep.mubr.msk.f32.mxu1 %vm17054_vm9, %v17053_v10  ;;  %16578 = vmatprep.subr.mxu0 %v17053_v10 }
0x3f06   : > { %16579 = vmatpush3.msra.mxu0 %v19702_v62  ;;  %16580 = vmatprep.mubr.msk.f32.mxu0 %vm17054_vm9, %v17053_v10 }
0x3f07   : > { %16586 = vmatmul.mubr.msk.f32.vlgmr.msra.gmra.mxu1 %vm114_vm3, %v19077_v49  ;;  %16588 = vmatprep.subr.mxu0 %v17053_v10 }
0x3f08   : > { %16593 = vmatprep.subr.mxu1 %v17053_v10  ;;  %16597 = vmatprep.mubr.msk.f32.mxu1 %vm17054_vm9, %v17053_v10 }
0x3f09   : > { %16594 = vmatpush3.msra.mxu1 %v17195_v5 }
0x3f0a   : > { %16595 = vmatprep.subr.mxu1 %v17053_v10 }
0x3f0b   : > { %16596 = vmatpush3.msra.mxu1 %v17201_v6 }
0x3f0c   : > { %16605 = vmatprep.subr.mxu1 %v17053_v10  ;;  %16598 = vmatmul.mubr.msk.f32.vlgmr.msra.gmra.mxu1 %vm137_vm2, %v19163_v24 }
0x3f0d   : > { %16607 = vmatprep.mubr.msk.f32.mxu1 %vm17054_vm9, %v17053_v10 }
0x3fc3   : > { %v11251_v41 = vpop.f32.mrf.mxu0  ;;  %v11322_v44 = vpop.f32.mrf.mxu1 }
0x3fc4   : > { %v11255_v43 = vmul.f32 %v11251_v41, %v17409_v63  ;;  %v11326_v49 = vmul.f32 %v11322_v44, %v17411_v0  ;;  %v11798_v44 = vrot.slane %v11793_v29, %v17318_v40  ;;  %v19292_v29 = vstv %s12248_s24  ;;  %s19707_s24 = ssub.s32 9, %s19700_s5 }
0x3fc5   : > { %v16564_v11 = vpop.f32.mrf.mxu0  ;;  %v16575_v4 = vpop.f32.mrf.mxu1  ;;  %p7375_p13 = scmp.ge.s32.totalorder %s7376_s3, %s19707_s24 }
0x3fc6   : > { %v11327_v8 = vadd.f32 %v11326_v49, %v11255_v43 }
0x3fc7   : > { %v11468_v22 = vpop.f32.mrf.mxu1 }
0x3fc8   : > { %v11328_v19 = vmul.f32 %v11327_v8, %v19064_v3  ;;  %v19176_v3 = vld [vmem:[#allocation2 + $0x30] sm:$0xff] }
0x3fc9   : > { %v16587_v47 = vpop.f32.mrf.mxu1 }
0x3fca   : > { %16581 = vmatmul.mubr.msk.f32.vlgmr.msra.gmra.mxu0 %vm137_vm2, %v11328_v19 }
0x3fcb   : > { %16590 = vmatprep.mubr.msk.f32.mxu0 %vm17054_vm9, %v17053_v10 }
0x3fcc   : > { %v11642_v57 = vpop.f32.mrf.mxu1 }
0x3fce   : > { %v16599_v37 = vpop.f32.mrf.mxu1 }
0x408a   : > { %v11398_v45 = vpop.f32.mrf.mxu0 }
0x408b   : > { %v11469_v2 = vadd.f32 %v11468_v22, %v11398_v45 }
0x408c   : > { %v16582_v16 = vpop.f32.mrf.mxu0 }
0x408d   : > { %16589 = vmatpush3.msra.mxu0 %v11469_v2 }
0x408e   : > { %16591 = vmatmul.mubr.msk.f32.vlgmr.msra.gmra.mxu0 %vm331_vm7, %v19101_v61  ;;  %16600 = vmatprep.subr.mxu0 %v17053_v10  ;;  %v11561_v61 = vmul.f32 %v11560_v32, %v17271_v18 }
0x408f   : > { %16601 = vmatpush3.msk.msra.mxu0 %vm250_vm0, %v17209_v7  ;;  %16602 = vmatprep.mubr.msk.f32.mxu0 %vm17054_vm9, %v17053_v10 }
0x4090   : > { %16610 = vmatprep.subr.mxu0 %v17053_v10  ;;  %v11562_v31 = vadd.f32 %v11561_v61, %v17257_v14 }
0x4092   : > { %16603 = vmatmul.mubr.msk.f32.vlgmr.msra.gmra.mxu0 %vm114_vm3, %v19176_v3  ;;  %v11564_v23 = vmul.f32 %v19193_v15, %v11562_v31 }
0x4093   : > { %16612 = vmatprep.mubr.msk.f32.mxu0 %vm17054_vm9, %v17053_v10 }
0x4094   : > { %v19200_v36 = vadd.f32 %v11569_v27, %v11564_v23 }
0x414e   : > { %v11538_v13 = vpop.f32.mrf.mxu0 }
0x414f   : > { %v19198_v58 = vadd.f32 %v11538_v13, %v10855_v30 }
0x4150   : > { %v16592_v26 = vpop.f32.mrf.mxu0 }
0x4151   : > { %v12255_v26 = vstv %s12251_s25  ;;  %s14770_s25 = scalar_lea.vmem [#allocation3], %s15035_s12 }
0x4152   : > { %v11715_v39 = vpop.f32.mrf.mxu0 }
0x4153   : > { %v11716_v46 = vadd.f32 %v11715_v39, %v11642_v57  ;;  %v11543_v39 = vmul.f32 %v19094_v20, %v19703_v55 }
0x4154   : > { %v16604_v41 = vpop.f32.mrf.mxu0 }
0x4155   : > { %16606 = vmatpush3.msra.mxu1 %v11716_v46  ;;  %v11548_v46 = vrot.slane %v11543_v39, %v17318_v40 }
0x4156   : > { %16608 = vmatmul.mubr.msk.f32.vlgmr.msra.gmra.mxu1 %vm331_vm7, %v19200_v36  ;;  %16615 = vmatprep.subr.mxu1 %v17053_v10 }
0x4157   : > { %16616 = vmatpush3.msra.mxu1 %v17293_v33  ;;  %16623 = vmatprep.mubr.msk.f32.mxu1 %vm17054_vm9, %v17053_v10 }
0x4158   : > { %16617 = vmatprep.subr.mxu1 %v17053_v10 }
0x4159   : > { %16618 = vmatpush3.msra.mxu1 %v17300_v34 }
0x415a   : > { %16619 = vmatprep.subr.mxu1 %v17053_v10 }
0x415b   : > { %16620 = vmatpush3.msra.mxu1 %v17307_v35 }
0x415c   : > { %16621 = vmatprep.subr.mxu1 %v17053_v10 }
0x415d   : > { %16622 = vmatpush3.msra.mxu1 %v17358_v53 }
0x415e   : > { %16637 = vmatprep.subr.mxu1 %v17053_v10 }
0x4216   : > { %v11788_v43 = vpop.f32.mrf.mxu1 }
0x4217   : > { %v11792_v49 = vadd.f32 %v11788_v43, %v19120_v9  ;;  %v12263_v43 = vstv %s12254_s13 }
0x4218   : > { %v16609_v11 = vpop.f32.mrf.mxu1 }
0x4219   : > { %v19219_v4 = vadd.f32 %v11798_v44, %v11792_v49  ;;  %v12262_v44 = vsel %vm12261_vm6, %v17268_v17, 0.0  ;;  %v11550_v49 = vadd.f32 %v11548_v46, %v19198_v58  ;;  %v12488_v58 = vmul.f32 %v19292_v29, %v17314_v38 }
0x421b   : > { %v14986_v8 = vmul.f32 -1.442695, %v19219_v4 }
0x421d   : > { %16993 = vpow2.f32 %v14986_v8  ;;  %v12264_v8 = vmul.f32 %v12263_v43, %v12262_v44  ;;  %v19361_v44 = vld [vmem:[#allocation3 + $0x40] sm:$0xff] }
0x422a   : > { %v16994_v22 = vpop.eup %16993 }
0x422b   : > { %v11804_v19 = vadd.f32 1.0, %v16994_v22 }
0x422d   : > { %16995 = vrcp.f32 %v11804_v19 }
0x423a   : > { %v16996_v47 = vpop.eup %16995 }
0x423b   : > { %16611 = vmatpush3.msra.mxu0 %v16996_v47 }
0x423c   : > { %16613 = vmatmul.mubr.msk.f32.vlgmr.msra.gmra.mxu0 %vm331_vm7, %v17327_v48  ;;  %16626 = vmatprep.subr.mxu0 %v17053_v10 }
0x423d   : > { %16627 = vmatpush3.msra.mxu0 %v17332_v50  ;;  %16634 = vmatprep.mubr.msk.f32.mxu0 %vm17054_vm9, %v17053_v10 }
0x423e   : > { %16628 = vmatprep.subr.mxu0 %v17053_v10 }
0x423f   : > { %16629 = vmatpush3.msra.mxu0 %v17340_v51 }
0x4240   : > { %16630 = vmatprep.subr.mxu0 %v17053_v10 }
0x4241   : > { %16631 = vmatpush3.msra.mxu0 %v17349_v52 }
0x4242   : > { %16632 = vmatprep.subr.mxu0 %v17053_v10 }
0x4243   : > { %16633 = vmatpush3.msra.mxu0 %v17363_v54 }
0x4244   : > { %16644 = vmatprep.subr.mxu0 %v17053_v10 }
0x42fc   : > { %v11873_v9 = vpop.f32.mrf.mxu0 }
0x42fd   : > { %16624 = vmatmul.mubr.msk.f32.vlgmr.msra.gmra.mxu1 %vm484_vm8, %v11873_v9  ;;  %16635 = vmatmul.mubr.msk.f32.vlgmr.msra.gmra.mxu0 %vm484_vm8, %v11873_v9 }
0x42fe   : > { %v16614_v45 = vpop.f32.mrf.mxu0  ;;  %16638 = vmatpush3.msra.mxu1 %v17382_v60  ;;  %16645 = vmatpush3.msk.msra.mxu0 %vm250_vm0, %v19701_v59 }
0x42ff   : > { %16646 = vmatprep.mubr.msk.f32.mxu0 %vm17054_vm9, %v17053_v10  ;;  %16639 = vmatprep.subr.mxu1 %v17053_v10 }
0x4300   : > { %16640 = vmatpush3.msra.mxu1 %v19702_v62  ;;  %16641 = vmatprep.mubr.msk.f32.mxu1 %vm17054_vm9, %v17053_v10 }
0x4301   : > { %16647 = vmatmul.mubr.msk.f32.vlgmr.msra.gmra.mxu0 %vm114_vm3, %v19176_v3  ;;  %16649 = vmatprep.subr.mxu1 %v17053_v10 }
0x4302   : > { %16654 = vmatprep.subr.mxu0 %v17053_v10  ;;  %16658 = vmatprep.mubr.msk.f32.mxu0 %vm17054_vm9, %v17053_v10 }
0x4303   : > { %16655 = vmatpush3.msra.mxu0 %v17195_v5 }
0x4304   : > { %16656 = vmatprep.subr.mxu0 %v17053_v10 }
0x4305   : > { %16657 = vmatpush3.msra.mxu0 %v17201_v6 }
0x4306   : > { %16666 = vmatprep.subr.mxu0 %v17053_v10  ;;  %16659 = vmatmul.mubr.msk.f32.vlgmr.msra.gmra.mxu0 %vm137_vm2, %v19262_v25 }
0x4307   : > { %16668 = vmatprep.mubr.msk.f32.mxu0 %vm17054_vm9, %v17053_v10 }
0x43bd   : > { %v11946_v2 = vpop.f32.mrf.mxu1  ;;  %v12017_v16 = vpop.f32.mrf.mxu0 }
0x43be   : > { %v11950_v57 = vmul.f32 %v11946_v2, %v17409_v63  ;;  %v12021_v3 = vmul.f32 %v12017_v16, %v17411_v0  ;;  %v12493_v16 = vrot.slane %v12488_v58, %v17318_v40  ;;  %v19391_v58 = vstv %s12943_s18 }
0x43bf   : > { %v16625_v37 = vpop.f32.mrf.mxu1  ;;  %v16636_v32 = vpop.f32.mrf.mxu0 }
0x43c0   : > { %v12022_v56 = vadd.f32 %v12021_v3, %v11950_v57 }
0x43c1   : > { %v12163_v61 = vpop.f32.mrf.mxu0 }
0x43c2   : > { %v12023_v1 = vmul.f32 %v12022_v56, %v19163_v24  ;;  %v19275_v24 = vld [vmem:[#allocation2 + $0x38] sm:$0xff] }
0x43c3   : > { %v16648_v31 = vpop.f32.mrf.mxu0 }
0x43c4   : > { %16642 = vmatmul.mubr.msk.f32.vlgmr.msra.gmra.mxu1 %vm137_vm2, %v12023_v1 }
0x43c5   : > { %16651 = vmatprep.mubr.msk.f32.mxu1 %vm17054_vm9, %v17053_v10 }
0x43c6   : > { %v12337_v23 = vpop.f32.mrf.mxu0 }
0x43c8   : > { %v16660_v27 = vpop.f32.mrf.mxu0 }
0x4484   : > { %v12093_v28 = vpop.f32.mrf.mxu1 }
0x4485   : > { %v12164_v30 = vadd.f32 %v12163_v61, %v12093_v28 }
0x4486   : > { %v16643_v13 = vpop.f32.mrf.mxu1 }
0x4487   : > { %16650 = vmatpush3.msra.mxu1 %v12164_v30 }
0x4488   : > { %16652 = vmatmul.mubr.msk.f32.vlgmr.msra.gmra.mxu1 %vm331_vm7, %v19200_v36  ;;  %16661 = vmatprep.subr.mxu1 %v17053_v10  ;;  %v12256_v36 = vmul.f32 %v12255_v26, %v17271_v18 }
0x4489   : > { %16662 = vmatpush3.msk.msra.mxu1 %vm250_vm0, %v17209_v7  ;;  %16663 = vmatprep.mubr.msk.f32.mxu1 %vm17054_vm9, %v17053_v10 }
0x448a   : > { %16671 = vmatprep.subr.mxu1 %v17053_v10  ;;  %v12257_v41 = vadd.f32 %v12256_v36, %v17257_v14 }
0x448c   : > { %16664 = vmatmul.mubr.msk.f32.vlgmr.msra.gmra.mxu1 %vm114_vm3, %v19275_v24  ;;  %v12259_v11 = vmul.f32 %v19292_v29, %v12257_v41 }
0x448d   : > { %16673 = vmatprep.mubr.msk.f32.mxu1 %vm17054_vm9, %v17053_v10 }
0x448e   : > { %v19299_v9 = vadd.f32 %v12264_v8, %v12259_v11 }
0x4548   : > { %v12233_v20 = vpop.f32.mrf.mxu1 }
0x4549   : > { %v19297_v22 = vadd.f32 %v12233_v20, %v11550_v49 }
0x454a   : > { %v16653_v19 = vpop.f32.mrf.mxu1 }
0x454b   : > { %v12950_v19 = vstv %s12946_s17 }
0x454c   : > { %v12410_v47 = vpop.f32.mrf.mxu1 }
0x454d   : > { %v12411_v45 = vadd.f32 %v12410_v47, %v12337_v23  ;;  %v12238_v47 = vmul.f32 %v19193_v15, %v19703_v55 }
0x454e   : > { %v16665_v2 = vpop.f32.mrf.mxu1 }
0x454f   : > { %16667 = vmatpush3.msra.mxu0 %v12411_v45  ;;  %v12243_v45 = vrot.slane %v12238_v47, %v17318_v40 }
0x4550   : > { %16669 = vmatmul.mubr.msk.f32.vlgmr.msra.gmra.mxu0 %vm331_vm7, %v19299_v9  ;;  %16676 = vmatprep.subr.mxu0 %v17053_v10 }
0x4551   : > { %16677 = vmatpush3.msra.mxu0 %v17293_v33  ;;  %16684 = vmatprep.mubr.msk.f32.mxu0 %vm17054_vm9, %v17053_v10 }
0x4552   : > { %16678 = vmatprep.subr.mxu0 %v17053_v10 }
0x4553   : > { %16679 = vmatpush3.msra.mxu0 %v17300_v34 }
0x4554   : > { %16680 = vmatprep.subr.mxu0 %v17053_v10 }
0x4555   : > { %16681 = vmatpush3.msra.mxu0 %v17307_v35 }
0x4556   : > { %16682 = vmatprep.subr.mxu0 %v17053_v10 }
0x4557   : > { %16683 = vmatpush3.msra.mxu0 %v17358_v53 }
0x4558   : > { %16698 = vmatprep.subr.mxu0 %v17053_v10 }
0x4610   : > { %v12483_v57 = vpop.f32.mrf.mxu0 }
0x4611   : > { %v12487_v3 = vadd.f32 %v12483_v57, %v19219_v4  ;;  %v12958_v57 = vstv %s12949_s22 }
0x4612   : > { %v16670_v37 = vpop.f32.mrf.mxu0 }
0x4613   : > { %v19318_v32 = vadd.f32 %v12493_v16, %v12487_v3  ;;  %v12957_v16 = vsel %vm12956_vm11, %v17268_v17, 0.0  ;;  %v12245_v3 = vadd.f32 %v12243_v45, %v19297_v22  ;;  %v13183_v22 = vmul.f32 %v19391_v58, %v17314_v38 }
0x4615   : > { %v14998_v56 = vmul.f32 -1.442695, %v19318_v32 }
0x4617   : > { %16997 = vpow2.f32 %v14998_v56  ;;  %v12959_v56 = vmul.f32 %v12958_v57, %v12957_v16  ;;  %v19460_v16 = vld [vmem:[#allocation3 + $0x48] sm:$0xff] }
0x4624   : > { %v16998_v61 = vpop.eup %16997 }
0x4625   : > { %v12499_v1 = vadd.f32 1.0, %v16998_v61 }
0x4627   : > { %16999 = vrcp.f32 %v12499_v1 }
0x4634   : > { %v17000_v31 = vpop.eup %16999 }
0x4635   : > { %16672 = vmatpush3.msra.mxu1 %v17000_v31 }
0x4636   : > { %16674 = vmatmul.mubr.msk.f32.vlgmr.msra.gmra.mxu1 %vm331_vm7, %v17327_v48  ;;  %16687 = vmatprep.subr.mxu1 %v17053_v10 }
0x4637   : > { %16688 = vmatpush3.msra.mxu1 %v17332_v50  ;;  %16695 = vmatprep.mubr.msk.f32.mxu1 %vm17054_vm9, %v17053_v10 }
0x4638   : > { %16689 = vmatprep.subr.mxu1 %v17053_v10 }
0x4639   : > { %16690 = vmatpush3.msra.mxu1 %v17340_v51 }
0x463a   : > { %16691 = vmatprep.subr.mxu1 %v17053_v10 }
0x463b   : > { %16692 = vmatpush3.msra.mxu1 %v17349_v52 }
0x463c   : > { %16693 = vmatprep.subr.mxu1 %v17053_v10 }
0x463d   : > { %16694 = vmatpush3.msra.mxu1 %v17363_v54 }
0x463e   : > { %16705 = vmatprep.subr.mxu1 %v17053_v10 }
0x46f6   : > { %v12568_v4 = vpop.f32.mrf.mxu1 }
0x46f7   : > { %16685 = vmatmul.mubr.msk.f32.vlgmr.msra.gmra.mxu0 %vm484_vm8, %v12568_v4  ;;  %16696 = vmatmul.mubr.msk.f32.vlgmr.msra.gmra.mxu1 %vm484_vm8, %v12568_v4 }
0x46f8   : > { %v16675_v28 = vpop.f32.mrf.mxu1  ;;  %16699 = vmatpush3.msra.mxu0 %v17382_v60  ;;  %16706 = vmatpush3.msk.msra.mxu1 %vm250_vm0, %v19701_v59 }
0x46f9   : > { %16707 = vmatprep.mubr.msk.f32.mxu1 %vm17054_vm9, %v17053_v10  ;;  %16700 = vmatprep.subr.mxu0 %v17053_v10 }
0x46fa   : > { %16701 = vmatpush3.msra.mxu0 %v19702_v62  ;;  %16702 = vmatprep.mubr.msk.f32.mxu0 %vm17054_vm9, %v17053_v10 }
0x46fb   : > { %16708 = vmatmul.mubr.msk.f32.vlgmr.msra.gmra.mxu1 %vm114_vm3, %v19275_v24  ;;  %16710 = vmatprep.subr.mxu0 %v17053_v10 }
0x46fc   : > { %16715 = vmatprep.subr.mxu1 %v17053_v10  ;;  %16719 = vmatprep.mubr.msk.f32.mxu1 %vm17054_vm9, %v17053_v10 }
0x46fd   : > { %16716 = vmatpush3.msra.mxu1 %v17195_v5 }
0x46fe   : > { %16717 = vmatprep.subr.mxu1 %v17053_v10 }
0x46ff   : > { %16718 = vmatpush3.msra.mxu1 %v17201_v6 }
0x4700   : > { %16727 = vmatprep.subr.mxu1 %v17053_v10  ;;  %16720 = vmatmul.mubr.msk.f32.vlgmr.msra.gmra.mxu1 %vm137_vm2, %v19361_v44 }
0x4701   : > { %16729 = vmatprep.mubr.msk.f32.mxu1 %vm17054_vm9, %v17053_v10 }
0x47b7   : > { %v12641_v30 = vpop.f32.mrf.mxu0  ;;  %v12712_v13 = vpop.f32.mrf.mxu1 }
0x47b8   : > { %v12645_v23 = vmul.f32 %v12641_v30, %v17409_v63  ;;  %v12716_v24 = vmul.f32 %v12712_v13, %v17411_v0  ;;  %v13188_v13 = vrot.slane %v13183_v22, %v17318_v40  ;;  %v19490_v22 = vstv %s13638_s15 }
0x47b9   : > { %v16686_v27 = vpop.f32.mrf.mxu0  ;;  %v16697_v26 = vpop.f32.mrf.mxu1 }
0x47ba   : > { %v12717_v39 = vadd.f32 %v12716_v24, %v12645_v23 }
0x47bb   : > { %v12858_v36 = vpop.f32.mrf.mxu1 }
0x47bc   : > { %v12718_v46 = vmul.f32 %v12717_v39, %v19262_v25  ;;  %v19374_v25 = vld [vmem:[#allocation2 + $0x40] sm:$0xff] }
0x47bd   : > { %v16709_v41 = vpop.f32.mrf.mxu1 }
0x47be   : > { %16703 = vmatmul.mubr.msk.f32.vlgmr.msra.gmra.mxu0 %vm137_vm2, %v12718_v46 }
0x47bf   : > { %16712 = vmatprep.mubr.msk.f32.mxu0 %vm17054_vm9, %v17053_v10 }
0x47c0   : > { %v13032_v11 = vpop.f32.mrf.mxu1 }
0x47c2   : > { %v16721_v8 = vpop.f32.mrf.mxu1 }
0x487e   : > { %v12788_v43 = vpop.f32.mrf.mxu0 }
0x487f   : > { %v12859_v49 = vadd.f32 %v12858_v36, %v12788_v43 }
0x4880   : > { %v16704_v20 = vpop.f32.mrf.mxu0 }
0x4881   : > { %16711 = vmatpush3.msra.mxu0 %v12859_v49 }
0x4882   : > { %16713 = vmatmul.mubr.msk.f32.vlgmr.msra.gmra.mxu0 %vm331_vm7, %v19299_v9  ;;  %16722 = vmatprep.subr.mxu0 %v17053_v10  ;;  %v12951_v9 = vmul.f32 %v12950_v19, %v17271_v18 }
0x4883   : > { %16723 = vmatpush3.msk.msra.mxu0 %vm250_vm0, %v17209_v7  ;;  %16724 = vmatprep.mubr.msk.f32.mxu0 %vm17054_vm9, %v17053_v10 }
0x4884   : > { %16732 = vmatprep.subr.mxu0 %v17053_v10  ;;  %v12952_v2 = vadd.f32 %v12951_v9, %v17257_v14 }
0x4886   : > { %16725 = vmatmul.mubr.msk.f32.vlgmr.msra.gmra.mxu0 %vm114_vm3, %v19374_v25  ;;  %v12954_v37 = vmul.f32 %v19391_v58, %v12952_v2 }
0x4887   : > { %16734 = vmatprep.mubr.msk.f32.mxu0 %vm17054_vm9, %v17053_v10 }
0x4888   : > { %v19398_v4 = vadd.f32 %v12959_v56, %v12954_v37 }
0x4942   : > { %v12928_v15 = vpop.f32.mrf.mxu0 }
0x4943   : > { %v19396_v61 = vadd.f32 %v12928_v15, %v12245_v3 }
0x4944   : > { %v16714_v1 = vpop.f32.mrf.mxu0 }
0x4945   : > { %v13645_v1 = vstv %s13641_s7 }
0x4946   : > { %v13105_v31 = vpop.f32.mrf.mxu0 }
0x4947   : > { %v13106_v28 = vadd.f32 %v13105_v31, %v13032_v11  ;;  %v12933_v31 = vmul.f32 %v19292_v29, %v19703_v55 }
0x4948   : > { %v16726_v30 = vpop.f32.mrf.mxu0 }
0x4949   : > { %16728 = vmatpush3.msra.mxu1 %v13106_v28  ;;  %v12938_v28 = vrot.slane %v12933_v31, %v17318_v40 }
0x494a   : > { %16730 = vmatmul.mubr.msk.f32.vlgmr.msra.gmra.mxu1 %vm331_vm7, %v19398_v4  ;;  %16737 = vmatprep.subr.mxu1 %v17053_v10 }
0x494b   : > { %16738 = vmatpush3.msra.mxu1 %v17293_v33  ;;  %16745 = vmatprep.mubr.msk.f32.mxu1 %vm17054_vm9, %v17053_v10 }
0x494c   : > { %16739 = vmatprep.subr.mxu1 %v17053_v10 }
0x494d   : > { %16740 = vmatpush3.msra.mxu1 %v17300_v34 }
0x494e   : > { %16741 = vmatprep.subr.mxu1 %v17053_v10 }
0x494f   : > { %16742 = vmatpush3.msra.mxu1 %v17307_v35 }
0x4950   : > { %16743 = vmatprep.subr.mxu1 %v17053_v10 }
0x4951   : > { %16744 = vmatpush3.msra.mxu1 %v17358_v53 }
0x4952   : > { %16759 = vmatprep.subr.mxu1 %v17053_v10 }
0x4a0a   : > { %v13178_v23 = vpop.f32.mrf.mxu1 }
0x4a0b   : > { %v13182_v24 = vadd.f32 %v13178_v23, %v19318_v32  ;;  %v13653_v23 = vstv %s13644_s23 }
0x4a0c   : > { %v16731_v27 = vpop.f32.mrf.mxu1 }
0x4a0d   : > { %v19417_v26 = vadd.f32 %v13188_v13, %v13182_v24  ;;  %v13652_v13 = vsel %vm13651_vm13, %v17268_v17, 0.0  ;;  %v12940_v24 = vadd.f32 %v12938_v28, %v19396_v61  ;;  %v13878_v61 = vmul.f32 %v19490_v22, %v17314_v38 }
0x4a0e   : > { %v13654_v27 = vmul.f32 %v13653_v23, %v13652_v13 }
0x4a0f   : > { %v15010_v39 = vmul.f32 -1.442695, %v19417_v26 }
0x4a11   : > { %17001 = vpow2.f32 %v15010_v39 }
0x4a1e   : > { %v17002_v36 = vpop.eup %17001 }
0x4a1f   : > { %v13194_v46 = vadd.f32 1.0, %v17002_v36 }
0x4a21   : > { %17003 = vrcp.f32 %v13194_v46 }
0x4a2e   : > { %v17004_v41 = vpop.eup %17003 }
0x4a2f   : > { %16733 = vmatpush3.msra.mxu0 %v17004_v41 }
0x4a30   : > { %16735 = vmatmul.mubr.msk.f32.vlgmr.msra.gmra.mxu0 %vm331_vm7, %v17327_v48  ;;  %16748 = vmatprep.subr.mxu0 %v17053_v10 }
0x4a31   : > { %16749 = vmatpush3.msra.mxu0 %v17332_v50  ;;  %16756 = vmatprep.mubr.msk.f32.mxu0 %vm17054_vm9, %v17053_v10 }
0x4a32   : > { %16750 = vmatprep.subr.mxu0 %v17053_v10 }
0x4a33   : > { %16751 = vmatpush3.msra.mxu0 %v17340_v51 }
0x4a34   : > { %16752 = vmatprep.subr.mxu0 %v17053_v10 }
0x4a35   : > { %16753 = vmatpush3.msra.mxu0 %v17349_v52 }
0x4a36   : > { %16754 = vmatprep.subr.mxu0 %v17053_v10 }
0x4a37   : > { %16755 = vmatpush3.msra.mxu0 %v17363_v54 }
0x4a38   : > { %16766 = vmatprep.subr.mxu0 %v17053_v10 }
0x4af0   : > { %v13263_v32 = vpop.f32.mrf.mxu0 }
0x4af1   : > { %16746 = vmatmul.mubr.msk.f32.vlgmr.msra.gmra.mxu1 %vm484_vm8, %v13263_v32  ;;  %16757 = vmatmul.mubr.msk.f32.vlgmr.msra.gmra.mxu0 %vm484_vm8, %v13263_v32 }
0x4af2   : > { %v16736_v43 = vpop.f32.mrf.mxu0  ;;  %16760 = vmatpush3.msra.mxu1 %v17382_v60  ;;  %16767 = vmatpush3.msk.msra.mxu0 %vm250_vm0, %v19701_v59 }
0x4af3   : > { %16768 = vmatprep.mubr.msk.f32.mxu0 %vm17054_vm9, %v17053_v10  ;;  %16761 = vmatprep.subr.mxu1 %v17053_v10 }
0x4af4   : > { %16762 = vmatpush3.msra.mxu1 %v19702_v62  ;;  %16763 = vmatprep.mubr.msk.f32.mxu1 %vm17054_vm9, %v17053_v10 }
0x4af5   : > { %16769 = vmatmul.mubr.msk.f32.vlgmr.msra.gmra.mxu0 %vm114_vm3, %v19374_v25  ;;  %16771 = vmatprep.subr.mxu1 %v17053_v10 }
0x4af6   : > { %16776 = vmatprep.subr.mxu0 %v17053_v10  ;;  %16780 = vmatprep.mubr.msk.f32.mxu0 %vm17054_vm9, %v17053_v10 }
0x4af7   : > { %16777 = vmatpush3.msra.mxu0 %v17195_v5 }
0x4af8   : > { %16778 = vmatprep.subr.mxu0 %v17053_v10 }
0x4af9   : > { %16779 = vmatpush3.msra.mxu0 %v17201_v6 }
0x4afa   : > { %16788 = vmatprep.subr.mxu0 %v17053_v10  ;;  %16781 = vmatmul.mubr.msk.f32.vlgmr.msra.gmra.mxu0 %vm137_vm2, %v19460_v16 }
0x4afb   : > { %16790 = vmatprep.mubr.msk.f32.mxu0 %vm17054_vm9, %v17053_v10 }
0x4bb1   : > { %v13336_v49 = vpop.f32.mrf.mxu1  ;;  %v13407_v20 = vpop.f32.mrf.mxu0 }
0x4bb2   : > { %v13340_v11 = vmul.f32 %v13336_v49, %v17409_v63  ;;  %v13411_v25 = vmul.f32 %v13407_v20, %v17411_v0  ;;  %v13883_v49 = vrot.slane %v13878_v61, %v17318_v40 }
0x4bb3   : > { %v16747_v8 = vpop.f32.mrf.mxu1  ;;  %v16758_v19 = vpop.f32.mrf.mxu0 }
0x4bb4   : > { %v13412_v47 = vadd.f32 %v13411_v25, %v13340_v11 }
0x4bb5   : > { %v13553_v9 = vpop.f32.mrf.mxu0 }
0x4bb6   : > { %v13413_v45 = vmul.f32 %v13412_v47, %v19361_v44  ;;  %v19473_v44 = vld [vmem:[#allocation2 + $0x48] sm:$0xff] }
0x4bb7   : > { %v16770_v2 = vpop.f32.mrf.mxu0 }
0x4bb8   : > { %16764 = vmatmul.mubr.msk.f32.vlgmr.msra.gmra.mxu1 %vm137_vm2, %v13413_v45 }
0x4bb9   : > { %16773 = vmatprep.mubr.msk.f32.mxu1 %vm17054_vm9, %v17053_v10 }
0x4bba   : > { %v13727_v37 = vpop.f32.mrf.mxu0 }
0x4bbc   : > { %v16782_v56 = vpop.f32.mrf.mxu0 }
0x4c78   : > { %v13483_v57 = vpop.f32.mrf.mxu1 }
0x4c79   : > { %v13554_v3 = vadd.f32 %v13553_v9, %v13483_v57 }
0x4c7a   : > { %v16765_v15 = vpop.f32.mrf.mxu1 }
0x4c7b   : > { %16772 = vmatpush3.msra.mxu1 %v13554_v3 }
0x4c7c   : > { %16774 = vmatmul.mubr.msk.f32.vlgmr.msra.gmra.mxu1 %vm331_vm7, %v19398_v4  ;;  %16783 = vmatprep.subr.mxu1 %v17053_v10  ;;  %v13646_v4 = vmul.f32 %v13645_v1, %v17271_v18 }
0x4c7d   : > { %16784 = vmatpush3.msk.msra.mxu1 %vm250_vm0, %v17209_v7  ;;  %16785 = vmatprep.mubr.msk.f32.mxu1 %vm17054_vm9, %v17053_v10 }
0x4c7e   : > { %16793 = vmatprep.subr.mxu1 %v17053_v10  ;;  %v13647_v30 = vadd.f32 %v13646_v4, %v17257_v14 }
0x4c80   : > { %16786 = vmatmul.mubr.msk.f32.vlgmr.msra.gmra.mxu1 %vm114_vm3, %v19473_v44  ;;  %v13649_v42 = vmul.f32 %v19490_v22, %v13647_v30 }
0x4c81   : > { %16795 = vmatprep.mubr.msk.f32.mxu1 %vm17054_vm9, %v17053_v10 }
0x4c82   : > { %v19497_v41 = vadd.f32 %v13654_v27, %v13649_v42  ;;  %v19705_v42 = vld [vmem:[#allocation9_spill] sm:$0xff] }
0x4d3c   : > { %v13623_v29 = vpop.f32.mrf.mxu1 }
0x4d3d   : > { %v19495_v39 = vadd.f32 %v13623_v29, %v12940_v24 }
0x4d3e   : > { %v16775_v36 = vpop.f32.mrf.mxu1 }
0x4d40   : > { %v13800_v46 = vpop.f32.mrf.mxu1 }
0x4d41   : > { %v13801_v32 = vadd.f32 %v13800_v46, %v13727_v37  ;;  %v19706_v46 = vld [vmem:[#allocation11_spill] sm:$0xff] }
0x4d42   : > { %v16787_v43 = vpop.f32.mrf.mxu1 }
0x4d43   : > { %16789 = vmatpush3.msra.mxu0 %v13801_v32  ;;  %v17055_v32 = vmov 0   ;;  %v13628_v43 = vmul.f32 %v19391_v58, %v19703_v55 }
0x4d44   : > { %16791 = vmatmul.mubr.msk.f32.vlgmr.msra.gmra.mxu0 %vm331_vm7, %v19497_v41  ;;  %16798 = vmatprep.subr.mxu0 %v17053_v10 }
0x4d45   : > { %16799 = vmatpush3.msra.mxu0 %v17293_v33  ;;  %16806 = vmatprep.mubr.msk.f32.mxu0 %vm17054_vm9, %v17053_v10  ;;  %v13633_v61 = vrot.slane %v13628_v43, %v17318_v40 }
0x4d46   : > { %16800 = vmatprep.subr.mxu0 %v17053_v10  ;;  %16968 = vset.pattern.permute.xlu0 %v17055_v32 }
0x4d47   : > { %16801 = vmatpush3.msra.mxu0 %v17300_v34 }
0x4d48   : > { %16802 = vmatprep.subr.mxu0 %v17053_v10 }
0x4d49   : > { %16803 = vmatpush3.msra.mxu0 %v17307_v35 }
0x4d4a   : > { %16804 = vmatprep.subr.mxu0 %v17053_v10 }
0x4d4b   : > { %16805 = vmatpush3.msra.mxu0 %v17358_v53 }
0x4d4c   : > { %16820 = vmatprep.subr.mxu0 %v17053_v10 }
0x4e04   : > { %v13873_v20 = vpop.f32.mrf.mxu0 }
0x4e05   : > { %v13877_v11 = vadd.f32 %v13873_v20, %v19417_v26 }
0x4e06   : > { %v16792_v25 = vpop.f32.mrf.mxu0 }
0x4e07   : > { %v13885_v8 = vadd.f32 %v13883_v49, %v13877_v11  ;;  %v13635_v49 = vadd.f32 %v13633_v61, %v19495_v39  ;;  %v14333_v39 = vld [vmem:[%s14332_s30] sm:$0xff] }
0x4e09   : > { %v15022_v19 = vmul.f32 -1.442695, %v13885_v8 }
0x4e0b   : > { %17005 = vpow2.f32 %v15022_v19 }
0x4e18   : > { %v17006_v47 = vpop.eup %17005 }
0x4e19   : > { %v13889_v9 = vadd.f32 1.0, %v17006_v47 }
0x4e1b   : > { %17007 = vrcp.f32 %v13889_v9 }
0x4e28   : > { %v17008_v45 = vpop.eup %17007 }
0x4e29   : > { %16794 = vmatpush3.msra.mxu1 %v17008_v45 }
0x4e2a   : > { %16796 = vmatmul.mubr.msk.f32.vlgmr.msra.gmra.mxu1 %vm331_vm7, %v17327_v48  ;;  %16809 = vmatprep.subr.mxu1 %v17053_v10 }
0x4e2b   : > { %16810 = vmatpush3.msra.mxu1 %v17332_v50  ;;  %16817 = vmatprep.mubr.msk.f32.mxu1 %vm17054_vm9, %v17053_v10 }
0x4e2c   : > { %16811 = vmatprep.subr.mxu1 %v17053_v10 }
0x4e2d   : > { %16812 = vmatpush3.msra.mxu1 %v17340_v51 }
0x4e2e   : > { %16813 = vmatprep.subr.mxu1 %v17053_v10 }
0x4e2f   : > { %16814 = vmatpush3.msra.mxu1 %v17349_v52 }
0x4e30   : > { %16815 = vmatprep.subr.mxu1 %v17053_v10 }
0x4e31   : > { %16816 = vmatpush3.msra.mxu1 %v17363_v54 }
0x4e32   : > { %16827 = vmatprep.subr.mxu1 %v17053_v10 }
0x4eea   : > { %v13958_v26 = vpop.f32.mrf.mxu1 }
0x4eeb   : > { %16807 = vmatmul.mubr.msk.f32.vlgmr.msra.gmra.mxu0 %vm484_vm8, %v13958_v26  ;;  %16818 = vmatmul.mubr.msk.f32.vlgmr.msra.gmra.mxu1 %vm484_vm8, %v13958_v26 }
0x4eec   : > { %v16797_v2 = vpop.f32.mrf.mxu1  ;;  %16828 = vmatpush3.msk.msra.mxu1 %vm250_vm0, %v19701_v59  ;;  %16829 = vmatprep.mubr.msk.f32.mxu1 %vm17054_vm9, %v17053_v10 }
0x4eed   : > { %16837 = vmatprep.subr.mxu1 %v17053_v10  ;;  %16821 = vmatpush3.msra.mxu0 %v17382_v60 }
0x4eee   : > { %16822 = vmatprep.subr.mxu0 %v17053_v10  ;;  %16824 = vmatprep.mubr.msk.f32.mxu0 %vm17054_vm9, %v17053_v10 }
0x4eef   : > { %16830 = vmatmul.mubr.msk.f32.vlgmr.msra.gmra.mxu1 %vm114_vm3, %v19473_v44  ;;  %16823 = vmatpush3.msra.mxu0 %v19702_v62 }
0x4ef0   : > { %16838 = vmatpush3.msra.mxu1 %v17008_v45  ;;  %16839 = vmatprep.mubr.msk.f32.mxu1 %vm17054_vm9, %v17053_v10 }
0x4ef1   : > { %16832 = vmatprep.subr.mxu0 %v17053_v10  ;;  %16853 = vmatprep.subr.mxu1 %v17053_v10 }
0x4ef3   : > { %16840 = vmatmul.mubr.msk.f32.vlgmr.msra.gmra.mxu1 %vm331_vm7, %v18485_v21 }
0x4ef4   : > { %16854 = vmatpush3.msra.mxu1 %v17332_v50  ;;  %16861 = vmatprep.mubr.msk.f32.mxu1 %vm17054_vm9, %v17053_v10 }
0x4ef5   : > { %16855 = vmatprep.subr.mxu1 %v17053_v10 }
0x4ef6   : > { %16856 = vmatpush3.msra.mxu1 %v17340_v51 }
0x4ef7   : > { %16857 = vmatprep.subr.mxu1 %v17053_v10 }
0x4ef8   : > { %16858 = vmatpush3.msra.mxu1 %v17349_v52 }
0x4ef9   : > { %16859 = vmatprep.subr.mxu1 %v17053_v10 }
0x4efa   : > { %16860 = vmatpush3.msra.mxu1 %v17363_v54 }
0x4fab   : > { %v14031_v57 = vpop.f32.mrf.mxu0  ;;  %v14102_v3 = vpop.f32.mrf.mxu1 }
0x4fac   : > { %v14035_v15 = vmul.f32 %v14031_v57, %v17409_v63  ;;  %v14106_v44 = vmul.f32 %v14102_v3, %v17411_v0 }
0x4fad   : > { %v16808_v37 = vpop.f32.mrf.mxu0  ;;  %v16819_v56 = vpop.f32.mrf.mxu1 }
0x4fae   : > { %v14107_v1 = vadd.f32 %v14106_v44, %v14035_v15 }
0x4faf   : > { %v14248_v31 = vpop.f32.mrf.mxu1 }
0x4fb0   : > { %v14108_v4 = vmul.f32 %v14107_v1, %v19460_v16  ;;  %v19704_v16 = vld [vmem:[#allocation10_spill] sm:$0xff] }
0x4fb1   : > { %v16831_v28 = vpop.f32.mrf.mxu1 }
0x4fb2   : > { %16825 = vmatmul.mubr.msk.f32.vlgmr.msra.gmra.mxu0 %vm137_vm2, %v14108_v4 }
0x4fb3   : > { %16834 = vmatprep.mubr.msk.f32.mxu0 %vm17054_vm9, %v17053_v10  ;;  %v14400_v30 = vpop.f32.mrf.mxu1 }
0x4fb4   : > { %16862 = vmatmul.mubr.msk.f32.vlgmr.msra.gmra.mxu1 %vm484_vm8, %v14400_v30 }
0x4fb5   : > { %v16841_v13 = vpop.f32.mrf.mxu1 }
0x5072   : > { %v14178_v23 = vpop.f32.mrf.mxu0 }
0x5073   : > { %v14249_v24 = vadd.f32 %v14248_v31, %v14178_v23 }
0x5074   : > { %v16826_v29 = vpop.f32.mrf.mxu0  ;;  %v14544_v27 = vpop.f32.mrf.mxu1 }
0x5075   : > { %16833 = vmatpush3.msra.mxu0 %v14249_v24  ;;  %v14548_v47 = vmul.f32 %v14544_v27, %v17411_v0 }
0x5076   : > { %16835 = vmatmul.mubr.msk.f32.vlgmr.msra.gmra.mxu0 %vm331_vm7, %v19497_v41  ;;  %16842 = vmatprep.subr.mxu0 %v17053_v10  ;;  %v16863_v36 = vpop.f32.mrf.mxu1  ;;  %v14559_v41 = vrot.slane %v19706_v46, %v17318_v40 }
0x5077   : > { %16843 = vmatpush3.msra.mxu0 %v17293_v33  ;;  %16850 = vmatprep.mubr.msk.f32.mxu0 %vm17054_vm9, %v17053_v10 }
0x5078   : > { %16844 = vmatprep.subr.mxu0 %v17053_v10  ;;  %14561 = vperm.xlu0 %16968, %v14559_v41  }
0x5079   : > { %16845 = vmatpush3.msra.mxu0 %v17300_v34 }
0x507a   : > { %16846 = vmatprep.subr.mxu0 %v17053_v10 }
0x507b   : > { %16847 = vmatpush3.msra.mxu0 %v17307_v35 }
0x507c   : > { %16848 = vmatprep.subr.mxu0 %v17053_v10 }
0x507d   : > { %16849 = vmatpush3.msra.mxu0 %v17358_v53 }
0x507e   : > { %16851 = vmatmul.mubr.msk.f32.vlgmr.msra.gmra.mxu0 %vm484_vm8, %v14400_v30  ;;  %16864 = vmatprep.subr.mxu0 %v17053_v10 }
0x507f   : > { %16865 = vmatpush3.msra.mxu0 %v19704_v16  ;;  %16868 = vmatprep.mubr.msk.f32.mxu0 %vm17054_vm9, %v17053_v10 }
0x5080   : > { %16866 = vmatprep.subr.mxu0 %v17053_v10  ;;  %v14323_v10 = vmul.f32 %v19490_v22, %v19703_v55 }
0x5081   : > { %16867 = vmatpush3.msra.mxu0 %v19705_v42 }
0x5082   : > { %v14328_v20 = vrot.slane %v14323_v10, %v17318_v40 }
0x50f3   : > { %v14562_v15 = vpop.permute.xlu0 %14561 }
0x5136   : > { %v14318_v11 = vpop.f32.mrf.mxu0 }
0x5137   : > { %v14322_v25 = vadd.f32 %v14318_v11, %v13635_v49 }
0x5138   : > { %v16836_v8 = vpop.f32.mrf.mxu0 }
0x5139   : > { %v14330_v19 = vadd.f32 %v14328_v20, %v14322_v25 }
0x513b   : > { %17009 = vtanh.f32 %v14330_v19 }
0x513e   : > { %v14473_v9 = vpop.f32.mrf.mxu0 }
0x513f   : > { %v14477_v58 = vmul.f32 %v14473_v9, %v17409_v63 }
0x5140   : > { %v16852_v45 = vpop.f32.mrf.mxu0 }
0x5141   : > { %v14549_v26 = vadd.f32 %v14548_v47, %v14477_v58 }
0x5143   : > { %v14552_v22 = vsub.f32 1.0, %v14549_v26  ;;  %v14551_v57 = vmul.f32 %v14549_v26, %v14333_v39 }
0x5148   : > { %v17010_v2 = vpop.eup %17009 }
0x5149   : > { %v14553_v3 = vmul.f32 %v17010_v2, %v14552_v22 }
0x514b   : > { %v14554_v31 = vadd.f32 %v14553_v3, %v14551_v57  }
0x514d   : > { %15038 = vst.msk [vmem:[%s14770_s25 + $0x10] sm:$0xff] %vm137_vm2, %v14554_v31  ;;  %16869 = vmatmul.mubr.msk.f32.vlgmr.msra.gmra.mxu0 %vm137_vm2, %v14554_v31 }
0x520c   :  { %7378 = sbr.rel (!%p7375_p13) target bundleno = 10417 (0x28b1), region = 148 }
0x520d   : > { %v14633_v44 = vpop.f32.mrf.mxu0 }
0x520e   : > { %v14634_v37 = vadd.f32 %v14633_v44, %v14562_v15 }
0x520f   : > { %v16870_v56 = vpop.f32.mrf.mxu0 }
0x5210   : > { %15036 = vst.msk [vmem:[%s14766_s19 + $0x10] sm:$0xff] %vm114_vm3, %v14634_v37 }
0x5211 PF:  { %14642 = vst.msk [vmem:[%s19659_s21] sm:$0xff] %vm331_vm7, %v17048_v31  ;;  %v19708_v1 = vmov 0.0   ;;  %v19709_v4 = vld [vmem:[#allocation11_spill] sm:$0xff]  ;;  %v19710_v30 = vld [vmem:[#allocation10_spill] sm:$0xff]  ;;  %v19711_v5 = vmov 0   ;;  %v19712_v6 = vld [vmem:[#allocation9_spill] sm:$0xff]  ;;  %v17048_v31 = vphi %v7364_v31, %v14554_v31  }
0x5212   :  { %16871 = vmatprep.subr.mxu0 %v19708_v1  ;;  %16875 = vmatprep.mubr.msk.f32.mxu0 %vm17051_vm1, %v19708_v1  ;;  %v14652_v28 = vrot.slane %v19709_v4, %v17318_v40  ;;  %s17056_s3 = smov 120   ;;  %s17057_s5 = smov [#allocation6]  }
0x5213   :  { %16872 = vmatpush3.msra.mxu0 %v19710_v30  ;;  %17011 = vset.pattern.permute.xlu0 %v19711_v5  ;;  %s14736_s2 = sshll.u32 %s17057_s5, 4  ;;  %s14737_s2 = int_to_ptr.vmem [resolvable:$true] %s14736_s2 }
0x5214   :  { %16873 = vmatprep.subr.mxu0 %v19708_v1  ;;  %14654 = vperm.xlu0 %17011, %v14652_v28   ;;  %s17012_s17 = scalar_lea.vmem %s14737_s2, 128  ;;  %p17017_p1 = scmp.lt.s32.totalorder %s14737_s2, %s14737_s2 }
0x5215   :  { %16874 = vmatpush3.msra.mxu0 %v19712_v6  ;;  %p17013_p0 = scmp.ne.s32.totalorder %s14737_s2, %s17012_s17  ;;  %p17018_p2 = scmp.lt.s32.totalorder %s17012_s17, %s17012_s17 }
0x5216   :  { %16876 = vmatmul.mubr.msk.f32.vlgmr.msra.gmra.mxu0 %vm137_vm2, %v17048_v31 }
0x5217   :  { %p17019_p3 = por %p17018_p2, %p17017_p1 }
0x5218   :  { %14644 = vrot.lane.b32.xlu0 %v17048_v31, %s17056_s3 }
0x5219   :  { %p17020_p4 = pnand %p17019_p3, %p17013_p0 }
0x521b   :  { %17023 = shalt.err (!%p17020_p4)
}
0x521c   :  { %14739 = dma.vmem_to_hbm [thread:$0]  %s14737_s2, 128, %s19658_s20, [#allocation7]  }
0x521d   :  { %s19713_s7 = sld [smem:[#allocation22_spill]] }
0x528f   :  { %v14655_v7 = vpop.permute.xlu0 %14654 }
0x5293   :  { %v14645_v12 = vpop.permute.xlu0 %14644 }
0x5294   :  { %14647 = vst.msk [vmem:[%s19659_s21 + $0x8] sm:$0xff] %vm331_vm7, %v14645_v12 }
0x52d6   :  { %v14725_v14 = vpop.f32.mrf.mxu0 }
0x52d7   :  { %v14726_v17 = vadd.f32 %v14725_v14, %v14655_v7 }
0x52d8   :  { %v16877_v18 = vpop.f32.mrf.mxu0 }
0x52d9   :  { %14729 = vst.msk [vmem:[%s19713_s7] sm:$0xff] %vm114_vm3, %v14726_v17 }
0x52da   :  { %17040 = dma.done.wait [#allocation7], 128  }
0x52db   :  { %17041 = vsyncadd [#allocation7], 4294967168 }
0x52dc   :  { %14751 = vsyncpa [#allocation7], 1 }

</bundles_post_ra>
